<compile_context>
chip_gen: v6e
topology: v6e:2x2x1
jax: 0.10.0
libtpu: 0.0.40
codegen_flags: <defaults>
</compile_context>

<pallas_src>
import functools
import math

import jax
import jax.numpy as jnp
import numpy as np
from jax import lax
from jax.experimental import pallas as pl
from jax.experimental.pallas import tpu as pltpu

_NEG = -1e30  # stands in for -inf when padding the max-pool windows


# ---------------------------------------------------------------------------
# In-kernel helpers (activations are (C, H*W) tiles; spatial index = y*W + x).
# ---------------------------------------------------------------------------
def _pad_lanes(a, m, fill):
    """(C, N) -> (C, N + 2m) with `fill` on both lane ends."""
    c = a.shape[0]
    pad = jnp.full((c, m), fill, a.dtype)
    return jnp.concatenate([pad, a, pad], axis=1)


def _spatial_consts(h, w):
    """Per-spatial-size constants: bias row-block and left/right column masks."""
    n = h * w
    ridx = lax.broadcasted_iota(jnp.int32, (1, n), 1)
    xcol = jnp.bitwise_and(ridx, w - 1)           # w is a power of two
    mask_l = xcol > 0                             # source column x-1 exists
    mask_r = xcol < (w - 1)                       # source column x+1 exists
    sub = lax.broadcasted_iota(jnp.int32, (8, n), 0)
    ones8 = (sub == 0).astype(jnp.float32)        # row 0 == 1 -> bias fold
    return ones8, mask_l, mask_r


def _conv3x3(a, wmat, h, w, ones8, mask_l, mask_r):
    """3x3 SAME conv + bias as a single matmul.

    a    : (Cin, H*W)
    wmat : (Cout, 8 + 9*Cin)  -- column 0 holds the bias, cols 1..7 are zero.
    """
    n = h * w
    m = w + 1                                     # max |tap shift|
    apad = _pad_lanes(a, m, 0.0)                  # zero padding == conv padding
    pieces = [ones8]
    for k in range(9):
        dy, dx = k // 3, k % 3
        s = (dy - 1) * w + (dx - 1)
        p = apad[:, m + s:m + s + n]              # shifted tap, zero-filled
        if dx == 0:
            p = jnp.where(mask_l, p, 0.0)         # kill row-wrap at x == 0
        elif dx == 2:
            p = jnp.where(mask_r, p, 0.0)         # kill row-wrap at x == W-1
        pieces.append(p)
    patches = jnp.concatenate(pieces, axis=0)     # (8 + 9*Cin, H*W)
    return jnp.dot(wmat, patches, preferred_element_type=jnp.float32)


def _maxpool3x3s2(a, h, w, mask_l, mask_r, sel):
    """MaxPool2d(kernel=3, stride=2, padding=1) on a (C, H*W) tile."""
    n = h * w
    a1 = _pad_lanes(a, 1, _NEG)
    left = jnp.where(mask_l, a1[:, 0:n], _NEG)
    right = jnp.where(mask_r, a1[:, 2:2 + n], _NEG)
    m1 = jnp.maximum(a, jnp.maximum(left, right))            # 1x3 window max
    a2 = _pad_lanes(m1, w, _NEG)
    m2 = jnp.maximum(m1, jnp.maximum(a2[:, 0:n], a2[:, 2 * w:2 * w + n]))
    # stride-2 downsample via a tiny one-hot selection matmul: (C,N)@(N,N/4)
    return jnp.dot(m2, sel, preferred_element_type=jnp.float32)


def _residual(x, w1, w2, h, w, ones8, mask_l, mask_r):
    """ImpalaResidual: conv2(relu(conv1(relu(x)))) + x."""
    out = jnp.maximum(x, 0.0)
    out = _conv3x3(out, w1, h, w, ones8, mask_l, mask_r)
    out = jnp.maximum(out, 0.0)
    out = _conv3x3(out, w2, h, w, ones8, mask_l, mask_r)
    return out + x


def _stage(a, wmain, wres_ref, sel, h, w):
    """conv3x3 -> maxpool(3,2,1) -> ImpalaResidual -> ImpalaResidual."""
    ones8, mask_l, mask_r = _spatial_consts(h, w)
    a = _conv3x3(a, wmain, h, w, ones8, mask_l, mask_r)
    a = _maxpool3x3s2(a, h, w, mask_l, mask_r, sel)
    ho, wo = h // 2, w // 2
    ones8o, mask_lo, mask_ro = _spatial_consts(ho, wo)
    a = _residual(a, wres_ref[0], wres_ref[1], ho, wo, ones8o, mask_lo, mask_ro)
    a = _residual(a, wres_ref[2], wres_ref[3], ho, wo, ones8o, mask_lo, mask_ro)
    return a


def _impala_cnn_kernel(image_size,
                       x_ref,
                       w1m_ref, w1r_ref, s1_ref,
                       w2m_ref, w2r_ref, s2_ref,
                       w3m_ref, w3r_ref, s3_ref,
                       hw_ref, hb_ref,
                       o_ref,
                       flat_scr):
    h = image_size
    a = x_ref[0]                                              # (8, H*W)
    a = _stage(a, w1m_ref[...], w1r_ref, s1_ref[...], h, h)
    h //= 2
    a = _stage(a, w2m_ref[...], w2r_ref, s2_ref[...], h, h)
    h //= 2
    a = _stage(a, w3m_ref[...], w3r_ref, s3_ref[...], h, h)   # (32, (H/8)^2)

    # Head: relu -> flatten in PyTorch (C, H, W) order -> linear -> relu.
    a = jnp.maximum(a, 0.0)
    chans, nl = a.shape
    for c in range(chans):
        flat_scr[0:1, c * nl:(c + 1) * nl] = a[c:c + 1, :]
    flat = flat_scr[...]                                      # (1, feat), lane-dense
    out = jnp.dot(flat, hw_ref[...],
                  preferred_element_type=jnp.float32) + hb_ref[...]
    o_ref[0] = jnp.maximum(out, 0.0)                          # (1, 256) store


# ---------------------------------------------------------------------------
# Host-side weight packing.
# ---------------------------------------------------------------------------
def _prep_conv(w_hwio, bias, cin_pad):
    """HWIO (3,3,Cin,Cout) + (Cout,) -> (Cout, 8 + 9*cin_pad) with bias in col 0."""
    kh, kw, cin, cout = w_hwio.shape
    wp = jnp.zeros((kh, kw, cin_pad, cout), jnp.float32)
    wp = wp.at[:, :, :cin, :].set(w_hwio.astype(jnp.float32))
    wk = jnp.transpose(wp.reshape(9, cin_pad, cout), (2, 0, 1))
    wk = wk.reshape(cout, 9 * cin_pad)
    bcol = jnp.zeros((cout, 8), jnp.float32).at[:, 0].set(bias.astype(jnp.float32))
    return jnp.concatenate([bcol, wk], axis=1)


def _pool_select(h, w):
    """One-hot (H*W, H*W/4) matrix selecting the stride-2 window centers."""
    ho, wo = h // 2, w // 2
    s = np.zeros((h * w, ho * wo), np.float32)
    for i in range(ho):
        for j in range(wo):
            s[(2 * i) * w + 2 * j, i * wo + j] = 1.0
    return jnp.asarray(s)


def impala_cnn_forward(x_nhwc, params, *, image_size):
    """ImpalaCNN forward. x_nhwc: (B, H, W, C) float32 -> (B, 256) float32."""
    assert image_size >= 16 and (image_size & (image_size - 1)) == 0, (
        "this kernel assumes power-of-two image sizes >= 16")
    b, h, w, cin = x_nhwc.shape
    assert h == image_size and w == image_size
    cin_pad = 8  # pad input channels so all im2col pieces stay 8-row aligned

    # NHWC -> per-image (C, H*W) flat layout used inside the kernel.
    x = jnp.transpose(x_nhwc, (0, 3, 1, 2)).reshape(b, cin, h * w)
    x = jnp.pad(x, ((0, 0), (0, cin_pad - cin), (0, 0))).astype(jnp.float32)

    operands = [x]
    in_specs = [pl.BlockSpec((1, cin_pad, h * w), lambda bb: (bb, 0, 0))]

    hh = image_size
    prev_pad = cin_pad
    for st in params["stages"]:
        cout = st["conv_w"].shape[-1]
        wmain = _prep_conv(st["conv_w"], st["conv_b"], prev_pad)
        wres = jnp.stack(
            [_prep_conv(st["res"][i][wk], st["res"][i][bk], cout)
             for i in range(2) for (wk, bk) in (("w1", "b1"), ("w2", "b2"))],
            axis=0)
        sel = _pool_select(hh, hh)
        operands += [wmain, wres, sel]
        in_specs += [
            pl.BlockSpec(wmain.shape, lambda bb: (0, 0)),
            pl.BlockSpec(wres.shape, lambda bb: (0, 0, 0)),
            pl.BlockSpec(sel.shape, lambda bb: (0, 0)),
        ]
        hh //= 2
        prev_pad = cout

    feat = hh * hh * prev_pad
    assert feat == params["linear_w"].shape[1]
    hw = jnp.transpose(params["linear_w"]).astype(jnp.float32)   # (feat, 256)
    hb = params["linear_b"].reshape(1, -1).astype(jnp.float32)   # (1, 256)
    operands += [hw, hb]
    in_specs += [pl.BlockSpec(hw.shape, lambda bb: (0, 0)),
                 pl.BlockSpec(hb.shape, lambda bb: (0, 0))]

    n_out = params["linear_w"].shape[0]
    kernel = functools.partial(_impala_cnn_kernel, image_size)
    out = pl.pallas_call(
        kernel,
        out_shape=jax.ShapeDtypeStruct((b, 1, n_out), jnp.float32),
        grid_spec=pltpu.PrefetchScalarGridSpec(
            num_scalar_prefetch=0,
            grid=(b,),
            in_specs=in_specs,
            out_specs=pl.BlockSpec((1, 1, n_out), lambda bb: (bb, 0, 0)),
            scratch_shapes=[pltpu.VMEM((1, feat), jnp.float32)],
        ),
        compiler_params=pltpu.CompilerParams(
            dimension_semantics=("parallel",)),
    )(*operands)
    return out.reshape(b, n_out)


# ---------------------------------------------------------------------------
# Pure-JAX reference matching the PyTorch module, and parameter init.
# ---------------------------------------------------------------------------
def _reference(x_nhwc, params):
    x = jnp.transpose(x_nhwc, (0, 3, 1, 2))        # NHWC -> NCHW, like PyTorch
    dn = ("NCHW", "HWIO", "NCHW")
    hp = lax.Precision.HIGHEST
    for st in params["stages"]:
        x = lax.conv_general_dilated(x, st["conv_w"], (1, 1), "SAME",
                                     dimension_numbers=dn, precision=hp)
        x = x + st["conv_b"][None, :, None, None]
        x = lax.reduce_window(x, -jnp.inf, lax.max, (1, 1, 3, 3), (1, 1, 2, 2),
                              ((0, 0), (0, 0), (1, 1), (1, 1)))
        for r in st["res"]:
            out = jnp.maximum(x, 0.0)
            out = lax.conv_general_dilated(out, r["w1"], (1, 1), "SAME",
                                           dimension_numbers=dn, precision=hp)
            out = out + r["b1"][None, :, None, None]
            out = jnp.maximum(out, 0.0)
            out = lax.conv_general_dilated(out, r["w2"], (1, 1), "SAME",
                                           dimension_numbers=dn, precision=hp)
            out = out + r["b2"][None, :, None, None]
            x = out + x
    x = jnp.maximum(x, 0.0)
    x = x.reshape(x.shape[0], -1)                  # (C, H, W) flatten order
    x = jnp.dot(x, params["linear_w"].T, precision=hp) + params["linear_b"]
    return jnp.maximum(x, 0.0)


def _init_conv(key, cin, cout):
    kw_, kb_ = jax.random.split(key)
    bound = 1.0 / np.sqrt(cin * 9)
    w = jax.random.uniform(kw_, (3, 3, cin, cout), jnp.float32, -bound, bound)
    bias = jax.random.uniform(kb_, (cout,), jnp.float32, -bound, bound)
    return w, bias


def init_impala_cnn_params(key, image_size, depth_in):
    stages = []
    cin = depth_in
    for cout in (16, 32, 32):
        key, k_main, k_r1a, k_r1b, k_r2a, k_r2b = jax.random.split(key, 6)
        wm, bm = _init_conv(k_main, cin, cout)
        res = []
        for ka, kb in ((k_r1a, k_r1b), (k_r2a, k_r2b)):
            w1, b1 = _init_conv(ka, cout, cout)
            w2, b2 = _init_conv(kb, cout, cout)
            res.append({"w1": w1, "b1": b1, "w2": w2, "b2": b2})
        stages.append({"conv_w": wm, "conv_b": bm, "res": res})
        cin = cout
    feat = math.ceil(image_size / 8) ** 2 * cin
    key, k_lw, k_lb = jax.random.split(key, 3)
    bound = 1.0 / np.sqrt(feat)
    lw = jax.random.uniform(k_lw, (256, feat), jnp.float32, -bound, bound)
    lb = jax.random.uniform(k_lb, (256,), jnp.float32, -bound, bound)
    return {"stages": stages, "linear_w": lw, "linear_b": lb}


if __name__ == "__main__":
    B, IMG, CIN = 2, 16, 4
    key = jax.random.PRNGKey(0)
    key, kx = jax.random.split(key)
    params = init_impala_cnn_params(key, IMG, CIN)
    x = jax.random.normal(kx, (B, IMG, IMG, CIN), jnp.float32)

    out = impala_cnn_forward(x, params, image_size=IMG)
    out = jax.block_until_ready(out)

    ref = jax.block_until_ready(_reference(x, params))
    assert out.shape == (B, 256)
    np.testing.assert_allclose(np.asarray(out), np.asarray(ref),
                               rtol=2e-4, atol=2e-4)
    print("KERNEL_OK")
</pallas_src>

<mosaic_0001>
module attributes {stable_mosaic.version = 11 : i64} {
  func.func @_impala_cnn_kernel(%arg0: i32, %arg1: memref<1x8x256xf32, #tpu.memory_space<vmem>>, %arg2: memref<16x80xf32, #tpu.memory_space<vmem>>, %arg3: memref<4x16x152xf32, #tpu.memory_space<vmem>>, %arg4: memref<256x64xf32, #tpu.memory_space<vmem>>, %arg5: memref<32x152xf32, #tpu.memory_space<vmem>>, %arg6: memref<4x32x296xf32, #tpu.memory_space<vmem>>, %arg7: memref<64x16xf32, #tpu.memory_space<vmem>>, %arg8: memref<32x296xf32, #tpu.memory_space<vmem>>, %arg9: memref<4x32x296xf32, #tpu.memory_space<vmem>>, %arg10: memref<16x4xf32, #tpu.memory_space<vmem>>, %arg11: memref<128x256xf32, #tpu.memory_space<vmem>>, %arg12: memref<1x256xf32, #tpu.memory_space<vmem>>, %arg13: memref<1x1x256xf32, #tpu.memory_space<vmem>>, %arg14: memref<1x128xf32, #tpu.memory_space<vmem>>) attributes {dimension_semantics = [#tpu.dimension_semantics<parallel>], iteration_bounds = array<i64: 2>, scalar_prefetch = 0 : i64, scratch_operands = 1 : i64, tpu.core_type = #tpu.core_type<tc>, window_params = [{transform_indices = @transform_0, window_bounds = array<i64: 1, 8, 256>}, {pipeline_mode = #tpu.pipeline_mode<synchronous>, transform_indices = @transform_1, window_bounds = array<i64: 16, 80>}, {pipeline_mode = #tpu.pipeline_mode<synchronous>, transform_indices = @transform_2, window_bounds = array<i64: 4, 16, 152>}, {pipeline_mode = #tpu.pipeline_mode<synchronous>, transform_indices = @transform_3, window_bounds = array<i64: 256, 64>}, {pipeline_mode = #tpu.pipeline_mode<synchronous>, transform_indices = @transform_4, window_bounds = array<i64: 32, 152>}, {pipeline_mode = #tpu.pipeline_mode<synchronous>, transform_indices = @transform_5, window_bounds = array<i64: 4, 32, 296>}, {pipeline_mode = #tpu.pipeline_mode<synchronous>, transform_indices = @transform_6, window_bounds = array<i64: 64, 16>}, {pipeline_mode = #tpu.pipeline_mode<synchronous>, transform_indices = @transform_7, window_bounds = array<i64: 32, 296>}, {pipeline_mode = #tpu.pipeline_mode<synchronous>, transform_indices = @transform_8, window_bounds = array<i64: 4, 32, 296>}, {pipeline_mode = #tpu.pipeline_mode<synchronous>, transform_indices = @transform_9, window_bounds = array<i64: 16, 4>}, {pipeline_mode = #tpu.pipeline_mode<synchronous>, transform_indices = @transform_10, window_bounds = array<i64: 128, 256>}, {pipeline_mode = #tpu.pipeline_mode<synchronous>, transform_indices = @transform_11, window_bounds = array<i64: 1, 256>}, {transform_indices = @transform_12, window_bounds = array<i64: 1, 1, 256>}]} {
    %c0 = arith.constant 0 : index
    %c0_0 = arith.constant 0 : index
    %c0_1 = arith.constant 0 : index
    %0 = vector.load %arg1[%c0, %c0_0, %c0_1] : memref<1x8x256xf32, #tpu.memory_space<vmem>>, vector<1x8x256xf32>
    %1 = vector.shape_cast %0 : vector<1x8x256xf32> to vector<8x256xf32>
    %c0_2 = arith.constant 0 : index
    %c0_3 = arith.constant 0 : index
    %2 = vector.load %arg2[%c0_2, %c0_3] : memref<16x80xf32, #tpu.memory_space<vmem>>, vector<16x80xf32>
    %c0_4 = arith.constant 0 : index
    %c0_5 = arith.constant 0 : index
    %3 = vector.load %arg4[%c0_4, %c0_5] : memref<256x64xf32, #tpu.memory_space<vmem>>, vector<256x64xf32>
    %4 = tpu.iota {dimensions = array<i32: 1>} : vector<1x256xi32>
    %c15_i32 = arith.constant 15 : i32
    %5 = vector.broadcast %c15_i32 : i32 to vector<1x256xi32>
    %6 = arith.andi %4, %5 : vector<1x256xi32>
    %c0_i32 = arith.constant 0 : i32
    %7 = vector.broadcast %c0_i32 : i32 to vector<1x256xi32>
    %8 = arith.cmpi sgt, %6, %7 : vector<1x256xi32>
    %c15_i32_6 = arith.constant 15 : i32
    %9 = vector.broadcast %c15_i32_6 : i32 to vector<1x256xi32>
    %10 = arith.cmpi slt, %6, %9 : vector<1x256xi32>
    %11 = tpu.iota {dimensions = array<i32: 0>} : vector<8x256xi32>
    %c0_i32_7 = arith.constant 0 : i32
    %12 = vector.broadcast %c0_i32_7 : i32 to vector<8x256xi32>
    %13 = arith.cmpi eq, %11, %12 : vector<8x256xi32>
    %14 = arith.extui %13 : vector<8x256xi1> to vector<8x256xi32>
    %15 = arith.sitofp %14 : vector<8x256xi32> to vector<8x256xf32>
    %cst = arith.constant 0.000000e+00 : f32
    %16 = vector.broadcast %cst : f32 to vector<8x17xf32>
    %17 = tpu.concatenate %16, %1, %16 in 1 : vector<8x17xf32>, vector<8x256xf32>, vector<8x17xf32> -> vector<8x290xf32>
    %18 = vector.extract_strided_slice %17 {offsets = [0, 0], sizes = [8, 256], strides = [1, 1]} : vector<8x290xf32> to vector<8x256xf32>
    %cst_8 = arith.constant 0.000000e+00 : f32
    %19 = vector.shape_cast %8 : vector<1x256xi1> to vector<1x256xi1>
    %20 = vector.broadcast %19 : vector<1x256xi1> to vector<8x256xi1>
    %21 = vector.broadcast %cst_8 : f32 to vector<8x256xf32>
    %22 = arith.select %20, %18, %21 : vector<8x256xi1>, vector<8x256xf32>
    %23 = vector.extract_strided_slice %17 {offsets = [0, 1], sizes = [8, 256], strides = [1, 1]} : vector<8x290xf32> to vector<8x256xf32>
    %24 = vector.extract_strided_slice %17 {offsets = [0, 2], sizes = [8, 256], strides = [1, 1]} : vector<8x290xf32> to vector<8x256xf32>
    %cst_9 = arith.constant 0.000000e+00 : f32
    %25 = vector.shape_cast %10 : vector<1x256xi1> to vector<1x256xi1>
    %26 = vector.broadcast %25 : vector<1x256xi1> to vector<8x256xi1>
    %27 = vector.broadcast %cst_9 : f32 to vector<8x256xf32>
    %28 = arith.select %26, %24, %27 : vector<8x256xi1>, vector<8x256xf32>
    %29 = vector.extract_strided_slice %17 {offsets = [0, 16], sizes = [8, 256], strides = [1, 1]} : vector<8x290xf32> to vector<8x256xf32>
    %cst_10 = arith.constant 0.000000e+00 : f32
    %30 = vector.shape_cast %8 : vector<1x256xi1> to vector<1x256xi1>
    %31 = vector.broadcast %30 : vector<1x256xi1> to vector<8x256xi1>
    %32 = vector.broadcast %cst_10 : f32 to vector<8x256xf32>
    %33 = arith.select %31, %29, %32 : vector<8x256xi1>, vector<8x256xf32>
    %34 = vector.extract_strided_slice %17 {offsets = [0, 17], sizes = [8, 256], strides = [1, 1]} : vector<8x290xf32> to vector<8x256xf32>
    %35 = vector.extract_strided_slice %17 {offsets = [0, 18], sizes = [8, 256], strides = [1, 1]} : vector<8x290xf32> to vector<8x256xf32>
    %cst_11 = arith.constant 0.000000e+00 : f32
    %36 = vector.shape_cast %10 : vector<1x256xi1> to vector<1x256xi1>
    %37 = vector.broadcast %36 : vector<1x256xi1> to vector<8x256xi1>
    %38 = vector.broadcast %cst_11 : f32 to vector<8x256xf32>
    %39 = arith.select %37, %35, %38 : vector<8x256xi1>, vector<8x256xf32>
    %40 = vector.extract_strided_slice %17 {offsets = [0, 32], sizes = [8, 256], strides = [1, 1]} : vector<8x290xf32> to vector<8x256xf32>
    %cst_12 = arith.constant 0.000000e+00 : f32
    %41 = vector.shape_cast %8 : vector<1x256xi1> to vector<1x256xi1>
    %42 = vector.broadcast %41 : vector<1x256xi1> to vector<8x256xi1>
    %43 = vector.broadcast %cst_12 : f32 to vector<8x256xf32>
    %44 = arith.select %42, %40, %43 : vector<8x256xi1>, vector<8x256xf32>
    %45 = vector.extract_strided_slice %17 {offsets = [0, 33], sizes = [8, 256], strides = [1, 1]} : vector<8x290xf32> to vector<8x256xf32>
    %46 = vector.extract_strided_slice %17 {offsets = [0, 34], sizes = [8, 256], strides = [1, 1]} : vector<8x290xf32> to vector<8x256xf32>
    %cst_13 = arith.constant 0.000000e+00 : f32
    %47 = vector.shape_cast %10 : vector<1x256xi1> to vector<1x256xi1>
    %48 = vector.broadcast %47 : vector<1x256xi1> to vector<8x256xi1>
    %49 = vector.broadcast %cst_13 : f32 to vector<8x256xf32>
    %50 = arith.select %48, %46, %49 : vector<8x256xi1>, vector<8x256xf32>
    %51 = tpu.concatenate %15, %22, %23, %28, %33, %34, %39, %44, %45, %50 in 0 : vector<8x256xf32>, vector<8x256xf32>, vector<8x256xf32>, vector<8x256xf32>, vector<8x256xf32>, vector<8x256xf32>, vector<8x256xf32>, vector<8x256xf32>, vector<8x256xf32>, vector<8x256xf32> -> vector<80x256xf32>
    %cst_14 = arith.constant dense<0.000000e+00> : vector<16x256xf32>
    %52 = tpu.matmul %2, %51, %cst_14 {dimension_numbers = #tpu.dot_dimension_numbers<[1], [0], [0], [1], [0, 0, 1, 1], [], []>} : vector<16x80xf32>, vector<80x256xf32>, vector<16x256xf32> -> vector<16x256xf32>
    %cst_15 = arith.constant -1.000000e+30 : f32
    %53 = vector.broadcast %cst_15 : f32 to vector<16x1xf32>
    %54 = tpu.concatenate %53, %52, %53 in 1 : vector<16x1xf32>, vector<16x256xf32>, vector<16x1xf32> -> vector<16x258xf32>
    %55 = vector.extract_strided_slice %54 {offsets = [0, 0], sizes = [16, 256], strides = [1, 1]} : vector<16x258xf32> to vector<16x256xf32>
    %cst_16 = arith.constant -1.000000e+30 : f32
    %56 = vector.shape_cast %8 : vector<1x256xi1> to vector<1x256xi1>
    %57 = vector.broadcast %56 : vector<1x256xi1> to vector<16x256xi1>
    %58 = vector.broadcast %cst_16 : f32 to vector<16x256xf32>
    %59 = arith.select %57, %55, %58 : vector<16x256xi1>, vector<16x256xf32>
    %60 = vector.extract_strided_slice %54 {offsets = [0, 2], sizes = [16, 256], strides = [1, 1]} : vector<16x258xf32> to vector<16x256xf32>
    %cst_17 = arith.constant -1.000000e+30 : f32
    %61 = vector.shape_cast %10 : vector<1x256xi1> to vector<1x256xi1>
    %62 = vector.broadcast %61 : vector<1x256xi1> to vector<16x256xi1>
    %63 = vector.broadcast %cst_17 : f32 to vector<16x256xf32>
    %64 = arith.select %62, %60, %63 : vector<16x256xi1>, vector<16x256xf32>
    %65 = arith.maximumf %59, %64 : vector<16x256xf32>
    %66 = arith.maximumf %52, %65 : vector<16x256xf32>
    %cst_18 = arith.constant -1.000000e+30 : f32
    %67 = vector.broadcast %cst_18 : f32 to vector<16x16xf32>
    %68 = tpu.concatenate %67, %66, %67 in 1 : vector<16x16xf32>, vector<16x256xf32>, vector<16x16xf32> -> vector<16x288xf32>
    %69 = vector.extract_strided_slice %68 {offsets = [0, 0], sizes = [16, 256], strides = [1, 1]} : vector<16x288xf32> to vector<16x256xf32>
    %70 = vector.extract_strided_slice %68 {offsets = [0, 32], sizes = [16, 256], strides = [1, 1]} : vector<16x288xf32> to vector<16x256xf32>
    %71 = arith.maximumf %69, %70 : vector<16x256xf32>
    %72 = arith.maximumf %66, %71 : vector<16x256xf32>
    %cst_19 = arith.constant dense<0.000000e+00> : vector<16x64xf32>
    %73 = tpu.matmul %72, %3, %cst_19 {dimension_numbers = #tpu.dot_dimension_numbers<[1], [0], [0], [1], [0, 0, 1, 1], [], []>} : vector<16x256xf32>, vector<256x64xf32>, vector<16x64xf32> -> vector<16x64xf32>
    %74 = tpu.iota {dimensions = array<i32: 1>} : vector<1x64xi32>
    %c7_i32 = arith.constant 7 : i32
    %75 = vector.broadcast %c7_i32 : i32 to vector<1x64xi32>
    %76 = arith.andi %74, %75 : vector<1x64xi32>
    %c0_i32_20 = arith.constant 0 : i32
    %77 = vector.broadcast %c0_i32_20 : i32 to vector<1x64xi32>
    %78 = arith.cmpi sgt, %76, %77 : vector<1x64xi32>
    %c7_i32_21 = arith.constant 7 : i32
    %79 = vector.broadcast %c7_i32_21 : i32 to vector<1x64xi32>
    %80 = arith.cmpi slt, %76, %79 : vector<1x64xi32>
    %81 = tpu.iota {dimensions = array<i32: 0>} : vector<8x64xi32>
    %c0_i32_22 = arith.constant 0 : i32
    %82 = vector.broadcast %c0_i32_22 : i32 to vector<8x64xi32>
    %83 = arith.cmpi eq, %81, %82 : vector<8x64xi32>
    %84 = arith.extui %83 : vector<8x64xi1> to vector<8x64xi32>
    %85 = arith.sitofp %84 : vector<8x64xi32> to vector<8x64xf32>
    %c0_23 = arith.constant 0 : index
    %c0_24 = arith.constant 0 : index
    %c0_25 = arith.constant 0 : index
    %86 = vector.load %arg3[%c0_23, %c0_24, %c0_25] : memref<4x16x152xf32, #tpu.memory_space<vmem>>, vector<1x16x152xf32>
    %87 = vector.shape_cast %86 : vector<1x16x152xf32> to vector<16x152xf32>
    %c1 = arith.constant 1 : index
    %c0_26 = arith.constant 0 : index
    %c0_27 = arith.constant 0 : index
    %88 = vector.load %arg3[%c1, %c0_26, %c0_27] : memref<4x16x152xf32, #tpu.memory_space<vmem>>, vector<1x16x152xf32>
    %89 = vector.shape_cast %88 : vector<1x16x152xf32> to vector<16x152xf32>
    %cst_28 = arith.constant 0.000000e+00 : f32
    %90 = vector.broadcast %cst_28 : f32 to vector<16x64xf32>
    %91 = arith.maximumf %73, %90 : vector<16x64xf32>
    %cst_29 = arith.constant 0.000000e+00 : f32
    %92 = vector.broadcast %cst_29 : f32 to vector<16x9xf32>
    %93 = tpu.concatenate %92, %91, %92 in 1 : vector<16x9xf32>, vector<16x64xf32>, vector<16x9xf32> -> vector<16x82xf32>
    %94 = vector.extract_strided_slice %93 {offsets = [0, 0], sizes = [16, 64], strides = [1, 1]} : vector<16x82xf32> to vector<16x64xf32>
    %cst_30 = arith.constant 0.000000e+00 : f32
    %95 = vector.shape_cast %78 : vector<1x64xi1> to vector<1x64xi1>
    %96 = vector.broadcast %95 : vector<1x64xi1> to vector<16x64xi1>
    %97 = vector.broadcast %cst_30 : f32 to vector<16x64xf32>
    %98 = arith.select %96, %94, %97 : vector<16x64xi1>, vector<16x64xf32>
    %99 = vector.extract_strided_slice %93 {offsets = [0, 1], sizes = [16, 64], strides = [1, 1]} : vector<16x82xf32> to vector<16x64xf32>
    %100 = vector.extract_strided_slice %93 {offsets = [0, 2], sizes = [16, 64], strides = [1, 1]} : vector<16x82xf32> to vector<16x64xf32>
    %cst_31 = arith.constant 0.000000e+00 : f32
    %101 = vector.shape_cast %80 : vector<1x64xi1> to vector<1x64xi1>
    %102 = vector.broadcast %101 : vector<1x64xi1> to vector<16x64xi1>
    %103 = vector.broadcast %cst_31 : f32 to vector<16x64xf32>
    %104 = arith.select %102, %100, %103 : vector<16x64xi1>, vector<16x64xf32>
    %105 = vector.extract_strided_slice %93 {offsets = [0, 8], sizes = [16, 64], strides = [1, 1]} : vector<16x82xf32> to vector<16x64xf32>
    %cst_32 = arith.constant 0.000000e+00 : f32
    %106 = vector.shape_cast %78 : vector<1x64xi1> to vector<1x64xi1>
    %107 = vector.broadcast %106 : vector<1x64xi1> to vector<16x64xi1>
    %108 = vector.broadcast %cst_32 : f32 to vector<16x64xf32>
    %109 = arith.select %107, %105, %108 : vector<16x64xi1>, vector<16x64xf32>
    %110 = vector.extract_strided_slice %93 {offsets = [0, 9], sizes = [16, 64], strides = [1, 1]} : vector<16x82xf32> to vector<16x64xf32>
    %111 = vector.extract_strided_slice %93 {offsets = [0, 10], sizes = [16, 64], strides = [1, 1]} : vector<16x82xf32> to vector<16x64xf32>
    %cst_33 = arith.constant 0.000000e+00 : f32
    %112 = vector.shape_cast %80 : vector<1x64xi1> to vector<1x64xi1>
    %113 = vector.broadcast %112 : vector<1x64xi1> to vector<16x64xi1>
    %114 = vector.broadcast %cst_33 : f32 to vector<16x64xf32>
    %115 = arith.select %113, %111, %114 : vector<16x64xi1>, vector<16x64xf32>
    %116 = vector.extract_strided_slice %93 {offsets = [0, 16], sizes = [16, 64], strides = [1, 1]} : vector<16x82xf32> to vector<16x64xf32>
    %cst_34 = arith.constant 0.000000e+00 : f32
    %117 = vector.shape_cast %78 : vector<1x64xi1> to vector<1x64xi1>
    %118 = vector.broadcast %117 : vector<1x64xi1> to vector<16x64xi1>
    %119 = vector.broadcast %cst_34 : f32 to vector<16x64xf32>
    %120 = arith.select %118, %116, %119 : vector<16x64xi1>, vector<16x64xf32>
    %121 = vector.extract_strided_slice %93 {offsets = [0, 17], sizes = [16, 64], strides = [1, 1]} : vector<16x82xf32> to vector<16x64xf32>
    %122 = vector.extract_strided_slice %93 {offsets = [0, 18], sizes = [16, 64], strides = [1, 1]} : vector<16x82xf32> to vector<16x64xf32>
    %cst_35 = arith.constant 0.000000e+00 : f32
    %123 = vector.shape_cast %80 : vector<1x64xi1> to vector<1x64xi1>
    %124 = vector.broadcast %123 : vector<1x64xi1> to vector<16x64xi1>
    %125 = vector.broadcast %cst_35 : f32 to vector<16x64xf32>
    %126 = arith.select %124, %122, %125 : vector<16x64xi1>, vector<16x64xf32>
    %127 = tpu.concatenate %85, %98, %99, %104, %109, %110, %115, %120, %121, %126 in 0 : vector<8x64xf32>, vector<16x64xf32>, vector<16x64xf32>, vector<16x64xf32>, vector<16x64xf32>, vector<16x64xf32>, vector<16x64xf32>, vector<16x64xf32>, vector<16x64xf32>, vector<16x64xf32> -> vector<152x64xf32>
    %cst_36 = arith.constant dense<0.000000e+00> : vector<16x64xf32>
    %128 = tpu.matmul %87, %127, %cst_36 {dimension_numbers = #tpu.dot_dimension_numbers<[1], [0], [0], [1], [0, 0, 1, 1], [], []>} : vector<16x152xf32>, vector<152x64xf32>, vector<16x64xf32> -> vector<16x64xf32>
    %cst_37 = arith.constant 0.000000e+00 : f32
    %129 = vector.broadcast %cst_37 : f32 to vector<16x64xf32>
    %130 = arith.maximumf %128, %129 : vector<16x64xf32>
    %cst_38 = arith.constant 0.000000e+00 : f32
    %131 = vector.broadcast %cst_38 : f32 to vector<16x9xf32>
    %132 = tpu.concatenate %131, %130, %131 in 1 : vector<16x9xf32>, vector<16x64xf32>, vector<16x9xf32> -> vector<16x82xf32>
    %133 = vector.extract_strided_slice %132 {offsets = [0, 0], sizes = [16, 64], strides = [1, 1]} : vector<16x82xf32> to vector<16x64xf32>
    %cst_39 = arith.constant 0.000000e+00 : f32
    %134 = vector.shape_cast %78 : vector<1x64xi1> to vector<1x64xi1>
    %135 = vector.broadcast %134 : vector<1x64xi1> to vector<16x64xi1>
    %136 = vector.broadcast %cst_39 : f32 to vector<16x64xf32>
    %137 = arith.select %135, %133, %136 : vector<16x64xi1>, vector<16x64xf32>
    %138 = vector.extract_strided_slice %132 {offsets = [0, 1], sizes = [16, 64], strides = [1, 1]} : vector<16x82xf32> to vector<16x64xf32>
    %139 = vector.extract_strided_slice %132 {offsets = [0, 2], sizes = [16, 64], strides = [1, 1]} : vector<16x82xf32> to vector<16x64xf32>
    %cst_40 = arith.constant 0.000000e+00 : f32
    %140 = vector.shape_cast %80 : vector<1x64xi1> to vector<1x64xi1>
    %141 = vector.broadcast %140 : vector<1x64xi1> to vector<16x64xi1>
    %142 = vector.broadcast %cst_40 : f32 to vector<16x64xf32>
    %143 = arith.select %141, %139, %142 : vector<16x64xi1>, vector<16x64xf32>
    %144 = vector.extract_strided_slice %132 {offsets = [0, 8], sizes = [16, 64], strides = [1, 1]} : vector<16x82xf32> to vector<16x64xf32>
    %cst_41 = arith.constant 0.000000e+00 : f32
    %145 = vector.shape_cast %78 : vector<1x64xi1> to vector<1x64xi1>
    %146 = vector.broadcast %145 : vector<1x64xi1> to vector<16x64xi1>
    %147 = vector.broadcast %cst_41 : f32 to vector<16x64xf32>
    %148 = arith.select %146, %144, %147 : vector<16x64xi1>, vector<16x64xf32>
    %149 = vector.extract_strided_slice %132 {offsets = [0, 9], sizes = [16, 64], strides = [1, 1]} : vector<16x82xf32> to vector<16x64xf32>
    %150 = vector.extract_strided_slice %132 {offsets = [0, 10], sizes = [16, 64], strides = [1, 1]} : vector<16x82xf32> to vector<16x64xf32>
    %cst_42 = arith.constant 0.000000e+00 : f32
    %151 = vector.shape_cast %80 : vector<1x64xi1> to vector<1x64xi1>
    %152 = vector.broadcast %151 : vector<1x64xi1> to vector<16x64xi1>
    %153 = vector.broadcast %cst_42 : f32 to vector<16x64xf32>
    %154 = arith.select %152, %150, %153 : vector<16x64xi1>, vector<16x64xf32>
    %155 = vector.extract_strided_slice %132 {offsets = [0, 16], sizes = [16, 64], strides = [1, 1]} : vector<16x82xf32> to vector<16x64xf32>
    %cst_43 = arith.constant 0.000000e+00 : f32
    %156 = vector.shape_cast %78 : vector<1x64xi1> to vector<1x64xi1>
    %157 = vector.broadcast %156 : vector<1x64xi1> to vector<16x64xi1>
    %158 = vector.broadcast %cst_43 : f32 to vector<16x64xf32>
    %159 = arith.select %157, %155, %158 : vector<16x64xi1>, vector<16x64xf32>
    %160 = vector.extract_strided_slice %132 {offsets = [0, 17], sizes = [16, 64], strides = [1, 1]} : vector<16x82xf32> to vector<16x64xf32>
    %161 = vector.extract_strided_slice %132 {offsets = [0, 18], sizes = [16, 64], strides = [1, 1]} : vector<16x82xf32> to vector<16x64xf32>
    %cst_44 = arith.constant 0.000000e+00 : f32
    %162 = vector.shape_cast %80 : vector<1x64xi1> to vector<1x64xi1>
    %163 = vector.broadcast %162 : vector<1x64xi1> to vector<16x64xi1>
    %164 = vector.broadcast %cst_44 : f32 to vector<16x64xf32>
    %165 = arith.select %163, %161, %164 : vector<16x64xi1>, vector<16x64xf32>
    %166 = tpu.concatenate %85, %137, %138, %143, %148, %149, %154, %159, %160, %165 in 0 : vector<8x64xf32>, vector<16x64xf32>, vector<16x64xf32>, vector<16x64xf32>, vector<16x64xf32>, vector<16x64xf32>, vector<16x64xf32>, vector<16x64xf32>, vector<16x64xf32>, vector<16x64xf32> -> vector<152x64xf32>
    %cst_45 = arith.constant dense<0.000000e+00> : vector<16x64xf32>
    %167 = tpu.matmul %89, %166, %cst_45 {dimension_numbers = #tpu.dot_dimension_numbers<[1], [0], [0], [1], [0, 0, 1, 1], [], []>} : vector<16x152xf32>, vector<152x64xf32>, vector<16x64xf32> -> vector<16x64xf32>
    %168 = arith.addf %167, %73 : vector<16x64xf32>
    %c2 = arith.constant 2 : index
    %c0_46 = arith.constant 0 : index
    %c0_47 = arith.constant 0 : index
    %169 = vector.load %arg3[%c2, %c0_46, %c0_47] : memref<4x16x152xf32, #tpu.memory_space<vmem>>, vector<1x16x152xf32>
    %170 = vector.shape_cast %169 : vector<1x16x152xf32> to vector<16x152xf32>
    %c3 = arith.constant 3 : index
    %c0_48 = arith.constant 0 : index
    %c0_49 = arith.constant 0 : index
    %171 = vector.load %arg3[%c3, %c0_48, %c0_49] : memref<4x16x152xf32, #tpu.memory_space<vmem>>, vector<1x16x152xf32>
    %172 = vector.shape_cast %171 : vector<1x16x152xf32> to vector<16x152xf32>
    %cst_50 = arith.constant 0.000000e+00 : f32
    %173 = vector.broadcast %cst_50 : f32 to vector<16x64xf32>
    %174 = arith.maximumf %168, %173 : vector<16x64xf32>
    %cst_51 = arith.constant 0.000000e+00 : f32
    %175 = vector.broadcast %cst_51 : f32 to vector<16x9xf32>
    %176 = tpu.concatenate %175, %174, %175 in 1 : vector<16x9xf32>, vector<16x64xf32>, vector<16x9xf32> -> vector<16x82xf32>
    %177 = vector.extract_strided_slice %176 {offsets = [0, 0], sizes = [16, 64], strides = [1, 1]} : vector<16x82xf32> to vector<16x64xf32>
    %cst_52 = arith.constant 0.000000e+00 : f32
    %178 = vector.shape_cast %78 : vector<1x64xi1> to vector<1x64xi1>
    %179 = vector.broadcast %178 : vector<1x64xi1> to vector<16x64xi1>
    %180 = vector.broadcast %cst_52 : f32 to vector<16x64xf32>
    %181 = arith.select %179, %177, %180 : vector<16x64xi1>, vector<16x64xf32>
    %182 = vector.extract_strided_slice %176 {offsets = [0, 1], sizes = [16, 64], strides = [1, 1]} : vector<16x82xf32> to vector<16x64xf32>
    %183 = vector.extract_strided_slice %176 {offsets = [0, 2], sizes = [16, 64], strides = [1, 1]} : vector<16x82xf32> to vector<16x64xf32>
    %cst_53 = arith.constant 0.000000e+00 : f32
    %184 = vector.shape_cast %80 : vector<1x64xi1> to vector<1x64xi1>
    %185 = vector.broadcast %184 : vector<1x64xi1> to vector<16x64xi1>
    %186 = vector.broadcast %cst_53 : f32 to vector<16x64xf32>
    %187 = arith.select %185, %183, %186 : vector<16x64xi1>, vector<16x64xf32>
    %188 = vector.extract_strided_slice %176 {offsets = [0, 8], sizes = [16, 64], strides = [1, 1]} : vector<16x82xf32> to vector<16x64xf32>
    %cst_54 = arith.constant 0.000000e+00 : f32
    %189 = vector.shape_cast %78 : vector<1x64xi1> to vector<1x64xi1>
    %190 = vector.broadcast %189 : vector<1x64xi1> to vector<16x64xi1>
    %191 = vector.broadcast %cst_54 : f32 to vector<16x64xf32>
    %192 = arith.select %190, %188, %191 : vector<16x64xi1>, vector<16x64xf32>
    %193 = vector.extract_strided_slice %176 {offsets = [0, 9], sizes = [16, 64], strides = [1, 1]} : vector<16x82xf32> to vector<16x64xf32>
    %194 = vector.extract_strided_slice %176 {offsets = [0, 10], sizes = [16, 64], strides = [1, 1]} : vector<16x82xf32> to vector<16x64xf32>
    %cst_55 = arith.constant 0.000000e+00 : f32
    %195 = vector.shape_cast %80 : vector<1x64xi1> to vector<1x64xi1>
    %196 = vector.broadcast %195 : vector<1x64xi1> to vector<16x64xi1>
    %197 = vector.broadcast %cst_55 : f32 to vector<16x64xf32>
    %198 = arith.select %196, %194, %197 : vector<16x64xi1>, vector<16x64xf32>
    %199 = vector.extract_strided_slice %176 {offsets = [0, 16], sizes = [16, 64], strides = [1, 1]} : vector<16x82xf32> to vector<16x64xf32>
    %cst_56 = arith.constant 0.000000e+00 : f32
    %200 = vector.shape_cast %78 : vector<1x64xi1> to vector<1x64xi1>
    %201 = vector.broadcast %200 : vector<1x64xi1> to vector<16x64xi1>
    %202 = vector.broadcast %cst_56 : f32 to vector<16x64xf32>
    %203 = arith.select %201, %199, %202 : vector<16x64xi1>, vector<16x64xf32>
    %204 = vector.extract_strided_slice %176 {offsets = [0, 17], sizes = [16, 64], strides = [1, 1]} : vector<16x82xf32> to vector<16x64xf32>
    %205 = vector.extract_strided_slice %176 {offsets = [0, 18], sizes = [16, 64], strides = [1, 1]} : vector<16x82xf32> to vector<16x64xf32>
    %cst_57 = arith.constant 0.000000e+00 : f32
    %206 = vector.shape_cast %80 : vector<1x64xi1> to vector<1x64xi1>
    %207 = vector.broadcast %206 : vector<1x64xi1> to vector<16x64xi1>
    %208 = vector.broadcast %cst_57 : f32 to vector<16x64xf32>
    %209 = arith.select %207, %205, %208 : vector<16x64xi1>, vector<16x64xf32>
    %210 = tpu.concatenate %85, %181, %182, %187, %192, %193, %198, %203, %204, %209 in 0 : vector<8x64xf32>, vector<16x64xf32>, vector<16x64xf32>, vector<16x64xf32>, vector<16x64xf32>, vector<16x64xf32>, vector<16x64xf32>, vector<16x64xf32>, vector<16x64xf32>, vector<16x64xf32> -> vector<152x64xf32>
    %cst_58 = arith.constant dense<0.000000e+00> : vector<16x64xf32>
    %211 = tpu.matmul %170, %210, %cst_58 {dimension_numbers = #tpu.dot_dimension_numbers<[1], [0], [0], [1], [0, 0, 1, 1], [], []>} : vector<16x152xf32>, vector<152x64xf32>, vector<16x64xf32> -> vector<16x64xf32>
    %cst_59 = arith.constant 0.000000e+00 : f32
    %212 = vector.broadcast %cst_59 : f32 to vector<16x64xf32>
    %213 = arith.maximumf %211, %212 : vector<16x64xf32>
    %cst_60 = arith.constant 0.000000e+00 : f32
    %214 = vector.broadcast %cst_60 : f32 to vector<16x9xf32>
    %215 = tpu.concatenate %214, %213, %214 in 1 : vector<16x9xf32>, vector<16x64xf32>, vector<16x9xf32> -> vector<16x82xf32>
    %216 = vector.extract_strided_slice %215 {offsets = [0, 0], sizes = [16, 64], strides = [1, 1]} : vector<16x82xf32> to vector<16x64xf32>
    %cst_61 = arith.constant 0.000000e+00 : f32
    %217 = vector.shape_cast %78 : vector<1x64xi1> to vector<1x64xi1>
    %218 = vector.broadcast %217 : vector<1x64xi1> to vector<16x64xi1>
    %219 = vector.broadcast %cst_61 : f32 to vector<16x64xf32>
    %220 = arith.select %218, %216, %219 : vector<16x64xi1>, vector<16x64xf32>
    %221 = vector.extract_strided_slice %215 {offsets = [0, 1], sizes = [16, 64], strides = [1, 1]} : vector<16x82xf32> to vector<16x64xf32>
    %222 = vector.extract_strided_slice %215 {offsets = [0, 2], sizes = [16, 64], strides = [1, 1]} : vector<16x82xf32> to vector<16x64xf32>
    %cst_62 = arith.constant 0.000000e+00 : f32
    %223 = vector.shape_cast %80 : vector<1x64xi1> to vector<1x64xi1>
    %224 = vector.broadcast %223 : vector<1x64xi1> to vector<16x64xi1>
    %225 = vector.broadcast %cst_62 : f32 to vector<16x64xf32>
    %226 = arith.select %224, %222, %225 : vector<16x64xi1>, vector<16x64xf32>
    %227 = vector.extract_strided_slice %215 {offsets = [0, 8], sizes = [16, 64], strides = [1, 1]} : vector<16x82xf32> to vector<16x64xf32>
    %cst_63 = arith.constant 0.000000e+00 : f32
    %228 = vector.shape_cast %78 : vector<1x64xi1> to vector<1x64xi1>
    %229 = vector.broadcast %228 : vector<1x64xi1> to vector<16x64xi1>
    %230 = vector.broadcast %cst_63 : f32 to vector<16x64xf32>
    %231 = arith.select %229, %227, %230 : vector<16x64xi1>, vector<16x64xf32>
    %232 = vector.extract_strided_slice %215 {offsets = [0, 9], sizes = [16, 64], strides = [1, 1]} : vector<16x82xf32> to vector<16x64xf32>
    %233 = vector.extract_strided_slice %215 {offsets = [0, 10], sizes = [16, 64], strides = [1, 1]} : vector<16x82xf32> to vector<16x64xf32>
    %cst_64 = arith.constant 0.000000e+00 : f32
    %234 = vector.shape_cast %80 : vector<1x64xi1> to vector<1x64xi1>
    %235 = vector.broadcast %234 : vector<1x64xi1> to vector<16x64xi1>
    %236 = vector.broadcast %cst_64 : f32 to vector<16x64xf32>
    %237 = arith.select %235, %233, %236 : vector<16x64xi1>, vector<16x64xf32>
    %238 = vector.extract_strided_slice %215 {offsets = [0, 16], sizes = [16, 64], strides = [1, 1]} : vector<16x82xf32> to vector<16x64xf32>
    %cst_65 = arith.constant 0.000000e+00 : f32
    %239 = vector.shape_cast %78 : vector<1x64xi1> to vector<1x64xi1>
    %240 = vector.broadcast %239 : vector<1x64xi1> to vector<16x64xi1>
    %241 = vector.broadcast %cst_65 : f32 to vector<16x64xf32>
    %242 = arith.select %240, %238, %241 : vector<16x64xi1>, vector<16x64xf32>
    %243 = vector.extract_strided_slice %215 {offsets = [0, 17], sizes = [16, 64], strides = [1, 1]} : vector<16x82xf32> to vector<16x64xf32>
    %244 = vector.extract_strided_slice %215 {offsets = [0, 18], sizes = [16, 64], strides = [1, 1]} : vector<16x82xf32> to vector<16x64xf32>
    %cst_66 = arith.constant 0.000000e+00 : f32
    %245 = vector.shape_cast %80 : vector<1x64xi1> to vector<1x64xi1>
    %246 = vector.broadcast %245 : vector<1x64xi1> to vector<16x64xi1>
    %247 = vector.broadcast %cst_66 : f32 to vector<16x64xf32>
    %248 = arith.select %246, %244, %247 : vector<16x64xi1>, vector<16x64xf32>
    %249 = tpu.concatenate %85, %220, %221, %226, %231, %232, %237, %242, %243, %248 in 0 : vector<8x64xf32>, vector<16x64xf32>, vector<16x64xf32>, vector<16x64xf32>, vector<16x64xf32>, vector<16x64xf32>, vector<16x64xf32>, vector<16x64xf32>, vector<16x64xf32>, vector<16x64xf32> -> vector<152x64xf32>
    %cst_67 = arith.constant dense<0.000000e+00> : vector<16x64xf32>
    %250 = tpu.matmul %172, %249, %cst_67 {dimension_numbers = #tpu.dot_dimension_numbers<[1], [0], [0], [1], [0, 0, 1, 1], [], []>} : vector<16x152xf32>, vector<152x64xf32>, vector<16x64xf32> -> vector<16x64xf32>
    %251 = arith.addf %250, %168 : vector<16x64xf32>
    %c0_68 = arith.constant 0 : index
    %c0_69 = arith.constant 0 : index
    %252 = vector.load %arg5[%c0_68, %c0_69] : memref<32x152xf32, #tpu.memory_space<vmem>>, vector<32x152xf32>
    %c0_70 = arith.constant 0 : index
    %c0_71 = arith.constant 0 : index
    %253 = vector.load %arg7[%c0_70, %c0_71] : memref<64x16xf32, #tpu.memory_space<vmem>>, vector<64x16xf32>
    %254 = tpu.iota {dimensions = array<i32: 1>} : vector<1x64xi32>
    %c7_i32_72 = arith.constant 7 : i32
    %255 = vector.broadcast %c7_i32_72 : i32 to vector<1x64xi32>
    %256 = arith.andi %254, %255 : vector<1x64xi32>
    %c0_i32_73 = arith.constant 0 : i32
    %257 = vector.broadcast %c0_i32_73 : i32 to vector<1x64xi32>
    %258 = arith.cmpi sgt, %256, %257 : vector<1x64xi32>
    %c7_i32_74 = arith.constant 7 : i32
    %259 = vector.broadcast %c7_i32_74 : i32 to vector<1x64xi32>
    %260 = arith.cmpi slt, %256, %259 : vector<1x64xi32>
    %261 = tpu.iota {dimensions = array<i32: 0>} : vector<8x64xi32>
    %c0_i32_75 = arith.constant 0 : i32
    %262 = vector.broadcast %c0_i32_75 : i32 to vector<8x64xi32>
    %263 = arith.cmpi eq, %261, %262 : vector<8x64xi32>
    %264 = arith.extui %263 : vector<8x64xi1> to vector<8x64xi32>
    %265 = arith.sitofp %264 : vector<8x64xi32> to vector<8x64xf32>
    %cst_76 = arith.constant 0.000000e+00 : f32
    %266 = vector.broadcast %cst_76 : f32 to vector<16x9xf32>
    %267 = tpu.concatenate %266, %251, %266 in 1 : vector<16x9xf32>, vector<16x64xf32>, vector<16x9xf32> -> vector<16x82xf32>
    %268 = vector.extract_strided_slice %267 {offsets = [0, 0], sizes = [16, 64], strides = [1, 1]} : vector<16x82xf32> to vector<16x64xf32>
    %cst_77 = arith.constant 0.000000e+00 : f32
    %269 = vector.shape_cast %258 : vector<1x64xi1> to vector<1x64xi1>
    %270 = vector.broadcast %269 : vector<1x64xi1> to vector<16x64xi1>
    %271 = vector.broadcast %cst_77 : f32 to vector<16x64xf32>
    %272 = arith.select %270, %268, %271 : vector<16x64xi1>, vector<16x64xf32>
    %273 = vector.extract_strided_slice %267 {offsets = [0, 1], sizes = [16, 64], strides = [1, 1]} : vector<16x82xf32> to vector<16x64xf32>
    %274 = vector.extract_strided_slice %267 {offsets = [0, 2], sizes = [16, 64], strides = [1, 1]} : vector<16x82xf32> to vector<16x64xf32>
    %cst_78 = arith.constant 0.000000e+00 : f32
    %275 = vector.shape_cast %260 : vector<1x64xi1> to vector<1x64xi1>
    %276 = vector.broadcast %275 : vector<1x64xi1> to vector<16x64xi1>
    %277 = vector.broadcast %cst_78 : f32 to vector<16x64xf32>
    %278 = arith.select %276, %274, %277 : vector<16x64xi1>, vector<16x64xf32>
    %279 = vector.extract_strided_slice %267 {offsets = [0, 8], sizes = [16, 64], strides = [1, 1]} : vector<16x82xf32> to vector<16x64xf32>
    %cst_79 = arith.constant 0.000000e+00 : f32
    %280 = vector.shape_cast %258 : vector<1x64xi1> to vector<1x64xi1>
    %281 = vector.broadcast %280 : vector<1x64xi1> to vector<16x64xi1>
    %282 = vector.broadcast %cst_79 : f32 to vector<16x64xf32>
    %283 = arith.select %281, %279, %282 : vector<16x64xi1>, vector<16x64xf32>
    %284 = vector.extract_strided_slice %267 {offsets = [0, 9], sizes = [16, 64], strides = [1, 1]} : vector<16x82xf32> to vector<16x64xf32>
    %285 = vector.extract_strided_slice %267 {offsets = [0, 10], sizes = [16, 64], strides = [1, 1]} : vector<16x82xf32> to vector<16x64xf32>
    %cst_80 = arith.constant 0.000000e+00 : f32
    %286 = vector.shape_cast %260 : vector<1x64xi1> to vector<1x64xi1>
    %287 = vector.broadcast %286 : vector<1x64xi1> to vector<16x64xi1>
    %288 = vector.broadcast %cst_80 : f32 to vector<16x64xf32>
    %289 = arith.select %287, %285, %288 : vector<16x64xi1>, vector<16x64xf32>
    %290 = vector.extract_strided_slice %267 {offsets = [0, 16], sizes = [16, 64], strides = [1, 1]} : vector<16x82xf32> to vector<16x64xf32>
    %cst_81 = arith.constant 0.000000e+00 : f32
    %291 = vector.shape_cast %258 : vector<1x64xi1> to vector<1x64xi1>
    %292 = vector.broadcast %291 : vector<1x64xi1> to vector<16x64xi1>
    %293 = vector.broadcast %cst_81 : f32 to vector<16x64xf32>
    %294 = arith.select %292, %290, %293 : vector<16x64xi1>, vector<16x64xf32>
    %295 = vector.extract_strided_slice %267 {offsets = [0, 17], sizes = [16, 64], strides = [1, 1]} : vector<16x82xf32> to vector<16x64xf32>
    %296 = vector.extract_strided_slice %267 {offsets = [0, 18], sizes = [16, 64], strides = [1, 1]} : vector<16x82xf32> to vector<16x64xf32>
    %cst_82 = arith.constant 0.000000e+00 : f32
    %297 = vector.shape_cast %260 : vector<1x64xi1> to vector<1x64xi1>
    %298 = vector.broadcast %297 : vector<1x64xi1> to vector<16x64xi1>
    %299 = vector.broadcast %cst_82 : f32 to vector<16x64xf32>
    %300 = arith.select %298, %296, %299 : vector<16x64xi1>, vector<16x64xf32>
    %301 = tpu.concatenate %265, %272, %273, %278, %283, %284, %289, %294, %295, %300 in 0 : vector<8x64xf32>, vector<16x64xf32>, vector<16x64xf32>, vector<16x64xf32>, vector<16x64xf32>, vector<16x64xf32>, vector<16x64xf32>, vector<16x64xf32>, vector<16x64xf32>, vector<16x64xf32> -> vector<152x64xf32>
    %cst_83 = arith.constant dense<0.000000e+00> : vector<32x64xf32>
    %302 = tpu.matmul %252, %301, %cst_83 {dimension_numbers = #tpu.dot_dimension_numbers<[1], [0], [0], [1], [0, 0, 1, 1], [], []>} : vector<32x152xf32>, vector<152x64xf32>, vector<32x64xf32> -> vector<32x64xf32>
    %cst_84 = arith.constant -1.000000e+30 : f32
    %303 = vector.broadcast %cst_84 : f32 to vector<32x1xf32>
    %304 = tpu.concatenate %303, %302, %303 in 1 : vector<32x1xf32>, vector<32x64xf32>, vector<32x1xf32> -> vector<32x66xf32>
    %305 = vector.extract_strided_slice %304 {offsets = [0, 0], sizes = [32, 64], strides = [1, 1]} : vector<32x66xf32> to vector<32x64xf32>
    %cst_85 = arith.constant -1.000000e+30 : f32
    %306 = vector.shape_cast %258 : vector<1x64xi1> to vector<1x64xi1>
    %307 = vector.broadcast %306 : vector<1x64xi1> to vector<32x64xi1>
    %308 = vector.broadcast %cst_85 : f32 to vector<32x64xf32>
    %309 = arith.select %307, %305, %308 : vector<32x64xi1>, vector<32x64xf32>
    %310 = vector.extract_strided_slice %304 {offsets = [0, 2], sizes = [32, 64], strides = [1, 1]} : vector<32x66xf32> to vector<32x64xf32>
    %cst_86 = arith.constant -1.000000e+30 : f32
    %311 = vector.shape_cast %260 : vector<1x64xi1> to vector<1x64xi1>
    %312 = vector.broadcast %311 : vector<1x64xi1> to vector<32x64xi1>
    %313 = vector.broadcast %cst_86 : f32 to vector<32x64xf32>
    %314 = arith.select %312, %310, %313 : vector<32x64xi1>, vector<32x64xf32>
    %315 = arith.maximumf %309, %314 : vector<32x64xf32>
    %316 = arith.maximumf %302, %315 : vector<32x64xf32>
    %cst_87 = arith.constant -1.000000e+30 : f32
    %317 = vector.broadcast %cst_87 : f32 to vector<32x8xf32>
    %318 = tpu.concatenate %317, %316, %317 in 1 : vector<32x8xf32>, vector<32x64xf32>, vector<32x8xf32> -> vector<32x80xf32>
    %319 = vector.extract_strided_slice %318 {offsets = [0, 0], sizes = [32, 64], strides = [1, 1]} : vector<32x80xf32> to vector<32x64xf32>
    %320 = vector.extract_strided_slice %318 {offsets = [0, 16], sizes = [32, 64], strides = [1, 1]} : vector<32x80xf32> to vector<32x64xf32>
    %321 = arith.maximumf %319, %320 : vector<32x64xf32>
    %322 = arith.maximumf %316, %321 : vector<32x64xf32>
    %cst_88 = arith.constant dense<0.000000e+00> : vector<32x16xf32>
    %323 = tpu.matmul %322, %253, %cst_88 {dimension_numbers = #tpu.dot_dimension_numbers<[1], [0], [0], [1], [0, 0, 1, 1], [], []>} : vector<32x64xf32>, vector<64x16xf32>, vector<32x16xf32> -> vector<32x16xf32>
    %324 = tpu.iota {dimensions = array<i32: 1>} : vector<1x16xi32>
    %c3_i32 = arith.constant 3 : i32
    %325 = vector.broadcast %c3_i32 : i32 to vector<1x16xi32>
    %326 = arith.andi %324, %325 : vector<1x16xi32>
    %c0_i32_89 = arith.constant 0 : i32
    %327 = vector.broadcast %c0_i32_89 : i32 to vector<1x16xi32>
    %328 = arith.cmpi sgt, %326, %327 : vector<1x16xi32>
    %c3_i32_90 = arith.constant 3 : i32
    %329 = vector.broadcast %c3_i32_90 : i32 to vector<1x16xi32>
    %330 = arith.cmpi slt, %326, %329 : vector<1x16xi32>
    %331 = tpu.iota {dimensions = array<i32: 0>} : vector<8x16xi32>
    %c0_i32_91 = arith.constant 0 : i32
    %332 = vector.broadcast %c0_i32_91 : i32 to vector<8x16xi32>
    %333 = arith.cmpi eq, %331, %332 : vector<8x16xi32>
    %334 = arith.extui %333 : vector<8x16xi1> to vector<8x16xi32>
    %335 = arith.sitofp %334 : vector<8x16xi32> to vector<8x16xf32>
    %c0_92 = arith.constant 0 : index
    %c0_93 = arith.constant 0 : index
    %c0_94 = arith.constant 0 : index
    %336 = vector.load %arg6[%c0_92, %c0_93, %c0_94] : memref<4x32x296xf32, #tpu.memory_space<vmem>>, vector<1x32x296xf32>
    %337 = vector.shape_cast %336 : vector<1x32x296xf32> to vector<32x296xf32>
    %c1_95 = arith.constant 1 : index
    %c0_96 = arith.constant 0 : index
    %c0_97 = arith.constant 0 : index
    %338 = vector.load %arg6[%c1_95, %c0_96, %c0_97] : memref<4x32x296xf32, #tpu.memory_space<vmem>>, vector<1x32x296xf32>
    %339 = vector.shape_cast %338 : vector<1x32x296xf32> to vector<32x296xf32>
    %cst_98 = arith.constant 0.000000e+00 : f32
    %340 = vector.broadcast %cst_98 : f32 to vector<32x16xf32>
    %341 = arith.maximumf %323, %340 : vector<32x16xf32>
    %cst_99 = arith.constant 0.000000e+00 : f32
    %342 = vector.broadcast %cst_99 : f32 to vector<32x5xf32>
    %343 = tpu.concatenate %342, %341, %342 in 1 : vector<32x5xf32>, vector<32x16xf32>, vector<32x5xf32> -> vector<32x26xf32>
    %344 = vector.extract_strided_slice %343 {offsets = [0, 0], sizes = [32, 16], strides = [1, 1]} : vector<32x26xf32> to vector<32x16xf32>
    %cst_100 = arith.constant 0.000000e+00 : f32
    %345 = vector.shape_cast %328 : vector<1x16xi1> to vector<1x16xi1>
    %346 = vector.broadcast %345 : vector<1x16xi1> to vector<32x16xi1>
    %347 = vector.broadcast %cst_100 : f32 to vector<32x16xf32>
    %348 = arith.select %346, %344, %347 : vector<32x16xi1>, vector<32x16xf32>
    %349 = vector.extract_strided_slice %343 {offsets = [0, 1], sizes = [32, 16], strides = [1, 1]} : vector<32x26xf32> to vector<32x16xf32>
    %350 = vector.extract_strided_slice %343 {offsets = [0, 2], sizes = [32, 16], strides = [1, 1]} : vector<32x26xf32> to vector<32x16xf32>
    %cst_101 = arith.constant 0.000000e+00 : f32
    %351 = vector.shape_cast %330 : vector<1x16xi1> to vector<1x16xi1>
    %352 = vector.broadcast %351 : vector<1x16xi1> to vector<32x16xi1>
    %353 = vector.broadcast %cst_101 : f32 to vector<32x16xf32>
    %354 = arith.select %352, %350, %353 : vector<32x16xi1>, vector<32x16xf32>
    %355 = vector.extract_strided_slice %343 {offsets = [0, 4], sizes = [32, 16], strides = [1, 1]} : vector<32x26xf32> to vector<32x16xf32>
    %cst_102 = arith.constant 0.000000e+00 : f32
    %356 = vector.shape_cast %328 : vector<1x16xi1> to vector<1x16xi1>
    %357 = vector.broadcast %356 : vector<1x16xi1> to vector<32x16xi1>
    %358 = vector.broadcast %cst_102 : f32 to vector<32x16xf32>
    %359 = arith.select %357, %355, %358 : vector<32x16xi1>, vector<32x16xf32>
    %360 = vector.extract_strided_slice %343 {offsets = [0, 5], sizes = [32, 16], strides = [1, 1]} : vector<32x26xf32> to vector<32x16xf32>
    %361 = vector.extract_strided_slice %343 {offsets = [0, 6], sizes = [32, 16], strides = [1, 1]} : vector<32x26xf32> to vector<32x16xf32>
    %cst_103 = arith.constant 0.000000e+00 : f32
    %362 = vector.shape_cast %330 : vector<1x16xi1> to vector<1x16xi1>
    %363 = vector.broadcast %362 : vector<1x16xi1> to vector<32x16xi1>
    %364 = vector.broadcast %cst_103 : f32 to vector<32x16xf32>
    %365 = arith.select %363, %361, %364 : vector<32x16xi1>, vector<32x16xf32>
    %366 = vector.extract_strided_slice %343 {offsets = [0, 8], sizes = [32, 16], strides = [1, 1]} : vector<32x26xf32> to vector<32x16xf32>
    %cst_104 = arith.constant 0.000000e+00 : f32
    %367 = vector.shape_cast %328 : vector<1x16xi1> to vector<1x16xi1>
    %368 = vector.broadcast %367 : vector<1x16xi1> to vector<32x16xi1>
    %369 = vector.broadcast %cst_104 : f32 to vector<32x16xf32>
    %370 = arith.select %368, %366, %369 : vector<32x16xi1>, vector<32x16xf32>
    %371 = vector.extract_strided_slice %343 {offsets = [0, 9], sizes = [32, 16], strides = [1, 1]} : vector<32x26xf32> to vector<32x16xf32>
    %372 = vector.extract_strided_slice %343 {offsets = [0, 10], sizes = [32, 16], strides = [1, 1]} : vector<32x26xf32> to vector<32x16xf32>
    %cst_105 = arith.constant 0.000000e+00 : f32
    %373 = vector.shape_cast %330 : vector<1x16xi1> to vector<1x16xi1>
    %374 = vector.broadcast %373 : vector<1x16xi1> to vector<32x16xi1>
    %375 = vector.broadcast %cst_105 : f32 to vector<32x16xf32>
    %376 = arith.select %374, %372, %375 : vector<32x16xi1>, vector<32x16xf32>
    %377 = tpu.concatenate %335, %348, %349, %354, %359, %360, %365, %370, %371, %376 in 0 : vector<8x16xf32>, vector<32x16xf32>, vector<32x16xf32>, vector<32x16xf32>, vector<32x16xf32>, vector<32x16xf32>, vector<32x16xf32>, vector<32x16xf32>, vector<32x16xf32>, vector<32x16xf32> -> vector<296x16xf32>
    %cst_106 = arith.constant dense<0.000000e+00> : vector<32x16xf32>
    %378 = tpu.matmul %337, %377, %cst_106 {dimension_numbers = #tpu.dot_dimension_numbers<[1], [0], [0], [1], [0, 0, 1, 1], [], []>} : vector<32x296xf32>, vector<296x16xf32>, vector<32x16xf32> -> vector<32x16xf32>
    %cst_107 = arith.constant 0.000000e+00 : f32
    %379 = vector.broadcast %cst_107 : f32 to vector<32x16xf32>
    %380 = arith.maximumf %378, %379 : vector<32x16xf32>
    %cst_108 = arith.constant 0.000000e+00 : f32
    %381 = vector.broadcast %cst_108 : f32 to vector<32x5xf32>
    %382 = tpu.concatenate %381, %380, %381 in 1 : vector<32x5xf32>, vector<32x16xf32>, vector<32x5xf32> -> vector<32x26xf32>
    %383 = vector.extract_strided_slice %382 {offsets = [0, 0], sizes = [32, 16], strides = [1, 1]} : vector<32x26xf32> to vector<32x16xf32>
    %cst_109 = arith.constant 0.000000e+00 : f32
    %384 = vector.shape_cast %328 : vector<1x16xi1> to vector<1x16xi1>
    %385 = vector.broadcast %384 : vector<1x16xi1> to vector<32x16xi1>
    %386 = vector.broadcast %cst_109 : f32 to vector<32x16xf32>
    %387 = arith.select %385, %383, %386 : vector<32x16xi1>, vector<32x16xf32>
    %388 = vector.extract_strided_slice %382 {offsets = [0, 1], sizes = [32, 16], strides = [1, 1]} : vector<32x26xf32> to vector<32x16xf32>
    %389 = vector.extract_strided_slice %382 {offsets = [0, 2], sizes = [32, 16], strides = [1, 1]} : vector<32x26xf32> to vector<32x16xf32>
    %cst_110 = arith.constant 0.000000e+00 : f32
    %390 = vector.shape_cast %330 : vector<1x16xi1> to vector<1x16xi1>
    %391 = vector.broadcast %390 : vector<1x16xi1> to vector<32x16xi1>
    %392 = vector.broadcast %cst_110 : f32 to vector<32x16xf32>
    %393 = arith.select %391, %389, %392 : vector<32x16xi1>, vector<32x16xf32>
    %394 = vector.extract_strided_slice %382 {offsets = [0, 4], sizes = [32, 16], strides = [1, 1]} : vector<32x26xf32> to vector<32x16xf32>
    %cst_111 = arith.constant 0.000000e+00 : f32
    %395 = vector.shape_cast %328 : vector<1x16xi1> to vector<1x16xi1>
    %396 = vector.broadcast %395 : vector<1x16xi1> to vector<32x16xi1>
    %397 = vector.broadcast %cst_111 : f32 to vector<32x16xf32>
    %398 = arith.select %396, %394, %397 : vector<32x16xi1>, vector<32x16xf32>
    %399 = vector.extract_strided_slice %382 {offsets = [0, 5], sizes = [32, 16], strides = [1, 1]} : vector<32x26xf32> to vector<32x16xf32>
    %400 = vector.extract_strided_slice %382 {offsets = [0, 6], sizes = [32, 16], strides = [1, 1]} : vector<32x26xf32> to vector<32x16xf32>
    %cst_112 = arith.constant 0.000000e+00 : f32
    %401 = vector.shape_cast %330 : vector<1x16xi1> to vector<1x16xi1>
    %402 = vector.broadcast %401 : vector<1x16xi1> to vector<32x16xi1>
    %403 = vector.broadcast %cst_112 : f32 to vector<32x16xf32>
    %404 = arith.select %402, %400, %403 : vector<32x16xi1>, vector<32x16xf32>
    %405 = vector.extract_strided_slice %382 {offsets = [0, 8], sizes = [32, 16], strides = [1, 1]} : vector<32x26xf32> to vector<32x16xf32>
    %cst_113 = arith.constant 0.000000e+00 : f32
    %406 = vector.shape_cast %328 : vector<1x16xi1> to vector<1x16xi1>
    %407 = vector.broadcast %406 : vector<1x16xi1> to vector<32x16xi1>
    %408 = vector.broadcast %cst_113 : f32 to vector<32x16xf32>
    %409 = arith.select %407, %405, %408 : vector<32x16xi1>, vector<32x16xf32>
    %410 = vector.extract_strided_slice %382 {offsets = [0, 9], sizes = [32, 16], strides = [1, 1]} : vector<32x26xf32> to vector<32x16xf32>
    %411 = vector.extract_strided_slice %382 {offsets = [0, 10], sizes = [32, 16], strides = [1, 1]} : vector<32x26xf32> to vector<32x16xf32>
    %cst_114 = arith.constant 0.000000e+00 : f32
    %412 = vector.shape_cast %330 : vector<1x16xi1> to vector<1x16xi1>
    %413 = vector.broadcast %412 : vector<1x16xi1> to vector<32x16xi1>
    %414 = vector.broadcast %cst_114 : f32 to vector<32x16xf32>
    %415 = arith.select %413, %411, %414 : vector<32x16xi1>, vector<32x16xf32>
    %416 = tpu.concatenate %335, %387, %388, %393, %398, %399, %404, %409, %410, %415 in 0 : vector<8x16xf32>, vector<32x16xf32>, vector<32x16xf32>, vector<32x16xf32>, vector<32x16xf32>, vector<32x16xf32>, vector<32x16xf32>, vector<32x16xf32>, vector<32x16xf32>, vector<32x16xf32> -> vector<296x16xf32>
    %cst_115 = arith.constant dense<0.000000e+00> : vector<32x16xf32>
    %417 = tpu.matmul %339, %416, %cst_115 {dimension_numbers = #tpu.dot_dimension_numbers<[1], [0], [0], [1], [0, 0, 1, 1], [], []>} : vector<32x296xf32>, vector<296x16xf32>, vector<32x16xf32> -> vector<32x16xf32>
    %418 = arith.addf %417, %323 : vector<32x16xf32>
    %c2_116 = arith.constant 2 : index
    %c0_117 = arith.constant 0 : index
    %c0_118 = arith.constant 0 : index
    %419 = vector.load %arg6[%c2_116, %c0_117, %c0_118] : memref<4x32x296xf32, #tpu.memory_space<vmem>>, vector<1x32x296xf32>
    %420 = vector.shape_cast %419 : vector<1x32x296xf32> to vector<32x296xf32>
    %c3_119 = arith.constant 3 : index
    %c0_120 = arith.constant 0 : index
    %c0_121 = arith.constant 0 : index
    %421 = vector.load %arg6[%c3_119, %c0_120, %c0_121] : memref<4x32x296xf32, #tpu.memory_space<vmem>>, vector<1x32x296xf32>
    %422 = vector.shape_cast %421 : vector<1x32x296xf32> to vector<32x296xf32>
    %cst_122 = arith.constant 0.000000e+00 : f32
    %423 = vector.broadcast %cst_122 : f32 to vector<32x16xf32>
    %424 = arith.maximumf %418, %423 : vector<32x16xf32>
    %cst_123 = arith.constant 0.000000e+00 : f32
    %425 = vector.broadcast %cst_123 : f32 to vector<32x5xf32>
    %426 = tpu.concatenate %425, %424, %425 in 1 : vector<32x5xf32>, vector<32x16xf32>, vector<32x5xf32> -> vector<32x26xf32>
    %427 = vector.extract_strided_slice %426 {offsets = [0, 0], sizes = [32, 16], strides = [1, 1]} : vector<32x26xf32> to vector<32x16xf32>
    %cst_124 = arith.constant 0.000000e+00 : f32
    %428 = vector.shape_cast %328 : vector<1x16xi1> to vector<1x16xi1>
    %429 = vector.broadcast %428 : vector<1x16xi1> to vector<32x16xi1>
    %430 = vector.broadcast %cst_124 : f32 to vector<32x16xf32>
    %431 = arith.select %429, %427, %430 : vector<32x16xi1>, vector<32x16xf32>
    %432 = vector.extract_strided_slice %426 {offsets = [0, 1], sizes = [32, 16], strides = [1, 1]} : vector<32x26xf32> to vector<32x16xf32>
    %433 = vector.extract_strided_slice %426 {offsets = [0, 2], sizes = [32, 16], strides = [1, 1]} : vector<32x26xf32> to vector<32x16xf32>
    %cst_125 = arith.constant 0.000000e+00 : f32
    %434 = vector.shape_cast %330 : vector<1x16xi1> to vector<1x16xi1>
    %435 = vector.broadcast %434 : vector<1x16xi1> to vector<32x16xi1>
    %436 = vector.broadcast %cst_125 : f32 to vector<32x16xf32>
    %437 = arith.select %435, %433, %436 : vector<32x16xi1>, vector<32x16xf32>
    %438 = vector.extract_strided_slice %426 {offsets = [0, 4], sizes = [32, 16], strides = [1, 1]} : vector<32x26xf32> to vector<32x16xf32>
    %cst_126 = arith.constant 0.000000e+00 : f32
    %439 = vector.shape_cast %328 : vector<1x16xi1> to vector<1x16xi1>
    %440 = vector.broadcast %439 : vector<1x16xi1> to vector<32x16xi1>
    %441 = vector.broadcast %cst_126 : f32 to vector<32x16xf32>
    %442 = arith.select %440, %438, %441 : vector<32x16xi1>, vector<32x16xf32>
    %443 = vector.extract_strided_slice %426 {offsets = [0, 5], sizes = [32, 16], strides = [1, 1]} : vector<32x26xf32> to vector<32x16xf32>
    %444 = vector.extract_strided_slice %426 {offsets = [0, 6], sizes = [32, 16], strides = [1, 1]} : vector<32x26xf32> to vector<32x16xf32>
    %cst_127 = arith.constant 0.000000e+00 : f32
    %445 = vector.shape_cast %330 : vector<1x16xi1> to vector<1x16xi1>
    %446 = vector.broadcast %445 : vector<1x16xi1> to vector<32x16xi1>
    %447 = vector.broadcast %cst_127 : f32 to vector<32x16xf32>
    %448 = arith.select %446, %444, %447 : vector<32x16xi1>, vector<32x16xf32>
    %449 = vector.extract_strided_slice %426 {offsets = [0, 8], sizes = [32, 16], strides = [1, 1]} : vector<32x26xf32> to vector<32x16xf32>
    %cst_128 = arith.constant 0.000000e+00 : f32
    %450 = vector.shape_cast %328 : vector<1x16xi1> to vector<1x16xi1>
    %451 = vector.broadcast %450 : vector<1x16xi1> to vector<32x16xi1>
    %452 = vector.broadcast %cst_128 : f32 to vector<32x16xf32>
    %453 = arith.select %451, %449, %452 : vector<32x16xi1>, vector<32x16xf32>
    %454 = vector.extract_strided_slice %426 {offsets = [0, 9], sizes = [32, 16], strides = [1, 1]} : vector<32x26xf32> to vector<32x16xf32>
    %455 = vector.extract_strided_slice %426 {offsets = [0, 10], sizes = [32, 16], strides = [1, 1]} : vector<32x26xf32> to vector<32x16xf32>
    %cst_129 = arith.constant 0.000000e+00 : f32
    %456 = vector.shape_cast %330 : vector<1x16xi1> to vector<1x16xi1>
    %457 = vector.broadcast %456 : vector<1x16xi1> to vector<32x16xi1>
    %458 = vector.broadcast %cst_129 : f32 to vector<32x16xf32>
    %459 = arith.select %457, %455, %458 : vector<32x16xi1>, vector<32x16xf32>
    %460 = tpu.concatenate %335, %431, %432, %437, %442, %443, %448, %453, %454, %459 in 0 : vector<8x16xf32>, vector<32x16xf32>, vector<32x16xf32>, vector<32x16xf32>, vector<32x16xf32>, vector<32x16xf32>, vector<32x16xf32>, vector<32x16xf32>, vector<32x16xf32>, vector<32x16xf32> -> vector<296x16xf32>
    %cst_130 = arith.constant dense<0.000000e+00> : vector<32x16xf32>
    %461 = tpu.matmul %420, %460, %cst_130 {dimension_numbers = #tpu.dot_dimension_numbers<[1], [0], [0], [1], [0, 0, 1, 1], [], []>} : vector<32x296xf32>, vector<296x16xf32>, vector<32x16xf32> -> vector<32x16xf32>
    %cst_131 = arith.constant 0.000000e+00 : f32
    %462 = vector.broadcast %cst_131 : f32 to vector<32x16xf32>
    %463 = arith.maximumf %461, %462 : vector<32x16xf32>
    %cst_132 = arith.constant 0.000000e+00 : f32
    %464 = vector.broadcast %cst_132 : f32 to vector<32x5xf32>
    %465 = tpu.concatenate %464, %463, %464 in 1 : vector<32x5xf32>, vector<32x16xf32>, vector<32x5xf32> -> vector<32x26xf32>
    %466 = vector.extract_strided_slice %465 {offsets = [0, 0], sizes = [32, 16], strides = [1, 1]} : vector<32x26xf32> to vector<32x16xf32>
    %cst_133 = arith.constant 0.000000e+00 : f32
    %467 = vector.shape_cast %328 : vector<1x16xi1> to vector<1x16xi1>
    %468 = vector.broadcast %467 : vector<1x16xi1> to vector<32x16xi1>
    %469 = vector.broadcast %cst_133 : f32 to vector<32x16xf32>
    %470 = arith.select %468, %466, %469 : vector<32x16xi1>, vector<32x16xf32>
    %471 = vector.extract_strided_slice %465 {offsets = [0, 1], sizes = [32, 16], strides = [1, 1]} : vector<32x26xf32> to vector<32x16xf32>
    %472 = vector.extract_strided_slice %465 {offsets = [0, 2], sizes = [32, 16], strides = [1, 1]} : vector<32x26xf32> to vector<32x16xf32>
    %cst_134 = arith.constant 0.000000e+00 : f32
    %473 = vector.shape_cast %330 : vector<1x16xi1> to vector<1x16xi1>
    %474 = vector.broadcast %473 : vector<1x16xi1> to vector<32x16xi1>
    %475 = vector.broadcast %cst_134 : f32 to vector<32x16xf32>
    %476 = arith.select %474, %472, %475 : vector<32x16xi1>, vector<32x16xf32>
    %477 = vector.extract_strided_slice %465 {offsets = [0, 4], sizes = [32, 16], strides = [1, 1]} : vector<32x26xf32> to vector<32x16xf32>
    %cst_135 = arith.constant 0.000000e+00 : f32
    %478 = vector.shape_cast %328 : vector<1x16xi1> to vector<1x16xi1>
    %479 = vector.broadcast %478 : vector<1x16xi1> to vector<32x16xi1>
    %480 = vector.broadcast %cst_135 : f32 to vector<32x16xf32>
    %481 = arith.select %479, %477, %480 : vector<32x16xi1>, vector<32x16xf32>
    %482 = vector.extract_strided_slice %465 {offsets = [0, 5], sizes = [32, 16], strides = [1, 1]} : vector<32x26xf32> to vector<32x16xf32>
    %483 = vector.extract_strided_slice %465 {offsets = [0, 6], sizes = [32, 16], strides = [1, 1]} : vector<32x26xf32> to vector<32x16xf32>
    %cst_136 = arith.constant 0.000000e+00 : f32
    %484 = vector.shape_cast %330 : vector<1x16xi1> to vector<1x16xi1>
    %485 = vector.broadcast %484 : vector<1x16xi1> to vector<32x16xi1>
    %486 = vector.broadcast %cst_136 : f32 to vector<32x16xf32>
    %487 = arith.select %485, %483, %486 : vector<32x16xi1>, vector<32x16xf32>
    %488 = vector.extract_strided_slice %465 {offsets = [0, 8], sizes = [32, 16], strides = [1, 1]} : vector<32x26xf32> to vector<32x16xf32>
    %cst_137 = arith.constant 0.000000e+00 : f32
    %489 = vector.shape_cast %328 : vector<1x16xi1> to vector<1x16xi1>
    %490 = vector.broadcast %489 : vector<1x16xi1> to vector<32x16xi1>
    %491 = vector.broadcast %cst_137 : f32 to vector<32x16xf32>
    %492 = arith.select %490, %488, %491 : vector<32x16xi1>, vector<32x16xf32>
    %493 = vector.extract_strided_slice %465 {offsets = [0, 9], sizes = [32, 16], strides = [1, 1]} : vector<32x26xf32> to vector<32x16xf32>
    %494 = vector.extract_strided_slice %465 {offsets = [0, 10], sizes = [32, 16], strides = [1, 1]} : vector<32x26xf32> to vector<32x16xf32>
    %cst_138 = arith.constant 0.000000e+00 : f32
    %495 = vector.shape_cast %330 : vector<1x16xi1> to vector<1x16xi1>
    %496 = vector.broadcast %495 : vector<1x16xi1> to vector<32x16xi1>
    %497 = vector.broadcast %cst_138 : f32 to vector<32x16xf32>
    %498 = arith.select %496, %494, %497 : vector<32x16xi1>, vector<32x16xf32>
    %499 = tpu.concatenate %335, %470, %471, %476, %481, %482, %487, %492, %493, %498 in 0 : vector<8x16xf32>, vector<32x16xf32>, vector<32x16xf32>, vector<32x16xf32>, vector<32x16xf32>, vector<32x16xf32>, vector<32x16xf32>, vector<32x16xf32>, vector<32x16xf32>, vector<32x16xf32> -> vector<296x16xf32>
    %cst_139 = arith.constant dense<0.000000e+00> : vector<32x16xf32>
    %500 = tpu.matmul %422, %499, %cst_139 {dimension_numbers = #tpu.dot_dimension_numbers<[1], [0], [0], [1], [0, 0, 1, 1], [], []>} : vector<32x296xf32>, vector<296x16xf32>, vector<32x16xf32> -> vector<32x16xf32>
    %501 = arith.addf %500, %418 : vector<32x16xf32>
    %c0_140 = arith.constant 0 : index
    %c0_141 = arith.constant 0 : index
    %502 = vector.load %arg8[%c0_140, %c0_141] : memref<32x296xf32, #tpu.memory_space<vmem>>, vector<32x296xf32>
    %c0_142 = arith.constant 0 : index
    %c0_143 = arith.constant 0 : index
    %503 = vector.load %arg10[%c0_142, %c0_143] : memref<16x4xf32, #tpu.memory_space<vmem>>, vector<16x4xf32>
    %504 = tpu.iota {dimensions = array<i32: 1>} : vector<1x16xi32>
    %c3_i32_144 = arith.constant 3 : i32
    %505 = vector.broadcast %c3_i32_144 : i32 to vector<1x16xi32>
    %506 = arith.andi %504, %505 : vector<1x16xi32>
    %c0_i32_145 = arith.constant 0 : i32
    %507 = vector.broadcast %c0_i32_145 : i32 to vector<1x16xi32>
    %508 = arith.cmpi sgt, %506, %507 : vector<1x16xi32>
    %c3_i32_146 = arith.constant 3 : i32
    %509 = vector.broadcast %c3_i32_146 : i32 to vector<1x16xi32>
    %510 = arith.cmpi slt, %506, %509 : vector<1x16xi32>
    %511 = tpu.iota {dimensions = array<i32: 0>} : vector<8x16xi32>
    %c0_i32_147 = arith.constant 0 : i32
    %512 = vector.broadcast %c0_i32_147 : i32 to vector<8x16xi32>
    %513 = arith.cmpi eq, %511, %512 : vector<8x16xi32>
    %514 = arith.extui %513 : vector<8x16xi1> to vector<8x16xi32>
    %515 = arith.sitofp %514 : vector<8x16xi32> to vector<8x16xf32>
    %cst_148 = arith.constant 0.000000e+00 : f32
    %516 = vector.broadcast %cst_148 : f32 to vector<32x5xf32>
    %517 = tpu.concatenate %516, %501, %516 in 1 : vector<32x5xf32>, vector<32x16xf32>, vector<32x5xf32> -> vector<32x26xf32>
    %518 = vector.extract_strided_slice %517 {offsets = [0, 0], sizes = [32, 16], strides = [1, 1]} : vector<32x26xf32> to vector<32x16xf32>
    %cst_149 = arith.constant 0.000000e+00 : f32
    %519 = vector.shape_cast %508 : vector<1x16xi1> to vector<1x16xi1>
    %520 = vector.broadcast %519 : vector<1x16xi1> to vector<32x16xi1>
    %521 = vector.broadcast %cst_149 : f32 to vector<32x16xf32>
    %522 = arith.select %520, %518, %521 : vector<32x16xi1>, vector<32x16xf32>
    %523 = vector.extract_strided_slice %517 {offsets = [0, 1], sizes = [32, 16], strides = [1, 1]} : vector<32x26xf32> to vector<32x16xf32>
    %524 = vector.extract_strided_slice %517 {offsets = [0, 2], sizes = [32, 16], strides = [1, 1]} : vector<32x26xf32> to vector<32x16xf32>
    %cst_150 = arith.constant 0.000000e+00 : f32
    %525 = vector.shape_cast %510 : vector<1x16xi1> to vector<1x16xi1>
    %526 = vector.broadcast %525 : vector<1x16xi1> to vector<32x16xi1>
    %527 = vector.broadcast %cst_150 : f32 to vector<32x16xf32>
    %528 = arith.select %526, %524, %527 : vector<32x16xi1>, vector<32x16xf32>
    %529 = vector.extract_strided_slice %517 {offsets = [0, 4], sizes = [32, 16], strides = [1, 1]} : vector<32x26xf32> to vector<32x16xf32>
    %cst_151 = arith.constant 0.000000e+00 : f32
    %530 = vector.shape_cast %508 : vector<1x16xi1> to vector<1x16xi1>
    %531 = vector.broadcast %530 : vector<1x16xi1> to vector<32x16xi1>
    %532 = vector.broadcast %cst_151 : f32 to vector<32x16xf32>
    %533 = arith.select %531, %529, %532 : vector<32x16xi1>, vector<32x16xf32>
    %534 = vector.extract_strided_slice %517 {offsets = [0, 5], sizes = [32, 16], strides = [1, 1]} : vector<32x26xf32> to vector<32x16xf32>
    %535 = vector.extract_strided_slice %517 {offsets = [0, 6], sizes = [32, 16], strides = [1, 1]} : vector<32x26xf32> to vector<32x16xf32>
    %cst_152 = arith.constant 0.000000e+00 : f32
    %536 = vector.shape_cast %510 : vector<1x16xi1> to vector<1x16xi1>
    %537 = vector.broadcast %536 : vector<1x16xi1> to vector<32x16xi1>
    %538 = vector.broadcast %cst_152 : f32 to vector<32x16xf32>
    %539 = arith.select %537, %535, %538 : vector<32x16xi1>, vector<32x16xf32>
    %540 = vector.extract_strided_slice %517 {offsets = [0, 8], sizes = [32, 16], strides = [1, 1]} : vector<32x26xf32> to vector<32x16xf32>
    %cst_153 = arith.constant 0.000000e+00 : f32
    %541 = vector.shape_cast %508 : vector<1x16xi1> to vector<1x16xi1>
    %542 = vector.broadcast %541 : vector<1x16xi1> to vector<32x16xi1>
    %543 = vector.broadcast %cst_153 : f32 to vector<32x16xf32>
    %544 = arith.select %542, %540, %543 : vector<32x16xi1>, vector<32x16xf32>
    %545 = vector.extract_strided_slice %517 {offsets = [0, 9], sizes = [32, 16], strides = [1, 1]} : vector<32x26xf32> to vector<32x16xf32>
    %546 = vector.extract_strided_slice %517 {offsets = [0, 10], sizes = [32, 16], strides = [1, 1]} : vector<32x26xf32> to vector<32x16xf32>
    %cst_154 = arith.constant 0.000000e+00 : f32
    %547 = vector.shape_cast %510 : vector<1x16xi1> to vector<1x16xi1>
    %548 = vector.broadcast %547 : vector<1x16xi1> to vector<32x16xi1>
    %549 = vector.broadcast %cst_154 : f32 to vector<32x16xf32>
    %550 = arith.select %548, %546, %549 : vector<32x16xi1>, vector<32x16xf32>
    %551 = tpu.concatenate %515, %522, %523, %528, %533, %534, %539, %544, %545, %550 in 0 : vector<8x16xf32>, vector<32x16xf32>, vector<32x16xf32>, vector<32x16xf32>, vector<32x16xf32>, vector<32x16xf32>, vector<32x16xf32>, vector<32x16xf32>, vector<32x16xf32>, vector<32x16xf32> -> vector<296x16xf32>
    %cst_155 = arith.constant dense<0.000000e+00> : vector<32x16xf32>
    %552 = tpu.matmul %502, %551, %cst_155 {dimension_numbers = #tpu.dot_dimension_numbers<[1], [0], [0], [1], [0, 0, 1, 1], [], []>} : vector<32x296xf32>, vector<296x16xf32>, vector<32x16xf32> -> vector<32x16xf32>
    %cst_156 = arith.constant -1.000000e+30 : f32
    %553 = vector.broadcast %cst_156 : f32 to vector<32x1xf32>
    %554 = tpu.concatenate %553, %552, %553 in 1 : vector<32x1xf32>, vector<32x16xf32>, vector<32x1xf32> -> vector<32x18xf32>
    %555 = vector.extract_strided_slice %554 {offsets = [0, 0], sizes = [32, 16], strides = [1, 1]} : vector<32x18xf32> to vector<32x16xf32>
    %cst_157 = arith.constant -1.000000e+30 : f32
    %556 = vector.shape_cast %508 : vector<1x16xi1> to vector<1x16xi1>
    %557 = vector.broadcast %556 : vector<1x16xi1> to vector<32x16xi1>
    %558 = vector.broadcast %cst_157 : f32 to vector<32x16xf32>
    %559 = arith.select %557, %555, %558 : vector<32x16xi1>, vector<32x16xf32>
    %560 = vector.extract_strided_slice %554 {offsets = [0, 2], sizes = [32, 16], strides = [1, 1]} : vector<32x18xf32> to vector<32x16xf32>
    %cst_158 = arith.constant -1.000000e+30 : f32
    %561 = vector.shape_cast %510 : vector<1x16xi1> to vector<1x16xi1>
    %562 = vector.broadcast %561 : vector<1x16xi1> to vector<32x16xi1>
    %563 = vector.broadcast %cst_158 : f32 to vector<32x16xf32>
    %564 = arith.select %562, %560, %563 : vector<32x16xi1>, vector<32x16xf32>
    %565 = arith.maximumf %559, %564 : vector<32x16xf32>
    %566 = arith.maximumf %552, %565 : vector<32x16xf32>
    %cst_159 = arith.constant -1.000000e+30 : f32
    %567 = vector.broadcast %cst_159 : f32 to vector<32x4xf32>
    %568 = tpu.concatenate %567, %566, %567 in 1 : vector<32x4xf32>, vector<32x16xf32>, vector<32x4xf32> -> vector<32x24xf32>
    %569 = vector.extract_strided_slice %568 {offsets = [0, 0], sizes = [32, 16], strides = [1, 1]} : vector<32x24xf32> to vector<32x16xf32>
    %570 = vector.extract_strided_slice %568 {offsets = [0, 8], sizes = [32, 16], strides = [1, 1]} : vector<32x24xf32> to vector<32x16xf32>
    %571 = arith.maximumf %569, %570 : vector<32x16xf32>
    %572 = arith.maximumf %566, %571 : vector<32x16xf32>
    %cst_160 = arith.constant dense<0.000000e+00> : vector<32x4xf32>
    %573 = tpu.matmul %572, %503, %cst_160 {dimension_numbers = #tpu.dot_dimension_numbers<[1], [0], [0], [1], [0, 0, 1, 1], [], []>} : vector<32x16xf32>, vector<16x4xf32>, vector<32x4xf32> -> vector<32x4xf32>
    %574 = tpu.iota {dimensions = array<i32: 1>} : vector<1x4xi32>
    %c1_i32 = arith.constant 1 : i32
    %575 = vector.broadcast %c1_i32 : i32 to vector<1x4xi32>
    %576 = arith.andi %574, %575 : vector<1x4xi32>
    %c0_i32_161 = arith.constant 0 : i32
    %577 = vector.broadcast %c0_i32_161 : i32 to vector<1x4xi32>
    %578 = arith.cmpi sgt, %576, %577 : vector<1x4xi32>
    %c1_i32_162 = arith.constant 1 : i32
    %579 = vector.broadcast %c1_i32_162 : i32 to vector<1x4xi32>
    %580 = arith.cmpi slt, %576, %579 : vector<1x4xi32>
    %581 = tpu.iota {dimensions = array<i32: 0>} : vector<8x4xi32>
    %c0_i32_163 = arith.constant 0 : i32
    %582 = vector.broadcast %c0_i32_163 : i32 to vector<8x4xi32>
    %583 = arith.cmpi eq, %581, %582 : vector<8x4xi32>
    %584 = arith.extui %583 : vector<8x4xi1> to vector<8x4xi32>
    %585 = arith.sitofp %584 : vector<8x4xi32> to vector<8x4xf32>
    %c0_164 = arith.constant 0 : index
    %c0_165 = arith.constant 0 : index
    %c0_166 = arith.constant 0 : index
    %586 = vector.load %arg9[%c0_164, %c0_165, %c0_166] : memref<4x32x296xf32, #tpu.memory_space<vmem>>, vector<1x32x296xf32>
    %587 = vector.shape_cast %586 : vector<1x32x296xf32> to vector<32x296xf32>
    %c1_167 = arith.constant 1 : index
    %c0_168 = arith.constant 0 : index
    %c0_169 = arith.constant 0 : index
    %588 = vector.load %arg9[%c1_167, %c0_168, %c0_169] : memref<4x32x296xf32, #tpu.memory_space<vmem>>, vector<1x32x296xf32>
    %589 = vector.shape_cast %588 : vector<1x32x296xf32> to vector<32x296xf32>
    %cst_170 = arith.constant 0.000000e+00 : f32
    %590 = vector.broadcast %cst_170 : f32 to vector<32x4xf32>
    %591 = arith.maximumf %573, %590 : vector<32x4xf32>
    %cst_171 = arith.constant 0.000000e+00 : f32
    %592 = vector.broadcast %cst_171 : f32 to vector<32x3xf32>
    %593 = tpu.concatenate %592, %591, %592 in 1 : vector<32x3xf32>, vector<32x4xf32>, vector<32x3xf32> -> vector<32x10xf32>
    %594 = vector.extract_strided_slice %593 {offsets = [0, 0], sizes = [32, 4], strides = [1, 1]} : vector<32x10xf32> to vector<32x4xf32>
    %cst_172 = arith.constant 0.000000e+00 : f32
    %595 = vector.shape_cast %578 : vector<1x4xi1> to vector<1x4xi1>
    %596 = vector.broadcast %595 : vector<1x4xi1> to vector<32x4xi1>
    %597 = vector.broadcast %cst_172 : f32 to vector<32x4xf32>
    %598 = arith.select %596, %594, %597 : vector<32x4xi1>, vector<32x4xf32>
    %599 = vector.extract_strided_slice %593 {offsets = [0, 1], sizes = [32, 4], strides = [1, 1]} : vector<32x10xf32> to vector<32x4xf32>
    %600 = vector.extract_strided_slice %593 {offsets = [0, 2], sizes = [32, 4], strides = [1, 1]} : vector<32x10xf32> to vector<32x4xf32>
    %cst_173 = arith.constant 0.000000e+00 : f32
    %601 = vector.shape_cast %580 : vector<1x4xi1> to vector<1x4xi1>
    %602 = vector.broadcast %601 : vector<1x4xi1> to vector<32x4xi1>
    %603 = vector.broadcast %cst_173 : f32 to vector<32x4xf32>
    %604 = arith.select %602, %600, %603 : vector<32x4xi1>, vector<32x4xf32>
    %605 = vector.extract_strided_slice %593 {offsets = [0, 2], sizes = [32, 4], strides = [1, 1]} : vector<32x10xf32> to vector<32x4xf32>
    %cst_174 = arith.constant 0.000000e+00 : f32
    %606 = vector.shape_cast %578 : vector<1x4xi1> to vector<1x4xi1>
    %607 = vector.broadcast %606 : vector<1x4xi1> to vector<32x4xi1>
    %608 = vector.broadcast %cst_174 : f32 to vector<32x4xf32>
    %609 = arith.select %607, %605, %608 : vector<32x4xi1>, vector<32x4xf32>
    %610 = vector.extract_strided_slice %593 {offsets = [0, 3], sizes = [32, 4], strides = [1, 1]} : vector<32x10xf32> to vector<32x4xf32>
    %611 = vector.extract_strided_slice %593 {offsets = [0, 4], sizes = [32, 4], strides = [1, 1]} : vector<32x10xf32> to vector<32x4xf32>
    %cst_175 = arith.constant 0.000000e+00 : f32
    %612 = vector.shape_cast %580 : vector<1x4xi1> to vector<1x4xi1>
    %613 = vector.broadcast %612 : vector<1x4xi1> to vector<32x4xi1>
    %614 = vector.broadcast %cst_175 : f32 to vector<32x4xf32>
    %615 = arith.select %613, %611, %614 : vector<32x4xi1>, vector<32x4xf32>
    %616 = vector.extract_strided_slice %593 {offsets = [0, 4], sizes = [32, 4], strides = [1, 1]} : vector<32x10xf32> to vector<32x4xf32>
    %cst_176 = arith.constant 0.000000e+00 : f32
    %617 = vector.shape_cast %578 : vector<1x4xi1> to vector<1x4xi1>
    %618 = vector.broadcast %617 : vector<1x4xi1> to vector<32x4xi1>
    %619 = vector.broadcast %cst_176 : f32 to vector<32x4xf32>
    %620 = arith.select %618, %616, %619 : vector<32x4xi1>, vector<32x4xf32>
    %621 = vector.extract_strided_slice %593 {offsets = [0, 5], sizes = [32, 4], strides = [1, 1]} : vector<32x10xf32> to vector<32x4xf32>
    %622 = vector.extract_strided_slice %593 {offsets = [0, 6], sizes = [32, 4], strides = [1, 1]} : vector<32x10xf32> to vector<32x4xf32>
    %cst_177 = arith.constant 0.000000e+00 : f32
    %623 = vector.shape_cast %580 : vector<1x4xi1> to vector<1x4xi1>
    %624 = vector.broadcast %623 : vector<1x4xi1> to vector<32x4xi1>
    %625 = vector.broadcast %cst_177 : f32 to vector<32x4xf32>
    %626 = arith.select %624, %622, %625 : vector<32x4xi1>, vector<32x4xf32>
    %627 = tpu.concatenate %585, %598, %599, %604, %609, %610, %615, %620, %621, %626 in 0 : vector<8x4xf32>, vector<32x4xf32>, vector<32x4xf32>, vector<32x4xf32>, vector<32x4xf32>, vector<32x4xf32>, vector<32x4xf32>, vector<32x4xf32>, vector<32x4xf32>, vector<32x4xf32> -> vector<296x4xf32>
    %cst_178 = arith.constant dense<0.000000e+00> : vector<32x4xf32>
    %628 = tpu.matmul %587, %627, %cst_178 {dimension_numbers = #tpu.dot_dimension_numbers<[1], [0], [0], [1], [0, 0, 1, 1], [], []>} : vector<32x296xf32>, vector<296x4xf32>, vector<32x4xf32> -> vector<32x4xf32>
    %cst_179 = arith.constant 0.000000e+00 : f32
    %629 = vector.broadcast %cst_179 : f32 to vector<32x4xf32>
    %630 = arith.maximumf %628, %629 : vector<32x4xf32>
    %cst_180 = arith.constant 0.000000e+00 : f32
    %631 = vector.broadcast %cst_180 : f32 to vector<32x3xf32>
    %632 = tpu.concatenate %631, %630, %631 in 1 : vector<32x3xf32>, vector<32x4xf32>, vector<32x3xf32> -> vector<32x10xf32>
    %633 = vector.extract_strided_slice %632 {offsets = [0, 0], sizes = [32, 4], strides = [1, 1]} : vector<32x10xf32> to vector<32x4xf32>
    %cst_181 = arith.constant 0.000000e+00 : f32
    %634 = vector.shape_cast %578 : vector<1x4xi1> to vector<1x4xi1>
    %635 = vector.broadcast %634 : vector<1x4xi1> to vector<32x4xi1>
    %636 = vector.broadcast %cst_181 : f32 to vector<32x4xf32>
    %637 = arith.select %635, %633, %636 : vector<32x4xi1>, vector<32x4xf32>
    %638 = vector.extract_strided_slice %632 {offsets = [0, 1], sizes = [32, 4], strides = [1, 1]} : vector<32x10xf32> to vector<32x4xf32>
    %639 = vector.extract_strided_slice %632 {offsets = [0, 2], sizes = [32, 4], strides = [1, 1]} : vector<32x10xf32> to vector<32x4xf32>
    %cst_182 = arith.constant 0.000000e+00 : f32
    %640 = vector.shape_cast %580 : vector<1x4xi1> to vector<1x4xi1>
    %641 = vector.broadcast %640 : vector<1x4xi1> to vector<32x4xi1>
    %642 = vector.broadcast %cst_182 : f32 to vector<32x4xf32>
    %643 = arith.select %641, %639, %642 : vector<32x4xi1>, vector<32x4xf32>
    %644 = vector.extract_strided_slice %632 {offsets = [0, 2], sizes = [32, 4], strides = [1, 1]} : vector<32x10xf32> to vector<32x4xf32>
    %cst_183 = arith.constant 0.000000e+00 : f32
    %645 = vector.shape_cast %578 : vector<1x4xi1> to vector<1x4xi1>
    %646 = vector.broadcast %645 : vector<1x4xi1> to vector<32x4xi1>
    %647 = vector.broadcast %cst_183 : f32 to vector<32x4xf32>
    %648 = arith.select %646, %644, %647 : vector<32x4xi1>, vector<32x4xf32>
    %649 = vector.extract_strided_slice %632 {offsets = [0, 3], sizes = [32, 4], strides = [1, 1]} : vector<32x10xf32> to vector<32x4xf32>
    %650 = vector.extract_strided_slice %632 {offsets = [0, 4], sizes = [32, 4], strides = [1, 1]} : vector<32x10xf32> to vector<32x4xf32>
    %cst_184 = arith.constant 0.000000e+00 : f32
    %651 = vector.shape_cast %580 : vector<1x4xi1> to vector<1x4xi1>
    %652 = vector.broadcast %651 : vector<1x4xi1> to vector<32x4xi1>
    %653 = vector.broadcast %cst_184 : f32 to vector<32x4xf32>
    %654 = arith.select %652, %650, %653 : vector<32x4xi1>, vector<32x4xf32>
    %655 = vector.extract_strided_slice %632 {offsets = [0, 4], sizes = [32, 4], strides = [1, 1]} : vector<32x10xf32> to vector<32x4xf32>
    %cst_185 = arith.constant 0.000000e+00 : f32
    %656 = vector.shape_cast %578 : vector<1x4xi1> to vector<1x4xi1>
    %657 = vector.broadcast %656 : vector<1x4xi1> to vector<32x4xi1>
    %658 = vector.broadcast %cst_185 : f32 to vector<32x4xf32>
    %659 = arith.select %657, %655, %658 : vector<32x4xi1>, vector<32x4xf32>
    %660 = vector.extract_strided_slice %632 {offsets = [0, 5], sizes = [32, 4], strides = [1, 1]} : vector<32x10xf32> to vector<32x4xf32>
    %661 = vector.extract_strided_slice %632 {offsets = [0, 6], sizes = [32, 4], strides = [1, 1]} : vector<32x10xf32> to vector<32x4xf32>
    %cst_186 = arith.constant 0.000000e+00 : f32
    %662 = vector.shape_cast %580 : vector<1x4xi1> to vector<1x4xi1>
    %663 = vector.broadcast %662 : vector<1x4xi1> to vector<32x4xi1>
    %664 = vector.broadcast %cst_186 : f32 to vector<32x4xf32>
    %665 = arith.select %663, %661, %664 : vector<32x4xi1>, vector<32x4xf32>
    %666 = tpu.concatenate %585, %637, %638, %643, %648, %649, %654, %659, %660, %665 in 0 : vector<8x4xf32>, vector<32x4xf32>, vector<32x4xf32>, vector<32x4xf32>, vector<32x4xf32>, vector<32x4xf32>, vector<32x4xf32>, vector<32x4xf32>, vector<32x4xf32>, vector<32x4xf32> -> vector<296x4xf32>
    %cst_187 = arith.constant dense<0.000000e+00> : vector<32x4xf32>
    %667 = tpu.matmul %589, %666, %cst_187 {dimension_numbers = #tpu.dot_dimension_numbers<[1], [0], [0], [1], [0, 0, 1, 1], [], []>} : vector<32x296xf32>, vector<296x4xf32>, vector<32x4xf32> -> vector<32x4xf32>
    %668 = arith.addf %667, %573 : vector<32x4xf32>
    %c2_188 = arith.constant 2 : index
    %c0_189 = arith.constant 0 : index
    %c0_190 = arith.constant 0 : index
    %669 = vector.load %arg9[%c2_188, %c0_189, %c0_190] : memref<4x32x296xf32, #tpu.memory_space<vmem>>, vector<1x32x296xf32>
    %670 = vector.shape_cast %669 : vector<1x32x296xf32> to vector<32x296xf32>
    %c3_191 = arith.constant 3 : index
    %c0_192 = arith.constant 0 : index
    %c0_193 = arith.constant 0 : index
    %671 = vector.load %arg9[%c3_191, %c0_192, %c0_193] : memref<4x32x296xf32, #tpu.memory_space<vmem>>, vector<1x32x296xf32>
    %672 = vector.shape_cast %671 : vector<1x32x296xf32> to vector<32x296xf32>
    %cst_194 = arith.constant 0.000000e+00 : f32
    %673 = vector.broadcast %cst_194 : f32 to vector<32x4xf32>
    %674 = arith.maximumf %668, %673 : vector<32x4xf32>
    %cst_195 = arith.constant 0.000000e+00 : f32
    %675 = vector.broadcast %cst_195 : f32 to vector<32x3xf32>
    %676 = tpu.concatenate %675, %674, %675 in 1 : vector<32x3xf32>, vector<32x4xf32>, vector<32x3xf32> -> vector<32x10xf32>
    %677 = vector.extract_strided_slice %676 {offsets = [0, 0], sizes = [32, 4], strides = [1, 1]} : vector<32x10xf32> to vector<32x4xf32>
    %cst_196 = arith.constant 0.000000e+00 : f32
    %678 = vector.shape_cast %578 : vector<1x4xi1> to vector<1x4xi1>
    %679 = vector.broadcast %678 : vector<1x4xi1> to vector<32x4xi1>
    %680 = vector.broadcast %cst_196 : f32 to vector<32x4xf32>
    %681 = arith.select %679, %677, %680 : vector<32x4xi1>, vector<32x4xf32>
    %682 = vector.extract_strided_slice %676 {offsets = [0, 1], sizes = [32, 4], strides = [1, 1]} : vector<32x10xf32> to vector<32x4xf32>
    %683 = vector.extract_strided_slice %676 {offsets = [0, 2], sizes = [32, 4], strides = [1, 1]} : vector<32x10xf32> to vector<32x4xf32>
    %cst_197 = arith.constant 0.000000e+00 : f32
    %684 = vector.shape_cast %580 : vector<1x4xi1> to vector<1x4xi1>
    %685 = vector.broadcast %684 : vector<1x4xi1> to vector<32x4xi1>
    %686 = vector.broadcast %cst_197 : f32 to vector<32x4xf32>
    %687 = arith.select %685, %683, %686 : vector<32x4xi1>, vector<32x4xf32>
    %688 = vector.extract_strided_slice %676 {offsets = [0, 2], sizes = [32, 4], strides = [1, 1]} : vector<32x10xf32> to vector<32x4xf32>
    %cst_198 = arith.constant 0.000000e+00 : f32
    %689 = vector.shape_cast %578 : vector<1x4xi1> to vector<1x4xi1>
    %690 = vector.broadcast %689 : vector<1x4xi1> to vector<32x4xi1>
    %691 = vector.broadcast %cst_198 : f32 to vector<32x4xf32>
    %692 = arith.select %690, %688, %691 : vector<32x4xi1>, vector<32x4xf32>
    %693 = vector.extract_strided_slice %676 {offsets = [0, 3], sizes = [32, 4], strides = [1, 1]} : vector<32x10xf32> to vector<32x4xf32>
    %694 = vector.extract_strided_slice %676 {offsets = [0, 4], sizes = [32, 4], strides = [1, 1]} : vector<32x10xf32> to vector<32x4xf32>
    %cst_199 = arith.constant 0.000000e+00 : f32
    %695 = vector.shape_cast %580 : vector<1x4xi1> to vector<1x4xi1>
    %696 = vector.broadcast %695 : vector<1x4xi1> to vector<32x4xi1>
    %697 = vector.broadcast %cst_199 : f32 to vector<32x4xf32>
    %698 = arith.select %696, %694, %697 : vector<32x4xi1>, vector<32x4xf32>
    %699 = vector.extract_strided_slice %676 {offsets = [0, 4], sizes = [32, 4], strides = [1, 1]} : vector<32x10xf32> to vector<32x4xf32>
    %cst_200 = arith.constant 0.000000e+00 : f32
    %700 = vector.shape_cast %578 : vector<1x4xi1> to vector<1x4xi1>
    %701 = vector.broadcast %700 : vector<1x4xi1> to vector<32x4xi1>
    %702 = vector.broadcast %cst_200 : f32 to vector<32x4xf32>
    %703 = arith.select %701, %699, %702 : vector<32x4xi1>, vector<32x4xf32>
    %704 = vector.extract_strided_slice %676 {offsets = [0, 5], sizes = [32, 4], strides = [1, 1]} : vector<32x10xf32> to vector<32x4xf32>
    %705 = vector.extract_strided_slice %676 {offsets = [0, 6], sizes = [32, 4], strides = [1, 1]} : vector<32x10xf32> to vector<32x4xf32>
    %cst_201 = arith.constant 0.000000e+00 : f32
    %706 = vector.shape_cast %580 : vector<1x4xi1> to vector<1x4xi1>
    %707 = vector.broadcast %706 : vector<1x4xi1> to vector<32x4xi1>
    %708 = vector.broadcast %cst_201 : f32 to vector<32x4xf32>
    %709 = arith.select %707, %705, %708 : vector<32x4xi1>, vector<32x4xf32>
    %710 = tpu.concatenate %585, %681, %682, %687, %692, %693, %698, %703, %704, %709 in 0 : vector<8x4xf32>, vector<32x4xf32>, vector<32x4xf32>, vector<32x4xf32>, vector<32x4xf32>, vector<32x4xf32>, vector<32x4xf32>, vector<32x4xf32>, vector<32x4xf32>, vector<32x4xf32> -> vector<296x4xf32>
    %cst_202 = arith.constant dense<0.000000e+00> : vector<32x4xf32>
    %711 = tpu.matmul %670, %710, %cst_202 {dimension_numbers = #tpu.dot_dimension_numbers<[1], [0], [0], [1], [0, 0, 1, 1], [], []>} : vector<32x296xf32>, vector<296x4xf32>, vector<32x4xf32> -> vector<32x4xf32>
    %cst_203 = arith.constant 0.000000e+00 : f32
    %712 = vector.broadcast %cst_203 : f32 to vector<32x4xf32>
    %713 = arith.maximumf %711, %712 : vector<32x4xf32>
    %cst_204 = arith.constant 0.000000e+00 : f32
    %714 = vector.broadcast %cst_204 : f32 to vector<32x3xf32>
    %715 = tpu.concatenate %714, %713, %714 in 1 : vector<32x3xf32>, vector<32x4xf32>, vector<32x3xf32> -> vector<32x10xf32>
    %716 = vector.extract_strided_slice %715 {offsets = [0, 0], sizes = [32, 4], strides = [1, 1]} : vector<32x10xf32> to vector<32x4xf32>
    %cst_205 = arith.constant 0.000000e+00 : f32
    %717 = vector.shape_cast %578 : vector<1x4xi1> to vector<1x4xi1>
    %718 = vector.broadcast %717 : vector<1x4xi1> to vector<32x4xi1>
    %719 = vector.broadcast %cst_205 : f32 to vector<32x4xf32>
    %720 = arith.select %718, %716, %719 : vector<32x4xi1>, vector<32x4xf32>
    %721 = vector.extract_strided_slice %715 {offsets = [0, 1], sizes = [32, 4], strides = [1, 1]} : vector<32x10xf32> to vector<32x4xf32>
    %722 = vector.extract_strided_slice %715 {offsets = [0, 2], sizes = [32, 4], strides = [1, 1]} : vector<32x10xf32> to vector<32x4xf32>
    %cst_206 = arith.constant 0.000000e+00 : f32
    %723 = vector.shape_cast %580 : vector<1x4xi1> to vector<1x4xi1>
    %724 = vector.broadcast %723 : vector<1x4xi1> to vector<32x4xi1>
    %725 = vector.broadcast %cst_206 : f32 to vector<32x4xf32>
    %726 = arith.select %724, %722, %725 : vector<32x4xi1>, vector<32x4xf32>
    %727 = vector.extract_strided_slice %715 {offsets = [0, 2], sizes = [32, 4], strides = [1, 1]} : vector<32x10xf32> to vector<32x4xf32>
    %cst_207 = arith.constant 0.000000e+00 : f32
    %728 = vector.shape_cast %578 : vector<1x4xi1> to vector<1x4xi1>
    %729 = vector.broadcast %728 : vector<1x4xi1> to vector<32x4xi1>
    %730 = vector.broadcast %cst_207 : f32 to vector<32x4xf32>
    %731 = arith.select %729, %727, %730 : vector<32x4xi1>, vector<32x4xf32>
    %732 = vector.extract_strided_slice %715 {offsets = [0, 3], sizes = [32, 4], strides = [1, 1]} : vector<32x10xf32> to vector<32x4xf32>
    %733 = vector.extract_strided_slice %715 {offsets = [0, 4], sizes = [32, 4], strides = [1, 1]} : vector<32x10xf32> to vector<32x4xf32>
    %cst_208 = arith.constant 0.000000e+00 : f32
    %734 = vector.shape_cast %580 : vector<1x4xi1> to vector<1x4xi1>
    %735 = vector.broadcast %734 : vector<1x4xi1> to vector<32x4xi1>
    %736 = vector.broadcast %cst_208 : f32 to vector<32x4xf32>
    %737 = arith.select %735, %733, %736 : vector<32x4xi1>, vector<32x4xf32>
    %738 = vector.extract_strided_slice %715 {offsets = [0, 4], sizes = [32, 4], strides = [1, 1]} : vector<32x10xf32> to vector<32x4xf32>
    %cst_209 = arith.constant 0.000000e+00 : f32
    %739 = vector.shape_cast %578 : vector<1x4xi1> to vector<1x4xi1>
    %740 = vector.broadcast %739 : vector<1x4xi1> to vector<32x4xi1>
    %741 = vector.broadcast %cst_209 : f32 to vector<32x4xf32>
    %742 = arith.select %740, %738, %741 : vector<32x4xi1>, vector<32x4xf32>
    %743 = vector.extract_strided_slice %715 {offsets = [0, 5], sizes = [32, 4], strides = [1, 1]} : vector<32x10xf32> to vector<32x4xf32>
    %744 = vector.extract_strided_slice %715 {offsets = [0, 6], sizes = [32, 4], strides = [1, 1]} : vector<32x10xf32> to vector<32x4xf32>
    %cst_210 = arith.constant 0.000000e+00 : f32
    %745 = vector.shape_cast %580 : vector<1x4xi1> to vector<1x4xi1>
    %746 = vector.broadcast %745 : vector<1x4xi1> to vector<32x4xi1>
    %747 = vector.broadcast %cst_210 : f32 to vector<32x4xf32>
    %748 = arith.select %746, %744, %747 : vector<32x4xi1>, vector<32x4xf32>
    %749 = tpu.concatenate %585, %720, %721, %726, %731, %732, %737, %742, %743, %748 in 0 : vector<8x4xf32>, vector<32x4xf32>, vector<32x4xf32>, vector<32x4xf32>, vector<32x4xf32>, vector<32x4xf32>, vector<32x4xf32>, vector<32x4xf32>, vector<32x4xf32>, vector<32x4xf32> -> vector<296x4xf32>
    %cst_211 = arith.constant dense<0.000000e+00> : vector<32x4xf32>
    %750 = tpu.matmul %672, %749, %cst_211 {dimension_numbers = #tpu.dot_dimension_numbers<[1], [0], [0], [1], [0, 0, 1, 1], [], []>} : vector<32x296xf32>, vector<296x4xf32>, vector<32x4xf32> -> vector<32x4xf32>
    %751 = arith.addf %750, %668 : vector<32x4xf32>
    %cst_212 = arith.constant 0.000000e+00 : f32
    %752 = vector.broadcast %cst_212 : f32 to vector<32x4xf32>
    %753 = arith.maximumf %751, %752 : vector<32x4xf32>
    %754 = vector.extract_strided_slice %753 {offsets = [0, 0], sizes = [1, 4], strides = [1, 1]} : vector<32x4xf32> to vector<1x4xf32>
    %c0_213 = arith.constant 0 : index
    %c0_214 = arith.constant 0 : index
    %755 = vector.load %arg14[%c0_213, %c0_214] : memref<1x128xf32, #tpu.memory_space<vmem>>, vector<1x4xf32>
    tpu.vector_store %arg14[%c0_213, %c0_214], %754 {strides = array<i32>} : memref<1x128xf32, #tpu.memory_space<vmem>>, vector<1x4xf32>,
    %756 = vector.extract_strided_slice %753 {offsets = [1, 0], sizes = [1, 4], strides = [1, 1]} : vector<32x4xf32> to vector<1x4xf32>
    %c0_215 = arith.constant 0 : index
    %c4 = arith.constant 4 : index
    %757 = vector.load %arg14[%c0_215, %c4] : memref<1x128xf32, #tpu.memory_space<vmem>>, vector<1x4xf32>
    tpu.vector_store %arg14[%c0_215, %c4], %756 {strides = array<i32>} : memref<1x128xf32, #tpu.memory_space<vmem>>, vector<1x4xf32>,
    %758 = vector.extract_strided_slice %753 {offsets = [2, 0], sizes = [1, 4], strides = [1, 1]} : vector<32x4xf32> to vector<1x4xf32>
    %c0_216 = arith.constant 0 : index
    %c8 = arith.constant 8 : index
    %759 = vector.load %arg14[%c0_216, %c8] : memref<1x128xf32, #tpu.memory_space<vmem>>, vector<1x4xf32>
    tpu.vector_store %arg14[%c0_216, %c8], %758 {strides = array<i32>} : memref<1x128xf32, #tpu.memory_space<vmem>>, vector<1x4xf32>,
    %760 = vector.extract_strided_slice %753 {offsets = [3, 0], sizes = [1, 4], strides = [1, 1]} : vector<32x4xf32> to vector<1x4xf32>
    %c0_217 = arith.constant 0 : index
    %c12 = arith.constant 12 : index
    %761 = vector.load %arg14[%c0_217, %c12] : memref<1x128xf32, #tpu.memory_space<vmem>>, vector<1x4xf32>
    tpu.vector_store %arg14[%c0_217, %c12], %760 {strides = array<i32>} : memref<1x128xf32, #tpu.memory_space<vmem>>, vector<1x4xf32>,
    %762 = vector.extract_strided_slice %753 {offsets = [4, 0], sizes = [1, 4], strides = [1, 1]} : vector<32x4xf32> to vector<1x4xf32>
    %c0_218 = arith.constant 0 : index
    %c16 = arith.constant 16 : index
    %763 = vector.load %arg14[%c0_218, %c16] : memref<1x128xf32, #tpu.memory_space<vmem>>, vector<1x4xf32>
    tpu.vector_store %arg14[%c0_218, %c16], %762 {strides = array<i32>} : memref<1x128xf32, #tpu.memory_space<vmem>>, vector<1x4xf32>,
    %764 = vector.extract_strided_slice %753 {offsets = [5, 0], sizes = [1, 4], strides = [1, 1]} : vector<32x4xf32> to vector<1x4xf32>
    %c0_219 = arith.constant 0 : index
    %c20 = arith.constant 20 : index
    %765 = vector.load %arg14[%c0_219, %c20] : memref<1x128xf32, #tpu.memory_space<vmem>>, vector<1x4xf32>
    tpu.vector_store %arg14[%c0_219, %c20], %764 {strides = array<i32>} : memref<1x128xf32, #tpu.memory_space<vmem>>, vector<1x4xf32>,
    %766 = vector.extract_strided_slice %753 {offsets = [6, 0], sizes = [1, 4], strides = [1, 1]} : vector<32x4xf32> to vector<1x4xf32>
    %c0_220 = arith.constant 0 : index
    %c24 = arith.constant 24 : index
    %767 = vector.load %arg14[%c0_220, %c24] : memref<1x128xf32, #tpu.memory_space<vmem>>, vector<1x4xf32>
    tpu.vector_store %arg14[%c0_220, %c24], %766 {strides = array<i32>} : memref<1x128xf32, #tpu.memory_space<vmem>>, vector<1x4xf32>,
    %768 = vector.extract_strided_slice %753 {offsets = [7, 0], sizes = [1, 4], strides = [1, 1]} : vector<32x4xf32> to vector<1x4xf32>
    %c0_221 = arith.constant 0 : index
    %c28 = arith.constant 28 : index
    %769 = vector.load %arg14[%c0_221, %c28] : memref<1x128xf32, #tpu.memory_space<vmem>>, vector<1x4xf32>
    tpu.vector_store %arg14[%c0_221, %c28], %768 {strides = array<i32>} : memref<1x128xf32, #tpu.memory_space<vmem>>, vector<1x4xf32>,
    %770 = vector.extract_strided_slice %753 {offsets = [8, 0], sizes = [1, 4], strides = [1, 1]} : vector<32x4xf32> to vector<1x4xf32>
    %c0_222 = arith.constant 0 : index
    %c32 = arith.constant 32 : index
    %771 = vector.load %arg14[%c0_222, %c32] : memref<1x128xf32, #tpu.memory_space<vmem>>, vector<1x4xf32>
    tpu.vector_store %arg14[%c0_222, %c32], %770 {strides = array<i32>} : memref<1x128xf32, #tpu.memory_space<vmem>>, vector<1x4xf32>,
    %772 = vector.extract_strided_slice %753 {offsets = [9, 0], sizes = [1, 4], strides = [1, 1]} : vector<32x4xf32> to vector<1x4xf32>
    %c0_223 = arith.constant 0 : index
    %c36 = arith.constant 36 : index
    %773 = vector.load %arg14[%c0_223, %c36] : memref<1x128xf32, #tpu.memory_space<vmem>>, vector<1x4xf32>
    tpu.vector_store %arg14[%c0_223, %c36], %772 {strides = array<i32>} : memref<1x128xf32, #tpu.memory_space<vmem>>, vector<1x4xf32>,
    %774 = vector.extract_strided_slice %753 {offsets = [10, 0], sizes = [1, 4], strides = [1, 1]} : vector<32x4xf32> to vector<1x4xf32>
    %c0_224 = arith.constant 0 : index
    %c40 = arith.constant 40 : index
    %775 = vector.load %arg14[%c0_224, %c40] : memref<1x128xf32, #tpu.memory_space<vmem>>, vector<1x4xf32>
    tpu.vector_store %arg14[%c0_224, %c40], %774 {strides = array<i32>} : memref<1x128xf32, #tpu.memory_space<vmem>>, vector<1x4xf32>,
    %776 = vector.extract_strided_slice %753 {offsets = [11, 0], sizes = [1, 4], strides = [1, 1]} : vector<32x4xf32> to vector<1x4xf32>
    %c0_225 = arith.constant 0 : index
    %c44 = arith.constant 44 : index
    %777 = vector.load %arg14[%c0_225, %c44] : memref<1x128xf32, #tpu.memory_space<vmem>>, vector<1x4xf32>
    tpu.vector_store %arg14[%c0_225, %c44], %776 {strides = array<i32>} : memref<1x128xf32, #tpu.memory_space<vmem>>, vector<1x4xf32>,
    %778 = vector.extract_strided_slice %753 {offsets = [12, 0], sizes = [1, 4], strides = [1, 1]} : vector<32x4xf32> to vector<1x4xf32>
    %c0_226 = arith.constant 0 : index
    %c48 = arith.constant 48 : index
    %779 = vector.load %arg14[%c0_226, %c48] : memref<1x128xf32, #tpu.memory_space<vmem>>, vector<1x4xf32>
    tpu.vector_store %arg14[%c0_226, %c48], %778 {strides = array<i32>} : memref<1x128xf32, #tpu.memory_space<vmem>>, vector<1x4xf32>,
    %780 = vector.extract_strided_slice %753 {offsets = [13, 0], sizes = [1, 4], strides = [1, 1]} : vector<32x4xf32> to vector<1x4xf32>
    %c0_227 = arith.constant 0 : index
    %c52 = arith.constant 52 : index
    %781 = vector.load %arg14[%c0_227, %c52] : memref<1x128xf32, #tpu.memory_space<vmem>>, vector<1x4xf32>
    tpu.vector_store %arg14[%c0_227, %c52], %780 {strides = array<i32>} : memref<1x128xf32, #tpu.memory_space<vmem>>, vector<1x4xf32>,
    %782 = vector.extract_strided_slice %753 {offsets = [14, 0], sizes = [1, 4], strides = [1, 1]} : vector<32x4xf32> to vector<1x4xf32>
    %c0_228 = arith.constant 0 : index
    %c56 = arith.constant 56 : index
    %783 = vector.load %arg14[%c0_228, %c56] : memref<1x128xf32, #tpu.memory_space<vmem>>, vector<1x4xf32>
    tpu.vector_store %arg14[%c0_228, %c56], %782 {strides = array<i32>} : memref<1x128xf32, #tpu.memory_space<vmem>>, vector<1x4xf32>,
    %784 = vector.extract_strided_slice %753 {offsets = [15, 0], sizes = [1, 4], strides = [1, 1]} : vector<32x4xf32> to vector<1x4xf32>
    %c0_229 = arith.constant 0 : index
    %c60 = arith.constant 60 : index
    %785 = vector.load %arg14[%c0_229, %c60] : memref<1x128xf32, #tpu.memory_space<vmem>>, vector<1x4xf32>
    tpu.vector_store %arg14[%c0_229, %c60], %784 {strides = array<i32>} : memref<1x128xf32, #tpu.memory_space<vmem>>, vector<1x4xf32>,
    %786 = vector.extract_strided_slice %753 {offsets = [16, 0], sizes = [1, 4], strides = [1, 1]} : vector<32x4xf32> to vector<1x4xf32>
    %c0_230 = arith.constant 0 : index
    %c64 = arith.constant 64 : index
    %787 = vector.load %arg14[%c0_230, %c64] : memref<1x128xf32, #tpu.memory_space<vmem>>, vector<1x4xf32>
    tpu.vector_store %arg14[%c0_230, %c64], %786 {strides = array<i32>} : memref<1x128xf32, #tpu.memory_space<vmem>>, vector<1x4xf32>,
    %788 = vector.extract_strided_slice %753 {offsets = [17, 0], sizes = [1, 4], strides = [1, 1]} : vector<32x4xf32> to vector<1x4xf32>
    %c0_231 = arith.constant 0 : index
    %c68 = arith.constant 68 : index
    %789 = vector.load %arg14[%c0_231, %c68] : memref<1x128xf32, #tpu.memory_space<vmem>>, vector<1x4xf32>
    tpu.vector_store %arg14[%c0_231, %c68], %788 {strides = array<i32>} : memref<1x128xf32, #tpu.memory_space<vmem>>, vector<1x4xf32>,
    %790 = vector.extract_strided_slice %753 {offsets = [18, 0], sizes = [1, 4], strides = [1, 1]} : vector<32x4xf32> to vector<1x4xf32>
    %c0_232 = arith.constant 0 : index
    %c72 = arith.constant 72 : index
    %791 = vector.load %arg14[%c0_232, %c72] : memref<1x128xf32, #tpu.memory_space<vmem>>, vector<1x4xf32>
    tpu.vector_store %arg14[%c0_232, %c72], %790 {strides = array<i32>} : memref<1x128xf32, #tpu.memory_space<vmem>>, vector<1x4xf32>,
    %792 = vector.extract_strided_slice %753 {offsets = [19, 0], sizes = [1, 4], strides = [1, 1]} : vector<32x4xf32> to vector<1x4xf32>
    %c0_233 = arith.constant 0 : index
    %c76 = arith.constant 76 : index
    %793 = vector.load %arg14[%c0_233, %c76] : memref<1x128xf32, #tpu.memory_space<vmem>>, vector<1x4xf32>
    tpu.vector_store %arg14[%c0_233, %c76], %792 {strides = array<i32>} : memref<1x128xf32, #tpu.memory_space<vmem>>, vector<1x4xf32>,
    %794 = vector.extract_strided_slice %753 {offsets = [20, 0], sizes = [1, 4], strides = [1, 1]} : vector<32x4xf32> to vector<1x4xf32>
    %c0_234 = arith.constant 0 : index
    %c80 = arith.constant 80 : index
    %795 = vector.load %arg14[%c0_234, %c80] : memref<1x128xf32, #tpu.memory_space<vmem>>, vector<1x4xf32>
    tpu.vector_store %arg14[%c0_234, %c80], %794 {strides = array<i32>} : memref<1x128xf32, #tpu.memory_space<vmem>>, vector<1x4xf32>,
    %796 = vector.extract_strided_slice %753 {offsets = [21, 0], sizes = [1, 4], strides = [1, 1]} : vector<32x4xf32> to vector<1x4xf32>
    %c0_235 = arith.constant 0 : index
    %c84 = arith.constant 84 : index
    %797 = vector.load %arg14[%c0_235, %c84] : memref<1x128xf32, #tpu.memory_space<vmem>>, vector<1x4xf32>
    tpu.vector_store %arg14[%c0_235, %c84], %796 {strides = array<i32>} : memref<1x128xf32, #tpu.memory_space<vmem>>, vector<1x4xf32>,
    %798 = vector.extract_strided_slice %753 {offsets = [22, 0], sizes = [1, 4], strides = [1, 1]} : vector<32x4xf32> to vector<1x4xf32>
    %c0_236 = arith.constant 0 : index
    %c88 = arith.constant 88 : index
    %799 = vector.load %arg14[%c0_236, %c88] : memref<1x128xf32, #tpu.memory_space<vmem>>, vector<1x4xf32>
    tpu.vector_store %arg14[%c0_236, %c88], %798 {strides = array<i32>} : memref<1x128xf32, #tpu.memory_space<vmem>>, vector<1x4xf32>,
    %800 = vector.extract_strided_slice %753 {offsets = [23, 0], sizes = [1, 4], strides = [1, 1]} : vector<32x4xf32> to vector<1x4xf32>
    %c0_237 = arith.constant 0 : index
    %c92 = arith.constant 92 : index
    %801 = vector.load %arg14[%c0_237, %c92] : memref<1x128xf32, #tpu.memory_space<vmem>>, vector<1x4xf32>
    tpu.vector_store %arg14[%c0_237, %c92], %800 {strides = array<i32>} : memref<1x128xf32, #tpu.memory_space<vmem>>, vector<1x4xf32>,
    %802 = vector.extract_strided_slice %753 {offsets = [24, 0], sizes = [1, 4], strides = [1, 1]} : vector<32x4xf32> to vector<1x4xf32>
    %c0_238 = arith.constant 0 : index
    %c96 = arith.constant 96 : index
    %803 = vector.load %arg14[%c0_238, %c96] : memref<1x128xf32, #tpu.memory_space<vmem>>, vector<1x4xf32>
    tpu.vector_store %arg14[%c0_238, %c96], %802 {strides = array<i32>} : memref<1x128xf32, #tpu.memory_space<vmem>>, vector<1x4xf32>,
    %804 = vector.extract_strided_slice %753 {offsets = [25, 0], sizes = [1, 4], strides = [1, 1]} : vector<32x4xf32> to vector<1x4xf32>
    %c0_239 = arith.constant 0 : index
    %c100 = arith.constant 100 : index
    %805 = vector.load %arg14[%c0_239, %c100] : memref<1x128xf32, #tpu.memory_space<vmem>>, vector<1x4xf32>
    tpu.vector_store %arg14[%c0_239, %c100], %804 {strides = array<i32>} : memref<1x128xf32, #tpu.memory_space<vmem>>, vector<1x4xf32>,
    %806 = vector.extract_strided_slice %753 {offsets = [26, 0], sizes = [1, 4], strides = [1, 1]} : vector<32x4xf32> to vector<1x4xf32>
    %c0_240 = arith.constant 0 : index
    %c104 = arith.constant 104 : index
    %807 = vector.load %arg14[%c0_240, %c104] : memref<1x128xf32, #tpu.memory_space<vmem>>, vector<1x4xf32>
    tpu.vector_store %arg14[%c0_240, %c104], %806 {strides = array<i32>} : memref<1x128xf32, #tpu.memory_space<vmem>>, vector<1x4xf32>,
    %808 = vector.extract_strided_slice %753 {offsets = [27, 0], sizes = [1, 4], strides = [1, 1]} : vector<32x4xf32> to vector<1x4xf32>
    %c0_241 = arith.constant 0 : index
    %c108 = arith.constant 108 : index
    %809 = vector.load %arg14[%c0_241, %c108] : memref<1x128xf32, #tpu.memory_space<vmem>>, vector<1x4xf32>
    tpu.vector_store %arg14[%c0_241, %c108], %808 {strides = array<i32>} : memref<1x128xf32, #tpu.memory_space<vmem>>, vector<1x4xf32>,
    %810 = vector.extract_strided_slice %753 {offsets = [28, 0], sizes = [1, 4], strides = [1, 1]} : vector<32x4xf32> to vector<1x4xf32>
    %c0_242 = arith.constant 0 : index
    %c112 = arith.constant 112 : index
    %811 = vector.load %arg14[%c0_242, %c112] : memref<1x128xf32, #tpu.memory_space<vmem>>, vector<1x4xf32>
    tpu.vector_store %arg14[%c0_242, %c112], %810 {strides = array<i32>} : memref<1x128xf32, #tpu.memory_space<vmem>>, vector<1x4xf32>,
    %812 = vector.extract_strided_slice %753 {offsets = [29, 0], sizes = [1, 4], strides = [1, 1]} : vector<32x4xf32> to vector<1x4xf32>
    %c0_243 = arith.constant 0 : index
    %c116 = arith.constant 116 : index
    %813 = vector.load %arg14[%c0_243, %c116] : memref<1x128xf32, #tpu.memory_space<vmem>>, vector<1x4xf32>
    tpu.vector_store %arg14[%c0_243, %c116], %812 {strides = array<i32>} : memref<1x128xf32, #tpu.memory_space<vmem>>, vector<1x4xf32>,
    %814 = vector.extract_strided_slice %753 {offsets = [30, 0], sizes = [1, 4], strides = [1, 1]} : vector<32x4xf32> to vector<1x4xf32>
    %c0_244 = arith.constant 0 : index
    %c120 = arith.constant 120 : index
    %815 = vector.load %arg14[%c0_244, %c120] : memref<1x128xf32, #tpu.memory_space<vmem>>, vector<1x4xf32>
    tpu.vector_store %arg14[%c0_244, %c120], %814 {strides = array<i32>} : memref<1x128xf32, #tpu.memory_space<vmem>>, vector<1x4xf32>,
    %816 = vector.extract_strided_slice %753 {offsets = [31, 0], sizes = [1, 4], strides = [1, 1]} : vector<32x4xf32> to vector<1x4xf32>
    %c0_245 = arith.constant 0 : index
    %c124 = arith.constant 124 : index
    %817 = vector.load %arg14[%c0_245, %c124] : memref<1x128xf32, #tpu.memory_space<vmem>>, vector<1x4xf32>
    tpu.vector_store %arg14[%c0_245, %c124], %816 {strides = array<i32>} : memref<1x128xf32, #tpu.memory_space<vmem>>, vector<1x4xf32>,
    %c0_246 = arith.constant 0 : index
    %c0_247 = arith.constant 0 : index
    %818 = vector.load %arg14[%c0_246, %c0_247] : memref<1x128xf32, #tpu.memory_space<vmem>>, vector<1x128xf32>
    %c0_248 = arith.constant 0 : index
    %c0_249 = arith.constant 0 : index
    %819 = vector.load %arg11[%c0_248, %c0_249] : memref<128x256xf32, #tpu.memory_space<vmem>>, vector<128x256xf32>
    %cst_250 = arith.constant dense<0.000000e+00> : vector<1x256xf32>
    %820 = tpu.matmul %818, %819, %cst_250 {dimension_numbers = #tpu.dot_dimension_numbers<[1], [0], [0], [1], [0, 0, 1, 1], [], []>} : vector<1x128xf32>, vector<128x256xf32>, vector<1x256xf32> -> vector<1x256xf32>
    %c0_251 = arith.constant 0 : index
    %c0_252 = arith.constant 0 : index
    %821 = vector.load %arg12[%c0_251, %c0_252] : memref<1x256xf32, #tpu.memory_space<vmem>>, vector<1x256xf32>
    %822 = arith.addf %820, %821 : vector<1x256xf32>
    %cst_253 = arith.constant 0.000000e+00 : f32
    %823 = vector.broadcast %cst_253 : f32 to vector<1x256xf32>
    %824 = arith.maximumf %822, %823 : vector<1x256xf32>
    %c0_254 = arith.constant 0 : index
    %c0_255 = arith.constant 0 : index
    %c0_256 = arith.constant 0 : index
    %825 = vector.load %arg13[%c0_254, %c0_255, %c0_256] : memref<1x1x256xf32, #tpu.memory_space<vmem>>, vector<1x1x256xf32>
    %826 = vector.shape_cast %825 : vector<1x1x256xf32> to vector<1x256xf32>
    %827 = vector.shape_cast %824 : vector<1x256xf32> to vector<1x1x256xf32>
    tpu.vector_store %arg13[%c0_254, %c0_255, %c0_256], %827 {strides = array<i32>} : memref<1x1x256xf32, #tpu.memory_space<vmem>>, vector<1x1x256xf32>,
    return
  }
  func.func @transform_0(%arg0: i32) -> (i32, i32, i32) {
    %c0_i32 = arith.constant 0 : i32
    %c0_i32_0 = arith.constant 0 : i32
    %c0_i32_1 = arith.constant 0 : i32
    return %arg0, %c0_i32, %c0_i32_0 : i32, i32, i32
  }
  func.func @transform_1(%arg0: i32) -> (i32, i32) {
    %c0_i32 = arith.constant 0 : i32
    %c0_i32_0 = arith.constant 0 : i32
    %c0_i32_1 = arith.constant 0 : i32
    return %c0_i32, %c0_i32_0 : i32, i32
  }
  func.func @transform_2(%arg0: i32) -> (i32, i32, i32) {
    %c0_i32 = arith.constant 0 : i32
    %c0_i32_0 = arith.constant 0 : i32
    %c0_i32_1 = arith.constant 0 : i32
    %c0_i32_2 = arith.constant 0 : i32
    return %c0_i32, %c0_i32_0, %c0_i32_1 : i32, i32, i32
  }
  func.func @transform_3(%arg0: i32) -> (i32, i32) {
    %c0_i32 = arith.constant 0 : i32
    %c0_i32_0 = arith.constant 0 : i32
    %c0_i32_1 = arith.constant 0 : i32
    return %c0_i32, %c0_i32_0 : i32, i32
  }
  func.func @transform_4(%arg0: i32) -> (i32, i32) {
    %c0_i32 = arith.constant 0 : i32
    %c0_i32_0 = arith.constant 0 : i32
    %c0_i32_1 = arith.constant 0 : i32
    return %c0_i32, %c0_i32_0 : i32, i32
  }
  func.func @transform_5(%arg0: i32) -> (i32, i32, i32) {
    %c0_i32 = arith.constant 0 : i32
    %c0_i32_0 = arith.constant 0 : i32
    %c0_i32_1 = arith.constant 0 : i32
    %c0_i32_2 = arith.constant 0 : i32
    return %c0_i32, %c0_i32_0, %c0_i32_1 : i32, i32, i32
  }
  func.func @transform_6(%arg0: i32) -> (i32, i32) {
    %c0_i32 = arith.constant 0 : i32
    %c0_i32_0 = arith.constant 0 : i32
    %c0_i32_1 = arith.constant 0 : i32
    return %c0_i32, %c0_i32_0 : i32, i32
  }
  func.func @transform_7(%arg0: i32) -> (i32, i32) {
    %c0_i32 = arith.constant 0 : i32
    %c0_i32_0 = arith.constant 0 : i32
    %c0_i32_1 = arith.constant 0 : i32
    return %c0_i32, %c0_i32_0 : i32, i32
  }
  func.func @transform_8(%arg0: i32) -> (i32, i32, i32) {
    %c0_i32 = arith.constant 0 : i32
    %c0_i32_0 = arith.constant 0 : i32
    %c0_i32_1 = arith.constant 0 : i32
    %c0_i32_2 = arith.constant 0 : i32
    return %c0_i32, %c0_i32_0, %c0_i32_1 : i32, i32, i32
  }
  func.func @transform_9(%arg0: i32) -> (i32, i32) {
    %c0_i32 = arith.constant 0 : i32
    %c0_i32_0 = arith.constant 0 : i32
    %c0_i32_1 = arith.constant 0 : i32
    return %c0_i32, %c0_i32_0 : i32, i32
  }
  func.func @transform_10(%arg0: i32) -> (i32, i32) {
    %c0_i32 = arith.constant 0 : i32
    %c0_i32_0 = arith.constant 0 : i32
    %c0_i32_1 = arith.constant 0 : i32
    return %c0_i32, %c0_i32_0 : i32, i32
  }
  func.func @transform_11(%arg0: i32) -> (i32, i32) {
    %c0_i32 = arith.constant 0 : i32
    %c0_i32_0 = arith.constant 0 : i32
    %c0_i32_1 = arith.constant 0 : i32
    return %c0_i32, %c0_i32_0 : i32, i32
  }
  func.func @transform_12(%arg0: i32) -> (i32, i32, i32) {
    %c0_i32 = arith.constant 0 : i32
    %c0_i32_0 = arith.constant 0 : i32
    %c0_i32_1 = arith.constant 0 : i32
    return %arg0, %c0_i32, %c0_i32_0 : i32, i32, i32
  }
}

</mosaic_0001>

<bundles_post_ra>
// kernel: tpu_custom_call.1
= control target key start
LH: loop header
LB: loop body
LE: loop exit
PB: predicated region body
PF: predicated region fallthrough
CT: control target
= control target key end

     0   :  { %s9990_s0 = inlined_call_operand.hbm [shape: f32[2,8,256], index: 0, kind: input, shape index: {}]   ;;  %s9991_s1 = inlined_call_operand.hbm [shape: f32[16,80], index: 1, kind: input, shape index: {}]   ;;  %s9992_s2 = inlined_call_operand.hbm [shape: f32[4,16,152], index: 2, kind: input, shape index: {}]   ;;  %s9993_s3 = inlined_call_operand.vmem [shape: f32[256,64], index: 3, kind: input, shape index: {}]   ;;  %s9994_s4 = inlined_call_operand.hbm [shape: f32[32,152], index: 4, kind: input, shape index: {}]   ;;  %s9995_s5 = inlined_call_operand.vmem [shape: f32[4,32,296], index: 5, kind: input, shape index: {}]   ;;  %s9996_s6 = inlined_call_operand.vmem [shape: f32[64,16], index: 6, kind: input, shape index: {}]   ;;  %s9997_s7 = inlined_call_operand.vmem [shape: f32[32,296], index: 7, kind: input, shape index: {}]   ;;  %s9998_s8 = inlined_call_operand.hbm [shape: f32[4,32,296], index: 8, kind: input, shape index: {}]   ;;  %s9999_s9 = inlined_call_operand.vmem [shape: f32[16,4], index: 9, kind: input, shape index: {}]   ;;  %s10000_s10 = inlined_call_operand.hbm [shape: f32[128,256], index: 10, kind: input, shape index: {}]   ;;  %s10001_s11 = inlined_call_operand.vmem [shape: f32[1,256], index: 11, kind: input, shape index: {}]   ;;  %s10002_s12 = inlined_call_operand.hbm [shape: f32[2,1,256], index: 12, kind: output, shape index: {}]  }
   0x1   :  { %10035 = sst [smem:[#allocation22_spill]] %s9990_s0 }
   0x2   :  { %10036 = sst [smem:[#allocation23_spill]] %s9991_s1 }
   0x3   :  { %10037 = sst [smem:[#allocation24_spill]] %s9992_s2 }
   0x4   :  { %10038 = sst [smem:[#allocation25_spill]] %s9993_s3 }
   0x5   :  { %10039 = sst [smem:[#allocation26_spill]] %s9994_s4 }
   0x6   :  { %10040 = sst [smem:[#allocation27_spill]] %s9996_s6 }
   0x7   :  { %10041 = sst [smem:[#allocation28_spill]] %s9998_s8 }
   0x8   :  { %10042 = sst [smem:[#allocation29_spill]] %s10000_s10 }
   0x9   :  { %17 = vsyncpa [#allocation4], 0 }
   0xa   :  { %19 = vsyncpa [#allocation4 + $0x1], 0 }
   0xb   :  { %20 = vsyncpa [#allocation7], 0 }
   0xc   :  { %21 = vsyncpa [#allocation10], 0 }
   0xd   :  { %22 = vsyncpa [#allocation13], 0 }
   0xe   :  { %23 = vsyncpa [#allocation5], 0 }
   0xf   :  { %25 = vsyncpa [#allocation5 + $0x1], 0  ;;  %s7390_s21 = smov 0   ;;  %s7392_s22 = smov 0  }
  0x10   :  { %s7394_s23 = smov 0   ;;  %s7396_s24 = smov 0  }
  0x11 LB: > { %10043 = sst [smem:[#allocation20_spill]] %s7256_s23  ;;  %s7262_s25 = smov [#allocation6]   ;;  %s7260_s24 = sphi %s7396_s24, %s10111_s24   ;;  %s7256_s23 = sphi %s7394_s23, %s10108_s23   ;;  %s7252_s22 = sphi %s7392_s22, %s10110_s22   ;;  %s7248_s21 = sphi %s7390_s21, %s10109_s21  }
  0x12   : > { %s331_s26 = sshll.u32 %s7262_s25, 4  ;;  %s7411_s27 = sadd.s32 4294967295, %s7260_s24   ;;  %s332_s26 = int_to_ptr.vmem [resolvable:$true] %s331_s26 }
  0x13   : > { %p5690_p0 = scmp.ge.s32.totalorder %s7260_s24, 1  ;;  %p10004_p1 = scmp.eq.s32.totalorder %s7411_s27, 0 }
  0x14   : > { %p319_p2 = scmp.lt.s32.totalorder %s7260_s24, 3  ;;  %s7263_s30 = smov [#allocation9]  }
  0x15   : > { %s360_s13 = sshll.u32 %s7263_s30, 4  ;;  %s7264_s14 = smov [#allocation8]   ;;  %s7429_s13 = int_to_ptr.vmem [resolvable:$true] %s360_s13 }
  0x16   : > { %p7416_p3 = pnand %p5690_p0, %p319_p2  ;;  %s7431_s15 = sshll.u32 %s7264_s14, 4  ;;  %s345_s15 = int_to_ptr.vmem [resolvable:$true] %s7431_s15 }
  0x17   : > { %s7037_s17 = scalar_lea.vmem %s332_s26, 256  ;;  %p7045_p11 = scmp.lt.s32.totalorder %s332_s26, %s332_s26 }
  0x18   : > { %s10044_s28 = scalar_select %p7416_p3, 1, 0 }
  0x19   : > { %p6847_p5 = pneg %p7416_p3  ;;  %p7038_p8 = scmp.ne.s32.totalorder %s332_s26, %s7037_s17 }
  0x1a   : > { %p7046_p12 = scmp.lt.s32.totalorder %s7037_s17, %s7037_s17 }
  0x1b   : > { %p7425_p6 = pnand %p6847_p5, %p10004_p1 }
  0x1c   : > { %p7047_p13 = por %p7046_p12, %p7045_p11 }
  0x1d   : > { %p7435_p7 = pneg %p7425_p6 }
  0x1f   : > { %p7040_p9 = pnand %p7038_p8, %p7435_p7 }
  0x21   : > { %p7041_p10 = pneg %p7040_p9 }
  0x23   : > { %p7048_p0 = pnand %p7047_p13, %p7041_p10 }
  0x25   : > { %7051 = shalt.err (!%p7048_p0)
}
  0x26   : > { %s7265_s18 = smov 128   ;;  %s7266_s19 = smov 8  }
  0x27   : > { %s10047_s1 = sld [smem:[#allocation23_spill]]  ;;  %s7063_s30 = scalar_lea.vmem %s7429_s13, 1024 }
  0x28   : > { %p7064_p2 = scmp.ne.s32.totalorder %s7429_s13, %s7063_s30  ;;  %p7071_p9 = scmp.lt.s32.totalorder %s7429_s13, %s7429_s13 }
  0x29   : > { %p7072_p10 = scmp.lt.s32.totalorder %s7063_s30, %s7063_s30 }
  0x2a   : > { %p7066_p5 = pnand %p7064_p2, %p7435_p7 }
  0x2b   : > { %p7073_p11 = por %p7072_p10, %p7071_p9 }
  0x2c   : > { %p7067_p8 = pneg %p7066_p5 }
  0x2d   : > { %6850 = dma.hbm_to_vmem [thread:$0]  (!%p7425_p6), %s10047_s1, 256, %s332_s26, [#allocation7], %s7265_s18, %s7265_s18, %s7266_s19  }
  0x2e   : > { %p7074_p12 = pnand %p7073_p11, %p7067_p8 }
  0x30   : > { %7077 = shalt.err (!%p7074_p12)
}
  0x31   : > { %s10003_s14 = smov 256   ;;  %s7268_s17 = smov 16  }
  0x32   : > { %s10048_s4 = sld [smem:[#allocation26_spill]]  ;;  %s7089_s19 = scalar_lea.vmem %s345_s15, 2048 }
  0x33   : > { %p7090_p13 = scmp.ne.s32.totalorder %s345_s15, %s7089_s19  ;;  %p7097_p5 = scmp.lt.s32.totalorder %s345_s15, %s345_s15 }
  0x34   : > { %p7098_p8 = scmp.lt.s32.totalorder %s7089_s19, %s7089_s19 }
  0x35   : > { %p7092_p0 = pnand %p7090_p13, %p7435_p7 }
  0x36   : > { %p7099_p9 = por %p7098_p8, %p7097_p5 }
  0x37   : > { %p7093_p2 = pneg %p7092_p0 }
  0x38   : > { %6856 = dma.hbm_to_vmem [thread:$0]  (!%p7425_p6), %s10048_s4, 1024, %s7429_s13, [#allocation10], %s10003_s14, %s10003_s14, %s7268_s17  }
  0x39   : > { %p7100_p10 = pnand %p7099_p9, %p7093_p2 }
  0x3b   : > { %7103 = shalt.err (!%p7100_p10)
}
  0x3c   : > { %s10049_s2 = sld [smem:[#allocation24_spill]]  ;;  %s7269_s13 = smov [#allocation11]  }
  0x3d   : > { %s382_s30 = sshll.u32 %s7269_s13, 4  ;;  %s383_s30 = int_to_ptr.vmem [resolvable:$true] %s382_s30 }
  0x3e   : > { %s7115_s26 = scalar_lea.vmem %s383_s30, 6144  ;;  %p7123_p0 = scmp.lt.s32.totalorder %s383_s30, %s383_s30 }
  0x3f   : > { %p7116_p11 = scmp.ne.s32.totalorder %s383_s30, %s7115_s26  ;;  %p7124_p2 = scmp.lt.s32.totalorder %s7115_s26, %s7115_s26 }
  0x41   : > { %p7118_p12 = pnand %p7116_p11, %p7435_p7  ;;  %p7125_p5 = por %p7124_p2, %p7123_p0 }
  0x42   : > { %6853 = dma.hbm_to_vmem [thread:$0]  (!%p7425_p6), %s10049_s2, 2048, %s345_s15, [#allocation7], %s10003_s14, %s10003_s14, %s7268_s17  }
  0x43   : > { %p7119_p13 = pneg %p7118_p12 }
  0x45   : > { %p7126_p8 = pnand %p7125_p5, %p7119_p13 }
  0x47   : > { %7129 = shalt.err (!%p7126_p8)
}
  0x48   : > { %s7270_s18 = smov 384   ;;  %s7271_s19 = smov 24  }
  0x49   : > { %s10050_s8 = sld [smem:[#allocation28_spill]]  ;;  %s7272_s25 = smov [#allocation12]  }
  0x4a   : > { %s398_s13 = sshll.u32 %s7272_s25, 4  ;;  %s399_s13 = int_to_ptr.vmem [resolvable:$true] %s398_s13 }
  0x4b   : > { %s7141_s14 = scalar_lea.vmem %s399_s13, 4096  ;;  %p7149_p12 = scmp.lt.s32.totalorder %s399_s13, %s399_s13 }
  0x4c   : > { %p7142_p9 = scmp.ne.s32.totalorder %s399_s13, %s7141_s14  ;;  %p7150_p13 = scmp.lt.s32.totalorder %s7141_s14, %s7141_s14 }
  0x4e   : > { %p7144_p10 = pnand %p7142_p9, %p7435_p7  ;;  %p7151_p0 = por %p7150_p13, %p7149_p12 }
  0x4f   : > { %6859 = dma.hbm_to_vmem [thread:$0]  (!%p7425_p6), %s10050_s8, 6144, %s383_s30, [#allocation10], %s7270_s18, %s7270_s18, %s7271_s19  }
  0x50   : > { %p7145_p11 = pneg %p7144_p10 }
  0x52   : > { %p7152_p2 = pnand %p7151_p0, %p7145_p11 }
  0x54   : > { %7155 = shalt.err (!%p7152_p2)
}
  0x55   : > { %s10051_s26 = smov 256   ;;  %s10052_s10 = sld [smem:[#allocation29_spill]] }
  0x56   : > { %s5689_s29 = sadd.s32 4294967294, %s7260_s24   ;;  %s7491_s16 = sadd.s32 1, %s7260_s24  }
  0x57   : > { %s38_s14 = sadd.s32 1, %s7256_s23  ;;  %s35_s18 = ssub.s32 %s7260_s24, %s7491_s16 }
  0x58   : > { %p45_p7 = scmp.ne.s32.totalorder %s7256_s23, %s7252_s22  ;;  %p36_p5 = scmp.eq.s32.totalorder %s35_s18, 0 }
  0x59   : > { %p46_p8 = scmp.eq.s32.totalorder %s7260_s24, 0  ;;  %p51_p9 = scmp.ne.s32.totalorder %s7252_s22, %s7248_s21 }
  0x5a   : > { %p306_p10 = scmp.eq.s32.totalorder %s7411_s27, 1  ;;  %p312_p13 = scmp.eq.s32.totalorder %s5689_s29, 1 }
  0x5b   : > { %6862 = dma.hbm_to_vmem [thread:$0]  (!%p7425_p6), %s10052_s10, 4096, %s399_s13, [#allocation13], %s10051_s26, %s10051_s26, %s7268_s17  }
  0x5c   : > { %s7503_s19 = scalar_select %p36_p5, %s7256_s23, %s38_s14  }
  0x5d   : > { %p47_p11 = por %p46_p8, %p45_p7  ;;  %p7507_p12 = por %p10004_p1, %p51_p9 }
  0x5e   : > { %10053 = sst [smem:[#allocation21_spill]] %s7503_s19  ;;  %p7511_p6 = por %p306_p10, %p45_p7 }
  0x5f   : > { %s10054_s15 = scalar_select %p7507_p12, 1, 0 }
  0x60   : > { %s10055_s17 = scalar_select %p7511_p6, 1, 0 }
  0x61   : > { %p6876_p0 = scmp.lt.s32.totalorder %s7260_s24, 2  ;;  %s415_s25 = sand.u32 1, %s7256_s23  }
  0x62   : > { %p7517_p2 = por %p312_p13, %p51_p9  ;;  %s5697_s26 = sshll.u32 %s415_s25, 4 }
  0x63   : > { %s6112_s20 = sshll.u32 %s7260_s24, 8  ;;  %s10057_s0 = sld [smem:[#allocation22_spill]] }
  0x64   : > { %s10056_s13 = scalar_select %p7517_p2, 1, 0 }
  0x65   : > { %s419_s1 = scalar_lea.vmem [#allocation3], %s5697_s26  ;;  %p7527_p7 = pnand %p6876_p0, %p47_p11 }
  0x66   : > { %s427_s2 = sshll.u32 %s419_s1, 4  ;;  %s416_s4 = scalar_lea.sflag [#allocation4], %s415_s25  ;;  %s428_s2 = int_to_ptr.vmem [resolvable:$true] %s427_s2 }
  0x67   : > { %p7158_p8 = pneg %p7527_p7 }
  0x69   : > { %s7525_s18 = scalar_lea.hbm %s10057_s0, %s6112_s20  ;;  %s7161_s14 = scalar_lea.hbm %s10057_s0, 512 }
  0x6a   : > { %s7156_s8 = scalar_lea.hbm %s7525_s18, 256  ;;  %p7162_p11 = scmp.lt.s32.totalorder %s7525_s18, %s10057_s0 }
  0x6b   : > { %p7157_p5 = scmp.ne.s32.totalorder %s7525_s18, %s7156_s8  ;;  %p7163_p13 = scmp.lt.s32.totalorder %s7161_s14, %s7156_s8 }
  0x6d   : > { %p7159_p9 = pnand %p7158_p8, %p7157_p5  ;;  %p7164_p0 = por %p7163_p13, %p7162_p11 }
  0x6f   : > { %p7160_p10 = pneg %p7159_p9 }
  0x71   : > { %p7165_p4 = pnand %p7164_p0, %p7160_p10 }
  0x73   : > { %7168 = shalt.err (!%p7165_p4)
}
  0x74   : > { %s7169_s1 = scalar_lea.vmem %s428_s2, 256  ;;  %s7273_s25 = smov [#allocation3]  }
  0x75   : > { %p7170_p1 = scmp.ne.s32.totalorder %s428_s2, %s7169_s1  ;;  %s7174_s19 = sshll.u32 %s7273_s25, 4  ;;  %s7175_s19 = int_to_ptr.vmem [resolvable:$false] %s7174_s19 }
  0x76   : > { %s7176_s23 = scalar_lea.vmem %s7175_s19, 512  ;;  %p7177_p5 = scmp.lt.s32.totalorder %s428_s2, %s7175_s19 }
  0x77   : > { %p7172_p2 = pnand %p7170_p1, %p7158_p8  ;;  %p7178_p9 = scmp.lt.s32.totalorder %s7176_s23, %s7169_s1 }
  0x79   : > { %p7173_p6 = pneg %p7172_p2  ;;  %p7179_p12 = por %p7178_p9, %p7177_p5 }
  0x7b   : > { %p7180_p3 = pnand %p7179_p12, %p7173_p6 }
  0x7d   : > { %7183 = shalt.err (!%p7180_p3)
}
  0x7e   : > { %6866 = dma.hbm_to_vmem [thread:$0]  (!%p7527_p7), %s7525_s18, 256, %s428_s2, %s416_s4  }
  0x7f   : > { %p10059_p10 = scmp.ne.s32.totalorder %s10044_s28, 0 }
  0x80   : > { %s7548_s8 = sand.u32 (!%p10059_p10), 1, %s7252_s22   ;;  %p10060_p1 = scmp.ne.s32.totalorder (!%p10059_p10), %s10054_s15, 0 }
  0x81   : > { %436 = sbr.rel (%p10059_p10) target bundleno = 9849 (0x2679), region = 68  ;;  %s5701_s10 = sshll.u32 (!%p10059_p10), %s7548_s8, 4 }
  0x82   : > { %s439_s20 = scalar_lea.sflag (!%p10059_p10), [#allocation4], %s7548_s8  ;;  %s442_s19 = scalar_lea.vmem (!%p10059_p10), [#allocation3], %s5701_s10 }
  0x86   : > { %7227 = dma.done.wait (%p10060_p1), %s439_s20, 256  }
  0x87   : > { %7229 = vsyncadd (%p10060_p1), %s439_s20, 4294967040  ;;  %p10061_p3 = scmp.eq.s32.totalorder %s7411_s27, 0 }
  0x89   : > { %7231 = dma.done.wait (%p10061_p3), [#allocation7], 2304   ;;  %p10062_p4 = pmov %p10061_p3 }
  0x8a   : > { %p10063_p12 = pmov %p10061_p3 }
  0x8b   : > { %7233 = vsyncadd (%p10062_p4), [#allocation7], 4294964992 }
  0x8c   : > { %7235 = dma.done.wait (%p10063_p12), [#allocation10], 7168   ;;  %p10064_p6 = pmov %p10061_p3 }
  0x8d   : > { %p10065_p2 = pmov %p10061_p3 }
  0x8e   : > { %7237 = vsyncadd (%p10064_p6), [#allocation10], 4294960128 }
  0x8f   : > { %7239 = dma.done.wait (%p10065_p2), [#allocation13], 4096   ;;  %p10066_p7 = pmov %p10065_p2 }
  0x90   : > { %v503_v0 = vld [vmem:[%s442_s19] sm:$0xff]  ;;  %s7274_s2 = smov 17   ;;  %v504_v1 = vld [vmem:[%s442_s19 + $0x8] sm:$0xff]  ;;  %vm559_vm0 = vcmask 138240   ;;  %s7275_s4 = smov 94   ;;  %v7283_v7 = vmov 0.0   ;;  %v539_v8 = vlaneseq }
  0x91   : > { %7241 = vsyncadd (%p10066_p7), [#allocation13], 4294963200  ;;  %555 = vrot.lane.b32.xlu0 %v503_v0, %s7274_s2  ;;  %s7276_s23 = smov 95   ;;  %s10014_s28 = smov 96   ;;  %747 = vmatprep.mubr.f32.mxu0 %v7283_v7  ;;  %vm636_vm2 = vcmask 769024   ;;  %vm671_vm4 = vcmask 777216  }
  0x92   : > { %s10012_s15 = smov 110   ;;  %s7279_s18 = smov 111   ;;  %v7611_v9 = vand.u32 127, %v539_v8  ;;  %vm623_vm5 = vcmask 785408   ;;  %vm610_vm8 = vcmask 900096   ;;  %vm660_vm9 = vcmask 908288  }
  0x93   : > { %s10016_s29 = smov 112   ;;  %s10027_s30 = smov 126   ;;  %vm597_vm10 = vcmask 916480   ;;  %vm584_vm11 = vcmask 1031168   ;;  %vm649_vm12 = vcmask 1039360   ;;  %v7656_v55 = vshrl.u32 %v539_v8, 7 }
  0x94   : > { %s10023_s14 = smov 127   ;;  %v541_v10 = vadd.s32 128, %v7611_v9  ;;  %v542_v15 = vand.u32 15, %v7611_v9  ;;  %v505_v58 = vld [vmem:[#allocation6] sm:$0xff]  ;;  %vm676_vm14 = vcmask 654336   ;;  %v7284_v59 = vmov 1.0  }
  0x95   : > { %557 = vrot.lane.b32.xlu0 %v504_v1, %s7274_s2  ;;  %vm550_vm13 = vcmp.eq.s32.totalorder %v7656_v55, 0  ;;  %v506_v60 = vld [vmem:[#allocation6 + $0x8] sm:$0xff]  ;;  %s10009_s26 = smov 1   ;;  %vm772_vm15 = vcmask 7168   ;;  %s10075_s3 = sld [smem:[#allocation25_spill]] }
  0x96   : > { %v543_v12 = vand.u32 15, %v541_v10  ;;  %vm7619_vm3 = vcmp.lt.s32.totalorder %v542_v15, 15  ;;  %vm7631_vm7 = vcmp.gt.s32.totalorder %v542_v15, 0  ;;  %s10011_s10 = smov 16   ;;  %s10029_s1 = smov 119  }
  0x97   : > { %s10025_s25 = smov 120   ;;  %s10082_s6 = sld [smem:[#allocation27_spill]] }
  0x98   : > { %vm7615_vm1 = vcmp.lt.s32.totalorder %v543_v12, 15  ;;  %vm7627_vm6 = vcmp.gt.s32.totalorder %v543_v12, 0  ;;  %s10088_s19 = smov 123   ;;  %s7302_s20 = smov 32  }
  0x99   : > { %s7303_s2 = smov 28   ;;  %s7304_s0 = smov 40  }
  0x9a   : > { %p10104_p11 = scmp.ne.s32.totalorder %s10055_s17, 0 }
  0x9b   : > { %v522_v16 = vld [vmem:[%s10075_s3 + $0x78] sm:$0xff]  ;;  %v537_v19 = vld [vmem:[%s10075_s3 + $0xf0] sm:$0xff] }
 0x103   : > { %v556_v2 = vpop.permute.xlu0 %555 }
 0x104   : > { %v7569_v3 = vsel %vm559_vm0, 0.0, %v556_v2 }
 0x105   : > { %630 = vrot.lane.b32.xlu0 %v7569_v3, %s7275_s4 }
 0x107   : > { %v558_v4 = vpop.permute.xlu0 %557 }
 0x108   : > { %v7573_v5 = vsel %vm559_vm0, %v556_v2, %v558_v4  ;;  %v565_v6 = vsel %vm559_vm0, %v558_v4, 0.0 }
 0x109   : > { %669 = vrot.lane.b32.xlu0 %v565_v6, %s7276_s23  ;;  %632 = vrot.lane.b32.xlu1 %v7573_v5, %s7275_s4 }
 0x10d   : > { %619 = vrot.lane.b32.xlu0 %v7573_v5, %s10014_s28  ;;  %634 = vrot.lane.b32.xlu1 %v565_v6, %s7275_s4  ;;  %s7287_s4 = smov 9  }
 0x111   : > { %617 = vrot.lane.b32.xlu0 %v7569_v3, %s10014_s28  ;;  %667 = vrot.lane.b32.xlu1 %v7573_v5, %s7276_s23 }
 0x115   : > { %608 = vrot.lane.b32.xlu0 %v565_v6, %s10012_s15  ;;  %665 = vrot.lane.b32.xlu1 %v7569_v3, %s7276_s23  ;;  %s10017_s23 = smov 118  }
 0x119   : > { %656 = vrot.lane.b32.xlu0 %v7573_v5, %s7279_s18  ;;  %621 = vrot.lane.b32.xlu1 %v565_v6, %s10014_s28 }
 0x11d   : > { %654 = vrot.lane.b32.xlu0 %v7569_v3, %s7279_s18  ;;  %606 = vrot.lane.b32.xlu1 %v7573_v5, %s10012_s15 }
 0x121   : > { %595 = vrot.lane.b32.xlu0 %v565_v6, %s10016_s29  ;;  %604 = vrot.lane.b32.xlu1 %v7569_v3, %s10012_s15  ;;  %s10076_s15 = smov 110  }
 0x125   : > { %580 = vrot.lane.b32.xlu0 %v7573_v5, %s10027_s30  ;;  %658 = vrot.lane.b32.xlu1 %v565_v6, %s7279_s18 }
 0x129   : > { %578 = vrot.lane.b32.xlu0 %v7569_v3, %s10027_s30  ;;  %593 = vrot.lane.b32.xlu1 %v7573_v5, %s10016_s29 }
 0x12d   : > { %647 = vrot.lane.b32.xlu0 %v565_v6, %s10023_s14  ;;  %591 = vrot.lane.b32.xlu1 %v7569_v3, %s10016_s29 }
 0x131   : > { %582 = vrot.lane.b32.xlu1 %v565_v6, %s10027_s30 }
 0x135   : > { %645 = vrot.lane.b32.xlu1 %v7573_v5, %s10023_s14 }
 0x139   : > { %643 = vrot.lane.b32.xlu1 %v7569_v3, %s10023_s14 }
 0x177   : > { %v631_v11 = vpop.permute.xlu0 %630 }
 0x17b   : > { %v633_v13 = vpop.permute.xlu1 %632  ;;  %v670_v14 = vpop.permute.xlu0 %669 }
 0x17c   : > { %v637_v21 = vsel %vm636_vm2, %v631_v11, %v633_v13 }
 0x17f   : > { %v635_v17 = vpop.permute.xlu1 %634  ;;  %v620_v18 = vpop.permute.xlu0 %619 }
 0x180   : > { %v638_v20 = vsel %vm636_vm2, %v633_v13, %v635_v17  ;;  %vm979_vm2 = vcmask 72704  }
 0x181   : > { %5709 = vmatprep.subr.msk.mxu0 %vm7615_vm1, %v638_v20 }
 0x182   : > { %5710 = vmatpush1.msk.msra.mxu0 %vm7619_vm3, %v637_v21 }
 0x183   : > { %v668_v22 = vpop.permute.xlu1 %667  ;;  %v618_v23 = vpop.permute.xlu0 %617 }
 0x184   : > { %v673_v24 = vsel %vm671_vm4, %v668_v22, %v670_v14  ;;  %v624_v33 = vsel %vm623_vm5, %v618_v23, %v620_v18 }
 0x185   : > { %697 = vmatprep.subr.mxu0 %v673_v24 }
 0x187   : > { %v666_v25 = vpop.permute.xlu1 %665  ;;  %v609_v26 = vpop.permute.xlu0 %608 }
 0x188   : > { %v672_v27 = vsel %vm671_vm4, %v666_v25, %v668_v22  ;;  %vm1051_vm4 = vcmask 195584  }
 0x189   : > { %698 = vmatpush1.msra.mxu0 %v672_v27 }
 0x18b   : > { %v622_v29 = vpop.permute.xlu1 %621  ;;  %v657_v30 = vpop.permute.xlu0 %656 }
 0x18c   : > { %v625_v32 = vsel %vm623_vm5, %v620_v18, %v622_v29 }
 0x18d   : > { %5711 = vmatprep.subr.msk.mxu0 %vm7627_vm6, %v625_v32 }
 0x18e   : > { %5712 = vmatpush1.msk.msra.mxu0 %vm7631_vm7, %v624_v33 }
 0x18f   : > { %v607_v34 = vpop.permute.xlu1 %606  ;;  %v655_v35 = vpop.permute.xlu0 %654 }
 0x190   : > { %v612_v36 = vsel %vm610_vm8, %v607_v34, %v609_v26  ;;  %v661_v42 = vsel %vm660_vm9, %v655_v35, %v657_v30 }
 0x191   : > { %5713 = vmatprep.subr.msk.mxu0 %vm7615_vm1, %v612_v36 }
 0x193   : > { %v605_v37 = vpop.permute.xlu1 %604  ;;  %v596_v39 = vpop.permute.xlu0 %595 }
 0x194   : > { %v611_v38 = vsel %vm610_vm8, %v605_v37, %v607_v34  ;;  %vm1874_vm8 = vcmask 64512  }
 0x195   : > { %5714 = vmatpush1.msk.msra.mxu0 %vm7619_vm3, %v611_v38 }
 0x197   : > { %v659_v40 = vpop.permute.xlu1 %658  ;;  %v581_v43 = vpop.permute.xlu0 %580 }
 0x198   : > { %v662_v41 = vsel %vm660_vm9, %v657_v30, %v659_v40  ;;  %vm1879_vm9 = vcmask 588800  }
 0x199   : > { %703 = vmatprep.subr.mxu0 %v662_v41 }
 0x19a   : > { %704 = vmatpush1.msra.mxu0 %v661_v42 }
 0x19b   : > { %v594_v44 = vpop.permute.xlu1 %593  ;;  %v579_v48 = vpop.permute.xlu0 %578 }
 0x19c   : > { %v599_v45 = vsel %vm597_vm10, %v594_v44, %v596_v39  ;;  %v585_v51 = vsel %vm584_vm11, %v579_v48, %v581_v43 }
 0x19d   : > { %5715 = vmatprep.subr.msk.mxu0 %vm7627_vm6, %v599_v45 }
 0x19f   : > { %v592_v46 = vpop.permute.xlu1 %591  ;;  %v648_v52 = vpop.permute.xlu0 %647 }
 0x1a0   : > { %v598_v47 = vsel %vm597_vm10, %v592_v46, %v594_v44  ;;  %vm1908_vm10 = vcmask 523264  }
 0x1a1   : > { %5716 = vmatpush1.msk.msra.mxu0 %vm7631_vm7, %v598_v47 }
 0x1a3   : > { %v583_v49 = vpop.permute.xlu1 %582 }
 0x1a4   : > { %v586_v50 = vsel %vm584_vm11, %v581_v43, %v583_v49 }
 0x1a5   : > { %5717 = vmatprep.subr.msk.mxu0 %vm7615_vm1, %v586_v50 }
 0x1a6   : > { %5718 = vmatpush1.msk.msra.mxu0 %vm7619_vm3, %v585_v51 }
 0x1a7   : > { %v646_v53 = vpop.permute.xlu1 %645 }
 0x1a8   : > { %v651_v54 = vsel %vm649_vm12, %v646_v53, %v648_v52  ;;  %v538_v52 = vld [vmem:[%s10075_s3 + $0xf8] sm:$0xff] }
 0x1a9   : > { %709 = vmatprep.subr.mxu0 %v651_v54  ;;  %6114 = vmatprep.subr.mxu1 %v538_v52 }
 0x1aa   : > { %6115 = vmatpush3.msra.mxu1 %v522_v16 }
 0x1ab   : > { %v644_v56 = vpop.permute.xlu1 %643  ;;  %6116 = vmatprep.subr.mxu1 %v537_v19 }
 0x1ac   : > { %v650_v57 = vsel %vm649_vm12, %v644_v56, %v646_v53  ;;  %v521_v56 = vld [vmem:[%s10075_s3 + $0x70] sm:$0xff]  ;;  %vm2059_vm12 = vcmask 171008  }
 0x1ad   : > { %710 = vmatpush1.msra.mxu0 %v650_v57  ;;  %v536_v57 = vld [vmem:[%s10075_s3 + $0xe8] sm:$0xff]  ;;  %6117 = vmatpush3.msra.mxu1 %v521_v56 }
 0x1ae   : > { %5719 = vmatprep.subr.msk.mxu0 %vm7627_vm6, %v7573_v5  ;;  %6118 = vmatprep.subr.mxu1 %v536_v57 }
 0x1af   : > { %5720 = vmatpush1.msk.msra.mxu0 %vm7631_vm7, %v7569_v3 }
 0x1b0   : > { %5721 = vmatprep.subr.msk.mxu0 %vm550_vm13, %v7284_v59 }
 0x1b1   : > { %5722 = vmatpush1.msk.msra.mxu0 %vm550_vm13, %v7284_v59 }
 0x1b2   : > { %5723 = vmatmul.mubr.msk.f32.vlgmr.msra.gmra.mxu0 %vm676_vm14, %v505_v58  ;;  %1058 = vmatprep.subr.mxu0 %v7283_v7  ;;  %v520_v58 = vld [vmem:[%s10075_s3 + $0x68] sm:$0xff] }
 0x1b3   : > { %753 = vmatprep.mubr.f32.mxu0 %v7283_v7  ;;  %6119 = vmatpush3.msra.mxu1 %v520_v58 }
 0x1b6   : > { %5724 = vmatmul.mubr.msk.f32.gmra.mxu0 %vm676_vm14, %v506_v60  ;;  %v535_v60 = vld [vmem:[%s10075_s3 + $0xe0] sm:$0xff]  ;;  %vm2192_vm14 = vcmask 326656  }
 0x1b7   : > { %6120 = vmatprep.subr.mxu1 %v535_v60 }
 0x272   : > { %v749_v61 = vpop.f32.mrf.mxu0 }
 0x274   : > { %v751_v62 = vpop.f32.mrf.mxu0 }
 0x275   : > { %v6976_v63 = vpack.i.bf16 %v751_v62, %v749_v61 }
 0x276   : > { %v755_v0 = vpop.f32.mrf.mxu0 }
 0x277   : > { %6977 = vrot.lane.b32.xlu0 %v6976_v63, %s10009_s26  ;;  %v518_v63 = vld [vmem:[%s10075_s3 + $0x58] sm:$0xff] }
 0x278   : > { %v757_v1 = vpop.f32.mrf.mxu0 }
 0x279   : > { %v6981_v2 = vpack.i.bf16 %v757_v1, %v755_v0 }
 0x27b   : > { %6982 = vrot.lane.b32.xlu1 %v6981_v2, %s10009_s26  ;;  %v532_v2 = vld [vmem:[%s10075_s3 + $0xc8] sm:$0xff]  ;;  %s10021_s26 = smov 122  }
 0x2e9   : > { %v6978_v3 = vpop.permute.xlu0 %6977 }
 0x2ea   : > { %v6980_v4 = vunpack.i.h.bf16 %v6978_v3  ;;  %v6979_v5 = vunpack.i.l.bf16 %v6978_v3  ;;  %v516_v3 = vld [vmem:[%s10075_s3 + $0x48] sm:$0xff] }
 0x2ec   : > { %v773_v6 = vsel %vm772_vm15, %v6979_v5, %v6980_v4  ;;  %v781_v10 = vsel %vm772_vm15, -1e+30, %v6979_v5  ;;  %v783_v17 = vsel %vm772_vm15, %v6980_v4, -1e+30  ;;  %v531_v4 = vld [vmem:[%s10075_s3 + $0xc0] sm:$0xff] }
 0x2ed   : > { %v6983_v11 = vpop.permute.xlu1 %6982  ;;  %v6986_v12 = vpack.i.bf16 %v773_v6, %v781_v10  ;;  %v785_v27 = vsel %vm7631_vm7, %v781_v10, -1e+30  ;;  %v786_v37 = vsel %vm7627_vm6, %v773_v6, -1e+30  ;;  %v515_v5 = vld [vmem:[%s10075_s3 + $0x40] sm:$0xff]  ;;  %v530_v6 = vld [vmem:[%s10075_s3 + $0xb8] sm:$0xff] }
 0x2ee   : > { %v6985_v13 = vunpack.i.h.bf16 %v6983_v11  ;;  %v6984_v14 = vunpack.i.l.bf16 %v6983_v11  ;;  %v514_v10 = vld [vmem:[%s10075_s3 + $0x38] sm:$0xff]  ;;  %v529_v11 = vld [vmem:[%s10075_s3 + $0xb0] sm:$0xff] }
 0x2ef   : > { %6987 = vrot.lane.b32.xlu0 %v6986_v12, %s10027_s30  ;;  %v513_v12 = vld [vmem:[%s10075_s3 + $0x30] sm:$0xff] }
 0x2f0   : > { %v782_v15 = vsel %vm772_vm15, -1e+30, %v6984_v14  ;;  %v774_v18 = vsel %vm772_vm15, %v6984_v14, %v6985_v13  ;;  %v784_v20 = vsel %vm772_vm15, %v6985_v13, -1e+30  ;;  %v528_v13 = vld [vmem:[%s10075_s3 + $0xa8] sm:$0xff] }
 0x2f1   : > { %v6991_v21 = vpack.i.bf16 %v782_v15, %v783_v17  ;;  %v6996_v22 = vpack.i.bf16 %v784_v20, %v774_v18  ;;  %v787_v38 = vsel %vm7631_vm7, %v782_v15, -1e+30  ;;  %v788_v39 = vsel %vm7627_vm6, %v774_v18, -1e+30  ;;  %v512_v14 = vld [vmem:[%s10075_s3 + $0x28] sm:$0xff]  ;;  %v527_v15 = vld [vmem:[%s10075_s3 + $0xa0] sm:$0xff] }
 0x2f2   : > { %v511_v17 = vld [vmem:[%s10075_s3 + $0x20] sm:$0xff]  ;;  %v526_v18 = vld [vmem:[%s10075_s3 + $0x98] sm:$0xff]  ;;  %vm1821_vm7 = vcmask 531456  }
 0x2f3   : > { %6992 = vrot.lane.b32.xlu1 %v6991_v21, %s10027_s30  ;;  %6997 = vrot.lane.b32.xlu0 %v6996_v22, %s10027_s30  ;;  %v510_v20 = vld [vmem:[%s10075_s3 + $0x18] sm:$0xff]  ;;  %v525_v21 = vld [vmem:[%s10075_s3 + $0x90] sm:$0xff] }
 0x2f4   : > { %v509_v22 = vld [vmem:[%s10075_s3 + $0x10] sm:$0xff] }
 0x361   : > { %v6988_v23 = vpop.permute.xlu0 %6987 }
 0x362   : > { %v6990_v24 = vunpack.i.h.bf16 %v6988_v23  ;;  %v6989_v25 = vunpack.i.l.bf16 %v6988_v23  ;;  %v524_v23 = vld [vmem:[%s10075_s3 + $0x88] sm:$0xff] }
 0x364   : > { %v805_v26 = vsel %vm584_vm11, %v6989_v25, %v6990_v24  ;;  %v523_v25 = vld [vmem:[%s10075_s3 + $0x80] sm:$0xff] }
 0x365   : > { %v6993_v29 = vpop.permute.xlu1 %6992  ;;  %v6998_v30 = vpop.permute.xlu0 %6997  ;;  %v813_v32 = vsel %vm7619_vm3, %v805_v26, -1e+30  ;;  %v507_v26 = vld [vmem:[%s10075_s3] sm:$0xff] }
 0x366   : > { %v6995_v33 = vunpack.i.h.bf16 %v6993_v29  ;;  %v6994_v34 = vunpack.i.l.bf16 %v6993_v29  ;;  %v7000_v35 = vunpack.i.h.bf16 %v6998_v30  ;;  %v6999_v36 = vunpack.i.l.bf16 %v6998_v30 }
 0x367   : > { %v817_v43 = vmax.f32 %v785_v27, %v813_v32 }
 0x368   : > { %v806_v40 = vsel %vm584_vm11, %v6990_v24, %v6994_v34  ;;  %v807_v41 = vsel %vm584_vm11, %v6995_v33, %v6999_v36  ;;  %v808_v42 = vsel %vm584_vm11, %v6999_v36, %v7000_v35  ;;  %v508_v24 = vld [vmem:[%s10075_s3 + $0x8] sm:$0xff]  ;;  %vm2054_vm11 = vcmask 39936  }
 0x369   : > { %v814_v44 = vsel %vm7615_vm1, %v806_v40, -1e+30  ;;  %v815_v45 = vsel %vm7619_vm3, %v807_v41, -1e+30  ;;  %v816_v31 = vsel %vm7615_vm1, %v808_v42, -1e+30  ;;  %v7704_v48 = vmax.f32 %v749_v61, %v817_v43 }
 0x36a   : > { %v818_v46 = vmax.f32 %v786_v37, %v814_v44  ;;  %v819_v47 = vmax.f32 %v787_v38, %v815_v45  ;;  %v820_v28 = vmax.f32 %v788_v39, %v816_v31  ;;  %v519_v61 = vld [vmem:[%s10075_s3 + $0x60] sm:$0xff]  ;;  %vm837_vm1 = vcmask 130048  }
 0x36b   : > { %6121 = vmatpush3.msra.mxu1 %v519_v61  ;;  %vm982_vm3 = vcmask 596992  }
 0x36c   : > { %v7706_v49 = vmax.f32 %v751_v62, %v818_v46  ;;  %v7708_v50 = vmax.f32 %v755_v0, %v819_v47  ;;  %v7710_v51 = vmax.f32 %v757_v1, %v820_v28  ;;  %v534_v62 = vld [vmem:[%s10075_s3 + $0xd8] sm:$0xff]  ;;  %v533_v0 = vld [vmem:[%s10075_s3 + $0xd0] sm:$0xff] }
 0x36d   : > { %6122 = vmatprep.subr.mxu1 %v534_v62  ;;  %v517_v1 = vld [vmem:[%s10075_s3 + $0x50] sm:$0xff]  ;;  %s7305_s3 = smov 36  }
 0x36e   : > { %v7001_v53 = vpack.i.bf16 %v7706_v49, %v7704_v48  ;;  %v7006_v54 = vpack.i.bf16 %v7710_v51, %v7708_v50  ;;  %6123 = vmatpush3.msra.mxu1 %v518_v63 }
 0x36f   : > { %6124 = vmatprep.subr.mxu1 %v533_v0 }
 0x370   : > { %7002 = vrot.lane.b32.xlu1 %v7001_v53, %s10011_s10  ;;  %7007 = vrot.lane.b32.xlu0 %v7006_v54, %s10011_s10  ;;  %s10015_s10 = smov 8  }
 0x371   : > { %6125 = vmatpush3.msra.mxu1 %v517_v1 }
 0x372   : > { %6126 = vmatprep.subr.mxu1 %v532_v2 }
 0x373   : > { %6127 = vmatpush3.msra.mxu1 %v516_v3 }
 0x374   : > { %6128 = vmatprep.subr.mxu1 %v531_v4 }
 0x375   : > { %6129 = vmatpush3.msra.mxu1 %v515_v5 }
 0x376   : > { %6130 = vmatprep.subr.mxu1 %v530_v6 }
 0x377   : > { %6131 = vmatpush3.msra.mxu1 %v514_v10 }
 0x378   : > { %6132 = vmatprep.subr.mxu1 %v529_v11 }
 0x379   : > { %6133 = vmatpush3.msra.mxu1 %v513_v12 }
 0x37a   : > { %6134 = vmatprep.subr.mxu1 %v528_v13 }
 0x37b   : > { %6135 = vmatpush3.msra.mxu1 %v512_v14 }
 0x37c   : > { %6136 = vmatprep.subr.mxu1 %v527_v15 }
 0x37d   : > { %6137 = vmatpush3.msra.mxu1 %v511_v17  ;;  %v961_v17 = vld [vmem:[#allocation8 + $0x8] sm:$0xff] }
 0x37e   : > { %6138 = vmatprep.subr.mxu1 %v526_v18  ;;  %5738 = vmatprep.mubr.msk.f32.mxu0 %vm1051_vm4, %v961_v17  ;;  %v957_v18 = vand.u32 7, %v7611_v9 }
 0x37f   : > { %6139 = vmatpush3.msra.mxu1 %v510_v20 }
 0x380   : > { %6140 = vmatprep.subr.mxu1 %v525_v21  ;;  %vm7889_vm6 = vcmp.lt.s32.totalorder %v957_v18, 7  ;;  %v1624_v21 = vld [vmem:[%s10082_s6 + $0x10] sm:$0xff] }
 0x381   : > { %6141 = vmatpush3.msra.mxu1 %v509_v22 }
 0x382   : > { %6142 = vmatprep.subr.mxu1 %v524_v23 }
 0x383   : > { %6143 = vmatpush3.msra.mxu1 %v508_v24  ;;  %v1623_v24 = vld [vmem:[%s10082_s6 + $0x8] sm:$0xff] }
 0x384   : > { %6144 = vmatprep.subr.mxu1 %v523_v25 }
 0x385   : > { %6145 = vmatpush3.msra.mxu1 %v507_v26 }
 0x386   : > { %1215 = vmatprep.subr.mxu1 %v7283_v7 }
 0x3e2   : > { %v7003_v27 = vpop.permute.xlu1 %7002  ;;  %v7008_v29 = vpop.permute.xlu0 %7007 }
 0x3e3   : > { %v7005_v30 = vunpack.i.h.bf16 %v7003_v27  ;;  %v7004_v32 = vunpack.i.l.bf16 %v7003_v27  ;;  %v7010_v33 = vunpack.i.h.bf16 %v7008_v29  ;;  %v7009_v34 = vunpack.i.l.bf16 %v7008_v29 }
 0x3e5   : > { %v838_v35 = vsel %vm837_vm1, %v7004_v32, %v7005_v30  ;;  %v848_v36 = vsel %vm837_vm1, %v7005_v30, -1e+30  ;;  %v839_v37 = vsel %vm837_vm1, %v7009_v34, %v7010_v33  ;;  %v846_v38 = vsel %vm837_vm1, -1e+30, %v7004_v32 }
 0x3e6   : > { %v7011_v39 = vpack.i.bf16 %v848_v36, %v838_v35  ;;  %v7016_v40 = vpack.i.bf16 %v839_v37, %v846_v38  ;;  %v847_v41 = vsel %vm837_vm1, -1e+30, %v7009_v34  ;;  %v849_v42 = vsel %vm837_vm1, %v7010_v33, -1e+30 }
 0x3e7   : > { %v7021_v43 = vpack.i.bf16 %v847_v41, %v849_v42  ;;  %v962_v42 = vld [vmem:[#allocation8 + $0x10] sm:$0xff] }
 0x3e8   : > { %7012 = vrot.lane.b32.xlu1 %v7011_v39, %s10014_s28  ;;  %7017 = vrot.lane.b32.xlu0 %v7016_v40, %s10014_s28  ;;  %v960_v39 = vld [vmem:[#allocation8] sm:$0xff] }
 0x3ec   : > { %7022 = vrot.lane.b32.xlu1 %v7021_v43, %s10014_s28  ;;  %s10033_s28 = smov 5  }
 0x45a   : > { %v7013_v44 = vpop.permute.xlu1 %7012  ;;  %v7018_v45 = vpop.permute.xlu0 %7017 }
 0x45b   : > { %v7015_v31 = vunpack.i.h.bf16 %v7013_v44  ;;  %v7014_v46 = vunpack.i.l.bf16 %v7013_v44  ;;  %v7019_v47 = vunpack.i.l.bf16 %v7018_v45  ;;  %v7020_v54 = vunpack.i.h.bf16 %v7018_v45 }
 0x45d   : > { %v867_v28 = vsel %vm623_vm5, %v7014_v46, %v7015_v31  ;;  %v866_v52 = vsel %vm623_vm5, %v7019_v47, %v7014_v46 }
 0x45e   : > { %v7023_v16 = vpop.permute.xlu1 %7022  ;;  %v875_v19 = vmax.f32 %v838_v35, %v867_v28  ;;  %v874_v53 = vmax.f32 %v846_v38, %v866_v52 }
 0x45f   : > { %v7025_v56 = vunpack.i.h.bf16 %v7023_v16  ;;  %v7024_v57 = vunpack.i.l.bf16 %v7023_v16 }
 0x460   : > { %v879_v58 = vmax.f32 %v7706_v49, %v875_v19  ;;  %v878_v60 = vmax.f32 %v7704_v48, %v874_v53 }
 0x461   : > { %v869_v61 = vsel %vm623_vm5, %v7020_v54, %v7024_v57  ;;  %v868_v62 = vsel %vm623_vm5, %v7025_v56, %v7020_v54  ;;  %vm7882_vm5 = vcmp.gt.s32.totalorder %v957_v18, 0  ;;  %v966_v56 = vld [vmem:[#allocation8 + $0x28] sm:$0xff] }
 0x462   : > { %946 = vmatprep.mubr.f32.mxu1 %v879_v58  ;;  %v877_v63 = vmax.f32 %v839_v37, %v869_v61  ;;  %v876_v0 = vmax.f32 %v847_v41, %v868_v62  ;;  %v963_v41 = vld [vmem:[#allocation8 + $0x18] sm:$0xff] }
 0x463   : > { %947 = vmatmul.mubr.f32.vlgmr.msra.gmra.mxu1 %v878_v60 }
 0x464   : > { %v881_v1 = vmax.f32 %v7710_v51, %v877_v63  ;;  %v880_v2 = vmax.f32 %v7708_v50, %v876_v0 }
 0x466   : > { %951 = vmatprep.mubr.f32.mxu1 %v881_v1 }
 0x467   : > { %952 = vmatmul.mubr.f32.gmra.mxu1 %v880_v2 }
 0x468   : > { %5753 = vmatprep.mubr.msk.f32.mxu1 %vm1051_vm4, %v966_v56 }
 0x523   : > { %v6146_v3 = vpop.f32.mrf.mxu1 }
 0x525   : > { %v6147_v4 = vpop.f32.mrf.mxu1 }
 0x526   : > { %v7832_v5 = vadd.f32 %v6147_v4, %v6146_v3 }
 0x527   : > { %v6149_v49 = vpop.f32.mrf.mxu1 }
 0x528   : > { %v969_v48 = vmax.f32 %v7832_v5, 0.0 }
 0x529   : > { %v6150_v6 = vpop.f32.mrf.mxu1 }
 0x52a   : > { %v7835_v10 = vadd.f32 %v6150_v6, %v6149_v49  ;;  %973 = vrot.lane.b32.xlu0 %v969_v48, %s7287_s4 }
 0x52c   : > { %v970_v11 = vmax.f32 %v7835_v10, 0.0 }
 0x52e   : > { %975 = vrot.lane.b32.xlu1 %v970_v11, %s7287_s4 }
 0x59c   : > { %v974_v50 = vpop.permute.xlu0 %973 }
 0x59d   : > { %v980_v51 = vsel %vm979_vm2, 0.0, %v974_v50  ;;  %v965_v50 = vld [vmem:[#allocation8 + $0x20] sm:$0xff] }
 0x59e   : > { %v7842_v12 = vsel %vm982_vm3, %v980_v51, 0.0 }
 0x59f   : > { %1045 = vrot.lane.b32.xlu0 %v7842_v12, %s7279_s18 }
 0x5a0   : > { %v976_v13 = vpop.permute.xlu1 %975 }
 0x5a1   : > { %v981_v14 = vsel %vm979_vm2, 0.0, %v976_v13  ;;  %v967_v13 = vld [vmem:[#allocation8 + $0x30] sm:$0xff] }
 0x5a2   : > { %v7848_v15 = vsel %vm982_vm3, %v981_v14, 0.0 }
 0x5a3   : > { %1019 = vrot.lane.b32.xlu1 %v7848_v15, %s10016_s29  ;;  %1017 = vrot.lane.b32.xlu0 %v7842_v12, %s10016_s29 }
 0x5a7   : > { %1011 = vrot.lane.b32.xlu1 %v7848_v15, %s10017_s23  ;;  %1009 = vrot.lane.b32.xlu0 %v7842_v12, %s10017_s23 }
 0x5ab   : > { %1041 = vrot.lane.b32.xlu1 %v7848_v15, %s10029_s1  ;;  %1039 = vrot.lane.b32.xlu0 %v7842_v12, %s10029_s1 }
 0x5af   : > { %1003 = vrot.lane.b32.xlu1 %v7848_v15, %s10025_s25  ;;  %1001 = vrot.lane.b32.xlu0 %v7842_v12, %s10025_s25 }
 0x5b3   : > { %995 = vrot.lane.b32.xlu1 %v7848_v15, %s10027_s30  ;;  %993 = vrot.lane.b32.xlu0 %v7842_v12, %s10027_s30 }
 0x5b7   : > { %1035 = vrot.lane.b32.xlu1 %v7848_v15, %s10023_s14  ;;  %1033 = vrot.lane.b32.xlu0 %v7842_v12, %s10023_s14 }
 0x5bb   : > { %1027 = vrot.lane.b32.xlu1 %v7848_v15, %s10076_s15  ;;  %1025 = vrot.lane.b32.xlu0 %v7842_v12, %s10076_s15 }
 0x5bf   : > { %1047 = vrot.lane.b32.xlu1 %v7848_v15, %s7279_s18 }
 0x611   : > { %v1046_v20 = vpop.permute.xlu0 %1045 }
 0x612   : > { %1059 = vmatpush1.msra.mxu0 %v1046_v20 }
 0x613   : > { %1060 = vmatprep.subr.mxu0 %v7283_v7 }
 0x615   : > { %v1020_v22 = vpop.permute.xlu1 %1019  ;;  %v1018_v23 = vpop.permute.xlu0 %1017 }
 0x616   : > { %5725 = vmatpush1.msk.msra.mxu0 %vm7882_vm5, %v1020_v22 }
 0x617   : > { %1062 = vmatprep.subr.mxu0 %v7283_v7 }
 0x618   : > { %5726 = vmatpush1.msk.msra.mxu0 %vm7882_vm5, %v1018_v23 }
 0x619   : > { %v1012_v25 = vpop.permute.xlu1 %1011  ;;  %1064 = vmatprep.subr.mxu0 %v7283_v7  ;;  %v1010_v26 = vpop.permute.xlu0 %1009 }
 0x61a   : > { %5727 = vmatpush1.msk.msra.mxu0 %vm7889_vm6, %v1012_v25 }
 0x61b   : > { %1066 = vmatprep.subr.mxu0 %v7283_v7 }
 0x61c   : > { %5728 = vmatpush1.msk.msra.mxu0 %vm7889_vm6, %v1010_v26 }
 0x61d   : > { %v1042_v27 = vpop.permute.xlu1 %1041  ;;  %1068 = vmatprep.subr.mxu0 %v7283_v7  ;;  %v1040_v29 = vpop.permute.xlu0 %1039 }
 0x61e   : > { %1069 = vmatpush1.msra.mxu0 %v1042_v27 }
 0x61f   : > { %1070 = vmatprep.subr.mxu0 %v7283_v7 }
 0x620   : > { %1071 = vmatpush1.msra.mxu0 %v1040_v29 }
 0x621   : > { %v1004_v30 = vpop.permute.xlu1 %1003  ;;  %1072 = vmatprep.subr.mxu0 %v7283_v7  ;;  %v1002_v32 = vpop.permute.xlu0 %1001 }
 0x622   : > { %5729 = vmatpush1.msk.msra.mxu0 %vm7882_vm5, %v1004_v30 }
 0x623   : > { %1074 = vmatprep.subr.mxu0 %v7283_v7 }
 0x624   : > { %5730 = vmatpush1.msk.msra.mxu0 %vm7882_vm5, %v1002_v32  ;;  %v1292_v32 = vld [vmem:[#allocation8 + $0x48] sm:$0xff] }
 0x625   : > { %v996_v33 = vpop.permute.xlu1 %995  ;;  %1076 = vmatprep.subr.mxu0 %v7283_v7  ;;  %v994_v34 = vpop.permute.xlu0 %993 }
 0x626   : > { %5731 = vmatpush1.msk.msra.mxu0 %vm7889_vm6, %v996_v33 }
 0x627   : > { %1078 = vmatprep.subr.mxu0 %v7283_v7 }
 0x628   : > { %5732 = vmatpush1.msk.msra.mxu0 %vm7889_vm6, %v994_v34 }
 0x629   : > { %v1036_v35 = vpop.permute.xlu1 %1035  ;;  %1080 = vmatprep.subr.mxu0 %v7283_v7  ;;  %v1034_v36 = vpop.permute.xlu0 %1033 }
 0x62a   : > { %1081 = vmatpush1.msra.mxu0 %v1036_v35 }
 0x62b   : > { %1082 = vmatprep.subr.mxu0 %v7283_v7 }
 0x62c   : > { %1083 = vmatpush1.msra.mxu0 %v1034_v36 }
 0x62d   : > { %1084 = vmatprep.subr.mxu0 %v7283_v7  ;;  %v1028_v37 = vpop.permute.xlu1 %1027  ;;  %v1026_v38 = vpop.permute.xlu0 %1025 }
 0x62e   : > { %5733 = vmatpush1.msk.msra.mxu0 %vm7882_vm5, %v7848_v15 }
 0x62f   : > { %1086 = vmatprep.subr.mxu0 %v7283_v7 }
 0x630   : > { %5734 = vmatpush1.msk.msra.mxu0 %vm7882_vm5, %v7842_v12  ;;  %v968_v12 = vld [vmem:[#allocation8 + $0x38] sm:$0xff] }
 0x631   : > { %1088 = vmatprep.subr.mxu0 %v7283_v7  ;;  %v1048_v40 = vpop.permute.xlu1 %1047 }
 0x632   : > { %5735 = vmatpush1.msk.msra.mxu0 %vm550_vm13, %v7284_v59 }
 0x633   : > { %1116 = vmatprep.subr.mxu0 %v7283_v7 }
 0x634   : > { %5736 = vmatpush2.msk.msra.mxu0 %vm7889_vm6, %v1028_v37 }
 0x635   : > { %1118 = vmatprep.subr.mxu0 %v7283_v7 }
 0x636   : > { %5737 = vmatpush2.msk.msra.mxu0 %vm7889_vm6, %v1026_v38 }
 0x637   : > { %1120 = vmatprep.subr.mxu0 %v7283_v7 }
 0x638   : > { %1121 = vmatpush2.msra.mxu0 %v1048_v40 }
 0x639   : > { %1123 = vmatmul.mubr.f32.vlgmr.msra.gmra.mxu0 %v960_v39  ;;  %1382 = vmatprep.subr.mxu0 %v7283_v7 }
 0x63a   : > { %5739 = vmatprep.mubr.msk.f32.mxu0 %vm1051_vm4, %v963_v41 }
 0x63d   : > { %1128 = vmatmul.mubr.f32.gmra.mxu0 %v962_v42 }
 0x63e   : > { %5768 = vmatprep.mubr.msk.f32.mxu0 %vm1051_vm4, %v1292_v32 }
 0x6f9   : > { %v1124_v43 = vpop.f32.mrf.mxu0 }
 0x6fa   : > { %v1133_v44 = vmax.f32 %v1124_v43, 0.0 }
 0x6fb   : > { %v1126_v45 = vpop.f32.mrf.mxu0 }
 0x6fc   : > { %1137 = vrot.lane.b32.xlu0 %v1133_v44, %s7287_s4 }
 0x6fd   : > { %v1129_v31 = vpop.f32.mrf.mxu0 }
 0x6fe   : > { %v1134_v46 = vmax.f32 %v1129_v31, 0.0 }
 0x6ff   : > { %v1131_v47 = vpop.f32.mrf.mxu0 }
 0x700   : > { %1139 = vrot.lane.b32.xlu1 %v1134_v46, %s7287_s4  ;;  %v1291_v47 = vld [vmem:[#allocation8 + $0x40] sm:$0xff] }
 0x76e   : > { %v1138_v28 = vpop.permute.xlu0 %1137 }
 0x76f   : > { %v1143_v52 = vsel %vm979_vm2, 0.0, %v1138_v28 }
 0x770   : > { %v7943_v16 = vsel %vm982_vm3, %v1143_v52, 0.0  ;;  %v1294_v52 = vld [vmem:[#allocation8 + $0x58] sm:$0xff] }
 0x771   : > { %1203 = vrot.lane.b32.xlu0 %v7943_v16, %s7279_s18 }
 0x772   : > { %v1140_v19 = vpop.permute.xlu1 %1139 }
 0x773   : > { %v1144_v53 = vsel %vm979_vm2, 0.0, %v1140_v19 }
 0x774   : > { %v1146_v54 = vsel %vm982_vm3, %v1144_v53, 0.0 }
 0x775   : > { %1175 = vrot.lane.b32.xlu0 %v7943_v16, %s10016_s29  ;;  %1177 = vrot.lane.b32.xlu1 %v1146_v54, %s10016_s29 }
 0x779   : > { %1167 = vrot.lane.b32.xlu0 %v7943_v16, %s10017_s23  ;;  %1169 = vrot.lane.b32.xlu1 %v1146_v54, %s10017_s23 }
 0x77d   : > { %1197 = vrot.lane.b32.xlu0 %v7943_v16, %s10029_s1  ;;  %1199 = vrot.lane.b32.xlu1 %v1146_v54, %s10029_s1 }
 0x781   : > { %1159 = vrot.lane.b32.xlu0 %v7943_v16, %s10025_s25  ;;  %1161 = vrot.lane.b32.xlu1 %v1146_v54, %s10025_s25 }
 0x785   : > { %1151 = vrot.lane.b32.xlu0 %v7943_v16, %s10027_s30  ;;  %1153 = vrot.lane.b32.xlu1 %v1146_v54, %s10027_s30 }
 0x789   : > { %1191 = vrot.lane.b32.xlu0 %v7943_v16, %s10023_s14  ;;  %1193 = vrot.lane.b32.xlu1 %v1146_v54, %s10023_s14 }
 0x78d   : > { %1183 = vrot.lane.b32.xlu0 %v7943_v16, %s10076_s15  ;;  %1185 = vrot.lane.b32.xlu1 %v1146_v54, %s10076_s15 }
 0x791   : > { %1205 = vrot.lane.b32.xlu1 %v1146_v54, %s7279_s18 }
 0x7e3   : > { %v1204_v57 = vpop.permute.xlu0 %1203 }
 0x7e4   : > { %1216 = vmatpush1.msra.mxu1 %v1204_v57 }
 0x7e5   : > { %1217 = vmatprep.subr.mxu1 %v7283_v7 }
 0x7e7   : > { %v1176_v58 = vpop.permute.xlu0 %1175  ;;  %v1178_v60 = vpop.permute.xlu1 %1177 }
 0x7e8   : > { %5740 = vmatpush1.msk.msra.mxu1 %vm7882_vm5, %v1178_v60 }
 0x7e9   : > { %1219 = vmatprep.subr.mxu1 %v7283_v7 }
 0x7ea   : > { %5741 = vmatpush1.msk.msra.mxu1 %vm7882_vm5, %v1176_v58 }
 0x7eb   : > { %v1168_v61 = vpop.permute.xlu0 %1167  ;;  %1221 = vmatprep.subr.mxu1 %v7283_v7  ;;  %v1170_v62 = vpop.permute.xlu1 %1169 }
 0x7ec   : > { %5742 = vmatpush1.msk.msra.mxu1 %vm7889_vm6, %v1170_v62 }
 0x7ed   : > { %1223 = vmatprep.subr.mxu1 %v7283_v7 }
 0x7ee   : > { %5743 = vmatpush1.msk.msra.mxu1 %vm7889_vm6, %v1168_v61 }
 0x7ef   : > { %v1198_v63 = vpop.permute.xlu0 %1197  ;;  %1225 = vmatprep.subr.mxu1 %v7283_v7  ;;  %v1200_v0 = vpop.permute.xlu1 %1199 }
 0x7f0   : > { %1226 = vmatpush1.msra.mxu1 %v1200_v0 }
 0x7f1   : > { %1227 = vmatprep.subr.mxu1 %v7283_v7 }
 0x7f2   : > { %1228 = vmatpush1.msra.mxu1 %v1198_v63 }
 0x7f3   : > { %v1160_v1 = vpop.permute.xlu0 %1159  ;;  %1229 = vmatprep.subr.mxu1 %v7283_v7  ;;  %v1162_v2 = vpop.permute.xlu1 %1161 }
 0x7f4   : > { %5744 = vmatpush1.msk.msra.mxu1 %vm7882_vm5, %v1162_v2  ;;  %v1297_v2 = vld [vmem:[#allocation8 + $0x68] sm:$0xff] }
 0x7f5   : > { %1231 = vmatprep.subr.mxu1 %v7283_v7 }
 0x7f6   : > { %5745 = vmatpush1.msk.msra.mxu1 %vm7882_vm5, %v1160_v1 }
 0x7f7   : > { %v1152_v3 = vpop.permute.xlu0 %1151  ;;  %1233 = vmatprep.subr.mxu1 %v7283_v7  ;;  %v1154_v4 = vpop.permute.xlu1 %1153 }
 0x7f8   : > { %5746 = vmatpush1.msk.msra.mxu1 %vm7889_vm6, %v1154_v4 }
 0x7f9   : > { %1235 = vmatprep.subr.mxu1 %v7283_v7 }
 0x7fa   : > { %5747 = vmatpush1.msk.msra.mxu1 %vm7889_vm6, %v1152_v3 }
 0x7fb   : > { %1237 = vmatprep.subr.mxu1 %v7283_v7  ;;  %v1194_v49 = vpop.permute.xlu1 %1193  ;;  %v1192_v48 = vpop.permute.xlu0 %1191 }
 0x7fc   : > { %1238 = vmatpush1.msra.mxu1 %v1194_v49 }
 0x7fd   : > { %1239 = vmatprep.subr.mxu1 %v7283_v7 }
 0x7fe   : > { %1240 = vmatpush1.msra.mxu1 %v1192_v48 }
 0x7ff   : > { %1241 = vmatprep.subr.mxu1 %v7283_v7  ;;  %v1186_v6 = vpop.permute.xlu1 %1185  ;;  %v1184_v11 = vpop.permute.xlu0 %1183 }
 0x800   : > { %5748 = vmatpush1.msk.msra.mxu1 %vm7882_vm5, %v1146_v54 }
 0x801   : > { %1243 = vmatprep.subr.mxu1 %v7283_v7 }
 0x802   : > { %5749 = vmatpush1.msk.msra.mxu1 %vm7882_vm5, %v7943_v16  ;;  %v1293_v16 = vld [vmem:[#allocation8 + $0x50] sm:$0xff] }
 0x803   : > { %1245 = vmatprep.subr.mxu1 %v7283_v7  ;;  %v1206_v51 = vpop.permute.xlu1 %1205 }
 0x804   : > { %5750 = vmatpush1.msk.msra.mxu1 %vm550_vm13, %v7284_v59 }
 0x805   : > { %1273 = vmatprep.subr.mxu1 %v7283_v7 }
 0x806   : > { %5751 = vmatpush2.msk.msra.mxu1 %vm7889_vm6, %v1186_v6 }
 0x807   : > { %1275 = vmatprep.subr.mxu1 %v7283_v7 }
 0x808   : > { %5752 = vmatpush2.msk.msra.mxu1 %vm7889_vm6, %v1184_v11 }
 0x809   : > { %1277 = vmatprep.subr.mxu1 %v7283_v7 }
 0x80a   : > { %1278 = vmatpush2.msra.mxu1 %v1206_v51 }
 0x80b   : > { %1280 = vmatmul.mubr.f32.vlgmr.msra.gmra.mxu1 %v965_v50  ;;  %1539 = vmatprep.subr.mxu1 %v7283_v7 }
 0x80c   : > { %5754 = vmatprep.mubr.msk.f32.mxu1 %vm1051_vm4, %v968_v12 }
 0x80f   : > { %1285 = vmatmul.mubr.f32.gmra.mxu1 %v967_v13 }
 0x810   : > { %5783 = vmatprep.mubr.msk.f32.mxu1 %vm1051_vm4, %v1297_v2 }
 0x8cb   : > { %v1281_v14 = vpop.f32.mrf.mxu1 }
 0x8cc   : > { %v8021_v15 = vadd.f32 %v7832_v5, %v1281_v14 }
 0x8cd   : > { %v1283_v17 = vpop.f32.mrf.mxu1 }
 0x8ce   : > { %v1300_v18 = vmax.f32 %v8021_v15, 0.0 }
 0x8cf   : > { %v1286_v20 = vpop.f32.mrf.mxu1 }
 0x8d0   : > { %v8025_v22 = vadd.f32 %v7835_v10, %v1286_v20  ;;  %1304 = vrot.lane.b32.xlu0 %v1300_v18, %s7287_s4 }
 0x8d1   : > { %v1288_v23 = vpop.f32.mrf.mxu1 }
 0x8d2   : > { %v1301_v25 = vmax.f32 %v8025_v22, 0.0 }
 0x8d4   : > { %1306 = vrot.lane.b32.xlu1 %v1301_v25, %s7287_s4  ;;  %v1296_v25 = vld [vmem:[#allocation8 + $0x60] sm:$0xff] }
 0x942   : > { %v1305_v26 = vpop.permute.xlu0 %1304 }
 0x943   : > { %v1310_v27 = vsel %vm979_vm2, 0.0, %v1305_v26 }
 0x944   : > { %v8032_v5 = vsel %vm982_vm3, %v1310_v27, 0.0  ;;  %v1299_v27 = vld [vmem:[#allocation8 + $0x78] sm:$0xff] }
 0x945   : > { %1370 = vrot.lane.b32.xlu0 %v8032_v5, %s7279_s18 }
 0x946   : > { %v1307_v29 = vpop.permute.xlu1 %1306 }
 0x947   : > { %v1311_v10 = vsel %vm979_vm2, 0.0, %v1307_v29 }
 0x948   : > { %v1313_v30 = vsel %vm982_vm3, %v1311_v10, 0.0 }
 0x949   : > { %1344 = vrot.lane.b32.xlu1 %v1313_v30, %s10016_s29  ;;  %1342 = vrot.lane.b32.xlu0 %v8032_v5, %s10016_s29 }
 0x94d   : > { %1336 = vrot.lane.b32.xlu1 %v1313_v30, %s10017_s23  ;;  %1334 = vrot.lane.b32.xlu0 %v8032_v5, %s10017_s23 }
 0x951   : > { %1366 = vrot.lane.b32.xlu1 %v1313_v30, %s10029_s1  ;;  %1364 = vrot.lane.b32.xlu0 %v8032_v5, %s10029_s1 }
 0x955   : > { %1328 = vrot.lane.b32.xlu1 %v1313_v30, %s10025_s25  ;;  %1326 = vrot.lane.b32.xlu0 %v8032_v5, %s10025_s25 }
 0x959   : > { %1320 = vrot.lane.b32.xlu1 %v1313_v30, %s10027_s30  ;;  %1318 = vrot.lane.b32.xlu0 %v8032_v5, %s10027_s30 }
 0x95d   : > { %1360 = vrot.lane.b32.xlu1 %v1313_v30, %s10023_s14  ;;  %1358 = vrot.lane.b32.xlu0 %v8032_v5, %s10023_s14 }
 0x961   : > { %1352 = vrot.lane.b32.xlu1 %v1313_v30, %s10076_s15  ;;  %1350 = vrot.lane.b32.xlu0 %v8032_v5, %s10076_s15 }
 0x965   : > { %1372 = vrot.lane.b32.xlu1 %v1313_v30, %s7279_s18 }
 0x9b7   : > { %v1371_v33 = vpop.permute.xlu0 %1370 }
 0x9b8   : > { %1383 = vmatpush1.msra.mxu0 %v1371_v33 }
 0x9b9   : > { %1384 = vmatprep.subr.mxu0 %v7283_v7 }
 0x9bb   : > { %v1345_v34 = vpop.permute.xlu1 %1344  ;;  %v1343_v35 = vpop.permute.xlu0 %1342 }
 0x9bc   : > { %5755 = vmatpush1.msk.msra.mxu0 %vm7882_vm5, %v1345_v34 }
 0x9bd   : > { %1386 = vmatprep.subr.mxu0 %v7283_v7 }
 0x9be   : > { %5756 = vmatpush1.msk.msra.mxu0 %vm7882_vm5, %v1343_v35 }
 0x9bf   : > { %v1337_v36 = vpop.permute.xlu1 %1336  ;;  %1388 = vmatprep.subr.mxu0 %v7283_v7  ;;  %v1335_v37 = vpop.permute.xlu0 %1334 }
 0x9c0   : > { %5757 = vmatpush1.msk.msra.mxu0 %vm7889_vm6, %v1337_v36 }
 0x9c1   : > { %1390 = vmatprep.subr.mxu0 %v7283_v7 }
 0x9c2   : > { %5758 = vmatpush1.msk.msra.mxu0 %vm7889_vm6, %v1335_v37 }
 0x9c3   : > { %v1367_v38 = vpop.permute.xlu1 %1366  ;;  %1392 = vmatprep.subr.mxu0 %v7283_v7  ;;  %v1365_v39 = vpop.permute.xlu0 %1364 }
 0x9c4   : > { %1393 = vmatpush1.msra.mxu0 %v1367_v38 }
 0x9c5   : > { %1394 = vmatprep.subr.mxu0 %v7283_v7 }
 0x9c6   : > { %1395 = vmatpush1.msra.mxu0 %v1365_v39 }
 0x9c7   : > { %v1329_v40 = vpop.permute.xlu1 %1328  ;;  %1396 = vmatprep.subr.mxu0 %v7283_v7  ;;  %v1327_v41 = vpop.permute.xlu0 %1326 }
 0x9c8   : > { %5759 = vmatpush1.msk.msra.mxu0 %vm7882_vm5, %v1329_v40 }
 0x9c9   : > { %1398 = vmatprep.subr.mxu0 %v7283_v7 }
 0x9ca   : > { %5760 = vmatpush1.msk.msra.mxu0 %vm7882_vm5, %v1327_v41 }
 0x9cb   : > { %v1321_v42 = vpop.permute.xlu1 %1320  ;;  %1400 = vmatprep.subr.mxu0 %v7283_v7  ;;  %v1319_v43 = vpop.permute.xlu0 %1318 }
 0x9cc   : > { %5761 = vmatpush1.msk.msra.mxu0 %vm7889_vm6, %v1321_v42 }
 0x9cd   : > { %1402 = vmatprep.subr.mxu0 %v7283_v7 }
 0x9ce   : > { %5762 = vmatpush1.msk.msra.mxu0 %vm7889_vm6, %v1319_v43 }
 0x9cf   : > { %v1361_v44 = vpop.permute.xlu1 %1360  ;;  %1404 = vmatprep.subr.mxu0 %v7283_v7  ;;  %v1359_v45 = vpop.permute.xlu0 %1358 }
 0x9d0   : > { %1405 = vmatpush1.msra.mxu0 %v1361_v44 }
 0x9d1   : > { %1406 = vmatprep.subr.mxu0 %v7283_v7 }
 0x9d2   : > { %1407 = vmatpush1.msra.mxu0 %v1359_v45 }
 0x9d3   : > { %1408 = vmatprep.subr.mxu0 %v7283_v7  ;;  %v1353_v31 = vpop.permute.xlu1 %1352  ;;  %v1351_v46 = vpop.permute.xlu0 %1350 }
 0x9d4   : > { %5763 = vmatpush1.msk.msra.mxu0 %vm7882_vm5, %v1313_v30 }
 0x9d5   : > { %1410 = vmatprep.subr.mxu0 %v7283_v7 }
 0x9d6   : > { %5764 = vmatpush1.msk.msra.mxu0 %vm7882_vm5, %v8032_v5  ;;  %v1298_v5 = vld [vmem:[#allocation8 + $0x70] sm:$0xff] }
 0x9d7   : > { %1412 = vmatprep.subr.mxu0 %v7283_v7  ;;  %v1373_v28 = vpop.permute.xlu1 %1372 }
 0x9d8   : > { %5765 = vmatpush1.msk.msra.mxu0 %vm550_vm13, %v7284_v59 }
 0x9d9   : > { %1440 = vmatprep.subr.mxu0 %v7283_v7 }
 0x9da   : > { %5766 = vmatpush2.msk.msra.mxu0 %vm7889_vm6, %v1353_v31 }
 0x9db   : > { %1442 = vmatprep.subr.mxu0 %v7283_v7 }
 0x9dc   : > { %5767 = vmatpush2.msk.msra.mxu0 %vm7889_vm6, %v1351_v46 }
 0x9dd   : > { %1444 = vmatprep.subr.mxu0 %v7283_v7 }
 0x9de   : > { %1445 = vmatpush2.msra.mxu0 %v1373_v28 }
 0x9df   : > { %1447 = vmatmul.mubr.f32.vlgmr.msra.gmra.mxu0 %v1291_v47  ;;  %1716 = vmatprep.subr.mxu0 %v7283_v7 }
 0x9e0   : > { %5769 = vmatprep.mubr.msk.f32.mxu0 %vm1051_vm4, %v1294_v52 }
 0x9e3   : > { %1452 = vmatmul.mubr.f32.gmra.mxu0 %v1293_v16 }
 0xa9f   : > { %v1448_v19 = vpop.f32.mrf.mxu0 }
 0xaa0   : > { %v1457_v53 = vmax.f32 %v1448_v19, 0.0 }
 0xaa1   : > { %v1450_v54 = vpop.f32.mrf.mxu0 }
 0xaa2   : > { %1461 = vrot.lane.b32.xlu0 %v1457_v53, %s7287_s4 }
 0xaa3   : > { %v1453_v56 = vpop.f32.mrf.mxu0 }
 0xaa4   : > { %v1458_v57 = vmax.f32 %v1453_v56, 0.0  ;;  %v1614_v56 = vld [vmem:[#allocation9] sm:$0xff] }
 0xaa5   : > { %v1455_v58 = vpop.f32.mrf.mxu0 }
 0xaa6   : > { %1463 = vrot.lane.b32.xlu1 %v1458_v57, %s7287_s4  ;;  %v1617_v58 = vld [vmem:[#allocation9 + $0x18] sm:$0xff] }
 0xb14   : > { %v1462_v60 = vpop.permute.xlu0 %1461 }
 0xb15   : > { %v1467_v61 = vsel %vm979_vm2, 0.0, %v1462_v60  ;;  %v1616_v60 = vld [vmem:[#allocation9 + $0x10] sm:$0xff] }
 0xb16   : > { %v8113_v62 = vsel %vm982_vm3, %v1467_v61, 0.0  ;;  %v1619_v61 = vld [vmem:[#allocation9 + $0x28] sm:$0xff] }
 0xb17   : > { %1527 = vrot.lane.b32.xlu0 %v8113_v62, %s7279_s18 }
 0xb18   : > { %v1464_v63 = vpop.permute.xlu1 %1463 }
 0xb19   : > { %v1468_v0 = vsel %vm979_vm2, 0.0, %v1464_v63  ;;  %v1621_v63 = vld [vmem:[#allocation9 + $0x38] sm:$0xff] }
 0xb1a   : > { %v1470_v1 = vsel %vm982_vm3, %v1468_v0, 0.0  ;;  %v1620_v0 = vld [vmem:[#allocation9 + $0x30] sm:$0xff] }
 0xb1b   : > { %1499 = vrot.lane.b32.xlu0 %v8113_v62, %s10016_s29  ;;  %1501 = vrot.lane.b32.xlu1 %v1470_v1, %s10016_s29 }
 0xb1f   : > { %1491 = vrot.lane.b32.xlu0 %v8113_v62, %s10017_s23  ;;  %1493 = vrot.lane.b32.xlu1 %v1470_v1, %s10017_s23 }
 0xb23   : > { %1521 = vrot.lane.b32.xlu0 %v8113_v62, %s10029_s1  ;;  %1523 = vrot.lane.b32.xlu1 %v1470_v1, %s10029_s1 }
 0xb27   : > { %1483 = vrot.lane.b32.xlu0 %v8113_v62, %s10025_s25  ;;  %1485 = vrot.lane.b32.xlu1 %v1470_v1, %s10025_s25 }
 0xb2b   : > { %1475 = vrot.lane.b32.xlu0 %v8113_v62, %s10027_s30  ;;  %1477 = vrot.lane.b32.xlu1 %v1470_v1, %s10027_s30 }
 0xb2f   : > { %1515 = vrot.lane.b32.xlu0 %v8113_v62, %s10023_s14  ;;  %1517 = vrot.lane.b32.xlu1 %v1470_v1, %s10023_s14 }
 0xb33   : > { %1507 = vrot.lane.b32.xlu0 %v8113_v62, %s10076_s15  ;;  %1509 = vrot.lane.b32.xlu1 %v1470_v1, %s10076_s15 }
 0xb37   : > { %1529 = vrot.lane.b32.xlu1 %v1470_v1, %s7279_s18 }
 0xb89   : > { %v1528_v3 = vpop.permute.xlu0 %1527 }
 0xb8a   : > { %1540 = vmatpush1.msra.mxu1 %v1528_v3 }
 0xb8b   : > { %1541 = vmatprep.subr.mxu1 %v7283_v7 }
 0xb8d   : > { %v1500_v4 = vpop.permute.xlu0 %1499  ;;  %v1502_v49 = vpop.permute.xlu1 %1501 }
 0xb8e   : > { %5770 = vmatpush1.msk.msra.mxu1 %vm7882_vm5, %v1502_v49 }
 0xb8f   : > { %1543 = vmatprep.subr.mxu1 %v7283_v7 }
 0xb90   : > { %5771 = vmatpush1.msk.msra.mxu1 %vm7882_vm5, %v1500_v4 }
 0xb91   : > { %v1492_v48 = vpop.permute.xlu0 %1491  ;;  %1545 = vmatprep.subr.mxu1 %v7283_v7  ;;  %v1494_v6 = vpop.permute.xlu1 %1493 }
 0xb92   : > { %5772 = vmatpush1.msk.msra.mxu1 %vm7889_vm6, %v1494_v6 }
 0xb93   : > { %1547 = vmatprep.subr.mxu1 %v7283_v7 }
 0xb94   : > { %5773 = vmatpush1.msk.msra.mxu1 %vm7889_vm6, %v1492_v48 }
 0xb95   : > { %v1522_v11 = vpop.permute.xlu0 %1521  ;;  %1549 = vmatprep.subr.mxu1 %v7283_v7  ;;  %v1524_v50 = vpop.permute.xlu1 %1523 }
 0xb96   : > { %1550 = vmatpush1.msra.mxu1 %v1524_v50 }
 0xb97   : > { %1551 = vmatprep.subr.mxu1 %v7283_v7 }
 0xb98   : > { %1552 = vmatpush1.msra.mxu1 %v1522_v11 }
 0xb99   : > { %v1484_v51 = vpop.permute.xlu0 %1483  ;;  %1553 = vmatprep.subr.mxu1 %v7283_v7  ;;  %v1486_v12 = vpop.permute.xlu1 %1485 }
 0xb9a   : > { %5774 = vmatpush1.msk.msra.mxu1 %vm7882_vm5, %v1486_v12 }
 0xb9b   : > { %1555 = vmatprep.subr.mxu1 %v7283_v7 }
 0xb9c   : > { %5775 = vmatpush1.msk.msra.mxu1 %vm7882_vm5, %v1484_v51 }
 0xb9d   : > { %v1476_v13 = vpop.permute.xlu0 %1475  ;;  %1557 = vmatprep.subr.mxu1 %v7283_v7  ;;  %v1478_v14 = vpop.permute.xlu1 %1477 }
 0xb9e   : > { %5776 = vmatpush1.msk.msra.mxu1 %vm7889_vm6, %v1478_v14 }
 0xb9f   : > { %1559 = vmatprep.subr.mxu1 %v7283_v7 }
 0xba0   : > { %5777 = vmatpush1.msk.msra.mxu1 %vm7889_vm6, %v1476_v13 }
 0xba1   : > { %1561 = vmatprep.subr.mxu1 %v7283_v7  ;;  %v1518_v17 = vpop.permute.xlu1 %1517  ;;  %v1516_v18 = vpop.permute.xlu0 %1515 }
 0xba2   : > { %1562 = vmatpush1.msra.mxu1 %v1518_v17 }
 0xba3   : > { %1563 = vmatprep.subr.mxu1 %v7283_v7 }
 0xba4   : > { %1564 = vmatpush1.msra.mxu1 %v1516_v18 }
 0xba5   : > { %1565 = vmatprep.subr.mxu1 %v7283_v7  ;;  %v1510_v20 = vpop.permute.xlu1 %1509  ;;  %v1508_v23 = vpop.permute.xlu0 %1507 }
 0xba6   : > { %5778 = vmatpush1.msk.msra.mxu1 %vm7882_vm5, %v1470_v1 }
 0xba7   : > { %1567 = vmatprep.subr.mxu1 %v7283_v7 }
 0xba8   : > { %5779 = vmatpush1.msk.msra.mxu1 %vm7882_vm5, %v8113_v62  ;;  %v1618_v62 = vld [vmem:[#allocation9 + $0x20] sm:$0xff] }
 0xba9   : > { %1569 = vmatprep.subr.mxu1 %v7283_v7  ;;  %v1530_v26 = vpop.permute.xlu1 %1529 }
 0xbaa   : > { %5780 = vmatpush1.msk.msra.mxu1 %vm550_vm13, %v7284_v59 }
 0xbab   : > { %1597 = vmatprep.subr.mxu1 %v7283_v7 }
 0xbac   : > { %5781 = vmatpush2.msk.msra.mxu1 %vm7889_vm6, %v1510_v20 }
 0xbad   : > { %1599 = vmatprep.subr.mxu1 %v7283_v7 }
 0xbae   : > { %5782 = vmatpush2.msk.msra.mxu1 %vm7889_vm6, %v1508_v23 }
 0xbaf   : > { %1601 = vmatprep.subr.mxu1 %v7283_v7 }
 0xbb0   : > { %1602 = vmatpush2.msra.mxu1 %v1530_v26 }
 0xbb1   : > { %1604 = vmatmul.mubr.f32.vlgmr.msra.gmra.mxu1 %v1296_v25 }
 0xbb2   : > { %5784 = vmatprep.mubr.msk.f32.mxu1 %vm1051_vm4, %v1299_v27 }
 0xbb5   : > { %1609 = vmatmul.mubr.f32.gmra.mxu1 %v1298_v5 }
 0xc71   : > { %v1605_v29 = vpop.f32.mrf.mxu1 }
 0xc72   : > { %v1606_v10 = vadd.f32 %v1605_v29, %v8021_v15 }
 0xc73   : > { %v1607_v30 = vpop.f32.mrf.mxu1 }
 0xc74   : > { %1632 = vrot.lane.b32.xlu0 %v1606_v10, %s7287_s4 }
 0xc75   : > { %v1610_v32 = vpop.f32.mrf.mxu1 }
 0xc76   : > { %v1611_v33 = vadd.f32 %v1610_v32, %v8025_v22  ;;  %v1615_v22 = vld [vmem:[#allocation9 + $0x8] sm:$0xff] }
 0xc77   : > { %v1612_v34 = vpop.f32.mrf.mxu1  ;;  %5798 = vmatprep.mubr.msk.f32.mxu0 %vm1051_vm4, %v1615_v22 }
 0xc78   : > { %1634 = vrot.lane.b32.xlu1 %v1611_v33, %s7287_s4  ;;  %s7298_s4 = smov 125  }
 0xce6   : > { %v1633_v35 = vpop.permute.xlu0 %1632 }
 0xce7   : > { %v1638_v36 = vsel %vm979_vm2, 0.0, %v1633_v35 }
 0xce8   : > { %v8195_v37 = vsel %vm982_vm3, %v1638_v36, 0.0 }
 0xce9   : > { %1698 = vrot.lane.b32.xlu0 %v8195_v37, %s7279_s18 }
 0xcea   : > { %v1635_v38 = vpop.permute.xlu1 %1634 }
 0xceb   : > { %v1639_v15 = vsel %vm979_vm2, 0.0, %v1635_v38  ;;  %v1628_v38 = vld [vmem:[%s10082_s6 + $0x30] sm:$0xff] }
 0xcec   : > { %v1641_v39 = vsel %vm982_vm3, %v1639_v15, 0.0 }
 0xced   : > { %1672 = vrot.lane.b32.xlu1 %v1641_v39, %s10016_s29  ;;  %1670 = vrot.lane.b32.xlu0 %v8195_v37, %s10016_s29 }
 0xcf1   : > { %1664 = vrot.lane.b32.xlu1 %v1641_v39, %s10017_s23  ;;  %1662 = vrot.lane.b32.xlu0 %v8195_v37, %s10017_s23 }
 0xcf5   : > { %1694 = vrot.lane.b32.xlu1 %v1641_v39, %s10029_s1  ;;  %1692 = vrot.lane.b32.xlu0 %v8195_v37, %s10029_s1 }
 0xcf9   : > { %1656 = vrot.lane.b32.xlu1 %v1641_v39, %s10025_s25  ;;  %1654 = vrot.lane.b32.xlu0 %v8195_v37, %s10025_s25 }
 0xcfd   : > { %1648 = vrot.lane.b32.xlu1 %v1641_v39, %s10027_s30  ;;  %1646 = vrot.lane.b32.xlu0 %v8195_v37, %s10027_s30 }
 0xd01   : > { %1688 = vrot.lane.b32.xlu1 %v1641_v39, %s10023_s14  ;;  %1686 = vrot.lane.b32.xlu0 %v8195_v37, %s10023_s14 }
 0xd05   : > { %1680 = vrot.lane.b32.xlu1 %v1641_v39, %s10076_s15  ;;  %1678 = vrot.lane.b32.xlu0 %v8195_v37, %s10076_s15  ;;  %s10019_s15 = smov 123  }
 0xd09   : > { %1700 = vrot.lane.b32.xlu1 %v1641_v39, %s7279_s18  ;;  %s10081_s18 = smov 1  }
 0xd5b   : > { %v1699_v40 = vpop.permute.xlu0 %1698 }
 0xd5c   : > { %1717 = vmatpush1.msra.mxu0 %v1699_v40 }
 0xd5d   : > { %1718 = vmatprep.subr.mxu0 %v7283_v7 }
 0xd5f   : > { %v1673_v41 = vpop.permute.xlu1 %1672  ;;  %v1671_v42 = vpop.permute.xlu0 %1670 }
 0xd60   : > { %5785 = vmatpush1.msk.msra.mxu0 %vm7882_vm5, %v1673_v41  ;;  %v1627_v41 = vld [vmem:[%s10082_s6 + $0x28] sm:$0xff] }
 0xd61   : > { %1720 = vmatprep.subr.mxu0 %v7283_v7 }
 0xd62   : > { %5786 = vmatpush1.msk.msra.mxu0 %vm7882_vm5, %v1671_v42 }
 0xd63   : > { %v1665_v43 = vpop.permute.xlu1 %1664  ;;  %1722 = vmatprep.subr.mxu0 %v7283_v7  ;;  %v1663_v44 = vpop.permute.xlu0 %1662 }
 0xd64   : > { %5787 = vmatpush1.msk.msra.mxu0 %vm7889_vm6, %v1665_v43  ;;  %v1626_v43 = vld [vmem:[%s10082_s6 + $0x20] sm:$0xff] }
 0xd65   : > { %1724 = vmatprep.subr.mxu0 %v7283_v7 }
 0xd66   : > { %5788 = vmatpush1.msk.msra.mxu0 %vm7889_vm6, %v1663_v44 }
 0xd67   : > { %v1695_v45 = vpop.permute.xlu1 %1694  ;;  %1726 = vmatprep.subr.mxu0 %v7283_v7  ;;  %v1693_v31 = vpop.permute.xlu0 %1692 }
 0xd68   : > { %1727 = vmatpush1.msra.mxu0 %v1695_v45 }
 0xd69   : > { %1728 = vmatprep.subr.mxu0 %v7283_v7 }
 0xd6a   : > { %1729 = vmatpush1.msra.mxu0 %v1693_v31 }
 0xd6b   : > { %v1657_v46 = vpop.permute.xlu1 %1656  ;;  %1730 = vmatprep.subr.mxu0 %v7283_v7  ;;  %v1655_v47 = vpop.permute.xlu0 %1654 }
 0xd6c   : > { %5789 = vmatpush1.msk.msra.mxu0 %vm7882_vm5, %v1657_v46 }
 0xd6d   : > { %1732 = vmatprep.subr.mxu0 %v7283_v7 }
 0xd6e   : > { %5790 = vmatpush1.msk.msra.mxu0 %vm7882_vm5, %v1655_v47 }
 0xd6f   : > { %v1649_v28 = vpop.permute.xlu1 %1648  ;;  %1734 = vmatprep.subr.mxu0 %v7283_v7  ;;  %v1647_v52 = vpop.permute.xlu0 %1646 }
 0xd70   : > { %5791 = vmatpush1.msk.msra.mxu0 %vm7889_vm6, %v1649_v28 }
 0xd71   : > { %1736 = vmatprep.subr.mxu0 %v7283_v7 }
 0xd72   : > { %5792 = vmatpush1.msk.msra.mxu0 %vm7889_vm6, %v1647_v52  ;;  %v1625_v52 = vld [vmem:[%s10082_s6 + $0x18] sm:$0xff] }
 0xd73   : > { %v1689_v16 = vpop.permute.xlu1 %1688  ;;  %1738 = vmatprep.subr.mxu0 %v7283_v7  ;;  %v1687_v19 = vpop.permute.xlu0 %1686 }
 0xd74   : > { %1739 = vmatpush1.msra.mxu0 %v1689_v16  ;;  %v1622_v16 = vld [vmem:[%s10082_s6] sm:$0xff] }
 0xd75   : > { %1740 = vmatprep.subr.mxu0 %v7283_v7 }
 0xd76   : > { %1741 = vmatpush1.msra.mxu0 %v1687_v19 }
 0xd77   : > { %1742 = vmatprep.subr.mxu0 %v7283_v7  ;;  %v1681_v53 = vpop.permute.xlu1 %1680  ;;  %v1679_v54 = vpop.permute.xlu0 %1678 }
 0xd78   : > { %5793 = vmatpush1.msk.msra.mxu0 %vm7882_vm5, %v1641_v39 }
 0xd79   : > { %1744 = vmatprep.subr.mxu0 %v7283_v7 }
 0xd7a   : > { %5794 = vmatpush1.msk.msra.mxu0 %vm7882_vm5, %v8195_v37  ;;  %v1629_v37 = vld [vmem:[%s10082_s6 + $0x38] sm:$0xff]  ;;  %s7307_s6 = smov 44  }
 0xd7b   : > { %1746 = vmatprep.subr.mxu0 %v7283_v7  ;;  %v1701_v57 = vpop.permute.xlu1 %1700 }
 0xd7c   : > { %5795 = vmatpush1.msk.msra.mxu0 %vm550_vm13, %v7284_v59 }
 0xd7d   : > { %1774 = vmatprep.subr.mxu0 %v7283_v7 }
 0xd7e   : > { %5796 = vmatpush2.msk.msra.mxu0 %vm7889_vm6, %v1681_v53 }
 0xd7f   : > { %1776 = vmatprep.subr.mxu0 %v7283_v7 }
 0xd80   : > { %5797 = vmatpush2.msk.msra.mxu0 %vm7889_vm6, %v1679_v54 }
 0xd81   : > { %1778 = vmatprep.subr.mxu0 %v7283_v7 }
 0xd82   : > { %1779 = vmatpush2.msra.mxu0 %v1701_v57 }
 0xd83   : > { %1781 = vmatmul.mubr.f32.vlgmr.msra.gmra.mxu0 %v1614_v56  ;;  %6647 = vmatprep.subr.mxu0 %v1629_v37 }
 0xd84   : > { %5799 = vmatprep.mubr.msk.f32.mxu0 %vm1051_vm4, %v1617_v58  ;;  %6648 = vmatpush3.msra.mxu0 %v1629_v37 }
 0xd85   : > { %6649 = vmatprep.subr.mxu0 %v1628_v38 }
 0xd86   : > { %6650 = vmatpush3.msra.mxu0 %v1628_v38 }
 0xd87   : > { %1786 = vmatmul.mubr.f32.gmra.mxu0 %v1616_v60  ;;  %6651 = vmatprep.subr.mxu0 %v1627_v41 }
 0xd88   : > { %5800 = vmatprep.mubr.msk.f32.mxu0 %vm1051_vm4, %v1619_v61  ;;  %6652 = vmatpush3.msra.mxu0 %v1627_v41 }
 0xd89   : > { %6653 = vmatprep.subr.mxu0 %v1626_v43 }
 0xd8a   : > { %6654 = vmatpush3.msra.mxu0 %v1626_v43 }
 0xd8b   : > { %1791 = vmatmul.mubr.f32.gmra.mxu0 %v1618_v62  ;;  %6655 = vmatprep.subr.mxu0 %v1625_v52 }
 0xd8c   : > { %5801 = vmatprep.mubr.msk.f32.mxu0 %vm1051_vm4, %v1621_v63  ;;  %6656 = vmatpush3.msra.mxu0 %v1625_v52  ;;  %vm4003_vm4 = vcmask 56320  }
 0xd8d   : > { %6657 = vmatprep.subr.mxu0 %v1624_v21 }
 0xd8e   : > { %6658 = vmatpush3.msra.mxu0 %v1624_v21  ;;  %v2006_v21 = vand.u32 3, %v7611_v9 }
 0xd8f   : > { %1796 = vmatmul.mubr.f32.gmra.mxu0 %v1620_v0  ;;  %6659 = vmatprep.subr.mxu0 %v1623_v24 }
 0xd90   : > { %6660 = vmatpush3.msra.mxu0 %v1623_v24  ;;  %vm8445_vm2 = vcmp.gt.s32.totalorder %v2006_v21, 0  ;;  %vm8453_vm3 = vcmp.lt.s32.totalorder %v2006_v21, 3 }
 0xd91   : > { %6661 = vmatprep.subr.mxu0 %v1622_v16 }
 0xd92   : > { %6662 = vmatpush3.msra.mxu0 %v1622_v16 }
 0xe43   : > { %v1782_v1 = vpop.f32.mrf.mxu0 }
 0xe44   : > { %1805 = vrot.lane.b32.xlu0 %v1782_v1, %s10081_s18 }
 0xe45   : > { %v1784_v2 = vpop.f32.mrf.mxu0 }
 0xe47   : > { %v1787_v3 = vpop.f32.mrf.mxu0 }
 0xe48   : > { %1807 = vrot.lane.b32.xlu1 %v1787_v3, %s10081_s18 }
 0xe49   : > { %v1789_v4 = vpop.f32.mrf.mxu0 }
 0xe4b   : > { %v1792_v49 = vpop.f32.mrf.mxu0 }
 0xe4c   : > { %1809 = vrot.lane.b32.xlu0 %v1792_v49, %s10081_s18 }
 0xe4d   : > { %v1794_v48 = vpop.f32.mrf.mxu0 }
 0xe4f   : > { %v1797_v6 = vpop.f32.mrf.mxu0 }
 0xe50   : > { %1811 = vrot.lane.b32.xlu1 %v1797_v6, %s10081_s18 }
 0xe51   : > { %v1799_v11 = vpop.f32.mrf.mxu0 }
 0xeb6   : > { %v1806_v50 = vpop.permute.xlu0 %1805 }
 0xeb7   : > { %v1817_v51 = vsel %vm772_vm15, -1e+30, %v1806_v50 }
 0xeb8   : > { %v1822_v12 = vsel %vm1821_vm7, %v1817_v51, -1e+30 }
 0xeb9   : > { %1834 = vrot.lane.b32.xlu0 %v1822_v12, %s10027_s30  ;;  %v1826_v29 = vsel %vm7882_vm5, %v1822_v12, -1e+30 }
 0xeba   : > { %v1808_v13 = vpop.permute.xlu1 %1807 }
 0xebb   : > { %v1818_v14 = vsel %vm772_vm15, -1e+30, %v1808_v13 }
 0xebc   : > { %v1823_v17 = vsel %vm1821_vm7, %v1818_v14, -1e+30 }
 0xebd   : > { %1836 = vrot.lane.b32.xlu1 %v1823_v17, %s10027_s30  ;;  %v1827_v34 = vsel %vm7882_vm5, %v1823_v17, -1e+30 }
 0xebe   : > { %v1810_v18 = vpop.permute.xlu0 %1809 }
 0xebf   : > { %v1819_v20 = vsel %vm772_vm15, -1e+30, %v1810_v18 }
 0xec0   : > { %v1824_v23 = vsel %vm1821_vm7, %v1819_v20, -1e+30 }
 0xec1   : > { %1838 = vrot.lane.b32.xlu0 %v1824_v23, %s10027_s30  ;;  %v1828_v22 = vsel %vm7882_vm5, %v1824_v23, -1e+30 }
 0xec2   : > { %v1812_v25 = vpop.permute.xlu1 %1811 }
 0xec3   : > { %v1820_v26 = vsel %vm772_vm15, -1e+30, %v1812_v25 }
 0xec4   : > { %v1825_v27 = vsel %vm1821_vm7, %v1820_v26, -1e+30  ;;  %vm5260_vm7 = vcmask 58401  }
 0xec5   : > { %1840 = vrot.lane.b32.xlu1 %v1825_v27, %s10027_s30  ;;  %v1829_v31 = vsel %vm7882_vm5, %v1825_v27, -1e+30 }
 0xf2b   : > { %v1835_v5 = vpop.permute.xlu0 %1834 }
 0xf2c   : > { %v1846_v10 = vsel %vm7889_vm6, %v1835_v5, -1e+30 }
 0xf2d   : > { %v1850_v30 = vmax.f32 %v1826_v29, %v1846_v10 }
 0xf2f   : > { %v8289_v32 = vmax.f32 %v1782_v1, %v1850_v30  ;;  %v1837_v33 = vpop.permute.xlu1 %1836 }
 0xf30   : > { %v1847_v35 = vsel %vm7889_vm6, %v1837_v33, -1e+30 }
 0xf31   : > { %v1851_v36 = vmax.f32 %v1827_v34, %v1847_v35  ;;  %1862 = vrot.lane.b32.xlu0 %v8289_v32, %s10015_s10 }
 0xf33   : > { %v1855_v15 = vmax.f32 %v1787_v3, %v1851_v36  ;;  %v1839_v39 = vpop.permute.xlu0 %1838 }
 0xf34   : > { %v1848_v40 = vsel %vm7889_vm6, %v1839_v39, -1e+30 }
 0xf35   : > { %v1852_v42 = vmax.f32 %v1828_v22, %v1848_v40  ;;  %1864 = vrot.lane.b32.xlu1 %v1855_v15, %s10015_s10  ;;  %v2010_v22 = vld [vmem:[%s9995_s5 + $0x8] sm:$0xff]  ;;  %v2011_v40 = vld [vmem:[%s9995_s5 + $0x10] sm:$0xff] }
 0xf36   : > { %2269 = vmatprep.mubr.f32.mxu1 %v2010_v22 }
 0xf37   : > { %v1856_v44 = vmax.f32 %v1792_v49, %v1852_v42  ;;  %v1841_v45 = vpop.permute.xlu1 %1840 }
 0xf38   : > { %v1849_v46 = vsel %vm7889_vm6, %v1841_v45, -1e+30 }
 0xf39   : > { %v1853_v47 = vmax.f32 %v1829_v31, %v1849_v46  ;;  %1866 = vrot.lane.b32.xlu0 %v1856_v44, %s10015_s10 }
 0xf3b   : > { %v1857_v28 = vmax.f32 %v1797_v6, %v1853_v47 }
 0xf3d   : > { %1868 = vrot.lane.b32.xlu1 %v1857_v28, %s10015_s10  ;;  %s10031_s10 = smov 124  }
 0xfa3   : > { %v1863_v19 = vpop.permute.xlu0 %1862 }
 0xfa4   : > { %v1875_v53 = vsel %vm1874_vm8, -1e+30, %v1863_v19  ;;  %v3415_v19 = vld [vmem:[%s9999_s9] sm:$0xff] }
 0xfa5   : > { %v1880_v54 = vsel %vm1879_vm9, %v1875_v53, -1e+30 }
 0xfa6   : > { %1888 = vrot.lane.b32.xlu0 %v1880_v54, %s10016_s29 }
 0xfa7   : > { %v1865_v56 = vpop.permute.xlu1 %1864 }
 0xfa8   : > { %v1876_v57 = vsel %vm1874_vm8, -1e+30, %v1865_v56 }
 0xfa9   : > { %v1881_v58 = vsel %vm1879_vm9, %v1876_v57, -1e+30 }
 0xfaa   : > { %1890 = vrot.lane.b32.xlu1 %v1881_v58, %s10016_s29 }
 0xfab   : > { %v1867_v60 = vpop.permute.xlu0 %1866 }
 0xfac   : > { %v1877_v61 = vsel %vm1874_vm8, -1e+30, %v1867_v60 }
 0xfad   : > { %v1882_v62 = vsel %vm1879_vm9, %v1877_v61, -1e+30 }
 0xfae   : > { %1892 = vrot.lane.b32.xlu0 %v1882_v62, %s10016_s29 }
 0xfaf   : > { %v1869_v63 = vpop.permute.xlu1 %1868 }
 0xfb0   : > { %v1878_v0 = vsel %vm1874_vm8, -1e+30, %v1869_v63  ;;  %vm5265_vm8 = vcmask 92226  }
 0xfb1   : > { %v1883_v1 = vsel %vm1879_vm9, %v1878_v0, -1e+30  ;;  %vm5270_vm9 = vcmask 126051  }
 0xfb2   : > { %1894 = vrot.lane.b32.xlu1 %v1883_v1, %s10016_s29  ;;  %s10089_s29 = smov 118  }
0x1018   : > { %v1889_v2 = vpop.permute.xlu0 %1888 }
0x1019   : > { %v1900_v3 = vmax.f32 %v1880_v54, %v1889_v2 }
0x101b   : > { %v1904_v4 = vmax.f32 %v8289_v32, %v1900_v3 }
0x101c   : > { %v1891_v49 = vpop.permute.xlu1 %1890 }
0x101d   : > { %v1901_v48 = vmax.f32 %v1881_v58, %v1891_v49  ;;  %6663 = vmatprep.mubr.msk.f32.mxu0 %vm1908_vm10, %v1904_v4 }
0x101f   : > { %v1905_v6 = vmax.f32 %v1855_v15, %v1901_v48 }
0x1020   : > { %v1893_v11 = vpop.permute.xlu0 %1892 }
0x1021   : > { %v1902_v50 = vmax.f32 %v1882_v62, %v1893_v11  ;;  %6664 = vmatmul.mubr.msk.f32.vlgmr.msra.gmra.mxu0 %vm1908_vm10, %v1905_v6  ;;  %v2009_v11 = vld [vmem:[%s9995_s5] sm:$0xff] }
0x1023   : > { %v1906_v51 = vmax.f32 %v1856_v44, %v1902_v50  ;;  %v2013_v50 = vld [vmem:[%s9995_s5 + $0x20] sm:$0xff] }
0x1024   : > { %v1895_v12 = vpop.permute.xlu1 %1894 }
0x1025   : > { %v1903_v13 = vmax.f32 %v1883_v1, %v1895_v12  ;;  %6666 = vmatprep.mubr.msk.f32.mxu0 %vm1908_vm10, %v1906_v51 }
0x1027   : > { %v1907_v14 = vmax.f32 %v1857_v28, %v1903_v13  ;;  %v2012_v13 = vld [vmem:[%s9995_s5 + $0x18] sm:$0xff] }
0x1029   : > { %6667 = vmatmul.mubr.msk.f32.gmra.mxu0 %vm1908_vm10, %v1907_v14  ;;  %v2016_v14 = vld [vmem:[%s9995_s5 + $0x38] sm:$0xff]  ;;  %vm5275_vm10 = vcmask 159876  }
0x102a   : > { %6679 = vmatprep.mubr.msk.f32.mxu0 %vm2192_vm14, %v2011_v40 }
0x10e1   : > { %v8341_v17 = vpop.f32.mrf.mxu0 }
0x10e2   : > { %v2035_v18 = vmax.f32 %v8341_v17, 0.0 }
0x10e3   : > { %v8345_v20 = vpop.f32.mrf.mxu0 }
0x10e4   : > { %2044 = vrot.lane.b32.xlu1 %v2035_v18, %s10033_s28  ;;  %v2034_v5 = vmax.f32 %v8345_v20, 0.0 }
0x10e9   : > { %v8347_v23 = vpop.f32.mrf.mxu0 }
0x10ea   : > { %v2037_v25 = vmax.f32 %v8347_v23, 0.0 }
0x10eb   : > { %v8350_v26 = vpop.f32.mrf.mxu0 }
0x10ec   : > { %v2036_v27 = vmax.f32 %v8350_v26, 0.0  ;;  %2048 = vrot.lane.b32.xlu1 %v2037_v25, %s10033_s28 }
0x10ee   : > { %2046 = vrot.lane.b32.xlu0 %v2036_v27, %s10033_s28  ;;  %v2015_v27 = vld [vmem:[%s9995_s5 + $0x30] sm:$0xff] }
0x10f2   : > { %2042 = vrot.lane.b32.xlu0 %v2034_v5, %s10033_s28  ;;  %v2014_v5 = vld [vmem:[%s9995_s5 + $0x28] sm:$0xff] }
0x1156   : > { %v2045_v29 = vpop.permute.xlu1 %2044 }
0x1157   : > { %v2056_v10 = vsel %vm2054_vm11, 0.0, %v2045_v29  ;;  %v2019_v29 = vld [vmem:[%s9995_s5 + $0x50] sm:$0xff] }
0x1158   : > { %v8359_v30 = vsel %vm2059_vm12, %v2056_v10, 0.0  ;;  %v2017_v10 = vld [vmem:[%s9995_s5 + $0x40] sm:$0xff] }
0x1159   : > { %2094 = vrot.lane.b32.xlu1 %v8359_v30, %s10031_s10  ;;  %2182 = vrot.lane.b32.xlu0 %v8359_v30, %s10029_s1 }
0x115d   : > { %2078 = vrot.lane.b32.xlu1 %v8359_v30, %s10027_s30  ;;  %2126 = vrot.lane.b32.xlu0 %v8359_v30, %s10025_s25 }
0x115e   : > { %v2049_v36 = vpop.permute.xlu1 %2048 }
0x115f   : > { %v2058_v37 = vsel %vm2054_vm11, 0.0, %v2049_v36 }
0x1160   : > { %v2047_v32 = vpop.permute.xlu0 %2046  ;;  %v8383_v38 = vsel %vm2059_vm12, %v2058_v37, 0.0 }
0x1161   : > { %v2057_v15 = vsel %vm2054_vm11, 0.0, %v2047_v32  ;;  %v2020_v32 = vld [vmem:[%s9995_s5 + $0x58] sm:$0xff] }
0x1162   : > { %v8395_v39 = vsel %vm2059_vm12, %v2057_v15, 0.0 }
0x1164   : > { %v2043_v33 = vpop.permute.xlu0 %2042 }
0x1165   : > { %v2055_v34 = vsel %vm2054_vm11, 0.0, %v2043_v33 }
0x1166   : > { %v8371_v35 = vsel %vm2059_vm12, %v2055_v34, 0.0 }
0x1167   : > { %2092 = vrot.lane.b32.xlu1 %v8371_v35, %s10031_s10  ;;  %2180 = vrot.lane.b32.xlu0 %v8371_v35, %s10029_s1 }
0x116b   : > { %2076 = vrot.lane.b32.xlu1 %v8371_v35, %s10027_s30  ;;  %2124 = vrot.lane.b32.xlu0 %v8371_v35, %s10025_s25 }
0x116f   : > { %2082 = vrot.lane.b32.xlu1 %v8383_v38, %s10027_s30  ;;  %2130 = vrot.lane.b32.xlu0 %v8383_v38, %s10025_s25 }
0x1173   : > { %2162 = vrot.lane.b32.xlu1 %v8383_v38, %s10023_s14  ;;  %2114 = vrot.lane.b32.xlu0 %v8383_v38, %s10021_s26 }
0x1177   : > { %2096 = vrot.lane.b32.xlu1 %v8395_v39, %s10031_s10  ;;  %2184 = vrot.lane.b32.xlu0 %v8395_v39, %s10029_s1 }
0x117b   : > { %2158 = vrot.lane.b32.xlu1 %v8359_v30, %s10023_s14  ;;  %2110 = vrot.lane.b32.xlu0 %v8359_v30, %s10021_s26 }
0x117f   : > { %2080 = vrot.lane.b32.xlu1 %v8395_v39, %s10027_s30  ;;  %2128 = vrot.lane.b32.xlu0 %v8395_v39, %s10025_s25 }
0x1183   : > { %2156 = vrot.lane.b32.xlu1 %v8371_v35, %s10023_s14  ;;  %2108 = vrot.lane.b32.xlu0 %v8371_v35, %s10021_s26 }
0x1187   : > { %2160 = vrot.lane.b32.xlu1 %v8395_v39, %s10023_s14  ;;  %2112 = vrot.lane.b32.xlu0 %v8395_v39, %s10021_s26  ;;  %s10094_s26 = smov 124  }
0x118b   : > { %2146 = vrot.lane.b32.xlu1 %v8383_v38, %s10017_s23  ;;  %2174 = vrot.lane.b32.xlu0 %v8383_v38, %s10019_s15 }
0x118f   : > { %2172 = vrot.lane.b32.xlu1 %v8395_v39, %s10019_s15  ;;  %2170 = vrot.lane.b32.xlu0 %v8359_v30, %s10019_s15 }
0x1193   : > { %2098 = vrot.lane.b32.xlu1 %v8383_v38, %s10031_s10  ;;  %2168 = vrot.lane.b32.xlu0 %v8371_v35, %s10019_s15  ;;  %s10095_s15 = smov 119  }
0x1197   : > { %2142 = vrot.lane.b32.xlu1 %v8359_v30, %s10017_s23  ;;  %2144 = vrot.lane.b32.xlu0 %v8395_v39, %s10017_s23 }
0x119b   : > { %2186 = vrot.lane.b32.xlu1 %v8383_v38, %s10029_s1  ;;  %2140 = vrot.lane.b32.xlu0 %v8371_v35, %s10017_s23  ;;  %s10087_s23 = smov 122  }
0x11cb   : > { %v2095_v41 = vpop.permute.xlu1 %2094  ;;  %v2183_v42 = vpop.permute.xlu0 %2182 }
0x11cf   : > { %v2079_v43 = vpop.permute.xlu1 %2078  ;;  %v2127_v44 = vpop.permute.xlu0 %2126 }
0x11d9   : > { %v2093_v45 = vpop.permute.xlu1 %2092  ;;  %v2181_v31 = vpop.permute.xlu0 %2180 }
0x11dd   : > { %v2077_v46 = vpop.permute.xlu1 %2076  ;;  %v2125_v47 = vpop.permute.xlu0 %2124 }
0x11e1   : > { %v2083_v28 = vpop.permute.xlu1 %2082  ;;  %v2131_v52 = vpop.permute.xlu0 %2130 }
0x11e5   : > { %v2163_v24 = vpop.permute.xlu1 %2162  ;;  %v2115_v16 = vpop.permute.xlu0 %2114 }
0x11e9   : > { %v2097_v53 = vpop.permute.xlu1 %2096  ;;  %v2185_v54 = vpop.permute.xlu0 %2184 }
0x11ea   : > { %6164 = vmatprep.subr.mxu1 %v2185_v54 }
0x11eb   : > { %6165 = vmatpush3.msk.msra.mxu1 %vm8445_vm2, %v2097_v53 }
0x11ec   : > { %6166 = vmatprep.subr.mxu1 %v2183_v42 }
0x11ed   : > { %v2159_v56 = vpop.permute.xlu1 %2158  ;;  %6167 = vmatpush3.msk.msra.mxu1 %vm8445_vm2, %v2095_v41  ;;  %v2111_v57 = vpop.permute.xlu0 %2110 }
0x11ee   : > { %6168 = vmatprep.subr.mxu1 %v2181_v31 }
0x11ef   : > { %6169 = vmatpush3.msk.msra.mxu1 %vm8445_vm2, %v2093_v45 }
0x11f0   : > { %6170 = vmatprep.subr.msk.mxu1 %vm8445_vm2, %v2131_v52 }
0x11f1   : > { %v2081_v60 = vpop.permute.xlu1 %2080  ;;  %6171 = vmatpush3.msk.msra.mxu1 %vm8453_vm3, %v2083_v28  ;;  %v2129_v61 = vpop.permute.xlu0 %2128 }
0x11f2   : > { %6172 = vmatprep.subr.msk.mxu1 %vm8445_vm2, %v2129_v61 }
0x11f3   : > { %6173 = vmatpush3.msk.msra.mxu1 %vm8453_vm3, %v2081_v60 }
0x11f4   : > { %6174 = vmatprep.subr.msk.mxu1 %vm8445_vm2, %v2127_v44 }
0x11f5   : > { %v2157_v62 = vpop.permute.xlu1 %2156  ;;  %6175 = vmatpush3.msk.msra.mxu1 %vm8453_vm3, %v2079_v43  ;;  %v2109_v63 = vpop.permute.xlu0 %2108 }
0x11f6   : > { %6176 = vmatprep.subr.msk.mxu1 %vm8445_vm2, %v2125_v47 }
0x11f7   : > { %6177 = vmatpush3.msk.msra.mxu1 %vm8453_vm3, %v2077_v46 }
0x11f8   : > { %6178 = vmatprep.subr.msk.mxu1 %vm8453_vm3, %v2115_v16 }
0x11f9   : > { %v2161_v0 = vpop.permute.xlu1 %2160  ;;  %6179 = vmatpush3.msra.mxu1 %v2163_v24  ;;  %v2113_v1 = vpop.permute.xlu0 %2112 }
0x11fa   : > { %6180 = vmatprep.subr.msk.mxu1 %vm8453_vm3, %v2113_v1 }
0x11fb   : > { %6181 = vmatpush3.msra.mxu1 %v2161_v0 }
0x11fc   : > { %6182 = vmatprep.subr.msk.mxu1 %vm8453_vm3, %v2111_v57 }
0x11fd   : > { %v2147_v2 = vpop.permute.xlu1 %2146  ;;  %6183 = vmatpush3.msra.mxu1 %v2159_v56  ;;  %v2175_v3 = vpop.permute.xlu0 %2174 }
0x11fe   : > { %6184 = vmatprep.subr.msk.mxu1 %vm8453_vm3, %v2109_v63  ;;  %6669 = vmatprep.subr.msk.mxu0 %vm8453_vm3, %v2147_v2 }
0x11ff   : > { %6185 = vmatpush3.msra.mxu1 %v2157_v62  ;;  %6670 = vmatpush3.msk.msra.mxu0 %vm8453_vm3, %v2147_v2 }
0x1200   : > { %6186 = vmatprep.subr.mxu1 %v2175_v3 }
0x1201   : > { %v2173_v4 = vpop.permute.xlu1 %2172  ;;  %6187 = vmatpush3.msk.msra.mxu1 %vm8445_vm2, %v8383_v38  ;;  %v2171_v49 = vpop.permute.xlu0 %2170 }
0x1202   : > { %6188 = vmatprep.subr.mxu1 %v2173_v4 }
0x1203   : > { %6189 = vmatpush3.msk.msra.mxu1 %vm8445_vm2, %v8395_v39 }
0x1204   : > { %6190 = vmatprep.subr.mxu1 %v2171_v49  ;;  %v5807_v49 = vld [vmem:[%s9995_s5 + $0x68] sm:$0xff] }
0x1205   : > { %v2099_v48 = vpop.permute.xlu1 %2098  ;;  %6191 = vmatpush3.msk.msra.mxu1 %vm8445_vm2, %v8359_v30  ;;  %v2169_v6 = vpop.permute.xlu0 %2168  ;;  %v2018_v30 = vld [vmem:[%s9995_s5 + $0x48] sm:$0xff] }
0x1206   : > { %6192 = vmatprep.subr.mxu1 %v2169_v6 }
0x1207   : > { %6193 = vmatpush3.msk.msra.mxu1 %vm8445_vm2, %v8371_v35 }
0x1208   : > { %6194 = vmatprep.subr.msk.mxu1 %vm8445_vm2, %v2099_v48  ;;  %v5808_v48 = vld [vmem:[%s9995_s5 + $0x70] sm:$0xff] }
0x1209   : > { %v2143_v51 = vpop.permute.xlu1 %2142  ;;  %6195 = vmatpush3.msk.msra.mxu1 %vm550_vm13, %v7284_v59  ;;  %v2145_v12 = vpop.permute.xlu0 %2144 }
0x120a   : > { %2270 = vmatmul.mubr.f32.vlgmr.msra.gmra.mxu1 %v2009_v11  ;;  %6671 = vmatprep.subr.msk.mxu0 %vm8453_vm3, %v2145_v12 }
0x120b   : > { %6672 = vmatpush3.msk.msra.mxu0 %vm8453_vm3, %v2145_v12  ;;  %2274 = vmatprep.mubr.f32.mxu1 %v2013_v50 }
0x120c   : > { %6673 = vmatprep.subr.msk.mxu0 %vm8453_vm3, %v2143_v51 }
0x120d   : > { %6674 = vmatpush3.msk.msra.mxu0 %vm8453_vm3, %v2143_v51  ;;  %v2141_v18 = vpop.permute.xlu0 %2140  ;;  %v2187_v25 = vpop.permute.xlu1 %2186 }
0x120e   : > { %2275 = vmatmul.mubr.f32.gmra.mxu1 %v2012_v13  ;;  %6675 = vmatprep.subr.msk.mxu0 %vm8453_vm3, %v2141_v18 }
0x120f   : > { %6676 = vmatpush3.msk.msra.mxu0 %vm8453_vm3, %v2141_v18  ;;  %2279 = vmatprep.mubr.f32.mxu1 %v2016_v14 }
0x1210   : > { %6677 = vmatprep.subr.mxu0 %v2187_v25 }
0x1211   : > { %6678 = vmatpush3.msra.mxu0 %v2187_v25 }
0x1212   : > { %2280 = vmatmul.mubr.f32.gmra.mxu1 %v2015_v27  ;;  %6680 = vmatmul.mubr.msk.f32.vlgmr.msra.gmra.mxu0 %vm2192_vm14, %v2014_v5 }
0x1213   : > { %2284 = vmatprep.mubr.f32.mxu1 %v2019_v29  ;;  %6682 = vmatprep.mubr.msk.f32.mxu0 %vm2192_vm14, %v2017_v10 }
0x1216   : > { %2285 = vmatmul.mubr.f32.gmra.mxu1 %v2018_v30  ;;  %6683 = vmatmul.mubr.msk.f32.gmra.mxu0 %vm2192_vm14, %v2020_v32 }
0x1217   : > { %2603 = vmatprep.mubr.f32.mxu0 %v5807_v49  ;;  %6695 = vmatprep.mubr.msk.f32.mxu1 %vm2192_vm14, %v5808_v48 }
0x12ca   : > { %v6196_v33 = vpop.f32.mrf.mxu1 }
0x12cc   : > { %v6197_v34 = vpop.f32.mrf.mxu1 }
0x12cd   : > { %v6198_v46 = vadd.f32 %v6197_v34, %v6196_v33 }
0x12ce   : > { %v6199_v35 = vpop.f32.mrf.mxu1 }
0x12d0   : > { %v6200_v36 = vpop.f32.mrf.mxu1 }
0x12d1   : > { %v6201_v37 = vadd.f32 %v6200_v36, %v6199_v35 }
0x12d2   : > { %v6202_v38 = vpop.f32.mrf.mxu1  ;;  %v6681_v15 = vpop.f32.mrf.mxu0 }
0x12d3   : > { %v2362_v39 = vadd.f32 %v6681_v15, %v6201_v37 }
0x12d4   : > { %v6203_v22 = vpop.f32.mrf.mxu1  ;;  %v2356_v40 = vpop.f32.mrf.mxu0 }
0x12d5   : > { %v2376_v41 = vmax.f32 %v2362_v39, 0.0  ;;  %v6204_v44 = vadd.f32 %v6203_v22, %v6202_v38  ;;  %v2357_v52 = vadd.f32 %v6198_v46, %v2356_v40 }
0x12d6   : > { %v6205_v42 = vpop.f32.mrf.mxu1  ;;  %v6684_v43 = vpop.f32.mrf.mxu0 }
0x12d7   : > { %2385 = vrot.lane.b32.xlu1 %v2376_v41, %s10033_s28  ;;  %v2375_v53 = vmax.f32 %v2357_v52, 0.0 }
0x12d8   : > { %v6206_v45 = vpop.f32.mrf.mxu1  ;;  %v2366_v31 = vpop.f32.mrf.mxu0 }
0x12d9   : > { %v6207_v47 = vadd.f32 %v6206_v45, %v6205_v42  ;;  %v2367_v28 = vadd.f32 %v6204_v44, %v2366_v31  ;;  %v5806_v44 = vld [vmem:[%s9995_s5 + $0x60] sm:$0xff] }
0x12da   : > { %v5810_v45 = vld [vmem:[%s9995_s5 + $0x80] sm:$0xff] }
0x12db   : > { %v2372_v21 = vadd.f32 %v6684_v43, %v6207_v47  ;;  %v2377_v24 = vmax.f32 %v2367_v28, 0.0  ;;  %v5809_v47 = vld [vmem:[%s9995_s5 + $0x78] sm:$0xff] }
0x12dc   : > { %v5813_v28 = vld [vmem:[%s9995_s5 + $0x98] sm:$0xff] }
0x12dd   : > { %v2378_v16 = vmax.f32 %v2372_v21, 0.0  ;;  %2387 = vrot.lane.b32.xlu0 %v2377_v24, %s10033_s28  ;;  %v5812_v21 = vld [vmem:[%s9995_s5 + $0x90] sm:$0xff] }
0x12de   : > { %v5816_v24 = vld [vmem:[%s9995_s5 + $0xb0] sm:$0xff] }
0x12df   : > { %2389 = vrot.lane.b32.xlu1 %v2378_v16, %s10033_s28 }
0x12e1   : > { %2383 = vrot.lane.b32.xlu0 %v2375_v53, %s10033_s28  ;;  %v5811_v53 = vld [vmem:[%s9995_s5 + $0x88] sm:$0xff] }
0x1349   : > { %v2386_v61 = vpop.permute.xlu1 %2385 }
0x134a   : > { %v2396_v62 = vsel %vm2054_vm11, 0.0, %v2386_v61 }
0x134b   : > { %v8567_v63 = vsel %vm2059_vm12, %v2396_v62, 0.0 }
0x134f   : > { %v2388_v54 = vpop.permute.xlu0 %2387 }
0x1350   : > { %v2397_v0 = vsel %vm2054_vm11, 0.0, %v2388_v54  ;;  %v5814_v54 = vld [vmem:[%s9995_s5 + $0xa0] sm:$0xff] }
0x1351   : > { %v8579_v1 = vsel %vm2059_vm12, %v2397_v0, 0.0  ;;  %v2390_v2 = vpop.permute.xlu1 %2389 }
0x1352   : > { %v2398_v3 = vsel %vm2054_vm11, 0.0, %v2390_v2 }
0x1353   : > { %v2384_v56 = vpop.permute.xlu0 %2383  ;;  %v8595_v4 = vsel %vm2059_vm12, %v2398_v3, 0.0 }
0x1354   : > { %v2395_v57 = vsel %vm2054_vm11, 0.0, %v2384_v56  ;;  %v5815_v56 = vld [vmem:[%s9995_s5 + $0xa8] sm:$0xff] }
0x1355   : > { %v8555_v60 = vsel %vm2059_vm12, %v2395_v57, 0.0  ;;  %v5817_v57 = vld [vmem:[%s9995_s5 + $0xb8] sm:$0xff] }
0x1356   : > { %2427 = vrot.lane.b32.xlu1 %v8555_v60, %s10031_s10  ;;  %2515 = vrot.lane.b32.xlu0 %v8555_v60, %s10029_s1 }
0x135a   : > { %2411 = vrot.lane.b32.xlu1 %v8555_v60, %s10027_s30  ;;  %2459 = vrot.lane.b32.xlu0 %v8555_v60, %s10025_s25 }
0x135e   : > { %2429 = vrot.lane.b32.xlu1 %v8567_v63, %s10031_s10  ;;  %2517 = vrot.lane.b32.xlu0 %v8567_v63, %s10029_s1 }
0x1362   : > { %2413 = vrot.lane.b32.xlu1 %v8567_v63, %s10027_s30  ;;  %2461 = vrot.lane.b32.xlu0 %v8567_v63, %s10025_s25 }
0x1366   : > { %2431 = vrot.lane.b32.xlu1 %v8579_v1, %s10031_s10  ;;  %2519 = vrot.lane.b32.xlu0 %v8579_v1, %s10029_s1 }
0x136a   : > { %2415 = vrot.lane.b32.xlu1 %v8579_v1, %s10027_s30  ;;  %2463 = vrot.lane.b32.xlu0 %v8579_v1, %s10025_s25 }
0x136e   : > { %2495 = vrot.lane.b32.xlu1 %v8579_v1, %s10023_s14  ;;  %2447 = vrot.lane.b32.xlu0 %v8579_v1, %s10087_s23 }
0x1372   : > { %2417 = vrot.lane.b32.xlu1 %v8595_v4, %s10027_s30  ;;  %2465 = vrot.lane.b32.xlu0 %v8595_v4, %s10025_s25  ;;  %s10090_s30 = smov 126   ;;  %s10092_s25 = smov 127  }
0x1376   : > { %2493 = vrot.lane.b32.xlu1 %v8567_v63, %s10023_s14  ;;  %2445 = vrot.lane.b32.xlu0 %v8567_v63, %s10087_s23 }
0x137a   : > { %2497 = vrot.lane.b32.xlu1 %v8595_v4, %s10023_s14  ;;  %2449 = vrot.lane.b32.xlu0 %v8595_v4, %s10087_s23 }
0x137e   : > { %2491 = vrot.lane.b32.xlu1 %v8555_v60, %s10023_s14  ;;  %2443 = vrot.lane.b32.xlu0 %v8555_v60, %s10087_s23  ;;  %s10091_s14 = smov 120  }
0x1382   : > { %2507 = vrot.lane.b32.xlu1 %v8579_v1, %s10088_s19  ;;  %2509 = vrot.lane.b32.xlu0 %v8595_v4, %s10088_s19 }
0x1386   : > { %2503 = vrot.lane.b32.xlu1 %v8555_v60, %s10088_s19  ;;  %2505 = vrot.lane.b32.xlu0 %v8567_v63, %s10088_s19 }
0x138a   : > { %2481 = vrot.lane.b32.xlu1 %v8595_v4, %s10089_s29  ;;  %2433 = vrot.lane.b32.xlu0 %v8595_v4, %s10031_s10 }
0x138e   : > { %2477 = vrot.lane.b32.xlu1 %v8567_v63, %s10089_s29  ;;  %2479 = vrot.lane.b32.xlu0 %v8579_v1, %s10089_s29 }
0x1392   : > { %2521 = vrot.lane.b32.xlu1 %v8595_v4, %s10029_s1  ;;  %2475 = vrot.lane.b32.xlu0 %v8555_v60, %s10089_s29 }
0x13c8   : > { %v2428_v6 = vpop.permute.xlu1 %2427  ;;  %v2516_v11 = vpop.permute.xlu0 %2515 }
0x13cc   : > { %v2412_v50 = vpop.permute.xlu1 %2411  ;;  %v2460_v51 = vpop.permute.xlu0 %2459 }
0x13d0   : > { %v2430_v12 = vpop.permute.xlu1 %2429  ;;  %v2518_v13 = vpop.permute.xlu0 %2517 }
0x13d4   : > { %v2414_v14 = vpop.permute.xlu1 %2413  ;;  %v2462_v18 = vpop.permute.xlu0 %2461 }
0x13d8   : > { %v2432_v25 = vpop.permute.xlu1 %2431  ;;  %v2520_v27 = vpop.permute.xlu0 %2519 }
0x13d9   : > { %6217 = vmatprep.subr.mxu0 %v2520_v27 }
0x13da   : > { %6218 = vmatpush3.msk.msra.mxu0 %vm8445_vm2, %v2432_v25 }
0x13db   : > { %6219 = vmatprep.subr.mxu0 %v2518_v13 }
0x13dc   : > { %v2416_v5 = vpop.permute.xlu1 %2415  ;;  %6220 = vmatpush3.msk.msra.mxu0 %vm8445_vm2, %v2430_v12  ;;  %v2464_v29 = vpop.permute.xlu0 %2463 }
0x13dd   : > { %6221 = vmatprep.subr.mxu0 %v2516_v11 }
0x13de   : > { %6222 = vmatpush3.msk.msra.mxu0 %vm8445_vm2, %v2428_v6 }
0x13e0   : > { %v2496_v10 = vpop.permute.xlu1 %2495  ;;  %v2448_v30 = vpop.permute.xlu0 %2447 }
0x13e4   : > { %v2418_v32 = vpop.permute.xlu1 %2417  ;;  %v2466_v33 = vpop.permute.xlu0 %2465 }
0x13e5   : > { %6223 = vmatprep.subr.msk.mxu0 %vm8445_vm2, %v2466_v33 }
0x13e6   : > { %6224 = vmatpush3.msk.msra.mxu0 %vm8453_vm3, %v2418_v32 }
0x13e7   : > { %6225 = vmatprep.subr.msk.mxu0 %vm8445_vm2, %v2464_v29 }
0x13e8   : > { %v2494_v34 = vpop.permute.xlu1 %2493  ;;  %6226 = vmatpush3.msk.msra.mxu0 %vm8453_vm3, %v2416_v5  ;;  %v2446_v35 = vpop.permute.xlu0 %2445 }
0x13e9   : > { %6227 = vmatprep.subr.msk.mxu0 %vm8445_vm2, %v2462_v18 }
0x13ea   : > { %6228 = vmatpush3.msk.msra.mxu0 %vm8453_vm3, %v2414_v14 }
0x13eb   : > { %6229 = vmatprep.subr.msk.mxu0 %vm8445_vm2, %v2460_v51 }
0x13ec   : > { %v2498_v36 = vpop.permute.xlu1 %2497  ;;  %6230 = vmatpush3.msk.msra.mxu0 %vm8453_vm3, %v2412_v50  ;;  %v2450_v37 = vpop.permute.xlu0 %2449 }
0x13ed   : > { %6231 = vmatprep.subr.msk.mxu0 %vm8453_vm3, %v2450_v37 }
0x13ee   : > { %6232 = vmatpush3.msra.mxu0 %v2498_v36 }
0x13ef   : > { %6233 = vmatprep.subr.msk.mxu0 %vm8453_vm3, %v2448_v30 }
0x13f0   : > { %v2492_v38 = vpop.permute.xlu1 %2491  ;;  %6234 = vmatpush3.msra.mxu0 %v2496_v10  ;;  %v2444_v15 = vpop.permute.xlu0 %2443 }
0x13f1   : > { %6235 = vmatprep.subr.msk.mxu0 %vm8453_vm3, %v2446_v35 }
0x13f2   : > { %6236 = vmatpush3.msra.mxu0 %v2494_v34 }
0x13f3   : > { %6237 = vmatprep.subr.msk.mxu0 %vm8453_vm3, %v2444_v15 }
0x13f4   : > { %v2508_v39 = vpop.permute.xlu1 %2507  ;;  %6238 = vmatpush3.msra.mxu0 %v2492_v38  ;;  %v2510_v22 = vpop.permute.xlu0 %2509 }
0x13f5   : > { %6239 = vmatprep.subr.mxu0 %v2510_v22 }
0x13f6   : > { %6240 = vmatpush3.msk.msra.mxu0 %vm8445_vm2, %v8595_v4 }
0x13f7   : > { %6241 = vmatprep.subr.mxu0 %v2508_v39 }
0x13f8   : > { %v2504_v40 = vpop.permute.xlu1 %2503  ;;  %6242 = vmatpush3.msk.msra.mxu0 %vm8445_vm2, %v8579_v1  ;;  %v2506_v41 = vpop.permute.xlu0 %2505 }
0x13f9   : > { %6243 = vmatprep.subr.mxu0 %v2506_v41  ;;  %v5877_v41 = vld [vmem:[%s9995_s5 + $0xc8] sm:$0xff] }
0x13fa   : > { %6244 = vmatpush3.msk.msra.mxu0 %vm8445_vm2, %v8567_v63 }
0x13fb   : > { %6245 = vmatprep.subr.mxu0 %v2504_v40 }
0x13fc   : > { %v2482_v42 = vpop.permute.xlu1 %2481  ;;  %6246 = vmatpush3.msk.msra.mxu0 %vm8445_vm2, %v8555_v60  ;;  %v2434_v43 = vpop.permute.xlu0 %2433 }
0x13fd   : > { %6247 = vmatprep.subr.msk.mxu0 %vm8445_vm2, %v2434_v43  ;;  %6685 = vmatprep.subr.msk.mxu1 %vm8453_vm3, %v2482_v42 }
0x13fe   : > { %6248 = vmatpush3.msk.msra.mxu0 %vm550_vm13, %v7284_v59  ;;  %6686 = vmatpush3.msk.msra.mxu1 %vm8453_vm3, %v2482_v42  ;;  %v5878_v42 = vld [vmem:[%s9995_s5 + $0xd0] sm:$0xff] }
0x13ff   : > { %2604 = vmatmul.mubr.f32.vlgmr.msra.gmra.mxu0 %v5806_v44 }
0x1400   : > { %v2478_v31 = vpop.permute.xlu1 %2477  ;;  %v2480_v46 = vpop.permute.xlu0 %2479  ;;  %2608 = vmatprep.mubr.f32.mxu0 %v5810_v45 }
0x1401   : > { %6687 = vmatprep.subr.msk.mxu1 %vm8453_vm3, %v2480_v46 }
0x1402   : > { %6688 = vmatpush3.msk.msra.mxu1 %vm8453_vm3, %v2480_v46 }
0x1403   : > { %2609 = vmatmul.mubr.f32.gmra.mxu0 %v5809_v47  ;;  %6689 = vmatprep.subr.msk.mxu1 %vm8453_vm3, %v2478_v31 }
0x1404   : > { %6690 = vmatpush3.msk.msra.mxu1 %vm8453_vm3, %v2478_v31  ;;  %v2476_v52 = vpop.permute.xlu0 %2475  ;;  %2613 = vmatprep.mubr.f32.mxu0 %v5813_v28  ;;  %v2522_v16 = vpop.permute.xlu1 %2521 }
0x1405   : > { %6691 = vmatprep.subr.msk.mxu1 %vm8453_vm3, %v2476_v52 }
0x1406   : > { %6692 = vmatpush3.msk.msra.mxu1 %vm8453_vm3, %v2476_v52 }
0x1407   : > { %2614 = vmatmul.mubr.f32.gmra.mxu0 %v5812_v21  ;;  %6693 = vmatprep.subr.mxu1 %v2522_v16 }
0x1408   : > { %6694 = vmatpush3.msra.mxu1 %v2522_v16  ;;  %2618 = vmatprep.mubr.f32.mxu0 %v5816_v24 }
0x1409   : > { %6696 = vmatmul.mubr.msk.f32.vlgmr.msra.gmra.mxu1 %vm2192_vm14, %v5811_v53 }
0x140a   : > { %6698 = vmatprep.mubr.msk.f32.mxu1 %vm2192_vm14, %v5814_v54 }
0x140b   : > { %2619 = vmatmul.mubr.f32.gmra.mxu0 %v5815_v56 }
0x140c   : > { %6711 = vmatprep.mubr.msk.f32.mxu0 %vm2192_vm14, %v5878_v42 }
0x140d   : > { %6699 = vmatmul.mubr.msk.f32.gmra.mxu1 %vm2192_vm14, %v5817_v57 }
0x140e   : > { %2963 = vmatprep.mubr.f32.mxu1 %v5877_v41 }
0x14bf   : > { %v6249_v60 = vpop.f32.mrf.mxu0 }
0x14c1   : > { %v6250_v61 = vpop.f32.mrf.mxu0 }
0x14c2   : > { %v6251_v50 = vadd.f32 %v6250_v61, %v6249_v60 }
0x14c3   : > { %v6252_v62 = vpop.f32.mrf.mxu0 }
0x14c5   : > { %v6253_v63 = vpop.f32.mrf.mxu0 }
0x14c6   : > { %v6254_v0 = vadd.f32 %v6253_v63, %v6252_v62 }
0x14c7   : > { %v6255_v1 = vpop.f32.mrf.mxu0 }
0x14c8   : > { %v2611_v2 = vadd.f32 %v8341_v17, %v6254_v0  ;;  %v2606_v17 = vadd.f32 %v6251_v50, %v8345_v20 }
0x14c9   : > { %v6256_v3 = vpop.f32.mrf.mxu0  ;;  %v6697_v4 = vpop.f32.mrf.mxu1 }
0x14ca   : > { %v6257_v49 = vadd.f32 %v6256_v3, %v6255_v1  ;;  %v8737_v48 = vadd.f32 %v6697_v4, %v2611_v2 }
0x14cb   : > { %v6258_v6 = vpop.f32.mrf.mxu0  ;;  %v2690_v11 = vpop.f32.mrf.mxu1 }
0x14cc   : > { %v2736_v51 = vmax.f32 %v8737_v48, 0.0  ;;  %v2616_v18 = vadd.f32 %v6257_v49, %v8350_v26  ;;  %v8746_v29 = vadd.f32 %v2690_v11, %v2606_v17  ;;  %v5883_v17 = vld [vmem:[%s9995_s5 + $0xf8] sm:$0xff] }
0x14cd   : > { %v6259_v12 = vpop.f32.mrf.mxu0  ;;  %v6700_v13 = vpop.f32.mrf.mxu1 }
0x14ce   : > { %v6260_v14 = vadd.f32 %v6259_v12, %v6258_v6  ;;  %2745 = vrot.lane.b32.xlu1 %v2736_v51, %s10033_s28  ;;  %v2735_v33 = vmax.f32 %v8746_v29, 0.0 }
0x14cf   : > { %v2700_v25 = vpop.f32.mrf.mxu1 }
0x14d0   : > { %v2621_v27 = vadd.f32 %v8347_v23, %v6260_v14  ;;  %v8744_v5 = vadd.f32 %v2700_v25, %v2616_v18  ;;  %v5880_v14 = vld [vmem:[%s9995_s5 + $0xe0] sm:$0xff]  ;;  %v5879_v25 = vld [vmem:[%s9995_s5 + $0xd8] sm:$0xff] }
0x14d2   : > { %v8748_v10 = vadd.f32 %v6700_v13, %v2621_v27  ;;  %v2737_v30 = vmax.f32 %v8744_v5, 0.0  ;;  %v5876_v13 = vld [vmem:[%s9995_s5 + $0xc0] sm:$0xff] }
0x14d4   : > { %v2738_v32 = vmax.f32 %v8748_v10, 0.0  ;;  %2747 = vrot.lane.b32.xlu0 %v2737_v30, %s10033_s28  ;;  %v5881_v30 = vld [vmem:[%s9995_s5 + $0xe8] sm:$0xff] }
0x14d6   : > { %2749 = vrot.lane.b32.xlu1 %v2738_v32, %s10033_s28  ;;  %v5884_v32 = vld [vmem:[%s9995_s5 + $0x100] sm:$0xff] }
0x14d8   : > { %2743 = vrot.lane.b32.xlu0 %v2735_v33, %s10033_s28  ;;  %v5882_v33 = vld [vmem:[%s9995_s5 + $0xf0] sm:$0xff]  ;;  %s10093_s28 = smov 5  }
0x1540   : > { %v2746_v35 = vpop.permute.xlu1 %2745 }
0x1541   : > { %v2756_v36 = vsel %vm2054_vm11, 0.0, %v2746_v35 }
0x1542   : > { %v8770_v37 = vsel %vm2059_vm12, %v2756_v36, 0.0 }
0x1546   : > { %v2748_v20 = vpop.permute.xlu0 %2747 }
0x1547   : > { %v2757_v38 = vsel %vm2054_vm11, 0.0, %v2748_v20  ;;  %v5886_v20 = vld [vmem:[%s9995_s5 + $0x110] sm:$0xff] }
0x1548   : > { %v8782_v15 = vsel %vm2059_vm12, %v2757_v38, 0.0  ;;  %v2750_v39 = vpop.permute.xlu1 %2749 }
0x1549   : > { %v2758_v22 = vsel %vm2054_vm11, 0.0, %v2750_v39 }
0x154a   : > { %v2744_v23 = vpop.permute.xlu0 %2743  ;;  %v8798_v40 = vsel %vm2059_vm12, %v2758_v22, 0.0 }
0x154b   : > { %v2755_v26 = vsel %vm2054_vm11, 0.0, %v2744_v23  ;;  %v5887_v23 = vld [vmem:[%s9995_s5 + $0x118] sm:$0xff] }
0x154c   : > { %v8758_v34 = vsel %vm2059_vm12, %v2755_v26, 0.0  ;;  %v5885_v26 = vld [vmem:[%s9995_s5 + $0x108] sm:$0xff] }
0x154d   : > { %2787 = vrot.lane.b32.xlu1 %v8758_v34, %s10031_s10  ;;  %2875 = vrot.lane.b32.xlu0 %v8758_v34, %s10029_s1 }
0x1551   : > { %2771 = vrot.lane.b32.xlu1 %v8758_v34, %s10090_s30  ;;  %2819 = vrot.lane.b32.xlu0 %v8758_v34, %s10091_s14 }
0x1555   : > { %2789 = vrot.lane.b32.xlu1 %v8770_v37, %s10031_s10  ;;  %2877 = vrot.lane.b32.xlu0 %v8770_v37, %s10029_s1 }
0x1559   : > { %2773 = vrot.lane.b32.xlu1 %v8770_v37, %s10090_s30  ;;  %2821 = vrot.lane.b32.xlu0 %v8770_v37, %s10091_s14 }
0x155d   : > { %2791 = vrot.lane.b32.xlu1 %v8782_v15, %s10031_s10  ;;  %2805 = vrot.lane.b32.xlu0 %v8770_v37, %s10087_s23 }
0x1561   : > { %2775 = vrot.lane.b32.xlu1 %v8782_v15, %s10090_s30  ;;  %2879 = vrot.lane.b32.xlu0 %v8782_v15, %s10029_s1 }
0x1565   : > { %2855 = vrot.lane.b32.xlu1 %v8782_v15, %s10092_s25  ;;  %2823 = vrot.lane.b32.xlu0 %v8782_v15, %s10091_s14 }
0x1569   : > { %2777 = vrot.lane.b32.xlu1 %v8798_v40, %s10090_s30  ;;  %2807 = vrot.lane.b32.xlu0 %v8782_v15, %s10087_s23 }
0x156d   : > { %2853 = vrot.lane.b32.xlu1 %v8770_v37, %s10092_s25  ;;  %2825 = vrot.lane.b32.xlu0 %v8798_v40, %s10091_s14 }
0x1571   : > { %2857 = vrot.lane.b32.xlu1 %v8798_v40, %s10092_s25  ;;  %2803 = vrot.lane.b32.xlu0 %v8758_v34, %s10087_s23 }
0x1575   : > { %2851 = vrot.lane.b32.xlu1 %v8758_v34, %s10092_s25  ;;  %2809 = vrot.lane.b32.xlu0 %v8798_v40, %s10087_s23 }
0x1579   : > { %2867 = vrot.lane.b32.xlu1 %v8782_v15, %s10088_s19  ;;  %2865 = vrot.lane.b32.xlu0 %v8770_v37, %s10088_s19 }
0x157d   : > { %2841 = vrot.lane.b32.xlu1 %v8798_v40, %s10089_s29  ;;  %2869 = vrot.lane.b32.xlu0 %v8798_v40, %s10088_s19 }
0x1581   : > { %2793 = vrot.lane.b32.xlu1 %v8798_v40, %s10031_s10  ;;  %2863 = vrot.lane.b32.xlu0 %v8758_v34, %s10088_s19  ;;  %s7301_s10 = smov 20  }
0x1585   : > { %2837 = vrot.lane.b32.xlu1 %v8770_v37, %s10089_s29  ;;  %2839 = vrot.lane.b32.xlu0 %v8782_v15, %s10089_s29 }
0x1589   : > { %2881 = vrot.lane.b32.xlu1 %v8798_v40, %s10029_s1  ;;  %2835 = vrot.lane.b32.xlu0 %v8758_v34, %s10089_s29  ;;  %s7297_s1 = smov 3  }
0x15bf   : > { %v2788_v43 = vpop.permute.xlu1 %2787  ;;  %v2876_v44 = vpop.permute.xlu0 %2875 }
0x15c3   : > { %v2772_v45 = vpop.permute.xlu1 %2771  ;;  %v2820_v31 = vpop.permute.xlu0 %2819 }
0x15c7   : > { %v2790_v46 = vpop.permute.xlu1 %2789  ;;  %v2878_v47 = vpop.permute.xlu0 %2877 }
0x15cb   : > { %v2774_v28 = vpop.permute.xlu1 %2773  ;;  %v2822_v52 = vpop.permute.xlu0 %2821 }
0x15cf   : > { %v2792_v21 = vpop.permute.xlu1 %2791  ;;  %v2806_v24 = vpop.permute.xlu0 %2805 }
0x15d3   : > { %v2776_v16 = vpop.permute.xlu1 %2775  ;;  %v2880_v53 = vpop.permute.xlu0 %2879 }
0x15d4   : > { %6270 = vmatprep.subr.mxu1 %v2880_v53 }
0x15d5   : > { %6271 = vmatpush3.msk.msra.mxu1 %vm8445_vm2, %v2792_v21 }
0x15d6   : > { %6272 = vmatprep.subr.mxu1 %v2878_v47 }
0x15d7   : > { %v2856_v54 = vpop.permute.xlu1 %2855  ;;  %6273 = vmatpush3.msk.msra.mxu1 %vm8445_vm2, %v2790_v46  ;;  %v2824_v56 = vpop.permute.xlu0 %2823 }
0x15d8   : > { %6274 = vmatprep.subr.mxu1 %v2876_v44 }
0x15d9   : > { %6275 = vmatpush3.msk.msra.mxu1 %vm8445_vm2, %v2788_v43 }
0x15db   : > { %v2778_v57 = vpop.permute.xlu1 %2777  ;;  %v2808_v60 = vpop.permute.xlu0 %2807 }
0x15df   : > { %v2854_v61 = vpop.permute.xlu1 %2853  ;;  %v2826_v62 = vpop.permute.xlu0 %2825 }
0x15e0   : > { %6276 = vmatprep.subr.msk.mxu1 %vm8445_vm2, %v2826_v62 }
0x15e1   : > { %6277 = vmatpush3.msk.msra.mxu1 %vm8453_vm3, %v2778_v57 }
0x15e2   : > { %6278 = vmatprep.subr.msk.mxu1 %vm8445_vm2, %v2824_v56 }
0x15e3   : > { %v2858_v63 = vpop.permute.xlu1 %2857  ;;  %6279 = vmatpush3.msk.msra.mxu1 %vm8453_vm3, %v2776_v16  ;;  %v2804_v0 = vpop.permute.xlu0 %2803 }
0x15e4   : > { %6280 = vmatprep.subr.msk.mxu1 %vm8445_vm2, %v2822_v52 }
0x15e5   : > { %6281 = vmatpush3.msk.msra.mxu1 %vm8453_vm3, %v2774_v28 }
0x15e6   : > { %6282 = vmatprep.subr.msk.mxu1 %vm8445_vm2, %v2820_v31 }
0x15e7   : > { %v2852_v1 = vpop.permute.xlu1 %2851  ;;  %6283 = vmatpush3.msk.msra.mxu1 %vm8453_vm3, %v2772_v45  ;;  %v2810_v2 = vpop.permute.xlu0 %2809 }
0x15e8   : > { %6284 = vmatprep.subr.msk.mxu1 %vm8453_vm3, %v2810_v2 }
0x15e9   : > { %6285 = vmatpush3.msra.mxu1 %v2858_v63 }
0x15ea   : > { %6286 = vmatprep.subr.msk.mxu1 %vm8453_vm3, %v2808_v60 }
0x15eb   : > { %v2868_v3 = vpop.permute.xlu1 %2867  ;;  %6287 = vmatpush3.msra.mxu1 %v2856_v54  ;;  %v2866_v4 = vpop.permute.xlu0 %2865 }
0x15ec   : > { %6288 = vmatprep.subr.msk.mxu1 %vm8453_vm3, %v2806_v24 }
0x15ed   : > { %6289 = vmatpush3.msra.mxu1 %v2854_v61 }
0x15ee   : > { %6290 = vmatprep.subr.msk.mxu1 %vm8453_vm3, %v2804_v0 }
0x15ef   : > { %v2842_v49 = vpop.permute.xlu1 %2841  ;;  %6291 = vmatpush3.msra.mxu1 %v2852_v1  ;;  %v2870_v6 = vpop.permute.xlu0 %2869 }
0x15f0   : > { %6292 = vmatprep.subr.mxu1 %v2870_v6  ;;  %6701 = vmatprep.subr.msk.mxu0 %vm8453_vm3, %v2842_v49  ;;  %v5889_v6 = vld [vmem:[%s9995_s5 + $0x128] sm:$0xff] }
0x15f1   : > { %6293 = vmatpush3.msk.msra.mxu1 %vm8445_vm2, %v8798_v40  ;;  %6702 = vmatpush3.msk.msra.mxu0 %vm8453_vm3, %v2842_v49 }
0x15f2   : > { %6294 = vmatprep.subr.mxu1 %v2868_v3 }
0x15f3   : > { %v2794_v11 = vpop.permute.xlu1 %2793  ;;  %6295 = vmatpush3.msk.msra.mxu1 %vm8445_vm2, %v8782_v15  ;;  %v2864_v50 = vpop.permute.xlu0 %2863 }
0x15f4   : > { %6296 = vmatprep.subr.mxu1 %v2866_v4 }
0x15f5   : > { %6297 = vmatpush3.msk.msra.mxu1 %vm8445_vm2, %v8770_v37 }
0x15f6   : > { %6298 = vmatprep.subr.mxu1 %v2864_v50 }
0x15f7   : > { %v2838_v51 = vpop.permute.xlu1 %2837  ;;  %6299 = vmatpush3.msk.msra.mxu1 %vm8445_vm2, %v8758_v34  ;;  %v2840_v12 = vpop.permute.xlu0 %2839 }
0x15f8   : > { %6300 = vmatprep.subr.msk.mxu1 %vm8445_vm2, %v2794_v11  ;;  %6703 = vmatprep.subr.msk.mxu0 %vm8453_vm3, %v2840_v12  ;;  %v5890_v11 = vld [vmem:[%s9995_s5 + $0x130] sm:$0xff] }
0x15f9   : > { %6301 = vmatpush3.msk.msra.mxu1 %vm550_vm13, %v7284_v59  ;;  %6704 = vmatpush3.msk.msra.mxu0 %vm8453_vm3, %v2840_v12 }
0x15fa   : > { %2964 = vmatmul.mubr.f32.vlgmr.msra.gmra.mxu1 %v5876_v13  ;;  %6705 = vmatprep.subr.msk.mxu0 %vm8453_vm3, %v2838_v51 }
0x15fb   : > { %6706 = vmatpush3.msk.msra.mxu0 %vm8453_vm3, %v2838_v51  ;;  %v2836_v18 = vpop.permute.xlu0 %2835  ;;  %2968 = vmatprep.mubr.f32.mxu1 %v5880_v14  ;;  %v2882_v27 = vpop.permute.xlu1 %2881 }
0x15fc   : > { %6707 = vmatprep.subr.msk.mxu0 %vm8453_vm3, %v2836_v18 }
0x15fd   : > { %6708 = vmatpush3.msk.msra.mxu0 %vm8453_vm3, %v2836_v18 }
0x15fe   : > { %2969 = vmatmul.mubr.f32.gmra.mxu1 %v5879_v25  ;;  %6709 = vmatprep.subr.mxu0 %v2882_v27 }
0x15ff   : > { %6710 = vmatpush3.msra.mxu0 %v2882_v27  ;;  %2973 = vmatprep.mubr.f32.mxu1 %v5883_v17 }
0x1600   : > { %6712 = vmatmul.mubr.msk.f32.vlgmr.msra.gmra.mxu0 %vm2192_vm14, %v5881_v30 }
0x1601   : > { %6714 = vmatprep.mubr.msk.f32.mxu0 %vm2192_vm14, %v5884_v32 }
0x1602   : > { %2974 = vmatmul.mubr.f32.gmra.mxu1 %v5882_v33 }
0x1603   : > { %2978 = vmatprep.mubr.f32.mxu1 %v5886_v20 }
0x1604   : > { %6715 = vmatmul.mubr.msk.f32.gmra.mxu0 %vm2192_vm14, %v5887_v23 }
0x1605   : > { %3297 = vmatprep.mubr.f32.mxu0 %v5889_v6 }
0x1606   : > { %2979 = vmatmul.mubr.f32.gmra.mxu1 %v5885_v26 }
0x1607   : > { %6727 = vmatprep.mubr.msk.f32.mxu1 %vm2192_vm14, %v5890_v11 }
0x16ba   : > { %v6302_v34 = vpop.f32.mrf.mxu1 }
0x16bc   : > { %v6303_v35 = vpop.f32.mrf.mxu1 }
0x16bd   : > { %v6304_v46 = vadd.f32 %v6303_v35, %v6302_v34 }
0x16be   : > { %v6305_v36 = vpop.f32.mrf.mxu1 }
0x16c0   : > { %v6306_v37 = vpop.f32.mrf.mxu1  ;;  %v6713_v38 = vpop.f32.mrf.mxu0 }
0x16c1   : > { %v6307_v15 = vadd.f32 %v6306_v37, %v6305_v36 }
0x16c2   : > { %v6308_v39 = vpop.f32.mrf.mxu1  ;;  %v3050_v22 = vpop.f32.mrf.mxu0 }
0x16c3   : > { %v3056_v40 = vadd.f32 %v6713_v38, %v6307_v15  ;;  %v3051_v52 = vadd.f32 %v6304_v46, %v3050_v22 }
0x16c4   : > { %v6309_v41 = vpop.f32.mrf.mxu1  ;;  %v6716_v42 = vpop.f32.mrf.mxu0 }
0x16c5   : > { %v3070_v43 = vmax.f32 %v3056_v40, 0.0  ;;  %v6310_v44 = vadd.f32 %v6309_v41, %v6308_v39  ;;  %v3069_v53 = vmax.f32 %v3051_v52, 0.0  ;;  %v5895_v52 = vld [vmem:[%s9995_s5 + $0x158] sm:$0xff] }
0x16c6   : > { %v6311_v45 = vpop.f32.mrf.mxu1  ;;  %v3060_v31 = vpop.f32.mrf.mxu0 }
0x16c7   : > { %v3061_v47 = vadd.f32 %v6310_v44, %v3060_v31  ;;  %3079 = vrot.lane.b32.xlu1 %v3070_v43, %s10093_s28  ;;  %v5892_v31 = vld [vmem:[%s9995_s5 + $0x140] sm:$0xff] }
0x16c8   : > { %v6312_v28 = vpop.f32.mrf.mxu1 }
0x16c9   : > { %v3071_v21 = vmax.f32 %v3061_v47, 0.0  ;;  %v6313_v24 = vadd.f32 %v6312_v28, %v6311_v45  ;;  %v5888_v45 = vld [vmem:[%s9995_s5 + $0x120] sm:$0xff]  ;;  %v5891_v28 = vld [vmem:[%s9995_s5 + $0x138] sm:$0xff] }
0x16cb   : > { %v3066_v16 = vadd.f32 %v6716_v42, %v6313_v24  ;;  %3081 = vrot.lane.b32.xlu0 %v3071_v21, %s10093_s28  ;;  %v5894_v24 = vld [vmem:[%s9995_s5 + $0x150] sm:$0xff] }
0x16cd   : > { %v3072_v54 = vmax.f32 %v3066_v16, 0.0  ;;  %v5898_v16 = vld [vmem:[%s9995_s5 + $0x170] sm:$0xff] }
0x16cf   : > { %3083 = vrot.lane.b32.xlu1 %v3072_v54, %s10093_s28  ;;  %3077 = vrot.lane.b32.xlu0 %v3069_v53, %s10093_s28  ;;  %v5893_v54 = vld [vmem:[%s9995_s5 + $0x148] sm:$0xff] }
0x1739   : > { %v3080_v62 = vpop.permute.xlu1 %3079 }
0x173a   : > { %v3090_v63 = vsel %vm2054_vm11, 0.0, %v3080_v62 }
0x173b   : > { %v8957_v0 = vsel %vm2059_vm12, %v3090_v63, 0.0 }
0x173d   : > { %v3082_v56 = vpop.permute.xlu0 %3081 }
0x173e   : > { %v3091_v1 = vsel %vm2054_vm11, 0.0, %v3082_v56  ;;  %v5896_v56 = vld [vmem:[%s9995_s5 + $0x160] sm:$0xff] }
0x173f   : > { %v8969_v2 = vsel %vm2059_vm12, %v3091_v1, 0.0 }
0x1741   : > { %v3078_v57 = vpop.permute.xlu0 %3077  ;;  %v3084_v3 = vpop.permute.xlu1 %3083 }
0x1742   : > { %v3089_v60 = vsel %vm2054_vm11, 0.0, %v3078_v57  ;;  %v3092_v4 = vsel %vm2054_vm11, 0.0, %v3084_v3  ;;  %v5897_v57 = vld [vmem:[%s9995_s5 + $0x168] sm:$0xff] }
0x1743   : > { %v8945_v61 = vsel %vm2059_vm12, %v3089_v60, 0.0  ;;  %v8985_v49 = vsel %vm2059_vm12, %v3092_v4, 0.0  ;;  %v5899_v60 = vld [vmem:[%s9995_s5 + $0x178] sm:$0xff] }
0x1744   : > { %3121 = vrot.lane.b32.xlu1 %v8945_v61, %s10094_s26  ;;  %3209 = vrot.lane.b32.xlu0 %v8945_v61, %s10095_s15 }
0x1748   : > { %3105 = vrot.lane.b32.xlu1 %v8945_v61, %s10090_s30  ;;  %3153 = vrot.lane.b32.xlu0 %v8945_v61, %s10091_s14 }
0x174c   : > { %3123 = vrot.lane.b32.xlu1 %v8957_v0, %s10094_s26  ;;  %3211 = vrot.lane.b32.xlu0 %v8957_v0, %s10095_s15 }
0x1750   : > { %3107 = vrot.lane.b32.xlu1 %v8957_v0, %s10090_s30  ;;  %3155 = vrot.lane.b32.xlu0 %v8957_v0, %s10091_s14 }
0x1754   : > { %3125 = vrot.lane.b32.xlu1 %v8969_v2, %s10094_s26  ;;  %3213 = vrot.lane.b32.xlu0 %v8969_v2, %s10095_s15 }
0x1758   : > { %3109 = vrot.lane.b32.xlu1 %v8969_v2, %s10090_s30  ;;  %3157 = vrot.lane.b32.xlu0 %v8969_v2, %s10091_s14 }
0x175c   : > { %3189 = vrot.lane.b32.xlu1 %v8969_v2, %s10092_s25  ;;  %3141 = vrot.lane.b32.xlu0 %v8969_v2, %s10087_s23 }
0x1760   : > { %3111 = vrot.lane.b32.xlu1 %v8985_v49, %s10090_s30  ;;  %3159 = vrot.lane.b32.xlu0 %v8985_v49, %s10091_s14 }
0x1764   : > { %3187 = vrot.lane.b32.xlu1 %v8957_v0, %s10092_s25  ;;  %3139 = vrot.lane.b32.xlu0 %v8957_v0, %s10087_s23 }
0x1768   : > { %3191 = vrot.lane.b32.xlu1 %v8985_v49, %s10092_s25  ;;  %3143 = vrot.lane.b32.xlu0 %v8985_v49, %s10087_s23 }
0x176c   : > { %3185 = vrot.lane.b32.xlu1 %v8945_v61, %s10092_s25  ;;  %3137 = vrot.lane.b32.xlu0 %v8945_v61, %s10087_s23 }
0x1770   : > { %3201 = vrot.lane.b32.xlu1 %v8969_v2, %s10088_s19  ;;  %3203 = vrot.lane.b32.xlu0 %v8985_v49, %s10088_s19 }
0x1774   : > { %3197 = vrot.lane.b32.xlu1 %v8945_v61, %s10088_s19  ;;  %3199 = vrot.lane.b32.xlu0 %v8957_v0, %s10088_s19 }
0x1778   : > { %3175 = vrot.lane.b32.xlu1 %v8985_v49, %s10089_s29  ;;  %3127 = vrot.lane.b32.xlu0 %v8985_v49, %s10094_s26 }
0x177c   : > { %3171 = vrot.lane.b32.xlu1 %v8957_v0, %s10089_s29  ;;  %3173 = vrot.lane.b32.xlu0 %v8969_v2, %s10089_s29 }
0x1780   : > { %3215 = vrot.lane.b32.xlu1 %v8985_v49, %s10095_s15  ;;  %3169 = vrot.lane.b32.xlu0 %v8945_v61, %s10089_s29 }
0x17b6   : > { %v3122_v50 = vpop.permute.xlu1 %3121  ;;  %v3210_v51 = vpop.permute.xlu0 %3209 }
0x17ba   : > { %v3106_v12 = vpop.permute.xlu1 %3105  ;;  %v3154_v13 = vpop.permute.xlu0 %3153 }
0x17be   : > { %v3124_v14 = vpop.permute.xlu1 %3123  ;;  %v3212_v18 = vpop.permute.xlu0 %3211 }
0x17c2   : > { %v3108_v25 = vpop.permute.xlu1 %3107  ;;  %v3156_v17 = vpop.permute.xlu0 %3155 }
0x17c6   : > { %v3126_v27 = vpop.permute.xlu1 %3125  ;;  %v3214_v30 = vpop.permute.xlu0 %3213 }
0x17c7   : > { %6323 = vmatprep.subr.mxu0 %v3214_v30 }
0x17c8   : > { %6324 = vmatpush3.msk.msra.mxu0 %vm8445_vm2, %v3126_v27 }
0x17c9   : > { %6325 = vmatprep.subr.mxu0 %v3212_v18 }
0x17ca   : > { %v3110_v32 = vpop.permute.xlu1 %3109  ;;  %6326 = vmatpush3.msk.msra.mxu0 %vm8445_vm2, %v3124_v14  ;;  %v3158_v33 = vpop.permute.xlu0 %3157 }
0x17cb   : > { %6327 = vmatprep.subr.mxu0 %v3210_v51 }
0x17cc   : > { %6328 = vmatpush3.msk.msra.mxu0 %vm8445_vm2, %v3122_v50 }
0x17ce   : > { %v3190_v20 = vpop.permute.xlu1 %3189  ;;  %v3142_v23 = vpop.permute.xlu0 %3141 }
0x17d2   : > { %v3112_v26 = vpop.permute.xlu1 %3111  ;;  %v3160_v34 = vpop.permute.xlu0 %3159 }
0x17d3   : > { %6329 = vmatprep.subr.msk.mxu0 %vm8445_vm2, %v3160_v34 }
0x17d4   : > { %6330 = vmatpush3.msk.msra.mxu0 %vm8453_vm3, %v3112_v26 }
0x17d5   : > { %6331 = vmatprep.subr.msk.mxu0 %vm8445_vm2, %v3158_v33 }
0x17d6   : > { %v3188_v35 = vpop.permute.xlu1 %3187  ;;  %6332 = vmatpush3.msk.msra.mxu0 %vm8453_vm3, %v3110_v32  ;;  %v3140_v36 = vpop.permute.xlu0 %3139 }
0x17d7   : > { %6333 = vmatprep.subr.msk.mxu0 %vm8445_vm2, %v3156_v17 }
0x17d8   : > { %6334 = vmatpush3.msk.msra.mxu0 %vm8453_vm3, %v3108_v25 }
0x17d9   : > { %6335 = vmatprep.subr.msk.mxu0 %vm8445_vm2, %v3154_v13 }
0x17da   : > { %v3192_v37 = vpop.permute.xlu1 %3191  ;;  %6336 = vmatpush3.msk.msra.mxu0 %vm8453_vm3, %v3106_v12  ;;  %v3144_v38 = vpop.permute.xlu0 %3143 }
0x17db   : > { %6337 = vmatprep.subr.msk.mxu0 %vm8453_vm3, %v3144_v38 }
0x17dc   : > { %6338 = vmatpush3.msra.mxu0 %v3192_v37 }
0x17dd   : > { %6339 = vmatprep.subr.msk.mxu0 %vm8453_vm3, %v3142_v23 }
0x17de   : > { %v3186_v15 = vpop.permute.xlu1 %3185  ;;  %6340 = vmatpush3.msra.mxu0 %v3190_v20  ;;  %v3138_v39 = vpop.permute.xlu0 %3137 }
0x17df   : > { %6341 = vmatprep.subr.msk.mxu0 %vm8453_vm3, %v3140_v36 }
0x17e0   : > { %6342 = vmatpush3.msra.mxu0 %v3188_v35 }
0x17e1   : > { %6343 = vmatprep.subr.msk.mxu0 %vm8453_vm3, %v3138_v39  ;;  %v3404_v39 = vld [vmem:[%s9997_s7 + $0x8] sm:$0xff] }
0x17e2   : > { %v3202_v22 = vpop.permute.xlu1 %3201  ;;  %6344 = vmatpush3.msra.mxu0 %v3186_v15  ;;  %v3204_v40 = vpop.permute.xlu0 %3203 }
0x17e3   : > { %6345 = vmatprep.subr.mxu0 %v3204_v40 }
0x17e4   : > { %6346 = vmatpush3.msk.msra.mxu0 %vm8445_vm2, %v8985_v49 }
0x17e5   : > { %6347 = vmatprep.subr.mxu0 %v3202_v22  ;;  %v3405_v22 = vld [vmem:[%s9997_s7 + $0x10] sm:$0xff] }
0x17e6   : > { %v3198_v41 = vpop.permute.xlu1 %3197  ;;  %6348 = vmatpush3.msk.msra.mxu0 %vm8445_vm2, %v8969_v2  ;;  %v3200_v42 = vpop.permute.xlu0 %3199 }
0x17e7   : > { %6349 = vmatprep.subr.mxu0 %v3200_v42 }
0x17e8   : > { %6350 = vmatpush3.msk.msra.mxu0 %vm8445_vm2, %v8957_v0 }
0x17e9   : > { %6351 = vmatprep.subr.mxu0 %v3198_v41 }
0x17ea   : > { %v3176_v43 = vpop.permute.xlu1 %3175  ;;  %6352 = vmatpush3.msk.msra.mxu0 %vm8445_vm2, %v8945_v61  ;;  %v3128_v44 = vpop.permute.xlu0 %3127 }
0x17eb   : > { %6353 = vmatprep.subr.msk.mxu0 %vm8445_vm2, %v3128_v44  ;;  %6717 = vmatprep.subr.msk.mxu1 %vm8453_vm3, %v3176_v43 }
0x17ec   : > { %6354 = vmatpush3.msk.msra.mxu0 %vm550_vm13, %v7284_v59  ;;  %6718 = vmatpush3.msk.msra.mxu1 %vm8453_vm3, %v3176_v43 }
0x17ed   : > { %3298 = vmatmul.mubr.f32.vlgmr.msra.gmra.mxu0 %v5888_v45 }
0x17ee   : > { %v3172_v46 = vpop.permute.xlu1 %3171  ;;  %v3174_v47 = vpop.permute.xlu0 %3173  ;;  %3302 = vmatprep.mubr.f32.mxu0 %v5892_v31 }
0x17ef   : > { %6719 = vmatprep.subr.msk.mxu1 %vm8453_vm3, %v3174_v47 }
0x17f0   : > { %6720 = vmatpush3.msk.msra.mxu1 %vm8453_vm3, %v3174_v47 }
0x17f1   : > { %3303 = vmatmul.mubr.f32.gmra.mxu0 %v5891_v28  ;;  %6721 = vmatprep.subr.msk.mxu1 %vm8453_vm3, %v3172_v46 }
0x17f2   : > { %6722 = vmatpush3.msk.msra.mxu1 %vm8453_vm3, %v3172_v46  ;;  %v3170_v21 = vpop.permute.xlu0 %3169  ;;  %3307 = vmatprep.mubr.f32.mxu0 %v5895_v52  ;;  %v3216_v53 = vpop.permute.xlu1 %3215 }
0x17f3   : > { %6723 = vmatprep.subr.msk.mxu1 %vm8453_vm3, %v3170_v21 }
0x17f4   : > { %6724 = vmatpush3.msk.msra.mxu1 %vm8453_vm3, %v3170_v21 }
0x17f5   : > { %3308 = vmatmul.mubr.f32.gmra.mxu0 %v5894_v24  ;;  %6725 = vmatprep.subr.mxu1 %v3216_v53 }
0x17f6   : > { %6726 = vmatpush3.msra.mxu1 %v3216_v53  ;;  %3312 = vmatprep.mubr.f32.mxu0 %v5898_v16 }
0x17f7   : > { %6728 = vmatmul.mubr.msk.f32.vlgmr.msra.gmra.mxu1 %vm2192_vm14, %v5893_v54 }
0x17f8   : > { %6730 = vmatprep.mubr.msk.f32.mxu1 %vm2192_vm14, %v5896_v56 }
0x17f9   : > { %3313 = vmatmul.mubr.f32.gmra.mxu0 %v5897_v57 }
0x17fa   : > { %6743 = vmatprep.mubr.msk.f32.mxu0 %vm2192_vm14, %v3405_v22 }
0x17fb   : > { %6731 = vmatmul.mubr.msk.f32.gmra.mxu1 %vm2192_vm14, %v5899_v60 }
0x17fc   : > { %3641 = vmatprep.mubr.f32.mxu1 %v3404_v39 }
0x18ad   : > { %v6355_v61 = vpop.f32.mrf.mxu0 }
0x18af   : > { %v6356_v62 = vpop.f32.mrf.mxu0 }
0x18b0   : > { %v6357_v14 = vadd.f32 %v6356_v62, %v6355_v61 }
0x18b1   : > { %v6358_v63 = vpop.f32.mrf.mxu0 }
0x18b3   : > { %v6359_v0 = vpop.f32.mrf.mxu0 }
0x18b4   : > { %v6360_v1 = vadd.f32 %v6359_v0, %v6358_v63 }
0x18b5   : > { %v6361_v2 = vpop.f32.mrf.mxu0 }
0x18b6   : > { %v3305_v3 = vadd.f32 %v6360_v1, %v8737_v48  ;;  %v3300_v48 = vadd.f32 %v6357_v14, %v8746_v29 }
0x18b7   : > { %v6362_v4 = vpop.f32.mrf.mxu0  ;;  %v6729_v49 = vpop.f32.mrf.mxu1 }
0x18b8   : > { %v6363_v6 = vadd.f32 %v6362_v4, %v6361_v2  ;;  %v3390_v11 = vadd.f32 %v6729_v49, %v3305_v3 }
0x18b9   : > { %v6364_v50 = vpop.f32.mrf.mxu0  ;;  %v3384_v51 = vpop.f32.mrf.mxu1 }
0x18ba   : > { %3423 = vrot.lane.b32.xlu1 %v3390_v11, %s10093_s28  ;;  %v3310_v25 = vadd.f32 %v6363_v6, %v8744_v5  ;;  %v3385_v33 = vadd.f32 %v3384_v51, %v3300_v48  ;;  %v3403_v6 = vld [vmem:[%s9997_s7] sm:$0xff]  ;;  %v3412_v48 = vld [vmem:[%s9997_s7 + $0x48] sm:$0xff] }
0x18bb   : > { %v6365_v12 = vpop.f32.mrf.mxu0  ;;  %v6732_v13 = vpop.f32.mrf.mxu1  ;;  %v3407_v11 = vld [vmem:[%s9997_s7 + $0x20] sm:$0xff] }
0x18bc   : > { %v6366_v18 = vadd.f32 %v6365_v12, %v6364_v50  ;;  %v3406_v12 = vld [vmem:[%s9997_s7 + $0x18] sm:$0xff] }
0x18bd   : > { %v3394_v17 = vpop.f32.mrf.mxu1 }
0x18be   : > { %v3315_v27 = vadd.f32 %v6366_v18, %v8748_v10  ;;  %v3395_v30 = vadd.f32 %v3394_v17, %v3310_v25  ;;  %v3409_v18 = vld [vmem:[%s9997_s7 + $0x30] sm:$0xff] }
0x18bf   : > { %v3413_v25 = vld [vmem:[%s9997_s7 + $0x50] sm:$0xff] }
0x18c0   : > { %v3400_v32 = vadd.f32 %v6732_v13, %v3315_v27  ;;  %3425 = vrot.lane.b32.xlu0 %v3395_v30, %s10093_s28  ;;  %v3410_v13 = vld [vmem:[%s9997_s7 + $0x38] sm:$0xff]  ;;  %v3408_v27 = vld [vmem:[%s9997_s7 + $0x28] sm:$0xff]  ;;  %v3411_v30 = vld [vmem:[%s9997_s7 + $0x40] sm:$0xff] }
0x18c2   : > { %3427 = vrot.lane.b32.xlu1 %v3400_v32, %s10093_s28  ;;  %v3414_v32 = vld [vmem:[%s9997_s7 + $0x58] sm:$0xff] }
0x18c4   : > { %3421 = vrot.lane.b32.xlu0 %v3385_v33, %s10093_s28  ;;  %s7308_s28 = smov 56  }
0x192c   : > { %v3424_v29 = vpop.permute.xlu1 %3423 }
0x192d   : > { %v3434_v10 = vsel %vm2054_vm11, 0.0, %v3424_v29 }
0x192e   : > { %v9148_v34 = vsel %vm2059_vm12, %v3434_v10, 0.0 }
0x1932   : > { %v3426_v20 = vpop.permute.xlu0 %3425 }
0x1933   : > { %v3435_v35 = vsel %vm2054_vm11, 0.0, %v3426_v20 }
0x1934   : > { %v9160_v36 = vsel %vm2059_vm12, %v3435_v35, 0.0  ;;  %v3428_v37 = vpop.permute.xlu1 %3427 }
0x1935   : > { %v3436_v38 = vsel %vm2054_vm11, 0.0, %v3428_v37 }
0x1936   : > { %v3422_v23 = vpop.permute.xlu0 %3421  ;;  %v9176_v15 = vsel %vm2059_vm12, %v3436_v38, 0.0 }
0x1937   : > { %v3433_v26 = vsel %vm2054_vm11, 0.0, %v3422_v23  ;;  %vm5280_vm11 = vcmask 193701  }
0x1938   : > { %v9136_v5 = vsel %vm2059_vm12, %v3433_v26, 0.0  ;;  %vm5285_vm12 = vcmask 227526  }
0x1939   : > { %3465 = vrot.lane.b32.xlu1 %v9136_v5, %s10094_s26  ;;  %3553 = vrot.lane.b32.xlu0 %v9136_v5, %s10095_s15 }
0x193d   : > { %3449 = vrot.lane.b32.xlu1 %v9136_v5, %s10090_s30  ;;  %3497 = vrot.lane.b32.xlu0 %v9136_v5, %s10091_s14 }
0x1941   : > { %3467 = vrot.lane.b32.xlu1 %v9148_v34, %s10094_s26  ;;  %3555 = vrot.lane.b32.xlu0 %v9148_v34, %s10095_s15 }
0x1945   : > { %3451 = vrot.lane.b32.xlu1 %v9148_v34, %s10090_s30  ;;  %3499 = vrot.lane.b32.xlu0 %v9148_v34, %s10091_s14 }
0x1949   : > { %3469 = vrot.lane.b32.xlu1 %v9160_v36, %s10094_s26  ;;  %3557 = vrot.lane.b32.xlu0 %v9160_v36, %s10095_s15 }
0x194d   : > { %3453 = vrot.lane.b32.xlu1 %v9160_v36, %s10090_s30  ;;  %3501 = vrot.lane.b32.xlu0 %v9160_v36, %s10091_s14 }
0x1951   : > { %3533 = vrot.lane.b32.xlu1 %v9160_v36, %s10092_s25  ;;  %3485 = vrot.lane.b32.xlu0 %v9160_v36, %s10087_s23 }
0x1955   : > { %3455 = vrot.lane.b32.xlu1 %v9176_v15, %s10090_s30  ;;  %3503 = vrot.lane.b32.xlu0 %v9176_v15, %s10091_s14 }
0x1959   : > { %3531 = vrot.lane.b32.xlu1 %v9148_v34, %s10092_s25  ;;  %3483 = vrot.lane.b32.xlu0 %v9148_v34, %s10087_s23 }
0x195d   : > { %3535 = vrot.lane.b32.xlu1 %v9176_v15, %s10092_s25  ;;  %3487 = vrot.lane.b32.xlu0 %v9176_v15, %s10087_s23 }
0x1961   : > { %3529 = vrot.lane.b32.xlu1 %v9136_v5, %s10092_s25  ;;  %3481 = vrot.lane.b32.xlu0 %v9136_v5, %s10087_s23 }
0x1965   : > { %3545 = vrot.lane.b32.xlu1 %v9160_v36, %s10088_s19  ;;  %3547 = vrot.lane.b32.xlu0 %v9176_v15, %s10088_s19 }
0x1969   : > { %3541 = vrot.lane.b32.xlu1 %v9136_v5, %s10088_s19  ;;  %3543 = vrot.lane.b32.xlu0 %v9148_v34, %s10088_s19 }
0x196d   : > { %3519 = vrot.lane.b32.xlu1 %v9176_v15, %s10089_s29  ;;  %3471 = vrot.lane.b32.xlu0 %v9176_v15, %s10094_s26 }
0x1971   : > { %3515 = vrot.lane.b32.xlu1 %v9148_v34, %s10089_s29  ;;  %3517 = vrot.lane.b32.xlu0 %v9160_v36, %s10089_s29 }
0x1975   : > { %3559 = vrot.lane.b32.xlu1 %v9176_v15, %s10095_s15  ;;  %3513 = vrot.lane.b32.xlu0 %v9136_v5, %s10089_s29  ;;  %s7309_s29 = smov 52   ;;  %s7310_s15 = smov 64  }
0x19ab   : > { %v3466_v40 = vpop.permute.xlu1 %3465  ;;  %v3554_v41 = vpop.permute.xlu0 %3553 }
0x19af   : > { %v3450_v42 = vpop.permute.xlu1 %3449  ;;  %v3498_v43 = vpop.permute.xlu0 %3497 }
0x19b3   : > { %v3468_v44 = vpop.permute.xlu1 %3467  ;;  %v3556_v45 = vpop.permute.xlu0 %3555 }
0x19b7   : > { %v3452_v31 = vpop.permute.xlu1 %3451  ;;  %v3500_v46 = vpop.permute.xlu0 %3499 }
0x19bb   : > { %v3470_v47 = vpop.permute.xlu1 %3469  ;;  %v3558_v28 = vpop.permute.xlu0 %3557 }
0x19bc   : > { %6376 = vmatprep.subr.mxu1 %v3558_v28 }
0x19bd   : > { %6377 = vmatpush3.msk.msra.mxu1 %vm8445_vm2, %v3470_v47 }
0x19be   : > { %6378 = vmatprep.subr.mxu1 %v3556_v45 }
0x19bf   : > { %v3454_v52 = vpop.permute.xlu1 %3453  ;;  %6379 = vmatpush3.msk.msra.mxu1 %vm8445_vm2, %v3468_v44  ;;  %v3502_v21 = vpop.permute.xlu0 %3501 }
0x19c0   : > { %6380 = vmatprep.subr.mxu1 %v3554_v41 }
0x19c1   : > { %6381 = vmatpush3.msk.msra.mxu1 %vm8445_vm2, %v3466_v40 }
0x19c3   : > { %v3534_v24 = vpop.permute.xlu1 %3533  ;;  %v3486_v16 = vpop.permute.xlu0 %3485 }
0x19c7   : > { %v3456_v53 = vpop.permute.xlu1 %3455  ;;  %v3504_v54 = vpop.permute.xlu0 %3503 }
0x19c8   : > { %6382 = vmatprep.subr.msk.mxu1 %vm8445_vm2, %v3504_v54 }
0x19c9   : > { %6383 = vmatpush3.msk.msra.mxu1 %vm8453_vm3, %v3456_v53 }
0x19ca   : > { %6384 = vmatprep.subr.msk.mxu1 %vm8445_vm2, %v3502_v21 }
0x19cb   : > { %v3532_v56 = vpop.permute.xlu1 %3531  ;;  %6385 = vmatpush3.msk.msra.mxu1 %vm8453_vm3, %v3454_v52  ;;  %v3484_v57 = vpop.permute.xlu0 %3483 }
0x19cc   : > { %6386 = vmatprep.subr.msk.mxu1 %vm8445_vm2, %v3500_v46 }
0x19cd   : > { %6387 = vmatpush3.msk.msra.mxu1 %vm8453_vm3, %v3452_v31 }
0x19ce   : > { %6388 = vmatprep.subr.msk.mxu1 %vm8445_vm2, %v3498_v43 }
0x19cf   : > { %v3536_v60 = vpop.permute.xlu1 %3535  ;;  %6389 = vmatpush3.msk.msra.mxu1 %vm8453_vm3, %v3450_v42  ;;  %v3488_v61 = vpop.permute.xlu0 %3487 }
0x19d0   : > { %6390 = vmatprep.subr.msk.mxu1 %vm8453_vm3, %v3488_v61 }
0x19d1   : > { %6391 = vmatpush3.msra.mxu1 %v3536_v60 }
0x19d2   : > { %6392 = vmatprep.subr.msk.mxu1 %vm8453_vm3, %v3486_v16 }
0x19d3   : > { %v3530_v62 = vpop.permute.xlu1 %3529  ;;  %6393 = vmatpush3.msra.mxu1 %v3534_v24  ;;  %v3482_v63 = vpop.permute.xlu0 %3481 }
0x19d4   : > { %6394 = vmatprep.subr.msk.mxu1 %vm8453_vm3, %v3484_v57 }
0x19d5   : > { %6395 = vmatpush3.msra.mxu1 %v3532_v56 }
0x19d6   : > { %6396 = vmatprep.subr.msk.mxu1 %vm8453_vm3, %v3482_v63 }
0x19d7   : > { %v3546_v0 = vpop.permute.xlu1 %3545  ;;  %6397 = vmatpush3.msra.mxu1 %v3530_v62  ;;  %v3548_v1 = vpop.permute.xlu0 %3547 }
0x19d8   : > { %6398 = vmatprep.subr.mxu1 %v3548_v1 }
0x19d9   : > { %6399 = vmatpush3.msk.msra.mxu1 %vm8445_vm2, %v9176_v15 }
0x19da   : > { %6400 = vmatprep.subr.mxu1 %v3546_v0 }
0x19db   : > { %v3542_v2 = vpop.permute.xlu1 %3541  ;;  %6401 = vmatpush3.msk.msra.mxu1 %vm8445_vm2, %v9160_v36  ;;  %v3544_v3 = vpop.permute.xlu0 %3543 }
0x19dc   : > { %6402 = vmatprep.subr.mxu1 %v3544_v3 }
0x19dd   : > { %6403 = vmatpush3.msk.msra.mxu1 %vm8445_vm2, %v9148_v34 }
0x19de   : > { %6404 = vmatprep.subr.mxu1 %v3542_v2 }
0x19df   : > { %v3520_v4 = vpop.permute.xlu1 %3519  ;;  %6405 = vmatpush3.msk.msra.mxu1 %vm8445_vm2, %v9136_v5  ;;  %v3472_v49 = vpop.permute.xlu0 %3471 }
0x19e0   : > { %6406 = vmatprep.subr.msk.mxu1 %vm8445_vm2, %v3472_v49  ;;  %6733 = vmatprep.subr.msk.mxu0 %vm8453_vm3, %v3520_v4 }
0x19e1   : > { %6407 = vmatpush3.msk.msra.mxu1 %vm550_vm13, %v7284_v59  ;;  %6734 = vmatpush3.msk.msra.mxu0 %vm8453_vm3, %v3520_v4 }
0x19e2   : > { %3642 = vmatmul.mubr.f32.vlgmr.msra.gmra.mxu1 %v3403_v6 }
0x19e3   : > { %v3516_v50 = vpop.permute.xlu1 %3515  ;;  %v3518_v51 = vpop.permute.xlu0 %3517  ;;  %3646 = vmatprep.mubr.f32.mxu1 %v3407_v11 }
0x19e4   : > { %6735 = vmatprep.subr.msk.mxu0 %vm8453_vm3, %v3518_v51 }
0x19e5   : > { %6736 = vmatpush3.msk.msra.mxu0 %vm8453_vm3, %v3518_v51 }
0x19e6   : > { %3647 = vmatmul.mubr.f32.gmra.mxu1 %v3406_v12  ;;  %6737 = vmatprep.subr.msk.mxu0 %vm8453_vm3, %v3516_v50 }
0x19e7   : > { %6738 = vmatpush3.msk.msra.mxu0 %vm8453_vm3, %v3516_v50  ;;  %v3514_v14 = vpop.permute.xlu0 %3513  ;;  %3651 = vmatprep.mubr.f32.mxu1 %v3410_v13  ;;  %v3560_v17 = vpop.permute.xlu1 %3559 }
0x19e8   : > { %6739 = vmatprep.subr.msk.mxu0 %vm8453_vm3, %v3514_v14 }
0x19e9   : > { %6740 = vmatpush3.msk.msra.mxu0 %vm8453_vm3, %v3514_v14 }
0x19ea   : > { %3652 = vmatmul.mubr.f32.gmra.mxu1 %v3409_v18  ;;  %6741 = vmatprep.subr.mxu0 %v3560_v17 }
0x19eb   : > { %6742 = vmatpush3.msra.mxu0 %v3560_v17  ;;  %3656 = vmatprep.mubr.f32.mxu1 %v3413_v25  ;;  %v3416_v17 = vld [vmem:[%s9999_s9 + $0x8] sm:$0xff] }
0x19ec   : > { %6744 = vmatmul.mubr.msk.f32.vlgmr.msra.gmra.mxu0 %vm2192_vm14, %v3408_v27  ;;  %6749 = vmatprep.subr.mxu0 %v3416_v17 }
0x19ed   : > { %6746 = vmatprep.mubr.msk.f32.mxu0 %vm2192_vm14, %v3411_v30  ;;  %6750 = vmatpush3.msra.mxu0 %v3416_v17 }
0x19ee   : > { %3657 = vmatmul.mubr.f32.gmra.mxu1 %v3412_v48  ;;  %6751 = vmatprep.subr.mxu0 %v3415_v19 }
0x19ef   : > { %6752 = vmatpush3.msra.mxu0 %v3415_v19 }
0x19f0   : > { %6747 = vmatmul.mubr.msk.f32.gmra.mxu0 %vm2192_vm14, %v3414_v32 }
0x1aa2   : > { %v6408_v33 = vpop.f32.mrf.mxu1 }
0x1aa4   : > { %v6409_v20 = vpop.f32.mrf.mxu1 }
0x1aa5   : > { %v6410_v35 = vadd.f32 %v6409_v20, %v6408_v33 }
0x1aa6   : > { %v6411_v23 = vpop.f32.mrf.mxu1 }
0x1aa8   : > { %v6412_v26 = vpop.f32.mrf.mxu1 }
0x1aa9   : > { %v6413_v29 = vadd.f32 %v6412_v26, %v6411_v23 }
0x1aaa   : > { %v6414_v5 = vpop.f32.mrf.mxu1 }
0x1aac   : > { %v6415_v10 = vpop.f32.mrf.mxu1  ;;  %v6745_v34 = vpop.f32.mrf.mxu0 }
0x1aad   : > { %v3734_v36 = vadd.f32 %v6745_v34, %v6413_v29  ;;  %v6416_v40 = vadd.f32 %v6415_v10, %v6414_v5 }
0x1aae   : > { %v6417_v37 = vpop.f32.mrf.mxu1  ;;  %v3728_v38 = vpop.f32.mrf.mxu0 }
0x1aaf   : > { %v3729_v15 = vadd.f32 %v6410_v35, %v3728_v38  ;;  %3753 = vrot.lane.b32.xlu1 %v3734_v36, %s10081_s18 }
0x1ab0   : > { %v6418_v39 = vpop.f32.mrf.mxu1  ;;  %v6748_v22 = vpop.f32.mrf.mxu0 }
0x1ab1   : > { %v6419_v41 = vadd.f32 %v6418_v39, %v6417_v37  ;;  %3751 = vrot.lane.b32.xlu0 %v3729_v15, %s10081_s18 }
0x1ab2   : > { %v3738_v42 = vpop.f32.mrf.mxu0 }
0x1ab3   : > { %v3744_v43 = vadd.f32 %v6748_v22, %v6419_v41  ;;  %v3739_v44 = vadd.f32 %v6416_v40, %v3738_v42 }
0x1ab5   : > { %3757 = vrot.lane.b32.xlu1 %v3744_v43, %s10081_s18  ;;  %3755 = vrot.lane.b32.xlu0 %v3739_v44, %s10081_s18  ;;  %s7296_s18 = smov 4  }
0x1b21   : > { %v3754_v45 = vpop.permute.xlu1 %3753 }
0x1b22   : > { %v3764_v31 = vsel %vm772_vm15, -1e+30, %v3754_v45 }
0x1b23   : > { %v3768_v46 = vsel %vm559_vm0, %v3764_v31, -1e+30  ;;  %v3752_v47 = vpop.permute.xlu0 %3751 }
0x1b24   : > { %v3763_v28 = vsel %vm772_vm15, -1e+30, %v3752_v47  ;;  %3781 = vrot.lane.b32.xlu1 %v3768_v46, %s10090_s30  ;;  %v3772_v60 = vsel %vm8445_vm2, %v3768_v46, -1e+30 }
0x1b25   : > { %v3767_v52 = vsel %vm559_vm0, %v3763_v28, -1e+30 }
0x1b26   : > { %3779 = vrot.lane.b32.xlu0 %v3767_v52, %s10090_s30  ;;  %v3771_v0 = vsel %vm8445_vm2, %v3767_v52, -1e+30 }
0x1b27   : > { %v3758_v21 = vpop.permute.xlu1 %3757  ;;  %v3756_v24 = vpop.permute.xlu0 %3755 }
0x1b28   : > { %v3766_v16 = vsel %vm772_vm15, -1e+30, %v3758_v21  ;;  %v3765_v53 = vsel %vm772_vm15, -1e+30, %v3756_v24  ;;  %vm3824_vm15 = vcmask 162816  }
0x1b29   : > { %v3770_v54 = vsel %vm559_vm0, %v3766_v16, -1e+30  ;;  %v3769_v56 = vsel %vm559_vm0, %v3765_v53, -1e+30  ;;  %vm3819_vm0 = vcmask 31744  }
0x1b2a   : > { %3785 = vrot.lane.b32.xlu1 %v3770_v54, %s10090_s30  ;;  %3783 = vrot.lane.b32.xlu0 %v3769_v56, %s10090_s30  ;;  %v3774_v49 = vsel %vm8445_vm2, %v3770_v54, -1e+30  ;;  %v3773_v51 = vsel %vm8445_vm2, %v3769_v56, -1e+30  ;;  %vm5296_vm2 = vcmask 286976  }
0x1b96   : > { %v3782_v57 = vpop.permute.xlu1 %3781 }
0x1b97   : > { %v3792_v61 = vsel %vm8453_vm3, %v3782_v57, -1e+30 }
0x1b98   : > { %v3796_v62 = vmax.f32 %v3772_v60, %v3792_v61  ;;  %v3780_v63 = vpop.permute.xlu0 %3779 }
0x1b99   : > { %v3791_v1 = vsel %vm8453_vm3, %v3780_v63, -1e+30 }
0x1b9a   : > { %v3800_v2 = vmax.f32 %v3734_v36, %v3796_v62  ;;  %v3795_v3 = vmax.f32 %v3771_v0, %v3791_v1 }
0x1b9c   : > { %v3799_v4 = vmax.f32 %v3729_v15, %v3795_v3  ;;  %3809 = vrot.lane.b32.xlu1 %v3800_v2, %s7296_s18  ;;  %v3786_v6 = vpop.permute.xlu1 %3785  ;;  %v3784_v11 = vpop.permute.xlu0 %3783  ;;  %v3955_v3 = vld [vmem:[#allocation11 + $0x10] sm:$0xff] }
0x1b9d   : > { %v3794_v50 = vsel %vm8453_vm3, %v3786_v6, -1e+30  ;;  %v3793_v12 = vsel %vm8453_vm3, %v3784_v11, -1e+30  ;;  %v3950_v6 = vand.u32 1, %v7611_v9  ;;  %v4627_v9 = vld [vmem:[#allocation11 + $0x168] sm:$0xff] }
0x1b9e   : > { %v3798_v13 = vmax.f32 %v3774_v49, %v3794_v50  ;;  %v3797_v14 = vmax.f32 %v3773_v51, %v3793_v12  ;;  %3807 = vrot.lane.b32.xlu0 %v3799_v4, %s7296_s18  ;;  %v4625_v51 = vld [vmem:[#allocation11 + $0x158] sm:$0xff]  ;;  %vm5301_vm3 = vcmask 320801  }
0x1b9f   : > { %vm9449_vm5 = vcmp.gt.s32.totalorder %v3950_v6, 0  ;;  %vm9457_vm6 = vcmp.lt.s32.totalorder %v3950_v6, 1 }
0x1ba0   : > { %v3802_v18 = vmax.f32 %v3744_v43, %v3798_v13  ;;  %v3801_v25 = vmax.f32 %v3739_v44, %v3797_v14 }
0x1ba2   : > { %3813 = vrot.lane.b32.xlu1 %v3802_v18, %s7296_s18  ;;  %3811 = vrot.lane.b32.xlu0 %v3801_v25, %s7296_s18 }
0x1c0e   : > { %v3810_v58 = vpop.permute.xlu1 %3809 }
0x1c0f   : > { %v3821_v27 = vsel %vm3819_vm0, -1e+30, %v3810_v58 }
0x1c10   : > { %v3826_v30 = vsel %vm3824_vm15, %v3821_v27, -1e+30  ;;  %v3808_v48 = vpop.permute.xlu0 %3807 }
0x1c11   : > { %v3820_v32 = vsel %vm3819_vm0, -1e+30, %v3808_v48  ;;  %3835 = vrot.lane.b32.xlu1 %v3826_v30, %s10091_s14 }
0x1c12   : > { %v3825_v33 = vsel %vm3824_vm15, %v3820_v32, -1e+30 }
0x1c13   : > { %3833 = vrot.lane.b32.xlu0 %v3825_v33, %s10091_s14 }
0x1c14   : > { %v3814_v20 = vpop.permute.xlu1 %3813  ;;  %v3812_v23 = vpop.permute.xlu0 %3811 }
0x1c15   : > { %v3823_v26 = vsel %vm3819_vm0, -1e+30, %v3814_v20  ;;  %v3822_v5 = vsel %vm3819_vm0, -1e+30, %v3812_v23  ;;  %vm5306_vm0 = vcmask 354626  }
0x1c16   : > { %v3828_v29 = vsel %vm3824_vm15, %v3823_v26, -1e+30  ;;  %v3827_v10 = vsel %vm3824_vm15, %v3822_v5, -1e+30  ;;  %v3953_v5 = vld [vmem:[#allocation11] sm:$0xff]  ;;  %vm5311_vm15 = vcmask 388451  }
0x1c17   : > { %3839 = vrot.lane.b32.xlu1 %v3828_v29, %s10091_s14  ;;  %3837 = vrot.lane.b32.xlu0 %v3827_v10, %s10091_s14 }
0x1c83   : > { %v3836_v34 = vpop.permute.xlu1 %3835 }
0x1c84   : > { %v3846_v35 = vmax.f32 %v3826_v30, %v3836_v34 }
0x1c85   : > { %v3834_v36 = vpop.permute.xlu0 %3833 }
0x1c86   : > { %v3845_v37 = vmax.f32 %v3825_v33, %v3834_v36  ;;  %v3850_v15 = vmax.f32 %v3800_v2, %v3846_v35  ;;  %v3954_v2 = vld [vmem:[#allocation11 + $0x8] sm:$0xff]  ;;  %v3956_v35 = vld [vmem:[#allocation11 + $0x18] sm:$0xff] }
0x1c87   : > { %4188 = vmatprep.mubr.f32.mxu1 %v3954_v2  ;;  %v3960_v36 = vld [vmem:[#allocation11 + $0x38] sm:$0xff] }
0x1c88   : > { %v3849_v38 = vmax.f32 %v3799_v4, %v3845_v37 }
0x1c89   : > { %v3840_v39 = vpop.permute.xlu1 %3839  ;;  %v3838_v22 = vpop.permute.xlu0 %3837 }
0x1c8a   : > { %v3848_v40 = vmax.f32 %v3828_v29, %v3840_v39  ;;  %v3847_v41 = vmax.f32 %v3827_v10, %v3838_v22  ;;  %6753 = vmatprep.mubr.msk.f32.mxu0 %vm837_vm1, %v3849_v38  ;;  %v3957_v29 = vld [vmem:[#allocation11 + $0x20] sm:$0xff]  ;;  %v3958_v39 = vld [vmem:[#allocation11 + $0x28] sm:$0xff]  ;;  %v3963_v22 = vld [vmem:[#allocation11 + $0x50] sm:$0xff] }
0x1c8b   : > { %6754 = vmatmul.mubr.msk.f32.vlgmr.msra.gmra.mxu0 %vm837_vm1, %v3850_v15  ;;  %v3959_v15 = vld [vmem:[#allocation11 + $0x30] sm:$0xff] }
0x1c8c   : > { %v3852_v42 = vmax.f32 %v3802_v18, %v3848_v40  ;;  %v3851_v43 = vmax.f32 %v3801_v25, %v3847_v41  ;;  %v3961_v40 = vld [vmem:[#allocation11 + $0x40] sm:$0xff]  ;;  %v3962_v41 = vld [vmem:[#allocation11 + $0x48] sm:$0xff] }
0x1c8e   : > { %6756 = vmatprep.mubr.msk.f32.mxu0 %vm837_vm1, %v3851_v43 }
0x1c8f   : > { %6757 = vmatmul.mubr.msk.f32.gmra.mxu0 %vm837_vm1, %v3852_v42  ;;  %vm3998_vm1 = vcmask 23552   ;;  %v3964_v42 = vld [vmem:[#allocation11 + $0x58] sm:$0xff] }
0x1c90   : > { %6769 = vmatprep.mubr.msk.f32.mxu0 %vm2192_vm14, %v3955_v3 }
0x1d4b   : > { %v9367_v44 = vpop.f32.mrf.mxu0 }
0x1d4c   : > { %v3979_v45 = vmax.f32 %v9367_v44, 0.0 }
0x1d4d   : > { %v9370_v31 = vpop.f32.mrf.mxu0 }
0x1d4e   : > { %3988 = vrot.lane.b32.xlu1 %v3979_v45, %s7297_s1  ;;  %v3978_v21 = vmax.f32 %v9370_v31, 0.0 }
0x1d4f   : > { %v9373_v46 = vpop.f32.mrf.mxu0 }
0x1d50   : > { %v3981_v47 = vmax.f32 %v9373_v46, 0.0 }
0x1d51   : > { %v9376_v28 = vpop.f32.mrf.mxu0 }
0x1d52   : > { %v3980_v52 = vmax.f32 %v9376_v28, 0.0  ;;  %3992 = vrot.lane.b32.xlu1 %v3981_v47, %s7297_s1 }
0x1d54   : > { %3990 = vrot.lane.b32.xlu0 %v3980_v52, %s7297_s1 }
0x1d58   : > { %3986 = vrot.lane.b32.xlu0 %v3978_v21, %s7297_s1 }
0x1dc0   : > { %v3989_v24 = vpop.permute.xlu1 %3988 }
0x1dc1   : > { %v4000_v16 = vsel %vm3998_vm1, 0.0, %v3989_v24 }
0x1dc2   : > { %v9385_v53 = vsel %vm4003_vm4, %v4000_v16, 0.0 }
0x1dc3   : > { %4022 = vrot.lane.b32.xlu1 %v9385_v53, %s10090_s30  ;;  %4102 = vrot.lane.b32.xlu0 %v9385_v53, %s10088_s19 }
0x1dc4   : > { %v3993_v62 = vpop.permute.xlu1 %3992 }
0x1dc5   : > { %v4002_v0 = vsel %vm3998_vm1, 0.0, %v3993_v62 }
0x1dc6   : > { %v3991_v54 = vpop.permute.xlu0 %3990  ;;  %v9409_v1 = vsel %vm4003_vm4, %v4002_v0, 0.0 }
0x1dc7   : > { %v4001_v61 = vsel %vm3998_vm1, 0.0, %v3991_v54 }
0x1dc8   : > { %v9401_v63 = vsel %vm4003_vm4, %v4001_v61, 0.0 }
0x1dca   : > { %v3987_v56 = vpop.permute.xlu0 %3986 }
0x1dcb   : > { %v3999_v57 = vsel %vm3998_vm1, 0.0, %v3987_v56 }
0x1dcc   : > { %v9393_v60 = vsel %vm4003_vm4, %v3999_v57, 0.0 }
0x1dcd   : > { %4020 = vrot.lane.b32.xlu1 %v9393_v60, %s10090_s30  ;;  %4100 = vrot.lane.b32.xlu0 %v9393_v60, %s10088_s19 }
0x1dd1   : > { %4024 = vrot.lane.b32.xlu1 %v9401_v63, %s10090_s30  ;;  %4104 = vrot.lane.b32.xlu0 %v9401_v63, %s10088_s19 }
0x1dd5   : > { %4026 = vrot.lane.b32.xlu1 %v9409_v1, %s10090_s30  ;;  %4046 = vrot.lane.b32.xlu0 %v9409_v1, %s10094_s26 }
0x1dd9   : > { %4042 = vrot.lane.b32.xlu1 %v9385_v53, %s10094_s26  ;;  %4044 = vrot.lane.b32.xlu0 %v9401_v63, %s10094_s26 }
0x1ddd   : > { %4082 = vrot.lane.b32.xlu1 %v9409_v1, %s10092_s25  ;;  %4040 = vrot.lane.b32.xlu0 %v9393_v60, %s10094_s26 }
0x1de1   : > { %4078 = vrot.lane.b32.xlu1 %v9385_v53, %s10092_s25  ;;  %4080 = vrot.lane.b32.xlu0 %v9401_v63, %s10092_s25 }
0x1de5   : > { %4094 = vrot.lane.b32.xlu1 %v9409_v1, %s7298_s4  ;;  %4076 = vrot.lane.b32.xlu0 %v9393_v60, %s10092_s25 }
0x1de9   : > { %4090 = vrot.lane.b32.xlu1 %v9385_v53, %s7298_s4  ;;  %4092 = vrot.lane.b32.xlu0 %v9401_v63, %s7298_s4 }
0x1ded   : > { %4088 = vrot.lane.b32.xlu1 %v9393_v60, %s7298_s4  ;;  %4066 = vrot.lane.b32.xlu0 %v9409_v1, %s10087_s23 }
0x1df1   : > { %4062 = vrot.lane.b32.xlu1 %v9385_v53, %s10087_s23  ;;  %4064 = vrot.lane.b32.xlu0 %v9401_v63, %s10087_s23 }
0x1df5   : > { %4106 = vrot.lane.b32.xlu1 %v9409_v1, %s10088_s19  ;;  %4060 = vrot.lane.b32.xlu0 %v9393_v60, %s10087_s23 }
0x1e35   : > { %v4023_v4 = vpop.permute.xlu1 %4022  ;;  %v4103_v49 = vpop.permute.xlu0 %4102 }
0x1e3f   : > { %v4021_v11 = vpop.permute.xlu1 %4020  ;;  %v4101_v50 = vpop.permute.xlu0 %4100 }
0x1e43   : > { %v4025_v12 = vpop.permute.xlu1 %4024  ;;  %v4105_v13 = vpop.permute.xlu0 %4104 }
0x1e44   : > { %6435 = vmatprep.subr.mxu1 %v4105_v13 }
0x1e45   : > { %6436 = vmatpush3.msk.msra.mxu1 %vm9449_vm5, %v4025_v12 }
0x1e46   : > { %6437 = vmatprep.subr.mxu1 %v4103_v49 }
0x1e47   : > { %v4027_v14 = vpop.permute.xlu1 %4026  ;;  %6438 = vmatpush3.msk.msra.mxu1 %vm9449_vm5, %v4023_v4  ;;  %v4047_v18 = vpop.permute.xlu0 %4046 }
0x1e48   : > { %6439 = vmatprep.subr.mxu1 %v4101_v50 }
0x1e49   : > { %6440 = vmatpush3.msk.msra.mxu1 %vm9449_vm5, %v4021_v11 }
0x1e4a   : > { %6441 = vmatprep.subr.msk.mxu1 %vm9449_vm5, %v4047_v18 }
0x1e4b   : > { %v4043_v25 = vpop.permute.xlu1 %4042  ;;  %6442 = vmatpush3.msk.msra.mxu1 %vm9457_vm6, %v4027_v14  ;;  %v4045_v17 = vpop.permute.xlu0 %4044 }
0x1e4c   : > { %6443 = vmatprep.subr.msk.mxu1 %vm9449_vm5, %v4045_v17 }
0x1e4d   : > { %6444 = vmatpush3.msk.msra.mxu1 %vm9457_vm6, %v4025_v12 }
0x1e4e   : > { %6445 = vmatprep.subr.msk.mxu1 %vm9449_vm5, %v4043_v25 }
0x1e4f   : > { %v4083_v19 = vpop.permute.xlu1 %4082  ;;  %6446 = vmatpush3.msk.msra.mxu1 %vm9457_vm6, %v4023_v4  ;;  %v4041_v58 = vpop.permute.xlu0 %4040 }
0x1e50   : > { %6447 = vmatprep.subr.msk.mxu1 %vm9449_vm5, %v4041_v58 }
0x1e51   : > { %6448 = vmatpush3.msk.msra.mxu1 %vm9457_vm6, %v4021_v11 }
0x1e52   : > { %6449 = vmatprep.subr.msk.mxu1 %vm9457_vm6, %v4047_v18 }
0x1e53   : > { %v4079_v27 = vpop.permute.xlu1 %4078  ;;  %6450 = vmatpush3.msra.mxu1 %v4083_v19  ;;  %v4081_v30 = vpop.permute.xlu0 %4080 }
0x1e54   : > { %6451 = vmatprep.subr.msk.mxu1 %vm9457_vm6, %v4045_v17 }
0x1e55   : > { %6452 = vmatpush3.msra.mxu1 %v4081_v30 }
0x1e56   : > { %6453 = vmatprep.subr.msk.mxu1 %vm9457_vm6, %v4043_v25 }
0x1e57   : > { %v4095_v48 = vpop.permute.xlu1 %4094  ;;  %6454 = vmatpush3.msra.mxu1 %v4079_v27  ;;  %v4077_v32 = vpop.permute.xlu0 %4076 }
0x1e58   : > { %6455 = vmatprep.subr.msk.mxu1 %vm9457_vm6, %v4041_v58 }
0x1e59   : > { %6456 = vmatpush3.msra.mxu1 %v4077_v32 }
0x1e5a   : > { %6457 = vmatprep.subr.mxu1 %v4095_v48 }
0x1e5b   : > { %v4091_v33 = vpop.permute.xlu1 %4090  ;;  %6458 = vmatpush3.msk.msra.mxu1 %vm9449_vm5, %v9409_v1  ;;  %v4093_v20 = vpop.permute.xlu0 %4092 }
0x1e5c   : > { %6459 = vmatprep.subr.mxu1 %v4093_v20  ;;  %v3968_v20 = vld [vmem:[#allocation11 + $0x70] sm:$0xff] }
0x1e5d   : > { %6460 = vmatpush3.msk.msra.mxu1 %vm9449_vm5, %v9401_v63 }
0x1e5e   : > { %6461 = vmatprep.subr.mxu1 %v4091_v33  ;;  %v3967_v33 = vld [vmem:[#allocation11 + $0x68] sm:$0xff] }
0x1e5f   : > { %v4089_v23 = vpop.permute.xlu1 %4088  ;;  %6462 = vmatpush3.msk.msra.mxu1 %vm9449_vm5, %v9385_v53  ;;  %v4067_v26 = vpop.permute.xlu0 %4066 }
0x1e60   : > { %6463 = vmatprep.subr.mxu1 %v4089_v23  ;;  %6759 = vmatprep.subr.msk.mxu0 %vm9457_vm6, %v4067_v26 }
0x1e61   : > { %6464 = vmatpush3.msk.msra.mxu1 %vm9449_vm5, %v9393_v60  ;;  %6760 = vmatpush3.msk.msra.mxu0 %vm9457_vm6, %v4067_v26 }
0x1e62   : > { %6465 = vmatprep.subr.msk.mxu1 %vm9449_vm5, %v4027_v14 }
0x1e63   : > { %v4063_v10 = vpop.permute.xlu1 %4062  ;;  %6466 = vmatpush3.msk.msra.mxu1 %vm550_vm13, %v7284_v59  ;;  %v4065_v34 = vpop.permute.xlu0 %4064 }
0x1e64   : > { %4189 = vmatmul.mubr.f32.vlgmr.msra.gmra.mxu1 %v3953_v5  ;;  %6761 = vmatprep.subr.msk.mxu0 %vm9457_vm6, %v4065_v34 }
0x1e65   : > { %6762 = vmatpush3.msk.msra.mxu0 %vm9457_vm6, %v4065_v34  ;;  %4193 = vmatprep.mubr.f32.mxu1 %v3957_v29 }
0x1e66   : > { %6763 = vmatprep.subr.msk.mxu0 %vm9457_vm6, %v4063_v10 }
0x1e67   : > { %6764 = vmatpush3.msk.msra.mxu0 %vm9457_vm6, %v4063_v10  ;;  %v4061_v37 = vpop.permute.xlu0 %4060  ;;  %v4107_v38 = vpop.permute.xlu1 %4106 }
0x1e68   : > { %4194 = vmatmul.mubr.f32.gmra.mxu1 %v3956_v35  ;;  %6765 = vmatprep.subr.msk.mxu0 %vm9457_vm6, %v4061_v37 }
0x1e69   : > { %6766 = vmatpush3.msk.msra.mxu0 %vm9457_vm6, %v4061_v37  ;;  %4198 = vmatprep.mubr.f32.mxu1 %v3960_v36 }
0x1e6a   : > { %6767 = vmatprep.subr.mxu0 %v4107_v38 }
0x1e6b   : > { %6768 = vmatpush3.msra.mxu0 %v4107_v38 }
0x1e6c   : > { %4199 = vmatmul.mubr.f32.gmra.mxu1 %v3959_v15  ;;  %6770 = vmatmul.mubr.msk.f32.vlgmr.msra.gmra.mxu0 %vm2192_vm14, %v3958_v39 }
0x1e6d   : > { %4203 = vmatprep.mubr.f32.mxu1 %v3963_v22  ;;  %6772 = vmatprep.mubr.msk.f32.mxu0 %vm2192_vm14, %v3961_v40 }
0x1e70   : > { %4204 = vmatmul.mubr.f32.gmra.mxu1 %v3962_v41  ;;  %6773 = vmatmul.mubr.msk.f32.gmra.mxu0 %vm2192_vm14, %v3964_v42 }
0x1e71   : > { %4498 = vmatprep.mubr.f32.mxu0 %v3967_v33  ;;  %6785 = vmatprep.mubr.msk.f32.mxu1 %vm2192_vm14, %v3968_v20 }
0x1f24   : > { %v6467_v43 = vpop.f32.mrf.mxu1 }
0x1f26   : > { %v6468_v45 = vpop.f32.mrf.mxu1 }
0x1f27   : > { %v6469_v1 = vadd.f32 %v6468_v45, %v6467_v43 }
0x1f28   : > { %v6470_v47 = vpop.f32.mrf.mxu1 }
0x1f2a   : > { %v6471_v52 = vpop.f32.mrf.mxu1 }
0x1f2b   : > { %v6472_v21 = vadd.f32 %v6471_v52, %v6470_v47 }
0x1f2c   : > { %v6473_v24 = vpop.f32.mrf.mxu1  ;;  %v6771_v16 = vpop.f32.mrf.mxu0 }
0x1f2d   : > { %v4281_v53 = vadd.f32 %v6771_v16, %v6472_v21  ;;  %v3966_v21 = vld [vmem:[#allocation11 + $0x60] sm:$0xff] }
0x1f2e   : > { %v6474_v54 = vpop.f32.mrf.mxu1  ;;  %v4275_v56 = vpop.f32.mrf.mxu0 }
0x1f2f   : > { %v4295_v57 = vmax.f32 %v4281_v53, 0.0  ;;  %v6475_v62 = vadd.f32 %v6474_v54, %v6473_v24  ;;  %v4276_v4 = vadd.f32 %v6469_v1, %v4275_v56  ;;  %v3970_v24 = vld [vmem:[#allocation11 + $0x80] sm:$0xff]  ;;  %v3969_v54 = vld [vmem:[#allocation11 + $0x78] sm:$0xff]  ;;  %v3975_v1 = vld [vmem:[#allocation11 + $0xa8] sm:$0xff] }
0x1f30   : > { %v6476_v60 = vpop.f32.mrf.mxu1  ;;  %v6774_v61 = vpop.f32.mrf.mxu0  ;;  %v3973_v56 = vld [vmem:[#allocation11 + $0x98] sm:$0xff] }
0x1f31   : > { %4304 = vrot.lane.b32.xlu1 %v4295_v57, %s7297_s1  ;;  %v4294_v50 = vmax.f32 %v4276_v4, 0.0 }
0x1f32   : > { %v6477_v63 = vpop.f32.mrf.mxu1  ;;  %v4285_v0 = vpop.f32.mrf.mxu0 }
0x1f33   : > { %v6478_v2 = vadd.f32 %v6477_v63, %v6476_v60  ;;  %v4286_v3 = vadd.f32 %v6475_v62, %v4285_v0  ;;  %v3971_v62 = vld [vmem:[#allocation11 + $0x88] sm:$0xff]  ;;  %v3976_v63 = vld [vmem:[#allocation11 + $0xb0] sm:$0xff]  ;;  %v3974_v0 = vld [vmem:[#allocation11 + $0xa0] sm:$0xff] }
0x1f35   : > { %v4291_v49 = vadd.f32 %v6774_v61, %v6478_v2  ;;  %v4296_v6 = vmax.f32 %v4286_v3, 0.0  ;;  %v3972_v61 = vld [vmem:[#allocation11 + $0x90] sm:$0xff]  ;;  %v3977_v2 = vld [vmem:[#allocation11 + $0xb8] sm:$0xff] }
0x1f37   : > { %v4297_v11 = vmax.f32 %v4291_v49, 0.0  ;;  %4306 = vrot.lane.b32.xlu0 %v4296_v6, %s7297_s1 }
0x1f39   : > { %4308 = vrot.lane.b32.xlu1 %v4297_v11, %s7297_s1 }
0x1f3b   : > { %4302 = vrot.lane.b32.xlu0 %v4294_v50, %s7297_s1 }
0x1fa3   : > { %v4305_v12 = vpop.permute.xlu1 %4304 }
0x1fa4   : > { %v4315_v13 = vsel %vm3998_vm1, 0.0, %v4305_v12 }
0x1fa5   : > { %v9529_v14 = vsel %vm4003_vm4, %v4315_v13, 0.0 }
0x1fa6   : > { %4332 = vrot.lane.b32.xlu1 %v9529_v14, %s10090_s30 }
0x1fa9   : > { %v4307_v18 = vpop.permute.xlu0 %4306 }
0x1faa   : > { %v4316_v25 = vsel %vm3998_vm1, 0.0, %v4307_v18 }
0x1fab   : > { %v9535_v17 = vsel %vm4003_vm4, %v4316_v25, 0.0  ;;  %v4309_v19 = vpop.permute.xlu1 %4308 }
0x1fac   : > { %4334 = vrot.lane.b32.xlu1 %v9535_v17, %s10090_s30  ;;  %v4317_v48 = vsel %vm3998_vm1, 0.0, %v4309_v19 }
0x1fad   : > { %v4303_v58 = vpop.permute.xlu0 %4302  ;;  %v9549_v32 = vsel %vm4003_vm4, %v4317_v48, 0.0 }
0x1fae   : > { %v4314_v27 = vsel %vm3998_vm1, 0.0, %v4303_v58 }
0x1faf   : > { %v9541_v30 = vsel %vm4003_vm4, %v4314_v27, 0.0 }
0x1fb0   : > { %4330 = vrot.lane.b32.xlu1 %v9541_v30, %s10090_s30  ;;  %4410 = vrot.lane.b32.xlu0 %v9541_v30, %s10088_s19 }
0x1fb4   : > { %4336 = vrot.lane.b32.xlu1 %v9549_v32, %s10090_s30  ;;  %4412 = vrot.lane.b32.xlu0 %v9529_v14, %s10088_s19 }
0x1fb8   : > { %4352 = vrot.lane.b32.xlu1 %v9529_v14, %s10094_s26  ;;  %4414 = vrot.lane.b32.xlu0 %v9535_v17, %s10088_s19 }
0x1fbc   : > { %4392 = vrot.lane.b32.xlu1 %v9549_v32, %s10092_s25  ;;  %4356 = vrot.lane.b32.xlu0 %v9549_v32, %s10094_s26 }
0x1fc0   : > { %4388 = vrot.lane.b32.xlu1 %v9529_v14, %s10092_s25  ;;  %4354 = vrot.lane.b32.xlu0 %v9535_v17, %s10094_s26 }
0x1fc4   : > { %4404 = vrot.lane.b32.xlu1 %v9549_v32, %s7298_s4  ;;  %4350 = vrot.lane.b32.xlu0 %v9541_v30, %s10094_s26 }
0x1fc8   : > { %4400 = vrot.lane.b32.xlu1 %v9529_v14, %s7298_s4  ;;  %4390 = vrot.lane.b32.xlu0 %v9535_v17, %s10092_s25 }
0x1fcc   : > { %4376 = vrot.lane.b32.xlu1 %v9549_v32, %s10087_s23  ;;  %4386 = vrot.lane.b32.xlu0 %v9541_v30, %s10092_s25 }
0x1fd0   : > { %4372 = vrot.lane.b32.xlu1 %v9529_v14, %s10087_s23  ;;  %4402 = vrot.lane.b32.xlu0 %v9535_v17, %s7298_s4 }
0x1fd4   : > { %4416 = vrot.lane.b32.xlu1 %v9549_v32, %s10088_s19  ;;  %4398 = vrot.lane.b32.xlu0 %v9541_v30, %s7298_s4 }
0x1fd8   : > { %4374 = vrot.lane.b32.xlu0 %v9535_v17, %s10087_s23 }
0x1fdc   : > { %4370 = vrot.lane.b32.xlu0 %v9541_v30, %s10087_s23 }
0x2018   : > { %v4333_v23 = vpop.permute.xlu1 %4332 }
0x201e   : > { %v4335_v26 = vpop.permute.xlu1 %4334 }
0x2022   : > { %v4331_v5 = vpop.permute.xlu1 %4330  ;;  %v4411_v29 = vpop.permute.xlu0 %4410 }
0x2026   : > { %v4337_v10 = vpop.permute.xlu1 %4336  ;;  %v4413_v34 = vpop.permute.xlu0 %4412 }
0x202a   : > { %v4353_v35 = vpop.permute.xlu1 %4352  ;;  %v4415_v36 = vpop.permute.xlu0 %4414 }
0x202b   : > { %6488 = vmatprep.subr.mxu0 %v4415_v36 }
0x202c   : > { %6489 = vmatpush3.msk.msra.mxu0 %vm9449_vm5, %v4335_v26 }
0x202d   : > { %6490 = vmatprep.subr.mxu0 %v4413_v34 }
0x202e   : > { %v4393_v37 = vpop.permute.xlu1 %4392  ;;  %6491 = vmatpush3.msk.msra.mxu0 %vm9449_vm5, %v4333_v23  ;;  %v4357_v38 = vpop.permute.xlu0 %4356 }
0x202f   : > { %6492 = vmatprep.subr.mxu0 %v4411_v29 }
0x2030   : > { %6493 = vmatpush3.msk.msra.mxu0 %vm9449_vm5, %v4331_v5 }
0x2031   : > { %6494 = vmatprep.subr.msk.mxu0 %vm9449_vm5, %v4357_v38 }
0x2032   : > { %v4389_v15 = vpop.permute.xlu1 %4388  ;;  %6495 = vmatpush3.msk.msra.mxu0 %vm9457_vm6, %v4337_v10  ;;  %v4355_v39 = vpop.permute.xlu0 %4354 }
0x2033   : > { %6496 = vmatprep.subr.msk.mxu0 %vm9449_vm5, %v4355_v39 }
0x2034   : > { %6497 = vmatpush3.msk.msra.mxu0 %vm9457_vm6, %v4335_v26 }
0x2035   : > { %6498 = vmatprep.subr.msk.mxu0 %vm9449_vm5, %v4353_v35 }
0x2036   : > { %v4405_v22 = vpop.permute.xlu1 %4404  ;;  %6499 = vmatpush3.msk.msra.mxu0 %vm9457_vm6, %v4333_v23  ;;  %v4351_v40 = vpop.permute.xlu0 %4350 }
0x2037   : > { %6500 = vmatprep.subr.msk.mxu0 %vm9449_vm5, %v4351_v40 }
0x2038   : > { %6501 = vmatpush3.msk.msra.mxu0 %vm9457_vm6, %v4331_v5 }
0x2039   : > { %6502 = vmatprep.subr.msk.mxu0 %vm9457_vm6, %v4357_v38 }
0x203a   : > { %v4401_v41 = vpop.permute.xlu1 %4400  ;;  %6503 = vmatpush3.msra.mxu0 %v4393_v37  ;;  %v4391_v42 = vpop.permute.xlu0 %4390 }
0x203b   : > { %6504 = vmatprep.subr.msk.mxu0 %vm9457_vm6, %v4355_v39 }
0x203c   : > { %6505 = vmatpush3.msra.mxu0 %v4391_v42 }
0x203d   : > { %6506 = vmatprep.subr.msk.mxu0 %vm9457_vm6, %v4353_v35 }
0x203e   : > { %v4377_v43 = vpop.permute.xlu1 %4376  ;;  %6507 = vmatpush3.msra.mxu0 %v4389_v15  ;;  %v4387_v45 = vpop.permute.xlu0 %4386 }
0x203f   : > { %6508 = vmatprep.subr.msk.mxu0 %vm9457_vm6, %v4351_v40  ;;  %6775 = vmatprep.subr.msk.mxu1 %vm9457_vm6, %v4377_v43 }
0x2040   : > { %6509 = vmatpush3.msra.mxu0 %v4387_v45  ;;  %6776 = vmatpush3.msk.msra.mxu1 %vm9457_vm6, %v4377_v43  ;;  %v4606_v43 = vld [vmem:[#allocation11 + $0xc8] sm:$0xff]  ;;  %v4607_v45 = vld [vmem:[#allocation11 + $0xd0] sm:$0xff] }
0x2041   : > { %6510 = vmatprep.subr.mxu0 %v4405_v22 }
0x2042   : > { %6511 = vmatpush3.msk.msra.mxu0 %vm9449_vm5, %v9549_v32  ;;  %v4403_v47 = vpop.permute.xlu0 %4402  ;;  %v4373_v16 = vpop.permute.xlu1 %4372 }
0x2043   : > { %6512 = vmatprep.subr.mxu0 %v4403_v47 }
0x2044   : > { %6513 = vmatpush3.msk.msra.mxu0 %vm9449_vm5, %v9535_v17 }
0x2045   : > { %6514 = vmatprep.subr.mxu0 %v4401_v41 }
0x2046   : > { %6515 = vmatpush3.msk.msra.mxu0 %vm9449_vm5, %v9529_v14  ;;  %v4399_v52 = vpop.permute.xlu0 %4398  ;;  %v4417_v60 = vpop.permute.xlu1 %4416 }
0x2047   : > { %6516 = vmatprep.subr.mxu0 %v4399_v52 }
0x2048   : > { %6517 = vmatpush3.msk.msra.mxu0 %vm9449_vm5, %v9541_v30 }
0x2049   : > { %6518 = vmatprep.subr.msk.mxu0 %vm9449_vm5, %v4337_v10 }
0x204a   : > { %6519 = vmatpush3.msk.msra.mxu0 %vm550_vm13, %v7284_v59  ;;  %v4375_v53 = vpop.permute.xlu0 %4374 }
0x204b   : > { %4499 = vmatmul.mubr.f32.vlgmr.msra.gmra.mxu0 %v3966_v21  ;;  %6777 = vmatprep.subr.msk.mxu1 %vm9457_vm6, %v4375_v53 }
0x204c   : > { %6778 = vmatpush3.msk.msra.mxu1 %vm9457_vm6, %v4375_v53  ;;  %4503 = vmatprep.mubr.f32.mxu0 %v3970_v24 }
0x204d   : > { %6779 = vmatprep.subr.msk.mxu1 %vm9457_vm6, %v4373_v16 }
0x204e   : > { %6780 = vmatpush3.msk.msra.mxu1 %vm9457_vm6, %v4373_v16  ;;  %v4371_v57 = vpop.permute.xlu0 %4370 }
0x204f   : > { %4504 = vmatmul.mubr.f32.gmra.mxu0 %v3969_v54  ;;  %6781 = vmatprep.subr.msk.mxu1 %vm9457_vm6, %v4371_v57 }
0x2050   : > { %6782 = vmatpush3.msk.msra.mxu1 %vm9457_vm6, %v4371_v57  ;;  %4508 = vmatprep.mubr.f32.mxu0 %v3973_v56 }
0x2051   : > { %6783 = vmatprep.subr.mxu1 %v4417_v60 }
0x2052   : > { %6784 = vmatpush3.msra.mxu1 %v4417_v60 }
0x2053   : > { %4509 = vmatmul.mubr.f32.gmra.mxu0 %v3972_v61  ;;  %6786 = vmatmul.mubr.msk.f32.vlgmr.msra.gmra.mxu1 %vm2192_vm14, %v3971_v62 }
0x2054   : > { %4513 = vmatprep.mubr.f32.mxu0 %v3976_v63  ;;  %6788 = vmatprep.mubr.msk.f32.mxu1 %vm2192_vm14, %v3974_v0 }
0x2057   : > { %4514 = vmatmul.mubr.f32.gmra.mxu0 %v3975_v1  ;;  %6789 = vmatmul.mubr.msk.f32.gmra.mxu1 %vm2192_vm14, %v3977_v2 }
0x2058   : > { %4834 = vmatprep.mubr.f32.mxu0 %v4606_v43  ;;  %6801 = vmatprep.mubr.msk.f32.mxu1 %vm2192_vm14, %v4607_v45 }
0x210b   : > { %v6520_v3 = vpop.f32.mrf.mxu0 }
0x210d   : > { %v6521_v4 = vpop.f32.mrf.mxu0 }
0x210e   : > { %v6522_v25 = vadd.f32 %v6521_v4, %v6520_v3 }
0x210f   : > { %v6523_v49 = vpop.f32.mrf.mxu0 }
0x2110   : > { %v4501_v20 = vadd.f32 %v6522_v25, %v9370_v31  ;;  %v4612_v25 = vld [vmem:[#allocation11 + $0xf8] sm:$0xff] }
0x2111   : > { %v6524_v6 = vpop.f32.mrf.mxu0 }
0x2112   : > { %v6525_v11 = vadd.f32 %v6524_v6, %v6523_v49 }
0x2113   : > { %v6526_v50 = vpop.f32.mrf.mxu0  ;;  %v6787_v12 = vpop.f32.mrf.mxu1 }
0x2114   : > { %v4506_v13 = vadd.f32 %v9367_v44, %v6525_v11 }
0x2115   : > { %v6527_v14 = vpop.f32.mrf.mxu0  ;;  %v4585_v18 = vpop.f32.mrf.mxu1 }
0x2116   : > { %v9659_v17 = vadd.f32 %v6787_v12, %v4506_v13  ;;  %v6528_v19 = vadd.f32 %v6527_v14, %v6526_v50  ;;  %v9667_v44 = vadd.f32 %v4585_v18, %v4501_v20  ;;  %v4605_v12 = vld [vmem:[#allocation11 + $0xc0] sm:$0xff]  ;;  %v4608_v18 = vld [vmem:[#allocation11 + $0xd8] sm:$0xff] }
0x2117   : > { %v6529_v58 = vpop.f32.mrf.mxu0  ;;  %v6790_v27 = vpop.f32.mrf.mxu1  ;;  %v4609_v13 = vld [vmem:[#allocation11 + $0xe0] sm:$0xff] }
0x2118   : > { %v4631_v30 = vmax.f32 %v9659_v17, 0.0  ;;  %v4511_v48 = vadd.f32 %v6528_v19, %v9376_v28  ;;  %v4630_v28 = vmax.f32 %v9667_v44, 0.0 }
0x2119   : > { %v6530_v32 = vpop.f32.mrf.mxu0  ;;  %v4595_v33 = vpop.f32.mrf.mxu1 }
0x211a   : > { %v6531_v23 = vadd.f32 %v6530_v32, %v6529_v58  ;;  %v9664_v26 = vadd.f32 %v4595_v33, %v4511_v48  ;;  %4640 = vrot.lane.b32.xlu1 %v4631_v30, %s7297_s1  ;;  %v4610_v58 = vld [vmem:[#allocation11 + $0xe8] sm:$0xff]  ;;  %v4611_v30 = vld [vmem:[#allocation11 + $0xf0] sm:$0xff]  ;;  %v4616_v32 = vld [vmem:[#allocation11 + $0x118] sm:$0xff] }
0x211b   : > { %v4615_v48 = vld [vmem:[#allocation11 + $0x110] sm:$0xff]  ;;  %v4614_v33 = vld [vmem:[#allocation11 + $0x108] sm:$0xff] }
0x211c   : > { %v4516_v5 = vadd.f32 %v9373_v46, %v6531_v23  ;;  %v4632_v29 = vmax.f32 %v9664_v26, 0.0 }
0x211e   : > { %v9671_v10 = vadd.f32 %v6790_v27, %v4516_v5  ;;  %4642 = vrot.lane.b32.xlu0 %v4632_v29, %s7297_s1  ;;  %v4613_v27 = vld [vmem:[#allocation11 + $0x100] sm:$0xff] }
0x2120   : > { %v4633_v34 = vmax.f32 %v9671_v10, 0.0 }
0x2122   : > { %4644 = vrot.lane.b32.xlu1 %v4633_v34, %s7297_s1  ;;  %4638 = vrot.lane.b32.xlu0 %v4630_v28, %s7297_s1 }
0x218c   : > { %v4641_v35 = vpop.permute.xlu1 %4640 }
0x218d   : > { %v4651_v38 = vsel %vm3998_vm1, 0.0, %v4641_v35 }
0x218e   : > { %v9688_v15 = vsel %vm4003_vm4, %v4651_v38, 0.0 }
0x2190   : > { %v4643_v31 = vpop.permute.xlu0 %4642 }
0x2191   : > { %v4652_v39 = vsel %vm3998_vm1, 0.0, %v4643_v31 }
0x2192   : > { %v9696_v40 = vsel %vm4003_vm4, %v4652_v39, 0.0 }
0x2194   : > { %v4639_v36 = vpop.permute.xlu0 %4638  ;;  %v4645_v22 = vpop.permute.xlu1 %4644 }
0x2195   : > { %v4650_v37 = vsel %vm3998_vm1, 0.0, %v4639_v36  ;;  %v4653_v41 = vsel %vm3998_vm1, 0.0, %v4645_v22 }
0x2196   : > { %v9680_v46 = vsel %vm4003_vm4, %v4650_v37, 0.0  ;;  %v9704_v42 = vsel %vm4003_vm4, %v4653_v41, 0.0 }
0x2197   : > { %4666 = vrot.lane.b32.xlu1 %v9680_v46, %s10090_s30  ;;  %4746 = vrot.lane.b32.xlu0 %v9680_v46, %s10088_s19 }
0x219b   : > { %4668 = vrot.lane.b32.xlu1 %v9688_v15, %s10090_s30  ;;  %4748 = vrot.lane.b32.xlu0 %v9688_v15, %s10088_s19 }
0x219f   : > { %4670 = vrot.lane.b32.xlu1 %v9696_v40, %s10090_s30  ;;  %4750 = vrot.lane.b32.xlu0 %v9696_v40, %s10088_s19 }
0x21a3   : > { %4672 = vrot.lane.b32.xlu1 %v9704_v42, %s10090_s30  ;;  %4690 = vrot.lane.b32.xlu0 %v9696_v40, %s10094_s26 }
0x21a7   : > { %4688 = vrot.lane.b32.xlu1 %v9688_v15, %s10094_s26  ;;  %4692 = vrot.lane.b32.xlu0 %v9704_v42, %s10094_s26 }
0x21ab   : > { %4728 = vrot.lane.b32.xlu1 %v9704_v42, %s10092_s25  ;;  %4686 = vrot.lane.b32.xlu0 %v9680_v46, %s10094_s26 }
0x21af   : > { %4724 = vrot.lane.b32.xlu1 %v9688_v15, %s10092_s25  ;;  %4726 = vrot.lane.b32.xlu0 %v9696_v40, %s10092_s25 }
0x21b3   : > { %4740 = vrot.lane.b32.xlu1 %v9704_v42, %s7298_s4  ;;  %4722 = vrot.lane.b32.xlu0 %v9680_v46, %s10092_s25 }
0x21b7   : > { %4736 = vrot.lane.b32.xlu1 %v9688_v15, %s7298_s4  ;;  %4738 = vrot.lane.b32.xlu0 %v9696_v40, %s7298_s4 }
0x21bb   : > { %4734 = vrot.lane.b32.xlu1 %v9680_v46, %s7298_s4  ;;  %4712 = vrot.lane.b32.xlu0 %v9704_v42, %s10087_s23 }
0x21bf   : > { %4708 = vrot.lane.b32.xlu1 %v9688_v15, %s10087_s23  ;;  %4710 = vrot.lane.b32.xlu0 %v9696_v40, %s10087_s23 }
0x21c3   : > { %4752 = vrot.lane.b32.xlu1 %v9704_v42, %s10088_s19  ;;  %4706 = vrot.lane.b32.xlu0 %v9680_v46, %s10087_s23 }
0x2209   : > { %v4667_v47 = vpop.permute.xlu1 %4666  ;;  %v4747_v52 = vpop.permute.xlu0 %4746 }
0x220d   : > { %v4669_v21 = vpop.permute.xlu1 %4668  ;;  %v4749_v24 = vpop.permute.xlu0 %4748 }
0x2211   : > { %v4671_v16 = vpop.permute.xlu1 %4670  ;;  %v4751_v53 = vpop.permute.xlu0 %4750 }
0x2212   : > { %6541 = vmatprep.subr.mxu0 %v4751_v53 }
0x2213   : > { %6542 = vmatpush3.msk.msra.mxu0 %vm9449_vm5, %v4671_v16 }
0x2214   : > { %6543 = vmatprep.subr.mxu0 %v4749_v24 }
0x2215   : > { %v4673_v54 = vpop.permute.xlu1 %4672  ;;  %6544 = vmatpush3.msk.msra.mxu0 %vm9449_vm5, %v4669_v21  ;;  %v4691_v56 = vpop.permute.xlu0 %4690 }
0x2216   : > { %6545 = vmatprep.subr.mxu0 %v4747_v52 }
0x2217   : > { %6546 = vmatpush3.msk.msra.mxu0 %vm9449_vm5, %v4667_v47 }
0x2219   : > { %v4689_v57 = vpop.permute.xlu1 %4688  ;;  %v4693_v60 = vpop.permute.xlu0 %4692 }
0x221a   : > { %6547 = vmatprep.subr.msk.mxu0 %vm9449_vm5, %v4693_v60 }
0x221b   : > { %6548 = vmatpush3.msk.msra.mxu0 %vm9457_vm6, %v4673_v54 }
0x221c   : > { %6549 = vmatprep.subr.msk.mxu0 %vm9449_vm5, %v4691_v56 }
0x221d   : > { %v4729_v61 = vpop.permute.xlu1 %4728  ;;  %6550 = vmatpush3.msk.msra.mxu0 %vm9457_vm6, %v4671_v16  ;;  %v4687_v62 = vpop.permute.xlu0 %4686 }
0x221e   : > { %6551 = vmatprep.subr.msk.mxu0 %vm9449_vm5, %v4689_v57 }
0x221f   : > { %6552 = vmatpush3.msk.msra.mxu0 %vm9457_vm6, %v4669_v21 }
0x2220   : > { %6553 = vmatprep.subr.msk.mxu0 %vm9449_vm5, %v4687_v62 }
0x2221   : > { %v4725_v63 = vpop.permute.xlu1 %4724  ;;  %6554 = vmatpush3.msk.msra.mxu0 %vm9457_vm6, %v4667_v47  ;;  %v4727_v0 = vpop.permute.xlu0 %4726 }
0x2222   : > { %6555 = vmatprep.subr.msk.mxu0 %vm9457_vm6, %v4693_v60 }
0x2223   : > { %6556 = vmatpush3.msra.mxu0 %v4729_v61 }
0x2224   : > { %6557 = vmatprep.subr.msk.mxu0 %vm9457_vm6, %v4691_v56 }
0x2225   : > { %v4741_v1 = vpop.permute.xlu1 %4740  ;;  %6558 = vmatpush3.msra.mxu0 %v4727_v0  ;;  %v4723_v2 = vpop.permute.xlu0 %4722 }
0x2226   : > { %6559 = vmatprep.subr.msk.mxu0 %vm9457_vm6, %v4689_v57 }
0x2227   : > { %6560 = vmatpush3.msra.mxu0 %v4725_v63 }
0x2228   : > { %6561 = vmatprep.subr.msk.mxu0 %vm9457_vm6, %v4687_v62 }
0x2229   : > { %v4737_v3 = vpop.permute.xlu1 %4736  ;;  %6562 = vmatpush3.msra.mxu0 %v4723_v2  ;;  %v4739_v4 = vpop.permute.xlu0 %4738 }
0x222a   : > { %6563 = vmatprep.subr.mxu0 %v4741_v1 }
0x222b   : > { %6564 = vmatpush3.msk.msra.mxu0 %vm9449_vm5, %v9704_v42 }
0x222c   : > { %6565 = vmatprep.subr.mxu0 %v4739_v4  ;;  %v4620_v4 = vld [vmem:[#allocation11 + $0x130] sm:$0xff] }
0x222d   : > { %v4735_v49 = vpop.permute.xlu1 %4734  ;;  %6566 = vmatpush3.msk.msra.mxu0 %vm9449_vm5, %v9696_v40  ;;  %v4713_v6 = vpop.permute.xlu0 %4712 }
0x222e   : > { %6567 = vmatprep.subr.mxu0 %v4737_v3  ;;  %6791 = vmatprep.subr.msk.mxu1 %vm9457_vm6, %v4713_v6  ;;  %v4619_v3 = vld [vmem:[#allocation11 + $0x128] sm:$0xff] }
0x222f   : > { %6568 = vmatpush3.msk.msra.mxu0 %vm9449_vm5, %v9688_v15  ;;  %6792 = vmatpush3.msk.msra.mxu1 %vm9457_vm6, %v4713_v6 }
0x2230   : > { %6569 = vmatprep.subr.mxu0 %v4735_v49 }
0x2231   : > { %v4709_v11 = vpop.permute.xlu1 %4708  ;;  %6570 = vmatpush3.msk.msra.mxu0 %vm9449_vm5, %v9680_v46  ;;  %v4711_v50 = vpop.permute.xlu0 %4710 }
0x2232   : > { %6571 = vmatprep.subr.msk.mxu0 %vm9449_vm5, %v4673_v54  ;;  %6793 = vmatprep.subr.msk.mxu1 %vm9457_vm6, %v4711_v50 }
0x2233   : > { %6572 = vmatpush3.msk.msra.mxu0 %vm550_vm13, %v7284_v59  ;;  %6794 = vmatpush3.msk.msra.mxu1 %vm9457_vm6, %v4711_v50 }
0x2234   : > { %4835 = vmatmul.mubr.f32.vlgmr.msra.gmra.mxu0 %v4605_v12  ;;  %6795 = vmatprep.subr.msk.mxu1 %vm9457_vm6, %v4709_v11 }
0x2235   : > { %6796 = vmatpush3.msk.msra.mxu1 %vm9457_vm6, %v4709_v11  ;;  %v4707_v14 = vpop.permute.xlu0 %4706  ;;  %4839 = vmatprep.mubr.f32.mxu0 %v4609_v13  ;;  %v4753_v19 = vpop.permute.xlu1 %4752 }
0x2236   : > { %6797 = vmatprep.subr.msk.mxu1 %vm9457_vm6, %v4707_v14 }
0x2237   : > { %6798 = vmatpush3.msk.msra.mxu1 %vm9457_vm6, %v4707_v14 }
0x2238   : > { %4840 = vmatmul.mubr.f32.gmra.mxu0 %v4608_v18  ;;  %6799 = vmatprep.subr.mxu1 %v4753_v19 }
0x2239   : > { %6800 = vmatpush3.msra.mxu1 %v4753_v19  ;;  %4844 = vmatprep.mubr.f32.mxu0 %v4612_v25 }
0x223a   : > { %6802 = vmatmul.mubr.msk.f32.vlgmr.msra.gmra.mxu1 %vm2192_vm14, %v4610_v58 }
0x223b   : > { %6804 = vmatprep.mubr.msk.f32.mxu1 %vm2192_vm14, %v4613_v27 }
0x223c   : > { %4845 = vmatmul.mubr.f32.gmra.mxu0 %v4611_v30 }
0x223d   : > { %4849 = vmatprep.mubr.f32.mxu0 %v4615_v48 }
0x223e   : > { %6805 = vmatmul.mubr.msk.f32.gmra.mxu1 %vm2192_vm14, %v4616_v32 }
0x223f   : > { %5144 = vmatprep.mubr.f32.mxu1 %v4619_v3  ;;  %v5445_v3 = vld [vmem:[#allocation12 + $0xe8] sm:$0xff] }
0x2240   : > { %4850 = vmatmul.mubr.f32.gmra.mxu0 %v4614_v33 }
0x2241   : > { %6817 = vmatprep.mubr.msk.f32.mxu0 %vm2192_vm14, %v4620_v4 }
0x22f4   : > { %v6573_v20 = vpop.f32.mrf.mxu0 }
0x22f6   : > { %v6574_v23 = vpop.f32.mrf.mxu0 }
0x22f7   : > { %v6575_v40 = vadd.f32 %v6574_v23, %v6573_v20 }
0x22f8   : > { %v6576_v5 = vpop.f32.mrf.mxu0 }
0x22fa   : > { %v6577_v29 = vpop.f32.mrf.mxu0  ;;  %v6803_v28 = vpop.f32.mrf.mxu1 }
0x22fb   : > { %v6578_v34 = vadd.f32 %v6577_v29, %v6576_v5 }
0x22fc   : > { %v6579_v31 = vpop.f32.mrf.mxu0  ;;  %v4921_v35 = vpop.f32.mrf.mxu1 }
0x22fd   : > { %v4927_v36 = vadd.f32 %v6803_v28, %v6578_v34  ;;  %v4922_v43 = vadd.f32 %v6575_v40, %v4921_v35  ;;  %v4622_v35 = vld [vmem:[#allocation11 + $0x140] sm:$0xff] }
0x22fe   : > { %v6580_v37 = vpop.f32.mrf.mxu0  ;;  %v6806_v46 = vpop.f32.mrf.mxu1 }
0x22ff   : > { %v4941_v38 = vmax.f32 %v4927_v36, 0.0  ;;  %v6581_v15 = vadd.f32 %v6580_v37, %v6579_v31  ;;  %v4940_v21 = vmax.f32 %v4922_v43, 0.0  ;;  %v4618_v31 = vld [vmem:[#allocation11 + $0x120] sm:$0xff] }
0x2300   : > { %v6582_v39 = vpop.f32.mrf.mxu0  ;;  %v4931_v22 = vpop.f32.mrf.mxu1 }
0x2301   : > { %v4932_v41 = vadd.f32 %v6581_v15, %v4931_v22  ;;  %4950 = vrot.lane.b32.xlu1 %v4941_v38, %s7297_s1  ;;  %v4623_v38 = vld [vmem:[#allocation11 + $0x148] sm:$0xff]  ;;  %v4626_v15 = vld [vmem:[#allocation11 + $0x160] sm:$0xff]  ;;  %v4628_v22 = vld [vmem:[#allocation11 + $0x170] sm:$0xff] }
0x2302   : > { %v6583_v42 = vpop.f32.mrf.mxu0 }
0x2303   : > { %v4942_v45 = vmax.f32 %v4932_v41, 0.0  ;;  %v6584_v47 = vadd.f32 %v6583_v42, %v6582_v39  ;;  %v4629_v39 = vld [vmem:[#allocation11 + $0x178] sm:$0xff] }
0x2305   : > { %v4937_v52 = vadd.f32 %v6806_v46, %v6584_v47  ;;  %4952 = vrot.lane.b32.xlu0 %v4942_v45, %s7297_s1  ;;  %v4621_v46 = vld [vmem:[#allocation11 + $0x138] sm:$0xff] }
0x2307   : > { %v4943_v24 = vmax.f32 %v4937_v52, 0.0 }
0x2309   : > { %4954 = vrot.lane.b32.xlu1 %v4943_v24, %s7297_s1  ;;  %4948 = vrot.lane.b32.xlu0 %v4940_v21, %s7297_s1  ;;  %s7311_s1 = smov 60  }
0x2373   : > { %v4951_v53 = vpop.permute.xlu1 %4950 }
0x2374   : > { %v4961_v60 = vsel %vm3998_vm1, 0.0, %v4951_v53 }
0x2375   : > { %v9823_v61 = vsel %vm4003_vm4, %v4961_v60, 0.0 }
0x2377   : > { %v4953_v16 = vpop.permute.xlu0 %4952 }
0x2378   : > { %v4962_v62 = vsel %vm3998_vm1, 0.0, %v4953_v16 }
0x2379   : > { %v9831_v63 = vsel %vm4003_vm4, %v4962_v62, 0.0 }
0x237b   : > { %v4949_v54 = vpop.permute.xlu0 %4948  ;;  %v4955_v0 = vpop.permute.xlu1 %4954 }
0x237c   : > { %v4960_v56 = vsel %vm3998_vm1, 0.0, %v4949_v54  ;;  %v4963_v1 = vsel %vm3998_vm1, 0.0, %v4955_v0  ;;  %vm5316_vm1 = vcmask 422276  }
0x237d   : > { %v9815_v57 = vsel %vm4003_vm4, %v4960_v56, 0.0  ;;  %v4967_v2 = vsel %vm4003_vm4, %v4963_v1, 0.0  ;;  %v5447_v1 = vld [vmem:[#allocation12 + $0xf8] sm:$0xff]  ;;  %vm5321_vm4 = vcmask 456101  }
0x237e   : > { %4976 = vrot.lane.b32.xlu1 %v9815_v57, %s10090_s30  ;;  %5056 = vrot.lane.b32.xlu0 %v9815_v57, %s10088_s19 }
0x2382   : > { %4978 = vrot.lane.b32.xlu1 %v9823_v61, %s10090_s30  ;;  %5058 = vrot.lane.b32.xlu0 %v9823_v61, %s10088_s19 }
0x2386   : > { %4980 = vrot.lane.b32.xlu1 %v9831_v63, %s10090_s30  ;;  %5060 = vrot.lane.b32.xlu0 %v9831_v63, %s10088_s19 }
0x238a   : > { %4998 = vrot.lane.b32.xlu1 %v9823_v61, %s10094_s26  ;;  %5000 = vrot.lane.b32.xlu0 %v9831_v63, %s10094_s26 }
0x238e   : > { %4982 = vrot.lane.b32.xlu1 %v4967_v2, %s10090_s30  ;;  %5002 = vrot.lane.b32.xlu0 %v4967_v2, %s10094_s26  ;;  %s7299_s30 = smov 12  }
0x2392   : > { %5034 = vrot.lane.b32.xlu1 %v9823_v61, %s10092_s25  ;;  %4996 = vrot.lane.b32.xlu0 %v9815_v57, %s10094_s26 }
0x2396   : > { %5038 = vrot.lane.b32.xlu1 %v4967_v2, %s10092_s25  ;;  %5036 = vrot.lane.b32.xlu0 %v9831_v63, %s10092_s25 }
0x239a   : > { %5020 = vrot.lane.b32.xlu1 %v9831_v63, %s10087_s23  ;;  %5032 = vrot.lane.b32.xlu0 %v9815_v57, %s10092_s25  ;;  %s7300_s25 = smov 24  }
0x239e   : > { %5050 = vrot.lane.b32.xlu1 %v4967_v2, %s7298_s4  ;;  %5048 = vrot.lane.b32.xlu0 %v9831_v63, %s7298_s4 }
0x23a2   : > { %5022 = vrot.lane.b32.xlu1 %v4967_v2, %s10087_s23  ;;  %5046 = vrot.lane.b32.xlu0 %v9823_v61, %s7298_s4 }
0x23a6   : > { %5018 = vrot.lane.b32.xlu1 %v9823_v61, %s10087_s23  ;;  %5044 = vrot.lane.b32.xlu0 %v9815_v57, %s7298_s4  ;;  %s7312_s4 = smov 72  }
0x23aa   : > { %5062 = vrot.lane.b32.xlu1 %v4967_v2, %s10088_s19  ;;  %5016 = vrot.lane.b32.xlu0 %v9815_v57, %s10087_s23  ;;  %s10100_s23 = smov 8   ;;  %s10101_s19 = smov 16  }
0x23f0   : > { %v4977_v49 = vpop.permute.xlu1 %4976  ;;  %v5057_v6 = vpop.permute.xlu0 %5056 }
0x23f4   : > { %v4979_v11 = vpop.permute.xlu1 %4978  ;;  %v5059_v50 = vpop.permute.xlu0 %5058 }
0x23f8   : > { %v4981_v12 = vpop.permute.xlu1 %4980  ;;  %v5061_v13 = vpop.permute.xlu0 %5060 }
0x23f9   : > { %6594 = vmatprep.subr.mxu1 %v5061_v13  ;;  %v5440_v13 = vld [vmem:[#allocation12 + $0xc0] sm:$0xff] }
0x23fa   : > { %6595 = vmatpush3.msk.msra.mxu1 %vm9449_vm5, %v4981_v12 }
0x23fb   : > { %6596 = vmatprep.subr.mxu1 %v5059_v50 }
0x23fc   : > { %v4999_v14 = vpop.permute.xlu1 %4998  ;;  %6597 = vmatpush3.msk.msra.mxu1 %vm9449_vm5, %v4979_v11  ;;  %v5001_v18 = vpop.permute.xlu0 %5000 }
0x23fd   : > { %6598 = vmatprep.subr.mxu1 %v5057_v6 }
0x23fe   : > { %6599 = vmatpush3.msk.msra.mxu1 %vm9449_vm5, %v4977_v49 }
0x2400   : > { %v4983_v25 = vpop.permute.xlu1 %4982  ;;  %v5003_v19 = vpop.permute.xlu0 %5002 }
0x2401   : > { %6600 = vmatprep.subr.msk.mxu1 %vm9449_vm5, %v5003_v19 }
0x2402   : > { %6601 = vmatpush3.msk.msra.mxu1 %vm9457_vm6, %v4983_v25 }
0x2403   : > { %6602 = vmatprep.subr.msk.mxu1 %vm9449_vm5, %v5001_v18 }
0x2404   : > { %v5035_v58 = vpop.permute.xlu1 %5034  ;;  %6603 = vmatpush3.msk.msra.mxu1 %vm9457_vm6, %v4981_v12  ;;  %v4997_v27 = vpop.permute.xlu0 %4996  ;;  %v5441_v12 = vld [vmem:[#allocation12 + $0xc8] sm:$0xff] }
0x2405   : > { %6604 = vmatprep.subr.msk.mxu1 %vm9449_vm5, %v4999_v14 }
0x2406   : > { %6605 = vmatpush3.msk.msra.mxu1 %vm9457_vm6, %v4979_v11  ;;  %v5442_v11 = vld [vmem:[#allocation12 + $0xd0] sm:$0xff] }
0x2407   : > { %6606 = vmatprep.subr.msk.mxu1 %vm9449_vm5, %v4997_v27 }
0x2408   : > { %v5039_v30 = vpop.permute.xlu1 %5038  ;;  %6607 = vmatpush3.msk.msra.mxu1 %vm9457_vm6, %v4977_v49  ;;  %v5037_v48 = vpop.permute.xlu0 %5036  ;;  %v5444_v49 = vld [vmem:[#allocation12 + $0xe0] sm:$0xff] }
0x2409   : > { %6608 = vmatprep.subr.msk.mxu1 %vm9457_vm6, %v5003_v19  ;;  %v5437_v19 = vld [vmem:[#allocation12 + $0xa8] sm:$0xff] }
0x240a   : > { %6609 = vmatpush3.msra.mxu1 %v5039_v30  ;;  %v5435_v30 = vld [vmem:[#allocation12 + $0x98] sm:$0xff] }
0x240b   : > { %6610 = vmatprep.subr.msk.mxu1 %vm9457_vm6, %v5001_v18 }
0x240c   : > { %v5021_v32 = vpop.permute.xlu1 %5020  ;;  %6611 = vmatpush3.msra.mxu1 %v5037_v48  ;;  %v5033_v33 = vpop.permute.xlu0 %5032  ;;  %v5434_v48 = vld [vmem:[#allocation12 + $0x90] sm:$0xff] }
0x240d   : > { %6612 = vmatprep.subr.msk.mxu1 %vm9457_vm6, %v4999_v14  ;;  %v5439_v14 = vld [vmem:[#allocation12 + $0xb8] sm:$0xff] }
0x240e   : > { %6613 = vmatpush3.msra.mxu1 %v5035_v58  ;;  %v5436_v58 = vld [vmem:[#allocation12 + $0xa0] sm:$0xff] }
0x240f   : > { %6614 = vmatprep.subr.msk.mxu1 %vm9457_vm6, %v4997_v27 }
0x2410   : > { %v5051_v20 = vpop.permute.xlu1 %5050  ;;  %6615 = vmatpush3.msra.mxu1 %v5033_v33  ;;  %v5049_v23 = vpop.permute.xlu0 %5048  ;;  %v5432_v33 = vld [vmem:[#allocation12 + $0x80] sm:$0xff] }
0x2411   : > { %6616 = vmatprep.subr.mxu1 %v5051_v20  ;;  %v5431_v20 = vld [vmem:[#allocation12 + $0x78] sm:$0xff] }
0x2412   : > { %6617 = vmatpush3.msk.msra.mxu1 %vm9449_vm5, %v4967_v2  ;;  %v5446_v2 = vld [vmem:[#allocation12 + $0xf0] sm:$0xff] }
0x2413   : > { %6618 = vmatprep.subr.mxu1 %v5049_v23  ;;  %v5430_v23 = vld [vmem:[#allocation12 + $0x70] sm:$0xff] }
0x2414   : > { %v5023_v5 = vpop.permute.xlu1 %5022  ;;  %6619 = vmatpush3.msk.msra.mxu1 %vm9449_vm5, %v9831_v63  ;;  %v5047_v29 = vpop.permute.xlu0 %5046 }
0x2415   : > { %6620 = vmatprep.subr.mxu1 %v5047_v29  ;;  %6807 = vmatprep.subr.msk.mxu0 %vm9457_vm6, %v5023_v5  ;;  %v5428_v29 = vld [vmem:[#allocation12 + $0x60] sm:$0xff] }
0x2416   : > { %6621 = vmatpush3.msk.msra.mxu1 %vm9449_vm5, %v9823_v61  ;;  %6808 = vmatpush3.msk.msra.mxu0 %vm9457_vm6, %v5023_v5  ;;  %v5429_v5 = vld [vmem:[#allocation12 + $0x68] sm:$0xff] }
0x2417   : > { %6809 = vmatprep.subr.msk.mxu0 %vm9457_vm6, %v5021_v32 }
0x2418   : > { %6810 = vmatpush3.msk.msra.mxu0 %vm9457_vm6, %v5021_v32  ;;  %v5019_v28 = vpop.permute.xlu1 %5018  ;;  %v5045_v34 = vpop.permute.xlu0 %5044 }
0x2419   : > { %6622 = vmatprep.subr.mxu1 %v5045_v34  ;;  %6811 = vmatprep.subr.msk.mxu0 %vm9457_vm6, %v5019_v28  ;;  %v5426_v34 = vld [vmem:[#allocation12 + $0x50] sm:$0xff] }
0x241a   : > { %6623 = vmatpush3.msk.msra.mxu1 %vm9449_vm5, %v9815_v57  ;;  %6812 = vmatpush3.msk.msra.mxu0 %vm9457_vm6, %v5019_v28  ;;  %v5427_v28 = vld [vmem:[#allocation12 + $0x58] sm:$0xff] }
0x241b   : > { %6624 = vmatprep.subr.msk.mxu1 %vm9449_vm5, %v4983_v25  ;;  %v5438_v25 = vld [vmem:[#allocation12 + $0xb0] sm:$0xff]  ;;  %vm5326_vm5 = vcmask 489926  }
0x241c   : > { %6625 = vmatpush3.msk.msra.mxu1 %vm550_vm13, %v7284_v59  ;;  %v5017_v36 = vpop.permute.xlu0 %5016  ;;  %v5063_v37 = vpop.permute.xlu1 %5062  ;;  %v4624_v59 = vld [vmem:[#allocation11 + $0x150] sm:$0xff]  ;;  %vm5254_vm13 = vcmask 24576  }
0x241d   : > { %5145 = vmatmul.mubr.f32.vlgmr.msra.gmra.mxu1 %v4618_v31  ;;  %6813 = vmatprep.subr.msk.mxu0 %vm9457_vm6, %v5017_v36  ;;  %v5425_v31 = vld [vmem:[#allocation12 + $0x48] sm:$0xff] }
0x241e   : > { %6814 = vmatpush3.msk.msra.mxu0 %vm9457_vm6, %v5017_v36  ;;  %5149 = vmatprep.mubr.f32.mxu1 %v4622_v35  ;;  %v5424_v35 = vld [vmem:[#allocation12 + $0x40] sm:$0xff]  ;;  %v5423_v36 = vld [vmem:[#allocation12 + $0x38] sm:$0xff]  ;;  %vm5331_vm6 = vcmask 523751  }
0x241f   : > { %6815 = vmatprep.subr.mxu0 %v5063_v37  ;;  %5460 = vmatprep.subr.mxu1 %v5447_v1 }
0x2420   : > { %6816 = vmatpush3.msra.mxu0 %v5063_v37  ;;  %5461 = vmatpush1.msra.mxu1 %v5446_v2  ;;  %v5422_v37 = vld [vmem:[#allocation12 + $0x30] sm:$0xff] }
0x2421   : > { %5150 = vmatmul.mubr.f32.gmra.mxu1 %v4621_v46  ;;  %6818 = vmatmul.mubr.msk.f32.vlgmr.msra.gmra.mxu0 %vm2192_vm14, %v4623_v38  ;;  %v5421_v46 = vld [vmem:[#allocation12 + $0x28] sm:$0xff]  ;;  %v5420_v38 = vld [vmem:[#allocation12 + $0x20] sm:$0xff] }
0x2422   : > { %5154 = vmatprep.mubr.f32.mxu1 %v4625_v51  ;;  %6820 = vmatprep.mubr.msk.f32.mxu0 %vm2192_vm14, %v4626_v15  ;;  %v5419_v51 = vld [vmem:[#allocation12 + $0x18] sm:$0xff]  ;;  %v5418_v15 = vld [vmem:[#allocation12 + $0x10] sm:$0xff] }
0x2423   : > { %5462 = vmatprep.subr.mxu1 %v5445_v3 }
0x2424   : > { %5463 = vmatpush1.msra.mxu1 %v5444_v49 }
0x2425   : > { %5155 = vmatmul.mubr.f32.gmra.mxu1 %v4624_v59  ;;  %6821 = vmatmul.mubr.msk.f32.gmra.mxu0 %vm2192_vm14, %v4629_v39  ;;  %v5417_v59 = vld [vmem:[#allocation12 + $0x8] sm:$0xff]  ;;  %v5416_v39 = vld [vmem:[#allocation12] sm:$0xff]  ;;  %vm5290_vm14 = vcmask 261351  }
0x2426   : > { %5159 = vmatprep.mubr.f32.mxu1 %v4628_v22 }
0x2429   : > { %5160 = vmatmul.mubr.f32.gmra.mxu1 %v4627_v9 }
0x242a   : > { %5524 = vmatprep.mubr.f32.mxu1 %v7283_v7 }
0x24dd   : > { %v6626_v40 = vpop.f32.mrf.mxu1 }
0x24df   : > { %v6627_v41 = vpop.f32.mrf.mxu1 }
0x24e0   : > { %v6628_v42 = vadd.f32 %v6627_v41, %v6626_v40 }
0x24e1   : > { %v6629_v43 = vpop.f32.mrf.mxu1  ;;  %v6819_v45 = vpop.f32.mrf.mxu0 }
0x24e2   : > { %v5147_v47 = vadd.f32 %v6628_v42, %v9667_v44 }
0x24e3   : > { %v6630_v52 = vpop.f32.mrf.mxu1  ;;  %v5231_v21 = vpop.f32.mrf.mxu0 }
0x24e4   : > { %v5232_v24 = vadd.f32 %v5231_v21, %v5147_v47  ;;  %v6631_v16 = vadd.f32 %v6630_v52, %v6629_v43 }
0x24e5   : > { %v6632_v56 = vpop.f32.mrf.mxu1  ;;  %v6822_v61 = vpop.f32.mrf.mxu0 }
0x24e6   : > { %v5250_v53 = vmax.f32 %v5232_v24, 0.0  ;;  %v5152_v7 = vadd.f32 %v6631_v16, %v9659_v17 }
0x24e7   : > { %v6633_v57 = vpop.f32.mrf.mxu1  ;;  %v5241_v62 = vpop.f32.mrf.mxu0 }
0x24e8   : > { %5262 = vrot.lane.b32.xlu1 %v5250_v53, %s10100_s23  ;;  %5257 = vrot.lane.b32.xlu0 %v5250_v53, %s7296_s18  ;;  %5255 = vst.msk [vmem:[#allocation2] sm:$0x1] %vm5254_vm13, %v5250_v53  ;;  %v5237_v54 = vadd.f32 %v6819_v45, %v5152_v7  ;;  %v6634_v60 = vadd.f32 %v6633_v57, %v6632_v56  ;;  %s7306_s18 = smov 48   ;;  %s7313_s23 = smov 68   ;;  %vm5337_vm13 = vcmask 549376  }
0x24e9   : > { %v6635_v0 = vpop.f32.mrf.mxu1 }
0x24ea   : > { %v5251_v44 = vmax.f32 %v5237_v54, 0.0  ;;  %v5157_v17 = vadd.f32 %v6634_v60, %v9664_v26  ;;  %v5443_v26 = vld [vmem:[#allocation12 + $0xd8] sm:$0xff] }
0x24eb   : > { %v6636_v6 = vpop.f32.mrf.mxu1  ;;  %5464 = vmatprep.subr.mxu1 %v5443_v26 }
0x24ec   : > { %5272 = vrot.lane.b32.xlu1 %v5250_v53, %s10101_s19  ;;  %5267 = vrot.lane.b32.xlu0 %v5250_v53, %s7299_s30  ;;  %v5242_v63 = vadd.f32 %v5241_v62, %v5157_v17  ;;  %v6637_v50 = vadd.f32 %v6636_v6, %v6635_v0  ;;  %s7314_s19 = smov 80   ;;  %s7315_s30 = smov 76  }
0x24ed   : > { %5465 = vmatpush1.msra.mxu1 %v5442_v11 }
0x24ee   : > { %v5252_v4 = vmax.f32 %v5242_v63, 0.0  ;;  %5466 = vmatprep.subr.mxu1 %v5441_v12  ;;  %v5162_v18 = vadd.f32 %v6637_v50, %v9671_v10  ;;  %v5433_v10 = vld [vmem:[#allocation12 + $0x88] sm:$0xff]  ;;  %v5452_v50 = vsub.s32 0, %v7656_v55 }
0x24ef   : > { %5467 = vmatpush1.msra.mxu1 %v5440_v13  ;;  %v5448_v12 = vld [vmem:[%s10001_s11] sm:$0x3]  ;;  %v5456_v13 = vsub.s32 1, %v7656_v55 }
0x24f0   : > { %5282 = vrot.lane.b32.xlu1 %v5250_v53, %s7300_s25  ;;  %5277 = vrot.lane.b32.xlu0 %v5250_v53, %s7301_s10  ;;  %v5247_v27 = vadd.f32 %v6822_v61, %v5162_v18  ;;  %s7316_s25 = smov 88   ;;  %s7317_s10 = smov 84   ;;  %v7323_v18 = vmov 1966171168  }
0x24f1   : > { %5468 = vmatprep.subr.mxu1 %v5439_v14  ;;  %v5453_v14 = vrot.slane %v5448_v12, %v5452_v50 }
0x24f2   : > { %5469 = vmatpush1.msra.mxu1 %v5438_v25  ;;  %v5253_v32 = vmax.f32 %v5247_v27, 0.0  ;;  %v5537_v25 = vunpack.c.l.s4 %v7323_v18 }
0x24f3   : > { %5470 = vmatprep.subr.mxu1 %v5437_v19  ;;  %v5457_v19 = vrot.slane %v5448_v12, %v5456_v13 }
0x24f4   : > { %5293 = vrot.lane.b32.xlu1 %v5251_v44, %s7302_s20  ;;  %5287 = vrot.lane.b32.xlu0 %v5250_v53, %s7303_s2  ;;  %s10102_s20 = smov 96   ;;  %s7318_s2 = smov 92  }
0x24f5   : > { %5471 = vmatpush1.msra.mxu1 %v5436_v58 }
0x24f6   : > { %5472 = vmatprep.subr.mxu1 %v5435_v30  ;;  %v5538_v30 = vunpack.c.0.s8 %v5537_v25 }
0x24f7   : > { %5473 = vmatpush1.msra.mxu1 %v5434_v48 }
0x24f8   : > { %5303 = vrot.lane.b32.xlu1 %v5251_v44, %s7304_s0  ;;  %5298 = vrot.lane.b32.xlu0 %v5251_v44, %s7305_s3  ;;  %s7319_s0 = smov 104   ;;  %s7320_s3 = smov 100  }
0x24f9   : > { %5474 = vmatprep.subr.mxu1 %v5433_v10 }
0x24fa   : > { %5475 = vmatpush1.msra.mxu1 %v5432_v33 }
0x24fb   : > { %5476 = vmatprep.subr.mxu1 %v5431_v20  ;;  %v5541_v20 = vsub.s32 %v5538_v30, %v7656_v55 }
0x24fc   : > { %5313 = vrot.lane.b32.xlu1 %v5251_v44, %s7306_s18  ;;  %5308 = vrot.lane.b32.xlu0 %v5251_v44, %s7307_s6  ;;  %s10103_s18 = smov 112   ;;  %s7321_s6 = smov 108  }
0x24fd   : > { %5477 = vmatpush1.msra.mxu1 %v5430_v23 }
0x24fe   : > { %5478 = vmatprep.subr.mxu1 %v5429_v5 }
0x24ff   : > { %5479 = vmatpush1.msra.mxu1 %v5428_v29 }
0x2500   : > { %5323 = vrot.lane.b32.xlu1 %v5251_v44, %s7308_s28  ;;  %5318 = vrot.lane.b32.xlu0 %v5251_v44, %s7309_s29  ;;  %s7322_s28 = smov 116   ;;  %s5707_s29 = sshll.u32 %s7548_s8, 1 }
0x2501   : > { %5480 = vmatprep.subr.mxu1 %v5427_v28 }
0x2502   : > { %5481 = vmatpush1.msra.mxu1 %v5426_v34 }
0x2503   : > { %5482 = vmatprep.subr.mxu1 %v5425_v31 }
0x2504   : > { %5334 = vrot.lane.b32.xlu1 %v5252_v4, %s7310_s15  ;;  %5328 = vrot.lane.b32.xlu0 %v5251_v44, %s7311_s1  ;;  %s6113_s15 = sshll.u32 %s7411_s27, 5  ;;  %s502_s1 = scalar_lea.vmem [#allocation14], %s5707_s29 }
0x2505   : > { %5483 = vmatpush1.msra.mxu1 %v5424_v35 }
0x2506   : > { %5484 = vmatprep.subr.mxu1 %v5423_v36 }
0x2507   : > { %5485 = vmatpush1.msra.mxu1 %v5422_v37 }
0x2508   : > { %5344 = vrot.lane.b32.xlu1 %v5252_v4, %s7312_s4  ;;  %5339 = vrot.lane.b32.xlu0 %v5252_v4, %s7313_s23  ;;  %s5571_s4 = sshll.u32 %s502_s1, 4  ;;  %s5572_s4 = int_to_ptr.vmem [resolvable:$true] %s5571_s4 }
0x2509   : > { %5486 = vmatprep.subr.mxu1 %v5421_v46 }
0x250a   : > { %5487 = vmatpush1.msra.mxu1 %v5420_v38 }
0x250b   : > { %5488 = vmatprep.subr.mxu1 %v5419_v51 }
0x250c   : > { %5354 = vrot.lane.b32.xlu1 %v5252_v4, %s7314_s19  ;;  %5349 = vrot.lane.b32.xlu0 %v5252_v4, %s7315_s30  ;;  %s5569_s30 = scalar_lea.hbm %s10002_s12, %s6113_s15 }
0x250d   : > { %5489 = vmatpush1.msra.mxu1 %v5418_v15 }
0x250e   : > { %5490 = vmatprep.subr.mxu1 %v5417_v59 }
0x250f   : > { %5491 = vmatpush1.msra.mxu1 %v5416_v39 }
0x2510   : > { %5364 = vrot.lane.b32.xlu1 %v5252_v4, %s7316_s25  ;;  %5359 = vrot.lane.b32.xlu0 %v5252_v4, %s7317_s10  ;;  %s5557_s25 = scalar_lea.sflag [#allocation5], %s7548_s8  ;;  %s7184_s10 = scalar_lea.vmem %s5572_s4, 32 }
0x2511   : > { %p7185_p8 = scmp.ne.s32.totalorder %s5572_s4, %s7184_s10 }
0x2513   : > { %p7186_p13 = pnand %p7185_p8, %p10104_p11 }
0x2514   : > { %5375 = vrot.lane.b32.xlu1 %v5253_v32, %s10102_s20  ;;  %5369 = vrot.lane.b32.xlu0 %v5252_v4, %s7318_s2  ;;  %s7324_s20 = smov [#allocation14]  }
0x2515   : > { %p7187_p0 = pneg %p7186_p13  ;;  %s7188_s27 = sshll.u32 %s7324_s20, 4  ;;  %s7189_s27 = int_to_ptr.vmem [resolvable:$false] %s7188_s27 }
0x2516   : > { %s7190_s2 = scalar_lea.vmem %s7189_s27, 64  ;;  %p7191_p5 = scmp.lt.s32.totalorder %s5572_s4, %s7189_s27 }
0x2517   : > { %p7192_p9 = scmp.lt.s32.totalorder %s7190_s2, %s7184_s10 }
0x2518   : > { %5385 = vrot.lane.b32.xlu1 %v5253_v32, %s7319_s0  ;;  %5380 = vrot.lane.b32.xlu0 %v5253_v32, %s7320_s3 }
0x2519   : > { %p7193_p10 = por %p7192_p9, %p7191_p5 }
0x251b   : > { %p7194_p1 = pnand %p7193_p10, %p7187_p0 }
0x251c   : > { %5395 = vrot.lane.b32.xlu1 %v5253_v32, %s10103_s18  ;;  %5390 = vrot.lane.b32.xlu0 %v5253_v32, %s7321_s6 }
0x2520   : > { %5405 = vrot.lane.b32.xlu1 %v5253_v32, %s10091_s14  ;;  %5400 = vrot.lane.b32.xlu0 %v5253_v32, %s7322_s28 }
0x2524   : > { %5410 = vrot.lane.b32.xlu0 %v5253_v32, %s10094_s26 }
0x255a   : > { %v5263_v22 = vpop.permute.xlu1 %5262  ;;  %v5258_v9 = vpop.permute.xlu0 %5257 }
0x255b   : > { %5261 = vst.msk [vmem:[#allocation2 - $0x1] sm:$0x2] %vm5260_vm7, %v5258_v9  ;;  %vm5342_vm7 = vcmask 583201  }
0x255c   : > { %5266 = vst.msk [vmem:[#allocation2 - $0x2] sm:$0x4] %vm5265_vm8, %v5263_v22  ;;  %vm5347_vm8 = vcmask 617026  }
0x255e   : > { %v5273_v40 = vpop.permute.xlu1 %5272  ;;  %v5268_v41 = vpop.permute.xlu0 %5267 }
0x255f   : > { %5271 = vst.msk [vmem:[#allocation2 - $0x3] sm:$0x8] %vm5270_vm9, %v5268_v41  ;;  %vm5352_vm9 = vcmask 650851  }
0x2560   : > { %5276 = vst.msk [vmem:[#allocation2 - $0x4] sm:$0x10] %vm5275_vm10, %v5273_v40  ;;  %vm5357_vm10 = vcmask 684676  }
0x2562   : > { %v5283_v42 = vpop.permute.xlu1 %5282  ;;  %v5278_v43 = vpop.permute.xlu0 %5277 }
0x2563   : > { %5281 = vst.msk [vmem:[#allocation2 - $0x5] sm:$0x20] %vm5280_vm11, %v5278_v43  ;;  %vm5362_vm11 = vcmask 718501  }
0x2564   : > { %5286 = vst.msk [vmem:[#allocation2 - $0x6] sm:$0x40] %vm5285_vm12, %v5283_v42  ;;  %vm5367_vm12 = vcmask 752326  }
0x2566   : > { %v5294_v45 = vpop.permute.xlu1 %5293  ;;  %v5288_v47 = vpop.permute.xlu0 %5287 }
0x2567   : > { %5291 = vst.msk [vmem:[#allocation2 - $0x7] sm:$0x80] %vm5290_vm14, %v5288_v47  ;;  %vm5372_vm14 = vcmask 786151  }
0x2568   : > { %5297 = vst.msk [vmem:[#allocation2] sm:$0x1] %vm5296_vm2, %v5294_v45  ;;  %vm5378_vm2 = vcmask 811776  }
0x256a   : > { %v5304_v52 = vpop.permute.xlu1 %5303  ;;  %v5299_v21 = vpop.permute.xlu0 %5298 }
0x256b   : > { %5302 = vst.msk [vmem:[#allocation2 - $0x1] sm:$0x2] %vm5301_vm3, %v5299_v21  ;;  %vm5383_vm3 = vcmask 845601  }
0x256c   : > { %5307 = vst.msk [vmem:[#allocation2 - $0x2] sm:$0x4] %vm5306_vm0, %v5304_v52  ;;  %vm5388_vm0 = vcmask 879426  }
0x256e   : > { %v5314_v24 = vpop.permute.xlu1 %5313  ;;  %v5309_v16 = vpop.permute.xlu0 %5308 }
0x256f   : > { %5312 = vst.msk [vmem:[#allocation2 - $0x3] sm:$0x8] %vm5311_vm15, %v5309_v16  ;;  %vm5393_vm15 = vcmask 913251  }
0x2570   : > { %5317 = vst.msk [vmem:[#allocation2 - $0x4] sm:$0x10] %vm5316_vm1, %v5314_v24  ;;  %vm5398_vm1 = vcmask 947076  }
0x2572   : > { %v5324_v53 = vpop.permute.xlu1 %5323  ;;  %v5319_v7 = vpop.permute.xlu0 %5318 }
0x2573   : > { %5322 = vst.msk [vmem:[#allocation2 - $0x5] sm:$0x20] %vm5321_vm4, %v5319_v7  ;;  %vm5403_vm4 = vcmask 980901  }
0x2574   : > { %5327 = vst.msk [vmem:[#allocation2 - $0x6] sm:$0x40] %vm5326_vm5, %v5324_v53  ;;  %vm5408_vm5 = vcmask 1014726  }
0x2576   : > { %v5335_v54 = vpop.permute.xlu1 %5334  ;;  %v5329_v56 = vpop.permute.xlu0 %5328 }
0x2577   : > { %5332 = vst.msk [vmem:[#allocation2 - $0x7] sm:$0x80] %vm5331_vm6, %v5329_v56  ;;  %vm5413_vm6 = vcmask 1048551  }
0x2578   : > { %5338 = vst.msk [vmem:[#allocation2] sm:$0x1] %vm5337_vm13, %v5335_v54  ;;  %vm5553_vm13 = vcmp.lt.s32.totalorder %v539_v8, 256 }
0x257a   : > { %v5345_v44 = vpop.permute.xlu1 %5344  ;;  %v5340_v57 = vpop.permute.xlu0 %5339 }
0x257b   : > { %5343 = vst.msk [vmem:[#allocation2 - $0x1] sm:$0x2] %vm5342_vm7, %v5340_v57 }
0x257c   : > { %5348 = vst.msk [vmem:[#allocation2 - $0x2] sm:$0x4] %vm5347_vm8, %v5345_v44 }
0x257e   : > { %v5355_v60 = vpop.permute.xlu1 %5354  ;;  %v5350_v61 = vpop.permute.xlu0 %5349 }
0x257f   : > { %5353 = vst.msk [vmem:[#allocation2 - $0x3] sm:$0x8] %vm5352_vm9, %v5350_v61 }
0x2580   : > { %5358 = vst.msk [vmem:[#allocation2 - $0x4] sm:$0x10] %vm5357_vm10, %v5355_v60 }
0x2582   : > { %v5365_v17 = vpop.permute.xlu1 %5364  ;;  %v5360_v62 = vpop.permute.xlu0 %5359 }
0x2583   : > { %5363 = vst.msk [vmem:[#allocation2 - $0x5] sm:$0x20] %vm5362_vm11, %v5360_v62 }
0x2584   : > { %5368 = vst.msk [vmem:[#allocation2 - $0x6] sm:$0x40] %vm5367_vm12, %v5365_v17 }
0x2586   : > { %v5376_v63 = vpop.permute.xlu1 %5375  ;;  %v5370_v0 = vpop.permute.xlu0 %5369 }
0x2587   : > { %5373 = vst.msk [vmem:[#allocation2 - $0x7] sm:$0x80] %vm5372_vm14, %v5370_v0 }
0x2588   : > { %5379 = vst.msk [vmem:[#allocation2] sm:$0x1] %vm5378_vm2, %v5376_v63 }
0x258a   : > { %v5386_v1 = vpop.permute.xlu1 %5385  ;;  %v5381_v2 = vpop.permute.xlu0 %5380 }
0x258b   : > { %5384 = vst.msk [vmem:[#allocation2 - $0x1] sm:$0x2] %vm5383_vm3, %v5381_v2 }
0x258c   : > { %5389 = vst.msk [vmem:[#allocation2 - $0x2] sm:$0x4] %vm5388_vm0, %v5386_v1 }
0x258e   : > { %v5396_v3 = vpop.permute.xlu1 %5395  ;;  %v5391_v4 = vpop.permute.xlu0 %5390 }
0x258f   : > { %5394 = vst.msk [vmem:[#allocation2 - $0x3] sm:$0x8] %vm5393_vm15, %v5391_v4 }
0x2590   : > { %5399 = vst.msk [vmem:[#allocation2 - $0x4] sm:$0x10] %vm5398_vm1, %v5396_v3 }
0x2592   : > { %v5406_v49 = vpop.permute.xlu1 %5405  ;;  %v5401_v6 = vpop.permute.xlu0 %5400 }
0x2593   : > { %5404 = vst.msk [vmem:[#allocation2 - $0x5] sm:$0x20] %vm5403_vm4, %v5401_v6 }
0x2594   : > { %5409 = vst.msk [vmem:[#allocation2 - $0x6] sm:$0x40] %vm5408_vm5, %v5406_v49 }
0x2596   : > { %v5411_v26 = vpop.permute.xlu0 %5410 }
0x2597   : > { %5414 = vst.msk [vmem:[#allocation2 - $0x7] sm:$0x80] %vm5413_vm6, %v5411_v26 }
0x259e   : > { %v5415_v11 = vld [vmem:[#allocation2] sm:$0x1] }
0x259f   : > { %5525 = vmatmul.mubr.f32.vlgmr.msra.gmra.mxu1 %v5415_v11 }
0x265f   : > { %v5526_v58 = vpop.f32.mrf.mxu1 }
0x2660   : > { %v5527_v27 = vadd.f32 %v5526_v58, %v5453_v14 }
0x2661   : > { %v5528_v48 = vpop.f32.mrf.mxu1 }
0x2662   : > { %v5529_v10 = vadd.f32 %v5528_v48, %v5457_v19  ;;  %v5531_v32 = vmax.f32 %v5527_v27, 0.0 }
0x2664   : > { %v5532_v33 = vmax.f32 %v5529_v10, 0.0 }
0x2666   : > { %v5535_v23 = vcombine.low %v5531_v32, %v5532_v33 }
0x2668   : > { %v5542_v5 = vrot.slane %v5535_v23, %v5541_v20 }
0x266a   : > { %v5549_v29 = vrot.slane %v5542_v5, %v5541_v20 }
0x266c   : > { %5555 = vst.msk [vmem:[%s502_s1] sm:$0x3] %vm5553_vm13, %v5549_v29 }
0x266d   : > { %7197 = shalt.err (!%p7194_p1)
}
0x266e   : > { %s7198_s0 = scalar_lea.hbm %s5569_s30, 32  ;;  %s7202_s18 = scalar_lea.hbm %s10002_s12, 64 }
0x266f   : > { %p7199_p3 = scmp.ne.s32.totalorder %s5569_s30, %s7198_s0  ;;  %p7203_p6 = scmp.lt.s32.totalorder %s5569_s30, %s10002_s12 }
0x2670   : > { %p7204_p2 = scmp.lt.s32.totalorder %s7202_s18, %s7198_s0 }
0x2671   : > { %p7200_p4 = pnand %p7199_p3, %p10104_p11 }
0x2672   : > { %p7205_p7 = por %p7204_p2, %p7203_p6 }
0x2673   : > { %p7201_p12 = pneg %p7200_p4 }
0x2675   : > { %p7206_p8 = pnand %p7205_p7, %p7201_p12 }
0x2677   : > { %7209 = shalt.err (!%p7206_p8)
}
0x2678   : > { %6845 = dma.vmem_to_hbm [thread:$0]  (%p10104_p11), %s5572_s4, 32, %s5569_s30, %s5557_s25  }
0x2679 PF: > { %s5583_s14 = sand.u32 1, %s7248_s21   ;;  %p10105_p13 = scmp.ne.s32.totalorder %s10056_s13, 0 }
0x267a   : > { %p10106_p0 = scmp.ge.s32.totalorder %s7260_s24, 2  ;;  %s5584_s26 = scalar_lea.sflag [#allocation5], %s5583_s14 }
0x267c   : > { %p6868_p5 = pnand %p10106_p0, %p10105_p13 }
0x267e   : > { %p6869_p9 = pneg %p6868_p5 }
0x2680   : > { %7243 = dma.done.wait (%p6869_p9), %s5584_s26, 32  }
0x2681   : > { %7245 = vsyncadd (%p6869_p9), %s5584_s26, 4294967264  ;;  %s10107_s29 = sld [smem:[#allocation20_spill]]  ;;  %p28_p10 = scmp.ge.s32.totalorder %s7491_s16, 4  }
0x2682   : > { %s10108_s23 = sld [smem:[#allocation21_spill]]  ;;  %s10109_s21 = smov %s7252_s22 }
0x2683   : > { %s10111_s24 = smov %s7491_s16  ;;  %30 = sbr.rel (!%p28_p10) target bundleno = 17 (0x11), region = 142 }
0x2687   : > { %s10110_s22 = smov %s10107_s29 }
0x2688   :  { %5589 = vsyncpa [#allocation4], 1 }
0x2689   :  { %5591 = vsyncpa [#allocation4 + $0x1], 1 }
0x268a   :  { %5592 = vsyncpa [#allocation7], 1 }
0x268b   :  { %5593 = vsyncpa [#allocation10], 1 }
0x268c   :  { %5594 = vsyncpa [#allocation13], 1 }
0x268d   :  { %5595 = vsyncpa [#allocation5], 1 }
0x268e   :  { %5597 = vsyncpa [#allocation5 + $0x1], 1 }

</bundles_post_ra>
